<compile_context>
chip_gen: v7x
topology: tpu7x:2x2x1
jax: 0.10.0
libtpu: 0.0.40
codegen_flags: <defaults>
</compile_context>

<pallas_src>
import jax
import jax.numpy as jnp
from jax import lax
from jax.experimental import pallas as pl
from jax.experimental.pallas import tpu as pltpu


_LANE = 128
_MAX_DIL = 18        # largest dilation -> spatial halo size
_PAD_T = _MAX_DIL    # top/bottom halo rows (leading dim, no alignment concern)
_PAD_L = 24          # left halo cols, rounded up to 8 so the interior copy into
                     # the staging buffer is a fully tile-aligned store
_PAD_R = _MAX_DIL    # right halo cols


def _round_up(x, m):
    return ((x + m - 1) // m) * m


def _vmem_limit_bytes():
    # Derive the VMEM budget from the actual chip instead of a hard constant.
    try:
        info = pltpu.get_tpu_info()
        for attr in ("vmem_capacity_bytes", "vmem_size_bytes", "vmem_bytes"):
            cap = getattr(info, attr, None)
            if cap:
                return min(int(0.85 * int(cap)), 128 * 1024 * 1024)
    except Exception:
        pass
    return None


# ------------------------------ Pallas kernel -------------------------------

def _make_kernel(h, wr, w_true, th, cp, dp):
    """Fused ASPP kernel over a tile of `th` image rows (rows = th * wr px)."""
    rows = th * wr
    inv_hw = 1.0 / float(h * w_true)

    def kernel(x_ref, w1_ref, w2_ref, w3_ref, w4_ref,
               b1_ref, b2_ref, b3_ref, b4_ref,
               w5_ref, b5_ref, wc2_ref, wc2p_ref, bc2_ref, wc3_ref, bc3_ref,
               out_ref, stage_ref, x5_ref):
        i = pl.program_id(1)

        # ---- once per image: build the zero-halo staging copy + pooled term ----
        @pl.when(i == 0)
        def _():
            stage_ref[...] = jnp.zeros_like(stage_ref)
            # Tile-aligned interior copy (row offset is a leading dim; column
            # offset 24 and width wr are multiples of 8, channels are full lanes).
            stage_ref[_PAD_T:_PAD_T + h, _PAD_L:_PAD_L + wr, :] = x_ref[...]
            # aspp5: global average pool -> 1x1 conv (+ folded BN) -> ReLU,
            # folded through its conv2 row block into a (1, dp) additive term.
            # (Bilinear upsample of a 1x1 map with align_corners=True is just a
            #  constant broadcast; zero pad columns/channels add 0 to the sum.)
            xs = jnp.sum(x_ref[...].reshape(h * wr, cp).astype(jnp.float32),
                         axis=0, keepdims=True) * inv_hw
            y = jnp.dot(xs.astype(jnp.bfloat16), w5_ref[...],
                        preferred_element_type=jnp.float32) + b5_ref[...]
            y = jnp.maximum(y, 0.0)
            x5_ref[...] = jnp.dot(y.astype(jnp.bfloat16), wc2p_ref[...],
                                  preferred_element_type=jnp.float32)

        r0 = _PAD_T + i * th                 # first staged row of this tile

        def dilated_branch(wt_ref, b_ref, d):
            # 3x3 dilated conv as 9 shifted 1x1 convs (BN folded into wt).
            # The 3 width shifts are materialized once per dilation as
            # (th + 2d)-row bands; the 3 dh taps are cheap leading-dim slices
            # (layout-preserving reshape since wr % 8 == 0).  Accumulation is a
            # plain chain of += dots so v7x can keep it in the MRB.
            acc = None
            for kw, dw in enumerate((-d, 0, d)):
                c0 = _PAD_L + dw
                band = stage_ref[pl.ds(r0 - d, th + 2 * d), c0:c0 + wr, :]
                for kh in range(3):                      # dh = (kh - 1) * d
                    tap = band[kh * d:kh * d + th].reshape(rows, cp)
                    part = jnp.dot(tap, wt_ref[kh * 3 + kw],
                                   preferred_element_type=jnp.float32)
                    acc = part if acc is None else acc + part
            return jnp.maximum(acc + b_ref[...], 0.0)

        # aspp1 (1x1 conv + folded BN + ReLU): the center tap reads straight
        # from the aligned, unpadded input block (no staging slice needed).
        x_center = x_ref[pl.ds(i * th, th), :, :].reshape(rows, cp)
        x1 = jnp.maximum(
            jnp.dot(x_center, w1_ref[...], preferred_element_type=jnp.float32)
            + b1_ref[...], 0.0)

        # concat(x1..x5, channel) @ conv2 == sum of per-branch matmuls against
        # conv2's row blocks (bn2 scale folded in).  Branch activations are
        # consumed immediately to keep liveness low.
        acc = jnp.dot(x1.astype(jnp.bfloat16), wc2_ref[0],
                      preferred_element_type=jnp.float32)
        acc = acc + jnp.dot(dilated_branch(w2_ref, b2_ref, 6).astype(jnp.bfloat16),
                            wc2_ref[1], preferred_element_type=jnp.float32)
        acc = acc + jnp.dot(dilated_branch(w3_ref, b3_ref, 12).astype(jnp.bfloat16),
                            wc2_ref[2], preferred_element_type=jnp.float32)
        acc = acc + jnp.dot(dilated_branch(w4_ref, b4_ref, 18).astype(jnp.bfloat16),
                            wc2_ref[3], preferred_element_type=jnp.float32)
        acc = acc + x5_ref[...]                       # pooled-branch term
        acc = jnp.maximum(acc + bc2_ref[...], 0.0)

        # conv3 (with bias); bf16, lane-dense store.
        out_ref[...] = (jnp.dot(acc.astype(jnp.bfloat16), wc3_ref[...],
                                preferred_element_type=jnp.float32)
                        + bc3_ref[...]).astype(out_ref.dtype)

    return kernel


# -------------------------------- glue (JAX) --------------------------------

def init_params(key, C, depth, num_classes):
    ks = jax.random.split(key, 16)

    def nrm(k, shape, scale=0.1):
        return scale * jax.random.normal(k, shape, dtype=jnp.float32)

    p = {}
    p["w1"] = nrm(ks[0], (C, depth))             # aspp1 1x1 conv (in, out)
    p["w2"] = nrm(ks[1], (9 * C, depth))         # aspp2 3x3, layout (kh*kw*C, out)
    p["w3"] = nrm(ks[2], (9 * C, depth))         # aspp3
    p["w4"] = nrm(ks[3], (9 * C, depth))         # aspp4
    p["w5"] = nrm(ks[4], (C, depth))             # aspp5 1x1 conv on pooled feats
    p["wc2"] = nrm(ks[5], (5 * depth, depth))    # conv2 1x1 over concat
    p["wc3"] = nrm(ks[6], (depth, num_classes))  # conv3 1x1 (has bias)
    p["bc3"] = nrm(ks[7], (1, num_classes))

    def bn(k, ch):
        k1, k2, k3, k4 = jax.random.split(k, 4)
        gamma = 1.0 + 0.1 * jax.random.normal(k1, (1, ch), jnp.float32)
        beta = 0.1 * jax.random.normal(k2, (1, ch), jnp.float32)
        mean = 0.1 * jax.random.normal(k3, (1, ch), jnp.float32)
        var = jnp.abs(1.0 + 0.1 * jax.random.normal(k4, (1, ch), jnp.float32))
        scale = gamma * lax.rsqrt(var + 1e-5)
        return scale, beta - mean * scale

    for i, k in zip(range(1, 6), ks[8:13]):
        p[f"s{i}"], p[f"b{i}"] = bn(k, depth)
    p["sc2"], p["bc2"] = bn(ks[13], depth)
    return p


def aspp_forward_pallas(x_nchw, p, depth, num_classes, row_block=None):
    n, c, h, w = x_nchw.shape
    th = h if row_block is None else row_block
    assert h % th == 0, "row_block must divide H"
    # Perf note: pick row_block so rows = th*wr >= 512 at production sizes, and
    # use depth as a multiple of 256 to fill the 256-wide v6e/v7x MXU.

    wr = _round_up(w, 8)                    # sublane-friendly width
    cp = _round_up(c, _LANE)
    dp = _round_up(depth, _LANE)
    ncp = _round_up(num_classes, _LANE)
    hp = h + 2 * _PAD_T
    wp = _PAD_L + wr + _PAD_R
    rows = th * wr

    bf16, f32 = jnp.bfloat16, jnp.float32

    def pad_to(a, shape, dtype):
        return jnp.pad(a, [(0, t - s) for s, t in zip(a.shape, shape)]).astype(dtype)

    # ---- fold BN scales into conv weights; zero-pad channel dims to 128 ----
    w1f = pad_to(p["w1"] * p["s1"], (cp, dp), bf16)
    w2f = pad_to((p["w2"] * p["s2"]).reshape(9, c, depth), (9, cp, dp), bf16)
    w3f = pad_to((p["w3"] * p["s3"]).reshape(9, c, depth), (9, cp, dp), bf16)
    w4f = pad_to((p["w4"] * p["s4"]).reshape(9, c, depth), (9, cp, dp), bf16)
    w5f = pad_to(p["w5"] * p["s5"], (cp, dp), bf16)
    b1f = pad_to(p["b1"], (1, dp), f32)
    b2f = pad_to(p["b2"], (1, dp), f32)
    b3f = pad_to(p["b3"], (1, dp), f32)
    b4f = pad_to(p["b4"], (1, dp), f32)
    b5f = pad_to(p["b5"], (1, dp), f32)

    wc2_scaled = (p["wc2"] * p["sc2"]).reshape(5, depth, depth)   # fold bn2 scale
    wc2f = pad_to(wc2_scaled[:4], (4, dp, dp), bf16)              # branches 1..4
    wc2p = pad_to(wc2_scaled[4], (dp, dp), bf16)                  # pooled branch
    bc2f = pad_to(p["bc2"], (1, dp), f32)
    wc3f = pad_to(p["wc3"], (dp, ncp), bf16)
    bc3f = pad_to(p["bc3"], (1, ncp), f32)

    # ---- activations: NHWC bf16; only lane/sublane padding (W -> mult of 8,
    # C -> mult of 128).  The 18-px spatial halo is built in-kernel. ----
    x_nhwc = jnp.transpose(x_nchw, (0, 2, 3, 1)).astype(bf16)
    x_in = jnp.pad(x_nhwc, ((0, 0), (0, 0), (0, wr - w), (0, cp - c)))

    kernel = _make_kernel(h, wr, w, th, cp, dp)
    grid = (n, h // th)

    def const_spec(a):
        idx = lambda b, i: (0,) * a.ndim
        try:   # constants never change block index -> single-buffered
            return pl.BlockSpec(a.shape, idx, pipeline_mode=pl.Buffered(1))
        except Exception:  # older jax without pipeline_mode
            return pl.BlockSpec(a.shape, idx)

    compiler_kwargs = dict(
        # Image axis parallel (megacore splits by image, preserving the
        # once-per-image staging/pool); row-tile axis must be sequential.
        dimension_semantics=("parallel", "arbitrary"))
    vmem_limit = _vmem_limit_bytes()
    if vmem_limit is not None:
        compiler_kwargs["vmem_limit_bytes"] = vmem_limit

    out_flat = pl.pallas_call(
        kernel,
        grid=grid,
        in_specs=[
            # Whole (unpadded) image per grid step: block index constant across
            # row tiles -> DMA'd once per image and revisited; default double
            # buffer lets the next image's DMA overlap the current image's tiles.
            pl.BlockSpec((None, h, wr, cp), lambda b, i: (b, 0, 0, 0)),
            const_spec(w1f), const_spec(w2f), const_spec(w3f), const_spec(w4f),
            const_spec(b1f), const_spec(b2f), const_spec(b3f), const_spec(b4f),
            const_spec(w5f), const_spec(b5f),
            const_spec(wc2f), const_spec(wc2p), const_spec(bc2f),
            const_spec(wc3f), const_spec(bc3f),
        ],
        out_specs=pl.BlockSpec((None, rows, ncp), lambda b, i: (b, i, 0)),
        out_shape=jax.ShapeDtypeStruct((n, h * wr, ncp), bf16),
        scratch_shapes=[
            pltpu.VMEM((hp, wp, cp), bf16),     # zero-halo staging image
            pltpu.VMEM((1, dp), f32),           # pooled-branch additive term
        ],
        compiler_params=pltpu.CompilerParams(**compiler_kwargs),
    )(x_in, w1f, w2f, w3f, w4f, b1f, b2f, b3f, b4f, w5f, b5f,
      wc2f, wc2p, bc2f, wc3f, bc3f)

    out = out_flat.reshape(n, h, wr, ncp)[:, :, :w, :num_classes].astype(f32)
    return jnp.transpose(out, (0, 3, 1, 2))      # back to NCHW (PyTorch convention)


def aspp_forward_ref(x_nchw, p, depth, num_classes):
    """Pure-JAX f32 reference (lax.conv based) for validation."""
    n, c, h, w = x_nchw.shape
    x = jnp.transpose(x_nchw, (0, 2, 3, 1)).astype(jnp.float32)

    def conv1x1(inp, wmat):
        return jnp.einsum('nhwc,cd->nhwd', inp, wmat)

    def conv3x3(inp, wmat, dil):
        w_hwio = wmat.reshape(3, 3, c, depth)
        return lax.conv_general_dilated(inp, w_hwio, (1, 1),
                                        [(dil, dil), (dil, dil)],
                                        rhs_dilation=(dil, dil),
                                        dimension_numbers=('NHWC', 'HWIO', 'NHWC'))

    def bnrelu(y, s, b):
        return jnp.maximum(y * s[0] + b[0], 0.0)

    x1 = bnrelu(conv1x1(x, p["w1"]), p["s1"], p["b1"])
    x2 = bnrelu(conv3x3(x, p["w2"], 6), p["s2"], p["b2"])
    x3 = bnrelu(conv3x3(x, p["w3"], 12), p["s3"], p["b3"])
    x4 = bnrelu(conv3x3(x, p["w4"], 18), p["s4"], p["b4"])
    pooled = jnp.mean(x, axis=(1, 2))
    x5 = bnrelu(pooled @ p["w5"], p["s5"], p["b5"])
    x5 = jnp.broadcast_to(x5[:, None, None, :], (n, h, w, depth))
    cat = jnp.concatenate([x1, x2, x3, x4, x5], axis=-1)
    hmid = bnrelu(jnp.einsum('nhwc,cd->nhwd', cat, p["wc2"]), p["sc2"], p["bc2"])
    out = jnp.einsum('nhwc,cd->nhwd', hmid, p["wc3"]) + p["bc3"][0]
    return jnp.transpose(out, (0, 3, 1, 2))


if __name__ == "__main__":
    key = jax.random.PRNGKey(0)
    k_x, k_p, k_x2, k_p2 = jax.random.split(key, 4)

    # Case 1: 16x16 map, 2 images, row_block=8 -> grid (2, 2) exercises the
    # tiled path and the per-image staging / pooled-term carry.
    N, C, H, W = 2, 4, 16, 16
    DEPTH, NUM_CLASSES = 8, 3
    x = jax.random.normal(k_x, (N, C, H, W), dtype=jnp.float32)
    params = init_params(k_p, C, DEPTH, NUM_CLASSES)
    out = jax.block_until_ready(
        aspp_forward_pallas(x, params, DEPTH, NUM_CLASSES, row_block=8))
    ref = aspp_forward_ref(x, params, DEPTH, NUM_CLASSES)
    assert out.shape == (N, NUM_CLASSES, H, W), out.shape
    err1 = float(jnp.max(jnp.abs(out - ref)))
    assert jnp.allclose(out, ref, rtol=5e-2, atol=5e-2), \
        f"case1 max abs err = {err1}"     # bf16 compute vs f32 reference

    # Case 2: W not a multiple of 8 (DeepLab-style odd feature maps).
    N2, C2, H2, W2 = 1, 4, 10, 15
    x2 = jax.random.normal(k_x2, (N2, C2, H2, W2), dtype=jnp.float32)
    params2 = init_params(k_p2, C2, DEPTH, NUM_CLASSES)
    out2 = jax.block_until_ready(
        aspp_forward_pallas(x2, params2, DEPTH, NUM_CLASSES, row_block=5))
    ref2 = aspp_forward_ref(x2, params2, DEPTH, NUM_CLASSES)
    assert out2.shape == (N2, NUM_CLASSES, H2, W2), out2.shape
    err2 = float(jnp.max(jnp.abs(out2 - ref2)))
    assert jnp.allclose(out2, ref2, rtol=5e-2, atol=5e-2), \
        f"case2 max abs err = {err2}"

    print("KERNEL_OK")
</pallas_src>

<mosaic_0001>
module attributes {stable_mosaic.version = 11 : i64} {
  func.func @kernel(%arg0: i32, %arg1: i32, %arg2: memref<1x16x16x128xbf16, #tpu.memory_space<vmem>>, %arg3: memref<128x128xbf16, #tpu.memory_space<vmem>>, %arg4: memref<9x128x128xbf16, #tpu.memory_space<vmem>>, %arg5: memref<9x128x128xbf16, #tpu.memory_space<vmem>>, %arg6: memref<9x128x128xbf16, #tpu.memory_space<vmem>>, %arg7: memref<1x128xf32, #tpu.memory_space<vmem>>, %arg8: memref<1x128xf32, #tpu.memory_space<vmem>>, %arg9: memref<1x128xf32, #tpu.memory_space<vmem>>, %arg10: memref<1x128xf32, #tpu.memory_space<vmem>>, %arg11: memref<128x128xbf16, #tpu.memory_space<vmem>>, %arg12: memref<1x128xf32, #tpu.memory_space<vmem>>, %arg13: memref<4x128x128xbf16, #tpu.memory_space<vmem>>, %arg14: memref<128x128xbf16, #tpu.memory_space<vmem>>, %arg15: memref<1x128xf32, #tpu.memory_space<vmem>>, %arg16: memref<128x128xbf16, #tpu.memory_space<vmem>>, %arg17: memref<1x128xf32, #tpu.memory_space<vmem>>, %arg18: memref<1x128x128xbf16, #tpu.memory_space<vmem>>, %arg19: memref<52x58x128xbf16, #tpu.memory_space<vmem>>, %arg20: memref<1x128xf32, #tpu.memory_space<vmem>>) attributes {dimension_semantics = [#tpu.dimension_semantics<parallel>, #tpu.dimension_semantics<arbitrary>], iteration_bounds = array<i64: 2, 2>, scalar_prefetch = 0 : i64, scratch_operands = 2 : i64, tpu.core_type = #tpu.core_type<tc>, window_params = [{transform_indices = @transform_0, window_bounds = array<i64: 1, 16, 16, 128>}, {pipeline_mode = #tpu.pipeline_mode<synchronous>, transform_indices = @transform_1, window_bounds = array<i64: 128, 128>}, {pipeline_mode = #tpu.pipeline_mode<synchronous>, transform_indices = @transform_2, window_bounds = array<i64: 9, 128, 128>}, {pipeline_mode = #tpu.pipeline_mode<synchronous>, transform_indices = @transform_3, window_bounds = array<i64: 9, 128, 128>}, {pipeline_mode = #tpu.pipeline_mode<synchronous>, transform_indices = @transform_4, window_bounds = array<i64: 9, 128, 128>}, {pipeline_mode = #tpu.pipeline_mode<synchronous>, transform_indices = @transform_5, window_bounds = array<i64: 1, 128>}, {pipeline_mode = #tpu.pipeline_mode<synchronous>, transform_indices = @transform_6, window_bounds = array<i64: 1, 128>}, {pipeline_mode = #tpu.pipeline_mode<synchronous>, transform_indices = @transform_7, window_bounds = array<i64: 1, 128>}, {pipeline_mode = #tpu.pipeline_mode<synchronous>, transform_indices = @transform_8, window_bounds = array<i64: 1, 128>}, {pipeline_mode = #tpu.pipeline_mode<synchronous>, transform_indices = @transform_9, window_bounds = array<i64: 128, 128>}, {pipeline_mode = #tpu.pipeline_mode<synchronous>, transform_indices = @transform_10, window_bounds = array<i64: 1, 128>}, {pipeline_mode = #tpu.pipeline_mode<synchronous>, transform_indices = @transform_11, window_bounds = array<i64: 4, 128, 128>}, {pipeline_mode = #tpu.pipeline_mode<synchronous>, transform_indices = @transform_12, window_bounds = array<i64: 128, 128>}, {pipeline_mode = #tpu.pipeline_mode<synchronous>, transform_indices = @transform_13, window_bounds = array<i64: 1, 128>}, {pipeline_mode = #tpu.pipeline_mode<synchronous>, transform_indices = @transform_14, window_bounds = array<i64: 128, 128>}, {pipeline_mode = #tpu.pipeline_mode<synchronous>, transform_indices = @transform_15, window_bounds = array<i64: 1, 128>}, {transform_indices = @transform_16, window_bounds = array<i64: 1, 128, 128>}]} {
    %c0_i32 = arith.constant 0 : i32
    %0 = arith.cmpi eq, %arg1, %c0_i32 : i32
    %1 = arith.extui %0 : i1 to i32
    %c0_i32_0 = arith.constant 0 : i32
    %2 = arith.cmpi ne, %1, %c0_i32_0 : i32
    scf.if %2 {
      %cst_166 = arith.constant 0.000000e+00 : bf16
      %255 = vector.broadcast %cst_166 : bf16 to vector<52x58x128xbf16>
      %c0_167 = arith.constant 0 : index
      %c0_168 = arith.constant 0 : index
      %c0_169 = arith.constant 0 : index
      %256 = vector.load %arg19[%c0_167, %c0_168, %c0_169] : memref<52x58x128xbf16, #tpu.memory_space<vmem>>, vector<52x58x128xbf16>
      tpu.vector_store %arg19[%c0_167, %c0_168, %c0_169], %255 {strides = array<i32>} : memref<52x58x128xbf16, #tpu.memory_space<vmem>>, vector<52x58x128xbf16>,
      %c0_170 = arith.constant 0 : index
      %c0_171 = arith.constant 0 : index
      %c0_172 = arith.constant 0 : index
      %c0_173 = arith.constant 0 : index
      %257 = vector.load %arg2[%c0_170, %c0_171, %c0_172, %c0_173] : memref<1x16x16x128xbf16, #tpu.memory_space<vmem>>, vector<1x16x16x128xbf16>
      %258 = vector.shape_cast %257 : vector<1x16x16x128xbf16> to vector<16x16x128xbf16>
      %c18_174 = arith.constant 18 : index
      %c24_175 = arith.constant 24 : index
      %c0_176 = arith.constant 0 : index
      %259 = vector.load %arg19[%c18_174, %c24_175, %c0_176] : memref<52x58x128xbf16, #tpu.memory_space<vmem>>, vector<16x16x128xbf16>
      tpu.vector_store %arg19[%c18_174, %c24_175, %c0_176], %258 {strides = array<i32>} : memref<52x58x128xbf16, #tpu.memory_space<vmem>>, vector<16x16x128xbf16>,
      %c0_177 = arith.constant 0 : index
      %c0_178 = arith.constant 0 : index
      %c0_179 = arith.constant 0 : index
      %c0_180 = arith.constant 0 : index
      %260 = vector.load %arg2[%c0_177, %c0_178, %c0_179, %c0_180] : memref<1x16x16x128xbf16, #tpu.memory_space<vmem>>, vector<1x16x16x128xbf16>
      %261 = vector.shape_cast %260 : vector<1x16x16x128xbf16> to vector<16x16x128xbf16>
      %262 = vector.shape_cast %261 : vector<16x16x128xbf16> to vector<256x128xbf16>
      %263 = arith.extf %262 : vector<256x128xbf16> to vector<256x128xf32>
      %cst_181 = arith.constant dense<0.000000e+00> : vector<128xf32>
      %264 = vector.multi_reduction <add>, %263, %cst_181 [0] : vector<256x128xf32> to vector<128xf32>
      %265 = vector.shape_cast %264 : vector<128xf32> to vector<1x128xf32>
      %cst_182 = arith.constant 3.906250e-03 : f32
      %266 = vector.broadcast %cst_182 : f32 to vector<1x128xf32>
      %267 = arith.mulf %265, %266 : vector<1x128xf32>
      %268 = arith.truncf %267 : vector<1x128xf32> to vector<1x128xbf16>
      %c0_183 = arith.constant 0 : index
      %c0_184 = arith.constant 0 : index
      %269 = vector.load %arg11[%c0_183, %c0_184] : memref<128x128xbf16, #tpu.memory_space<vmem>>, vector<128x128xbf16>
      %cst_185 = arith.constant dense<0.000000e+00> : vector<1x128xf32>
      %270 = tpu.matmul %268, %269, %cst_185 {dimension_numbers = #tpu.dot_dimension_numbers<[1], [0], [0], [1], [0, 0, 1, 1], [], []>} : vector<1x128xbf16>, vector<128x128xbf16>, vector<1x128xf32> -> vector<1x128xf32>
      %c0_186 = arith.constant 0 : index
      %c0_187 = arith.constant 0 : index
      %271 = vector.load %arg12[%c0_186, %c0_187] : memref<1x128xf32, #tpu.memory_space<vmem>>, vector<1x128xf32>
      %272 = arith.addf %270, %271 : vector<1x128xf32>
      %cst_188 = arith.constant 0.000000e+00 : f32
      %273 = vector.broadcast %cst_188 : f32 to vector<1x128xf32>
      %274 = arith.maximumf %272, %273 : vector<1x128xf32>
      %275 = arith.truncf %274 : vector<1x128xf32> to vector<1x128xbf16>
      %c0_189 = arith.constant 0 : index
      %c0_190 = arith.constant 0 : index
      %276 = vector.load %arg14[%c0_189, %c0_190] : memref<128x128xbf16, #tpu.memory_space<vmem>>, vector<128x128xbf16>
      %cst_191 = arith.constant dense<0.000000e+00> : vector<1x128xf32>
      %277 = tpu.matmul %275, %276, %cst_191 {dimension_numbers = #tpu.dot_dimension_numbers<[1], [0], [0], [1], [0, 0, 1, 1], [], []>} : vector<1x128xbf16>, vector<128x128xbf16>, vector<1x128xf32> -> vector<1x128xf32>
      %c0_192 = arith.constant 0 : index
      %c0_193 = arith.constant 0 : index
      %278 = vector.load %arg20[%c0_192, %c0_193] : memref<1x128xf32, #tpu.memory_space<vmem>>, vector<1x128xf32>
      tpu.vector_store %arg20[%c0_192, %c0_193], %277 {strides = array<i32>} : memref<1x128xf32, #tpu.memory_space<vmem>>, vector<1x128xf32>,
    } else {
    }
    %c8_i32 = arith.constant 8 : i32
    %3 = arith.muli %arg1, %c8_i32 : i32
    %c18_i32 = arith.constant 18 : i32
    %4 = arith.addi %c18_i32, %3 : i32
    %c8_i32_1 = arith.constant 8 : i32
    %5 = arith.muli %arg1, %c8_i32_1 : i32
    %c0 = arith.constant 0 : index
    %6 = arith.index_cast %5 : i32 to index
    %c0_2 = arith.constant 0 : index
    %c0_3 = arith.constant 0 : index
    %7 = vector.load %arg2[%c0, %6, %c0_2, %c0_3] : memref<1x16x16x128xbf16, #tpu.memory_space<vmem>>, vector<1x8x16x128xbf16>
    %8 = vector.shape_cast %7 : vector<1x8x16x128xbf16> to vector<8x16x128xbf16>
    %9 = vector.shape_cast %8 : vector<8x16x128xbf16> to vector<128x128xbf16>
    %c0_4 = arith.constant 0 : index
    %c0_5 = arith.constant 0 : index
    %10 = vector.load %arg3[%c0_4, %c0_5] : memref<128x128xbf16, #tpu.memory_space<vmem>>, vector<128x128xbf16>
    %cst = arith.constant dense<0.000000e+00> : vector<128x128xf32>
    %11 = tpu.matmul %9, %10, %cst {dimension_numbers = #tpu.dot_dimension_numbers<[1], [0], [0], [1], [0, 0, 1, 1], [], []>} : vector<128x128xbf16>, vector<128x128xbf16>, vector<128x128xf32> -> vector<128x128xf32>
    %c0_6 = arith.constant 0 : index
    %c0_7 = arith.constant 0 : index
    %12 = vector.load %arg7[%c0_6, %c0_7] : memref<1x128xf32, #tpu.memory_space<vmem>>, vector<1x128xf32>
    %13 = vector.broadcast %12 : vector<1x128xf32> to vector<128x128xf32>
    %14 = arith.addf %11, %13 : vector<128x128xf32>
    %cst_8 = arith.constant 0.000000e+00 : f32
    %15 = vector.broadcast %cst_8 : f32 to vector<128x128xf32>
    %16 = arith.maximumf %14, %15 : vector<128x128xf32>
    %17 = arith.truncf %16 : vector<128x128xf32> to vector<128x128xbf16>
    %c0_9 = arith.constant 0 : index
    %c0_10 = arith.constant 0 : index
    %c0_11 = arith.constant 0 : index
    %18 = vector.load %arg13[%c0_9, %c0_10, %c0_11] : memref<4x128x128xbf16, #tpu.memory_space<vmem>>, vector<1x128x128xbf16>
    %19 = vector.shape_cast %18 : vector<1x128x128xbf16> to vector<128x128xbf16>
    %cst_12 = arith.constant dense<0.000000e+00> : vector<128x128xf32>
    %20 = tpu.matmul %17, %19, %cst_12 {dimension_numbers = #tpu.dot_dimension_numbers<[1], [0], [0], [1], [0, 0, 1, 1], [], []>} : vector<128x128xbf16>, vector<128x128xbf16>, vector<128x128xf32> -> vector<128x128xf32>
    %c6_i32 = arith.constant 6 : i32
    %21 = arith.subi %4, %c6_i32 : i32
    %22 = arith.index_cast %21 : i32 to index
    %c18 = arith.constant 18 : index
    %c0_13 = arith.constant 0 : index
    %23 = vector.load %arg19[%22, %c18, %c0_13] : memref<52x58x128xbf16, #tpu.memory_space<vmem>>, vector<20x16x128xbf16>
    %24 = vector.extract_strided_slice %23 {offsets = [0, 0, 0], sizes = [8, 16, 128], strides = [1, 1, 1]} : vector<20x16x128xbf16> to vector<8x16x128xbf16>
    %25 = vector.shape_cast %24 : vector<8x16x128xbf16> to vector<128x128xbf16>
    %c0_14 = arith.constant 0 : index
    %c0_15 = arith.constant 0 : index
    %c0_16 = arith.constant 0 : index
    %26 = vector.load %arg4[%c0_14, %c0_15, %c0_16] : memref<9x128x128xbf16, #tpu.memory_space<vmem>>, vector<1x128x128xbf16>
    %27 = vector.shape_cast %26 : vector<1x128x128xbf16> to vector<128x128xbf16>
    %cst_17 = arith.constant dense<0.000000e+00> : vector<128x128xf32>
    %28 = tpu.matmul %25, %27, %cst_17 {dimension_numbers = #tpu.dot_dimension_numbers<[1], [0], [0], [1], [0, 0, 1, 1], [], []>} : vector<128x128xbf16>, vector<128x128xbf16>, vector<128x128xf32> -> vector<128x128xf32>
    %29 = vector.extract_strided_slice %23 {offsets = [6, 0, 0], sizes = [8, 16, 128], strides = [1, 1, 1]} : vector<20x16x128xbf16> to vector<8x16x128xbf16>
    %30 = vector.shape_cast %29 : vector<8x16x128xbf16> to vector<128x128xbf16>
    %c3 = arith.constant 3 : index
    %c0_18 = arith.constant 0 : index
    %c0_19 = arith.constant 0 : index
    %31 = vector.load %arg4[%c3, %c0_18, %c0_19] : memref<9x128x128xbf16, #tpu.memory_space<vmem>>, vector<1x128x128xbf16>
    %32 = vector.shape_cast %31 : vector<1x128x128xbf16> to vector<128x128xbf16>
    %cst_20 = arith.constant dense<0.000000e+00> : vector<128x128xf32>
    %33 = tpu.matmul %30, %32, %cst_20 {dimension_numbers = #tpu.dot_dimension_numbers<[1], [0], [0], [1], [0, 0, 1, 1], [], []>} : vector<128x128xbf16>, vector<128x128xbf16>, vector<128x128xf32> -> vector<128x128xf32>
    %34 = arith.addf %28, %33 : vector<128x128xf32>
    %35 = vector.extract_strided_slice %23 {offsets = [12, 0, 0], sizes = [8, 16, 128], strides = [1, 1, 1]} : vector<20x16x128xbf16> to vector<8x16x128xbf16>
    %36 = vector.shape_cast %35 : vector<8x16x128xbf16> to vector<128x128xbf16>
    %c6 = arith.constant 6 : index
    %c0_21 = arith.constant 0 : index
    %c0_22 = arith.constant 0 : index
    %37 = vector.load %arg4[%c6, %c0_21, %c0_22] : memref<9x128x128xbf16, #tpu.memory_space<vmem>>, vector<1x128x128xbf16>
    %38 = vector.shape_cast %37 : vector<1x128x128xbf16> to vector<128x128xbf16>
    %cst_23 = arith.constant dense<0.000000e+00> : vector<128x128xf32>
    %39 = tpu.matmul %36, %38, %cst_23 {dimension_numbers = #tpu.dot_dimension_numbers<[1], [0], [0], [1], [0, 0, 1, 1], [], []>} : vector<128x128xbf16>, vector<128x128xbf16>, vector<128x128xf32> -> vector<128x128xf32>
    %40 = arith.addf %34, %39 : vector<128x128xf32>
    %c6_i32_24 = arith.constant 6 : i32
    %41 = arith.subi %4, %c6_i32_24 : i32
    %42 = arith.index_cast %41 : i32 to index
    %c24 = arith.constant 24 : index
    %c0_25 = arith.constant 0 : index
    %43 = vector.load %arg19[%42, %c24, %c0_25] : memref<52x58x128xbf16, #tpu.memory_space<vmem>>, vector<20x16x128xbf16>
    %44 = vector.extract_strided_slice %43 {offsets = [0, 0, 0], sizes = [8, 16, 128], strides = [1, 1, 1]} : vector<20x16x128xbf16> to vector<8x16x128xbf16>
    %45 = vector.shape_cast %44 : vector<8x16x128xbf16> to vector<128x128xbf16>
    %c1 = arith.constant 1 : index
    %c0_26 = arith.constant 0 : index
    %c0_27 = arith.constant 0 : index
    %46 = vector.load %arg4[%c1, %c0_26, %c0_27] : memref<9x128x128xbf16, #tpu.memory_space<vmem>>, vector<1x128x128xbf16>
    %47 = vector.shape_cast %46 : vector<1x128x128xbf16> to vector<128x128xbf16>
    %cst_28 = arith.constant dense<0.000000e+00> : vector<128x128xf32>
    %48 = tpu.matmul %45, %47, %cst_28 {dimension_numbers = #tpu.dot_dimension_numbers<[1], [0], [0], [1], [0, 0, 1, 1], [], []>} : vector<128x128xbf16>, vector<128x128xbf16>, vector<128x128xf32> -> vector<128x128xf32>
    %49 = arith.addf %40, %48 : vector<128x128xf32>
    %50 = vector.extract_strided_slice %43 {offsets = [6, 0, 0], sizes = [8, 16, 128], strides = [1, 1, 1]} : vector<20x16x128xbf16> to vector<8x16x128xbf16>
    %51 = vector.shape_cast %50 : vector<8x16x128xbf16> to vector<128x128xbf16>
    %c4 = arith.constant 4 : index
    %c0_29 = arith.constant 0 : index
    %c0_30 = arith.constant 0 : index
    %52 = vector.load %arg4[%c4, %c0_29, %c0_30] : memref<9x128x128xbf16, #tpu.memory_space<vmem>>, vector<1x128x128xbf16>
    %53 = vector.shape_cast %52 : vector<1x128x128xbf16> to vector<128x128xbf16>
    %cst_31 = arith.constant dense<0.000000e+00> : vector<128x128xf32>
    %54 = tpu.matmul %51, %53, %cst_31 {dimension_numbers = #tpu.dot_dimension_numbers<[1], [0], [0], [1], [0, 0, 1, 1], [], []>} : vector<128x128xbf16>, vector<128x128xbf16>, vector<128x128xf32> -> vector<128x128xf32>
    %55 = arith.addf %49, %54 : vector<128x128xf32>
    %56 = vector.extract_strided_slice %43 {offsets = [12, 0, 0], sizes = [8, 16, 128], strides = [1, 1, 1]} : vector<20x16x128xbf16> to vector<8x16x128xbf16>
    %57 = vector.shape_cast %56 : vector<8x16x128xbf16> to vector<128x128xbf16>
    %c7 = arith.constant 7 : index
    %c0_32 = arith.constant 0 : index
    %c0_33 = arith.constant 0 : index
    %58 = vector.load %arg4[%c7, %c0_32, %c0_33] : memref<9x128x128xbf16, #tpu.memory_space<vmem>>, vector<1x128x128xbf16>
    %59 = vector.shape_cast %58 : vector<1x128x128xbf16> to vector<128x128xbf16>
    %cst_34 = arith.constant dense<0.000000e+00> : vector<128x128xf32>
    %60 = tpu.matmul %57, %59, %cst_34 {dimension_numbers = #tpu.dot_dimension_numbers<[1], [0], [0], [1], [0, 0, 1, 1], [], []>} : vector<128x128xbf16>, vector<128x128xbf16>, vector<128x128xf32> -> vector<128x128xf32>
    %61 = arith.addf %55, %60 : vector<128x128xf32>
    %c6_i32_35 = arith.constant 6 : i32
    %62 = arith.subi %4, %c6_i32_35 : i32
    %63 = arith.index_cast %62 : i32 to index
    %c30 = arith.constant 30 : index
    %c0_36 = arith.constant 0 : index
    %64 = vector.load %arg19[%63, %c30, %c0_36] : memref<52x58x128xbf16, #tpu.memory_space<vmem>>, vector<20x16x128xbf16>
    %65 = vector.extract_strided_slice %64 {offsets = [0, 0, 0], sizes = [8, 16, 128], strides = [1, 1, 1]} : vector<20x16x128xbf16> to vector<8x16x128xbf16>
    %66 = vector.shape_cast %65 : vector<8x16x128xbf16> to vector<128x128xbf16>
    %c2 = arith.constant 2 : index
    %c0_37 = arith.constant 0 : index
    %c0_38 = arith.constant 0 : index
    %67 = vector.load %arg4[%c2, %c0_37, %c0_38] : memref<9x128x128xbf16, #tpu.memory_space<vmem>>, vector<1x128x128xbf16>
    %68 = vector.shape_cast %67 : vector<1x128x128xbf16> to vector<128x128xbf16>
    %cst_39 = arith.constant dense<0.000000e+00> : vector<128x128xf32>
    %69 = tpu.matmul %66, %68, %cst_39 {dimension_numbers = #tpu.dot_dimension_numbers<[1], [0], [0], [1], [0, 0, 1, 1], [], []>} : vector<128x128xbf16>, vector<128x128xbf16>, vector<128x128xf32> -> vector<128x128xf32>
    %70 = arith.addf %61, %69 : vector<128x128xf32>
    %71 = vector.extract_strided_slice %64 {offsets = [6, 0, 0], sizes = [8, 16, 128], strides = [1, 1, 1]} : vector<20x16x128xbf16> to vector<8x16x128xbf16>
    %72 = vector.shape_cast %71 : vector<8x16x128xbf16> to vector<128x128xbf16>
    %c5 = arith.constant 5 : index
    %c0_40 = arith.constant 0 : index
    %c0_41 = arith.constant 0 : index
    %73 = vector.load %arg4[%c5, %c0_40, %c0_41] : memref<9x128x128xbf16, #tpu.memory_space<vmem>>, vector<1x128x128xbf16>
    %74 = vector.shape_cast %73 : vector<1x128x128xbf16> to vector<128x128xbf16>
    %cst_42 = arith.constant dense<0.000000e+00> : vector<128x128xf32>
    %75 = tpu.matmul %72, %74, %cst_42 {dimension_numbers = #tpu.dot_dimension_numbers<[1], [0], [0], [1], [0, 0, 1, 1], [], []>} : vector<128x128xbf16>, vector<128x128xbf16>, vector<128x128xf32> -> vector<128x128xf32>
    %76 = arith.addf %70, %75 : vector<128x128xf32>
    %77 = vector.extract_strided_slice %64 {offsets = [12, 0, 0], sizes = [8, 16, 128], strides = [1, 1, 1]} : vector<20x16x128xbf16> to vector<8x16x128xbf16>
    %78 = vector.shape_cast %77 : vector<8x16x128xbf16> to vector<128x128xbf16>
    %c8 = arith.constant 8 : index
    %c0_43 = arith.constant 0 : index
    %c0_44 = arith.constant 0 : index
    %79 = vector.load %arg4[%c8, %c0_43, %c0_44] : memref<9x128x128xbf16, #tpu.memory_space<vmem>>, vector<1x128x128xbf16>
    %80 = vector.shape_cast %79 : vector<1x128x128xbf16> to vector<128x128xbf16>
    %cst_45 = arith.constant dense<0.000000e+00> : vector<128x128xf32>
    %81 = tpu.matmul %78, %80, %cst_45 {dimension_numbers = #tpu.dot_dimension_numbers<[1], [0], [0], [1], [0, 0, 1, 1], [], []>} : vector<128x128xbf16>, vector<128x128xbf16>, vector<128x128xf32> -> vector<128x128xf32>
    %82 = arith.addf %76, %81 : vector<128x128xf32>
    %c0_46 = arith.constant 0 : index
    %c0_47 = arith.constant 0 : index
    %83 = vector.load %arg8[%c0_46, %c0_47] : memref<1x128xf32, #tpu.memory_space<vmem>>, vector<1x128xf32>
    %84 = vector.broadcast %83 : vector<1x128xf32> to vector<128x128xf32>
    %85 = arith.addf %82, %84 : vector<128x128xf32>
    %cst_48 = arith.constant 0.000000e+00 : f32
    %86 = vector.broadcast %cst_48 : f32 to vector<128x128xf32>
    %87 = arith.maximumf %85, %86 : vector<128x128xf32>
    %88 = arith.truncf %87 : vector<128x128xf32> to vector<128x128xbf16>
    %c1_49 = arith.constant 1 : index
    %c0_50 = arith.constant 0 : index
    %c0_51 = arith.constant 0 : index
    %89 = vector.load %arg13[%c1_49, %c0_50, %c0_51] : memref<4x128x128xbf16, #tpu.memory_space<vmem>>, vector<1x128x128xbf16>
    %90 = vector.shape_cast %89 : vector<1x128x128xbf16> to vector<128x128xbf16>
    %cst_52 = arith.constant dense<0.000000e+00> : vector<128x128xf32>
    %91 = tpu.matmul %88, %90, %cst_52 {dimension_numbers = #tpu.dot_dimension_numbers<[1], [0], [0], [1], [0, 0, 1, 1], [], []>} : vector<128x128xbf16>, vector<128x128xbf16>, vector<128x128xf32> -> vector<128x128xf32>
    %92 = arith.addf %20, %91 : vector<128x128xf32>
    %c12_i32 = arith.constant 12 : i32
    %93 = arith.subi %4, %c12_i32 : i32
    %94 = arith.index_cast %93 : i32 to index
    %c12 = arith.constant 12 : index
    %c0_53 = arith.constant 0 : index
    %95 = vector.load %arg19[%94, %c12, %c0_53] : memref<52x58x128xbf16, #tpu.memory_space<vmem>>, vector<32x16x128xbf16>
    %96 = vector.extract_strided_slice %95 {offsets = [0, 0, 0], sizes = [8, 16, 128], strides = [1, 1, 1]} : vector<32x16x128xbf16> to vector<8x16x128xbf16>
    %97 = vector.shape_cast %96 : vector<8x16x128xbf16> to vector<128x128xbf16>
    %c0_54 = arith.constant 0 : index
    %c0_55 = arith.constant 0 : index
    %c0_56 = arith.constant 0 : index
    %98 = vector.load %arg5[%c0_54, %c0_55, %c0_56] : memref<9x128x128xbf16, #tpu.memory_space<vmem>>, vector<1x128x128xbf16>
    %99 = vector.shape_cast %98 : vector<1x128x128xbf16> to vector<128x128xbf16>
    %cst_57 = arith.constant dense<0.000000e+00> : vector<128x128xf32>
    %100 = tpu.matmul %97, %99, %cst_57 {dimension_numbers = #tpu.dot_dimension_numbers<[1], [0], [0], [1], [0, 0, 1, 1], [], []>} : vector<128x128xbf16>, vector<128x128xbf16>, vector<128x128xf32> -> vector<128x128xf32>
    %101 = vector.extract_strided_slice %95 {offsets = [12, 0, 0], sizes = [8, 16, 128], strides = [1, 1, 1]} : vector<32x16x128xbf16> to vector<8x16x128xbf16>
    %102 = vector.shape_cast %101 : vector<8x16x128xbf16> to vector<128x128xbf16>
    %c3_58 = arith.constant 3 : index
    %c0_59 = arith.constant 0 : index
    %c0_60 = arith.constant 0 : index
    %103 = vector.load %arg5[%c3_58, %c0_59, %c0_60] : memref<9x128x128xbf16, #tpu.memory_space<vmem>>, vector<1x128x128xbf16>
    %104 = vector.shape_cast %103 : vector<1x128x128xbf16> to vector<128x128xbf16>
    %cst_61 = arith.constant dense<0.000000e+00> : vector<128x128xf32>
    %105 = tpu.matmul %102, %104, %cst_61 {dimension_numbers = #tpu.dot_dimension_numbers<[1], [0], [0], [1], [0, 0, 1, 1], [], []>} : vector<128x128xbf16>, vector<128x128xbf16>, vector<128x128xf32> -> vector<128x128xf32>
    %106 = arith.addf %100, %105 : vector<128x128xf32>
    %107 = vector.extract_strided_slice %95 {offsets = [24, 0, 0], sizes = [8, 16, 128], strides = [1, 1, 1]} : vector<32x16x128xbf16> to vector<8x16x128xbf16>
    %108 = vector.shape_cast %107 : vector<8x16x128xbf16> to vector<128x128xbf16>
    %c6_62 = arith.constant 6 : index
    %c0_63 = arith.constant 0 : index
    %c0_64 = arith.constant 0 : index
    %109 = vector.load %arg5[%c6_62, %c0_63, %c0_64] : memref<9x128x128xbf16, #tpu.memory_space<vmem>>, vector<1x128x128xbf16>
    %110 = vector.shape_cast %109 : vector<1x128x128xbf16> to vector<128x128xbf16>
    %cst_65 = arith.constant dense<0.000000e+00> : vector<128x128xf32>
    %111 = tpu.matmul %108, %110, %cst_65 {dimension_numbers = #tpu.dot_dimension_numbers<[1], [0], [0], [1], [0, 0, 1, 1], [], []>} : vector<128x128xbf16>, vector<128x128xbf16>, vector<128x128xf32> -> vector<128x128xf32>
    %112 = arith.addf %106, %111 : vector<128x128xf32>
    %c12_i32_66 = arith.constant 12 : i32
    %113 = arith.subi %4, %c12_i32_66 : i32
    %114 = arith.index_cast %113 : i32 to index
    %c24_67 = arith.constant 24 : index
    %c0_68 = arith.constant 0 : index
    %115 = vector.load %arg19[%114, %c24_67, %c0_68] : memref<52x58x128xbf16, #tpu.memory_space<vmem>>, vector<32x16x128xbf16>
    %116 = vector.extract_strided_slice %115 {offsets = [0, 0, 0], sizes = [8, 16, 128], strides = [1, 1, 1]} : vector<32x16x128xbf16> to vector<8x16x128xbf16>
    %117 = vector.shape_cast %116 : vector<8x16x128xbf16> to vector<128x128xbf16>
    %c1_69 = arith.constant 1 : index
    %c0_70 = arith.constant 0 : index
    %c0_71 = arith.constant 0 : index
    %118 = vector.load %arg5[%c1_69, %c0_70, %c0_71] : memref<9x128x128xbf16, #tpu.memory_space<vmem>>, vector<1x128x128xbf16>
    %119 = vector.shape_cast %118 : vector<1x128x128xbf16> to vector<128x128xbf16>
    %cst_72 = arith.constant dense<0.000000e+00> : vector<128x128xf32>
    %120 = tpu.matmul %117, %119, %cst_72 {dimension_numbers = #tpu.dot_dimension_numbers<[1], [0], [0], [1], [0, 0, 1, 1], [], []>} : vector<128x128xbf16>, vector<128x128xbf16>, vector<128x128xf32> -> vector<128x128xf32>
    %121 = arith.addf %112, %120 : vector<128x128xf32>
    %122 = vector.extract_strided_slice %115 {offsets = [12, 0, 0], sizes = [8, 16, 128], strides = [1, 1, 1]} : vector<32x16x128xbf16> to vector<8x16x128xbf16>
    %123 = vector.shape_cast %122 : vector<8x16x128xbf16> to vector<128x128xbf16>
    %c4_73 = arith.constant 4 : index
    %c0_74 = arith.constant 0 : index
    %c0_75 = arith.constant 0 : index
    %124 = vector.load %arg5[%c4_73, %c0_74, %c0_75] : memref<9x128x128xbf16, #tpu.memory_space<vmem>>, vector<1x128x128xbf16>
    %125 = vector.shape_cast %124 : vector<1x128x128xbf16> to vector<128x128xbf16>
    %cst_76 = arith.constant dense<0.000000e+00> : vector<128x128xf32>
    %126 = tpu.matmul %123, %125, %cst_76 {dimension_numbers = #tpu.dot_dimension_numbers<[1], [0], [0], [1], [0, 0, 1, 1], [], []>} : vector<128x128xbf16>, vector<128x128xbf16>, vector<128x128xf32> -> vector<128x128xf32>
    %127 = arith.addf %121, %126 : vector<128x128xf32>
    %128 = vector.extract_strided_slice %115 {offsets = [24, 0, 0], sizes = [8, 16, 128], strides = [1, 1, 1]} : vector<32x16x128xbf16> to vector<8x16x128xbf16>
    %129 = vector.shape_cast %128 : vector<8x16x128xbf16> to vector<128x128xbf16>
    %c7_77 = arith.constant 7 : index
    %c0_78 = arith.constant 0 : index
    %c0_79 = arith.constant 0 : index
    %130 = vector.load %arg5[%c7_77, %c0_78, %c0_79] : memref<9x128x128xbf16, #tpu.memory_space<vmem>>, vector<1x128x128xbf16>
    %131 = vector.shape_cast %130 : vector<1x128x128xbf16> to vector<128x128xbf16>
    %cst_80 = arith.constant dense<0.000000e+00> : vector<128x128xf32>
    %132 = tpu.matmul %129, %131, %cst_80 {dimension_numbers = #tpu.dot_dimension_numbers<[1], [0], [0], [1], [0, 0, 1, 1], [], []>} : vector<128x128xbf16>, vector<128x128xbf16>, vector<128x128xf32> -> vector<128x128xf32>
    %133 = arith.addf %127, %132 : vector<128x128xf32>
    %c12_i32_81 = arith.constant 12 : i32
    %134 = arith.subi %4, %c12_i32_81 : i32
    %135 = arith.index_cast %134 : i32 to index
    %c36 = arith.constant 36 : index
    %c0_82 = arith.constant 0 : index
    %136 = vector.load %arg19[%135, %c36, %c0_82] : memref<52x58x128xbf16, #tpu.memory_space<vmem>>, vector<32x16x128xbf16>
    %137 = vector.extract_strided_slice %136 {offsets = [0, 0, 0], sizes = [8, 16, 128], strides = [1, 1, 1]} : vector<32x16x128xbf16> to vector<8x16x128xbf16>
    %138 = vector.shape_cast %137 : vector<8x16x128xbf16> to vector<128x128xbf16>
    %c2_83 = arith.constant 2 : index
    %c0_84 = arith.constant 0 : index
    %c0_85 = arith.constant 0 : index
    %139 = vector.load %arg5[%c2_83, %c0_84, %c0_85] : memref<9x128x128xbf16, #tpu.memory_space<vmem>>, vector<1x128x128xbf16>
    %140 = vector.shape_cast %139 : vector<1x128x128xbf16> to vector<128x128xbf16>
    %cst_86 = arith.constant dense<0.000000e+00> : vector<128x128xf32>
    %141 = tpu.matmul %138, %140, %cst_86 {dimension_numbers = #tpu.dot_dimension_numbers<[1], [0], [0], [1], [0, 0, 1, 1], [], []>} : vector<128x128xbf16>, vector<128x128xbf16>, vector<128x128xf32> -> vector<128x128xf32>
    %142 = arith.addf %133, %141 : vector<128x128xf32>
    %143 = vector.extract_strided_slice %136 {offsets = [12, 0, 0], sizes = [8, 16, 128], strides = [1, 1, 1]} : vector<32x16x128xbf16> to vector<8x16x128xbf16>
    %144 = vector.shape_cast %143 : vector<8x16x128xbf16> to vector<128x128xbf16>
    %c5_87 = arith.constant 5 : index
    %c0_88 = arith.constant 0 : index
    %c0_89 = arith.constant 0 : index
    %145 = vector.load %arg5[%c5_87, %c0_88, %c0_89] : memref<9x128x128xbf16, #tpu.memory_space<vmem>>, vector<1x128x128xbf16>
    %146 = vector.shape_cast %145 : vector<1x128x128xbf16> to vector<128x128xbf16>
    %cst_90 = arith.constant dense<0.000000e+00> : vector<128x128xf32>
    %147 = tpu.matmul %144, %146, %cst_90 {dimension_numbers = #tpu.dot_dimension_numbers<[1], [0], [0], [1], [0, 0, 1, 1], [], []>} : vector<128x128xbf16>, vector<128x128xbf16>, vector<128x128xf32> -> vector<128x128xf32>
    %148 = arith.addf %142, %147 : vector<128x128xf32>
    %149 = vector.extract_strided_slice %136 {offsets = [24, 0, 0], sizes = [8, 16, 128], strides = [1, 1, 1]} : vector<32x16x128xbf16> to vector<8x16x128xbf16>
    %150 = vector.shape_cast %149 : vector<8x16x128xbf16> to vector<128x128xbf16>
    %c8_91 = arith.constant 8 : index
    %c0_92 = arith.constant 0 : index
    %c0_93 = arith.constant 0 : index
    %151 = vector.load %arg5[%c8_91, %c0_92, %c0_93] : memref<9x128x128xbf16, #tpu.memory_space<vmem>>, vector<1x128x128xbf16>
    %152 = vector.shape_cast %151 : vector<1x128x128xbf16> to vector<128x128xbf16>
    %cst_94 = arith.constant dense<0.000000e+00> : vector<128x128xf32>
    %153 = tpu.matmul %150, %152, %cst_94 {dimension_numbers = #tpu.dot_dimension_numbers<[1], [0], [0], [1], [0, 0, 1, 1], [], []>} : vector<128x128xbf16>, vector<128x128xbf16>, vector<128x128xf32> -> vector<128x128xf32>
    %154 = arith.addf %148, %153 : vector<128x128xf32>
    %c0_95 = arith.constant 0 : index
    %c0_96 = arith.constant 0 : index
    %155 = vector.load %arg9[%c0_95, %c0_96] : memref<1x128xf32, #tpu.memory_space<vmem>>, vector<1x128xf32>
    %156 = vector.broadcast %155 : vector<1x128xf32> to vector<128x128xf32>
    %157 = arith.addf %154, %156 : vector<128x128xf32>
    %cst_97 = arith.constant 0.000000e+00 : f32
    %158 = vector.broadcast %cst_97 : f32 to vector<128x128xf32>
    %159 = arith.maximumf %157, %158 : vector<128x128xf32>
    %160 = arith.truncf %159 : vector<128x128xf32> to vector<128x128xbf16>
    %c2_98 = arith.constant 2 : index
    %c0_99 = arith.constant 0 : index
    %c0_100 = arith.constant 0 : index
    %161 = vector.load %arg13[%c2_98, %c0_99, %c0_100] : memref<4x128x128xbf16, #tpu.memory_space<vmem>>, vector<1x128x128xbf16>
    %162 = vector.shape_cast %161 : vector<1x128x128xbf16> to vector<128x128xbf16>
    %cst_101 = arith.constant dense<0.000000e+00> : vector<128x128xf32>
    %163 = tpu.matmul %160, %162, %cst_101 {dimension_numbers = #tpu.dot_dimension_numbers<[1], [0], [0], [1], [0, 0, 1, 1], [], []>} : vector<128x128xbf16>, vector<128x128xbf16>, vector<128x128xf32> -> vector<128x128xf32>
    %164 = arith.addf %92, %163 : vector<128x128xf32>
    %c18_i32_102 = arith.constant 18 : i32
    %165 = arith.subi %4, %c18_i32_102 : i32
    %166 = arith.index_cast %165 : i32 to index
    %c6_103 = arith.constant 6 : index
    %c0_104 = arith.constant 0 : index
    %167 = vector.load %arg19[%166, %c6_103, %c0_104] : memref<52x58x128xbf16, #tpu.memory_space<vmem>>, vector<44x16x128xbf16>
    %168 = vector.extract_strided_slice %167 {offsets = [0, 0, 0], sizes = [8, 16, 128], strides = [1, 1, 1]} : vector<44x16x128xbf16> to vector<8x16x128xbf16>
    %169 = vector.shape_cast %168 : vector<8x16x128xbf16> to vector<128x128xbf16>
    %c0_105 = arith.constant 0 : index
    %c0_106 = arith.constant 0 : index
    %c0_107 = arith.constant 0 : index
    %170 = vector.load %arg6[%c0_105, %c0_106, %c0_107] : memref<9x128x128xbf16, #tpu.memory_space<vmem>>, vector<1x128x128xbf16>
    %171 = vector.shape_cast %170 : vector<1x128x128xbf16> to vector<128x128xbf16>
    %cst_108 = arith.constant dense<0.000000e+00> : vector<128x128xf32>
    %172 = tpu.matmul %169, %171, %cst_108 {dimension_numbers = #tpu.dot_dimension_numbers<[1], [0], [0], [1], [0, 0, 1, 1], [], []>} : vector<128x128xbf16>, vector<128x128xbf16>, vector<128x128xf32> -> vector<128x128xf32>
    %173 = vector.extract_strided_slice %167 {offsets = [18, 0, 0], sizes = [8, 16, 128], strides = [1, 1, 1]} : vector<44x16x128xbf16> to vector<8x16x128xbf16>
    %174 = vector.shape_cast %173 : vector<8x16x128xbf16> to vector<128x128xbf16>
    %c3_109 = arith.constant 3 : index
    %c0_110 = arith.constant 0 : index
    %c0_111 = arith.constant 0 : index
    %175 = vector.load %arg6[%c3_109, %c0_110, %c0_111] : memref<9x128x128xbf16, #tpu.memory_space<vmem>>, vector<1x128x128xbf16>
    %176 = vector.shape_cast %175 : vector<1x128x128xbf16> to vector<128x128xbf16>
    %cst_112 = arith.constant dense<0.000000e+00> : vector<128x128xf32>
    %177 = tpu.matmul %174, %176, %cst_112 {dimension_numbers = #tpu.dot_dimension_numbers<[1], [0], [0], [1], [0, 0, 1, 1], [], []>} : vector<128x128xbf16>, vector<128x128xbf16>, vector<128x128xf32> -> vector<128x128xf32>
    %178 = arith.addf %172, %177 : vector<128x128xf32>
    %179 = vector.extract_strided_slice %167 {offsets = [36, 0, 0], sizes = [8, 16, 128], strides = [1, 1, 1]} : vector<44x16x128xbf16> to vector<8x16x128xbf16>
    %180 = vector.shape_cast %179 : vector<8x16x128xbf16> to vector<128x128xbf16>
    %c6_113 = arith.constant 6 : index
    %c0_114 = arith.constant 0 : index
    %c0_115 = arith.constant 0 : index
    %181 = vector.load %arg6[%c6_113, %c0_114, %c0_115] : memref<9x128x128xbf16, #tpu.memory_space<vmem>>, vector<1x128x128xbf16>
    %182 = vector.shape_cast %181 : vector<1x128x128xbf16> to vector<128x128xbf16>
    %cst_116 = arith.constant dense<0.000000e+00> : vector<128x128xf32>
    %183 = tpu.matmul %180, %182, %cst_116 {dimension_numbers = #tpu.dot_dimension_numbers<[1], [0], [0], [1], [0, 0, 1, 1], [], []>} : vector<128x128xbf16>, vector<128x128xbf16>, vector<128x128xf32> -> vector<128x128xf32>
    %184 = arith.addf %178, %183 : vector<128x128xf32>
    %c18_i32_117 = arith.constant 18 : i32
    %185 = arith.subi %4, %c18_i32_117 : i32
    %186 = arith.index_cast %185 : i32 to index
    %c24_118 = arith.constant 24 : index
    %c0_119 = arith.constant 0 : index
    %187 = vector.load %arg19[%186, %c24_118, %c0_119] : memref<52x58x128xbf16, #tpu.memory_space<vmem>>, vector<44x16x128xbf16>
    %188 = vector.extract_strided_slice %187 {offsets = [0, 0, 0], sizes = [8, 16, 128], strides = [1, 1, 1]} : vector<44x16x128xbf16> to vector<8x16x128xbf16>
    %189 = vector.shape_cast %188 : vector<8x16x128xbf16> to vector<128x128xbf16>
    %c1_120 = arith.constant 1 : index
    %c0_121 = arith.constant 0 : index
    %c0_122 = arith.constant 0 : index
    %190 = vector.load %arg6[%c1_120, %c0_121, %c0_122] : memref<9x128x128xbf16, #tpu.memory_space<vmem>>, vector<1x128x128xbf16>
    %191 = vector.shape_cast %190 : vector<1x128x128xbf16> to vector<128x128xbf16>
    %cst_123 = arith.constant dense<0.000000e+00> : vector<128x128xf32>
    %192 = tpu.matmul %189, %191, %cst_123 {dimension_numbers = #tpu.dot_dimension_numbers<[1], [0], [0], [1], [0, 0, 1, 1], [], []>} : vector<128x128xbf16>, vector<128x128xbf16>, vector<128x128xf32> -> vector<128x128xf32>
    %193 = arith.addf %184, %192 : vector<128x128xf32>
    %194 = vector.extract_strided_slice %187 {offsets = [18, 0, 0], sizes = [8, 16, 128], strides = [1, 1, 1]} : vector<44x16x128xbf16> to vector<8x16x128xbf16>
    %195 = vector.shape_cast %194 : vector<8x16x128xbf16> to vector<128x128xbf16>
    %c4_124 = arith.constant 4 : index
    %c0_125 = arith.constant 0 : index
    %c0_126 = arith.constant 0 : index
    %196 = vector.load %arg6[%c4_124, %c0_125, %c0_126] : memref<9x128x128xbf16, #tpu.memory_space<vmem>>, vector<1x128x128xbf16>
    %197 = vector.shape_cast %196 : vector<1x128x128xbf16> to vector<128x128xbf16>
    %cst_127 = arith.constant dense<0.000000e+00> : vector<128x128xf32>
    %198 = tpu.matmul %195, %197, %cst_127 {dimension_numbers = #tpu.dot_dimension_numbers<[1], [0], [0], [1], [0, 0, 1, 1], [], []>} : vector<128x128xbf16>, vector<128x128xbf16>, vector<128x128xf32> -> vector<128x128xf32>
    %199 = arith.addf %193, %198 : vector<128x128xf32>
    %200 = vector.extract_strided_slice %187 {offsets = [36, 0, 0], sizes = [8, 16, 128], strides = [1, 1, 1]} : vector<44x16x128xbf16> to vector<8x16x128xbf16>
    %201 = vector.shape_cast %200 : vector<8x16x128xbf16> to vector<128x128xbf16>
    %c7_128 = arith.constant 7 : index
    %c0_129 = arith.constant 0 : index
    %c0_130 = arith.constant 0 : index
    %202 = vector.load %arg6[%c7_128, %c0_129, %c0_130] : memref<9x128x128xbf16, #tpu.memory_space<vmem>>, vector<1x128x128xbf16>
    %203 = vector.shape_cast %202 : vector<1x128x128xbf16> to vector<128x128xbf16>
    %cst_131 = arith.constant dense<0.000000e+00> : vector<128x128xf32>
    %204 = tpu.matmul %201, %203, %cst_131 {dimension_numbers = #tpu.dot_dimension_numbers<[1], [0], [0], [1], [0, 0, 1, 1], [], []>} : vector<128x128xbf16>, vector<128x128xbf16>, vector<128x128xf32> -> vector<128x128xf32>
    %205 = arith.addf %199, %204 : vector<128x128xf32>
    %c18_i32_132 = arith.constant 18 : i32
    %206 = arith.subi %4, %c18_i32_132 : i32
    %207 = arith.index_cast %206 : i32 to index
    %c42 = arith.constant 42 : index
    %c0_133 = arith.constant 0 : index
    %208 = vector.load %arg19[%207, %c42, %c0_133] : memref<52x58x128xbf16, #tpu.memory_space<vmem>>, vector<44x16x128xbf16>
    %209 = vector.extract_strided_slice %208 {offsets = [0, 0, 0], sizes = [8, 16, 128], strides = [1, 1, 1]} : vector<44x16x128xbf16> to vector<8x16x128xbf16>
    %210 = vector.shape_cast %209 : vector<8x16x128xbf16> to vector<128x128xbf16>
    %c2_134 = arith.constant 2 : index
    %c0_135 = arith.constant 0 : index
    %c0_136 = arith.constant 0 : index
    %211 = vector.load %arg6[%c2_134, %c0_135, %c0_136] : memref<9x128x128xbf16, #tpu.memory_space<vmem>>, vector<1x128x128xbf16>
    %212 = vector.shape_cast %211 : vector<1x128x128xbf16> to vector<128x128xbf16>
    %cst_137 = arith.constant dense<0.000000e+00> : vector<128x128xf32>
    %213 = tpu.matmul %210, %212, %cst_137 {dimension_numbers = #tpu.dot_dimension_numbers<[1], [0], [0], [1], [0, 0, 1, 1], [], []>} : vector<128x128xbf16>, vector<128x128xbf16>, vector<128x128xf32> -> vector<128x128xf32>
    %214 = arith.addf %205, %213 : vector<128x128xf32>
    %215 = vector.extract_strided_slice %208 {offsets = [18, 0, 0], sizes = [8, 16, 128], strides = [1, 1, 1]} : vector<44x16x128xbf16> to vector<8x16x128xbf16>
    %216 = vector.shape_cast %215 : vector<8x16x128xbf16> to vector<128x128xbf16>
    %c5_138 = arith.constant 5 : index
    %c0_139 = arith.constant 0 : index
    %c0_140 = arith.constant 0 : index
    %217 = vector.load %arg6[%c5_138, %c0_139, %c0_140] : memref<9x128x128xbf16, #tpu.memory_space<vmem>>, vector<1x128x128xbf16>
    %218 = vector.shape_cast %217 : vector<1x128x128xbf16> to vector<128x128xbf16>
    %cst_141 = arith.constant dense<0.000000e+00> : vector<128x128xf32>
    %219 = tpu.matmul %216, %218, %cst_141 {dimension_numbers = #tpu.dot_dimension_numbers<[1], [0], [0], [1], [0, 0, 1, 1], [], []>} : vector<128x128xbf16>, vector<128x128xbf16>, vector<128x128xf32> -> vector<128x128xf32>
    %220 = arith.addf %214, %219 : vector<128x128xf32>
    %221 = vector.extract_strided_slice %208 {offsets = [36, 0, 0], sizes = [8, 16, 128], strides = [1, 1, 1]} : vector<44x16x128xbf16> to vector<8x16x128xbf16>
    %222 = vector.shape_cast %221 : vector<8x16x128xbf16> to vector<128x128xbf16>
    %c8_142 = arith.constant 8 : index
    %c0_143 = arith.constant 0 : index
    %c0_144 = arith.constant 0 : index
    %223 = vector.load %arg6[%c8_142, %c0_143, %c0_144] : memref<9x128x128xbf16, #tpu.memory_space<vmem>>, vector<1x128x128xbf16>
    %224 = vector.shape_cast %223 : vector<1x128x128xbf16> to vector<128x128xbf16>
    %cst_145 = arith.constant dense<0.000000e+00> : vector<128x128xf32>
    %225 = tpu.matmul %222, %224, %cst_145 {dimension_numbers = #tpu.dot_dimension_numbers<[1], [0], [0], [1], [0, 0, 1, 1], [], []>} : vector<128x128xbf16>, vector<128x128xbf16>, vector<128x128xf32> -> vector<128x128xf32>
    %226 = arith.addf %220, %225 : vector<128x128xf32>
    %c0_146 = arith.constant 0 : index
    %c0_147 = arith.constant 0 : index
    %227 = vector.load %arg10[%c0_146, %c0_147] : memref<1x128xf32, #tpu.memory_space<vmem>>, vector<1x128xf32>
    %228 = vector.broadcast %227 : vector<1x128xf32> to vector<128x128xf32>
    %229 = arith.addf %226, %228 : vector<128x128xf32>
    %cst_148 = arith.constant 0.000000e+00 : f32
    %230 = vector.broadcast %cst_148 : f32 to vector<128x128xf32>
    %231 = arith.maximumf %229, %230 : vector<128x128xf32>
    %232 = arith.truncf %231 : vector<128x128xf32> to vector<128x128xbf16>
    %c3_149 = arith.constant 3 : index
    %c0_150 = arith.constant 0 : index
    %c0_151 = arith.constant 0 : index
    %233 = vector.load %arg13[%c3_149, %c0_150, %c0_151] : memref<4x128x128xbf16, #tpu.memory_space<vmem>>, vector<1x128x128xbf16>
    %234 = vector.shape_cast %233 : vector<1x128x128xbf16> to vector<128x128xbf16>
    %cst_152 = arith.constant dense<0.000000e+00> : vector<128x128xf32>
    %235 = tpu.matmul %232, %234, %cst_152 {dimension_numbers = #tpu.dot_dimension_numbers<[1], [0], [0], [1], [0, 0, 1, 1], [], []>} : vector<128x128xbf16>, vector<128x128xbf16>, vector<128x128xf32> -> vector<128x128xf32>
    %236 = arith.addf %164, %235 : vector<128x128xf32>
    %c0_153 = arith.constant 0 : index
    %c0_154 = arith.constant 0 : index
    %237 = vector.load %arg20[%c0_153, %c0_154] : memref<1x128xf32, #tpu.memory_space<vmem>>, vector<1x128xf32>
    %238 = vector.broadcast %237 : vector<1x128xf32> to vector<128x128xf32>
    %239 = arith.addf %236, %238 : vector<128x128xf32>
    %c0_155 = arith.constant 0 : index
    %c0_156 = arith.constant 0 : index
    %240 = vector.load %arg15[%c0_155, %c0_156] : memref<1x128xf32, #tpu.memory_space<vmem>>, vector<1x128xf32>
    %241 = vector.broadcast %240 : vector<1x128xf32> to vector<128x128xf32>
    %242 = arith.addf %239, %241 : vector<128x128xf32>
    %cst_157 = arith.constant 0.000000e+00 : f32
    %243 = vector.broadcast %cst_157 : f32 to vector<128x128xf32>
    %244 = arith.maximumf %242, %243 : vector<128x128xf32>
    %245 = arith.truncf %244 : vector<128x128xf32> to vector<128x128xbf16>
    %c0_158 = arith.constant 0 : index
    %c0_159 = arith.constant 0 : index
    %246 = vector.load %arg16[%c0_158, %c0_159] : memref<128x128xbf16, #tpu.memory_space<vmem>>, vector<128x128xbf16>
    %cst_160 = arith.constant dense<0.000000e+00> : vector<128x128xf32>
    %247 = tpu.matmul %245, %246, %cst_160 {dimension_numbers = #tpu.dot_dimension_numbers<[1], [0], [0], [1], [0, 0, 1, 1], [], []>} : vector<128x128xbf16>, vector<128x128xbf16>, vector<128x128xf32> -> vector<128x128xf32>
    %c0_161 = arith.constant 0 : index
    %c0_162 = arith.constant 0 : index
    %248 = vector.load %arg17[%c0_161, %c0_162] : memref<1x128xf32, #tpu.memory_space<vmem>>, vector<1x128xf32>
    %249 = vector.broadcast %248 : vector<1x128xf32> to vector<128x128xf32>
    %250 = arith.addf %247, %249 : vector<128x128xf32>
    %251 = arith.truncf %250 : vector<128x128xf32> to vector<128x128xbf16>
    %c0_163 = arith.constant 0 : index
    %c0_164 = arith.constant 0 : index
    %c0_165 = arith.constant 0 : index
    %252 = vector.load %arg18[%c0_163, %c0_164, %c0_165] : memref<1x128x128xbf16, #tpu.memory_space<vmem>>, vector<1x128x128xbf16>
    %253 = vector.shape_cast %252 : vector<1x128x128xbf16> to vector<128x128xbf16>
    %254 = vector.shape_cast %251 : vector<128x128xbf16> to vector<1x128x128xbf16>
    tpu.vector_store %arg18[%c0_163, %c0_164, %c0_165], %254 {strides = array<i32>} : memref<1x128x128xbf16, #tpu.memory_space<vmem>>, vector<1x128x128xbf16>,
    return
  }
  func.func @transform_0(%arg0: i32, %arg1: i32) -> (i32, i32, i32, i32) {
    %c0_i32 = arith.constant 0 : i32
    %c0_i32_0 = arith.constant 0 : i32
    %c0_i32_1 = arith.constant 0 : i32
    %c0_i32_2 = arith.constant 0 : i32
    return %arg0, %c0_i32, %c0_i32_0, %c0_i32_1 : i32, i32, i32, i32
  }
  func.func @transform_1(%arg0: i32, %arg1: i32) -> (i32, i32) {
    %c0_i32 = arith.constant 0 : i32
    %c0_i32_0 = arith.constant 0 : i32
    %c0_i32_1 = arith.constant 0 : i32
    return %c0_i32, %c0_i32_0 : i32, i32
  }
  func.func @transform_2(%arg0: i32, %arg1: i32) -> (i32, i32, i32) {
    %c0_i32 = arith.constant 0 : i32
    %c0_i32_0 = arith.constant 0 : i32
    %c0_i32_1 = arith.constant 0 : i32
    %c0_i32_2 = arith.constant 0 : i32
    return %c0_i32, %c0_i32_0, %c0_i32_1 : i32, i32, i32
  }
  func.func @transform_3(%arg0: i32, %arg1: i32) -> (i32, i32, i32) {
    %c0_i32 = arith.constant 0 : i32
    %c0_i32_0 = arith.constant 0 : i32
    %c0_i32_1 = arith.constant 0 : i32
    %c0_i32_2 = arith.constant 0 : i32
    return %c0_i32, %c0_i32_0, %c0_i32_1 : i32, i32, i32
  }
  func.func @transform_4(%arg0: i32, %arg1: i32) -> (i32, i32, i32) {
    %c0_i32 = arith.constant 0 : i32
    %c0_i32_0 = arith.constant 0 : i32
    %c0_i32_1 = arith.constant 0 : i32
    %c0_i32_2 = arith.constant 0 : i32
    return %c0_i32, %c0_i32_0, %c0_i32_1 : i32, i32, i32
  }
  func.func @transform_5(%arg0: i32, %arg1: i32) -> (i32, i32) {
    %c0_i32 = arith.constant 0 : i32
    %c0_i32_0 = arith.constant 0 : i32
    %c0_i32_1 = arith.constant 0 : i32
    return %c0_i32, %c0_i32_0 : i32, i32
  }
  func.func @transform_6(%arg0: i32, %arg1: i32) -> (i32, i32) {
    %c0_i32 = arith.constant 0 : i32
    %c0_i32_0 = arith.constant 0 : i32
    %c0_i32_1 = arith.constant 0 : i32
    return %c0_i32, %c0_i32_0 : i32, i32
  }
  func.func @transform_7(%arg0: i32, %arg1: i32) -> (i32, i32) {
    %c0_i32 = arith.constant 0 : i32
    %c0_i32_0 = arith.constant 0 : i32
    %c0_i32_1 = arith.constant 0 : i32
    return %c0_i32, %c0_i32_0 : i32, i32
  }
  func.func @transform_8(%arg0: i32, %arg1: i32) -> (i32, i32) {
    %c0_i32 = arith.constant 0 : i32
    %c0_i32_0 = arith.constant 0 : i32
    %c0_i32_1 = arith.constant 0 : i32
    return %c0_i32, %c0_i32_0 : i32, i32
  }
  func.func @transform_9(%arg0: i32, %arg1: i32) -> (i32, i32) {
    %c0_i32 = arith.constant 0 : i32
    %c0_i32_0 = arith.constant 0 : i32
    %c0_i32_1 = arith.constant 0 : i32
    return %c0_i32, %c0_i32_0 : i32, i32
  }
  func.func @transform_10(%arg0: i32, %arg1: i32) -> (i32, i32) {
    %c0_i32 = arith.constant 0 : i32
    %c0_i32_0 = arith.constant 0 : i32
    %c0_i32_1 = arith.constant 0 : i32
    return %c0_i32, %c0_i32_0 : i32, i32
  }
  func.func @transform_11(%arg0: i32, %arg1: i32) -> (i32, i32, i32) {
    %c0_i32 = arith.constant 0 : i32
    %c0_i32_0 = arith.constant 0 : i32
    %c0_i32_1 = arith.constant 0 : i32
    %c0_i32_2 = arith.constant 0 : i32
    return %c0_i32, %c0_i32_0, %c0_i32_1 : i32, i32, i32
  }
  func.func @transform_12(%arg0: i32, %arg1: i32) -> (i32, i32) {
    %c0_i32 = arith.constant 0 : i32
    %c0_i32_0 = arith.constant 0 : i32
    %c0_i32_1 = arith.constant 0 : i32
    return %c0_i32, %c0_i32_0 : i32, i32
  }
  func.func @transform_13(%arg0: i32, %arg1: i32) -> (i32, i32) {
    %c0_i32 = arith.constant 0 : i32
    %c0_i32_0 = arith.constant 0 : i32
    %c0_i32_1 = arith.constant 0 : i32
    return %c0_i32, %c0_i32_0 : i32, i32
  }
  func.func @transform_14(%arg0: i32, %arg1: i32) -> (i32, i32) {
    %c0_i32 = arith.constant 0 : i32
    %c0_i32_0 = arith.constant 0 : i32
    %c0_i32_1 = arith.constant 0 : i32
    return %c0_i32, %c0_i32_0 : i32, i32
  }
  func.func @transform_15(%arg0: i32, %arg1: i32) -> (i32, i32) {
    %c0_i32 = arith.constant 0 : i32
    %c0_i32_0 = arith.constant 0 : i32
    %c0_i32_1 = arith.constant 0 : i32
    return %c0_i32, %c0_i32_0 : i32, i32
  }
  func.func @transform_16(%arg0: i32, %arg1: i32) -> (i32, i32, i32) {
    %c0_i32 = arith.constant 0 : i32
    %c0_i32_0 = arith.constant 0 : i32
    return %arg0, %arg1, %c0_i32 : i32, i32, i32
  }
}

</mosaic_0001>

<bundles_post_ra>
// kernel: tpu_custom_call.1
= control target key start
LH: loop header
LB: loop body
LE: loop exit
PB: predicated region body
PF: predicated region fallthrough
CT: control target
= control target key end

     0   :  { %s17952_s0 = inlined_call_operand.hbm [shape: bf16[2,16,16,128], index: 0, kind: input, shape index: {}]   ;;  %s17953_s1 = inlined_call_operand.hbm [shape: bf16[128,128], index: 1, kind: input, shape index: {}]   ;;  %s17954_s2 = inlined_call_operand.hbm [shape: bf16[9,128,128], index: 2, kind: input, shape index: {}]   ;;  %s17955_s3 = inlined_call_operand.hbm [shape: bf16[9,128,128], index: 3, kind: input, shape index: {}]   ;;  %s17956_s4 = inlined_call_operand.hbm [shape: bf16[9,128,128], index: 4, kind: input, shape index: {}]   ;;  %s17957_s5 = inlined_call_operand.vmem [shape: f32[1,128], index: 5, kind: input, shape index: {}]   ;;  %s17958_s6 = inlined_call_operand.vmem [shape: f32[1,128], index: 6, kind: input, shape index: {}]   ;;  %s17959_s7 = inlined_call_operand.vmem [shape: f32[1,128], index: 7, kind: input, shape index: {}]   ;;  %s17960_s8 = inlined_call_operand.vmem [shape: f32[1,128], index: 8, kind: input, shape index: {}]   ;;  %s17961_s9 = inlined_call_operand.hbm [shape: bf16[128,128], index: 9, kind: input, shape index: {}]   ;;  %s17962_s10 = inlined_call_operand.vmem [shape: f32[1,128], index: 10, kind: input, shape index: {}]   ;;  %s17963_s11 = inlined_call_operand.hbm [shape: bf16[4,128,128], index: 11, kind: input, shape index: {}]   ;;  %s17964_s12 = inlined_call_operand.hbm [shape: bf16[128,128], index: 12, kind: input, shape index: {}]   ;;  %s17965_s13 = inlined_call_operand.vmem [shape: f32[1,128], index: 13, kind: input, shape index: {}]   ;;  %s17966_s14 = inlined_call_operand.hbm [shape: bf16[128,128], index: 14, kind: input, shape index: {}]   ;;  %s17967_s15 = inlined_call_operand.vmem [shape: f32[1,128], index: 15, kind: input, shape index: {}]   ;;  %s17968_s16 = inlined_call_operand.hbm [shape: bf16[2,256,128], index: 16, kind: output, shape index: {}]  }
   0x1   :  { %17999 = sst [smem:[#allocation38_spill]] %s17952_s0 }
   0x2   :  { %18000 = sst [smem:[#allocation39_spill]] %s17953_s1 }
   0x3   :  { %18001 = sst [smem:[#allocation40_spill]] %s17954_s2 }
   0x4   :  { %18002 = sst [smem:[#allocation41_spill]] %s17955_s3 }
   0x5   :  { %18003 = sst [smem:[#allocation42_spill]] %s17957_s5 }
   0x6   :  { %18004 = sst [smem:[#allocation43_spill]] %s17958_s6 }
   0x7   :  { %18005 = sst [smem:[#allocation44_spill]] %s17959_s7 }
   0x8   :  { %18006 = sst [smem:[#allocation45_spill]] %s17960_s8 }
   0x9   :  { %18007 = sst [smem:[#allocation46_spill]] %s17962_s10 }
   0xa   :  { %18008 = sst [smem:[#allocation47_spill]] %s17965_s13 }
   0xb   :  { %18009 = sst [smem:[#allocation48_spill]] %s17967_s15 }
   0xc   :  { %18010 = sst [smem:[#allocation49_spill]] %s17968_s16 }
   0xd   :  { %21 = vsyncpa [#allocation5], 0 }
   0xe   :  { %23 = vsyncpa [#allocation5 + $0x1], 0 }
   0xf   :  { %24 = vsyncpa [#allocation8], 0 }
  0x10   :  { %25 = vsyncpa [#allocation11], 0 }
  0x11   :  { %26 = vsyncpa [#allocation14], 0 }
  0x12   :  { %27 = vsyncpa [#allocation17], 0 }
  0x13   :  { %28 = vsyncpa [#allocation6], 0 }
  0x14   :  { %30 = vsyncpa [#allocation6 + $0x1], 0  ;;  %s14894_s21 = smov 0   ;;  %s14896_s22 = smov 0  }
  0x15   :  { %s14898_s23 = smov 0   ;;  %s14900_s24 = smov 0  }
  0x16   :  { %s14902_s25 = smov 0   ;;  %s14904_s26 = smov 0  }
  0x17   :  { %s14906_s27 = smov 0   ;;  %s14908_s28 = smov 0  }
  0x18   :  { %s14910_s29 = smov 0   ;;  %s14912_s30 = smov 0  }
  0x19   :  { %s14914_s0 = smov 0  }
  0x1a LB: > { %18011 = sst [smem:[#allocation26_spill]] %s14750_s21  ;;  %s17971_s17 = sadd.s32 4294967295, %s14790_s0   ;;  %s14790_s0 = sphi %s14914_s0, %s36_s0   ;;  %s14786_s30 = sphi %s14912_s30, %s18142_s30   ;;  %s14782_s29 = sphi %s14910_s29, %s18141_s29   ;;  %s14778_s28 = sphi %s14908_s28, %s18140_s28   ;;  %s14774_s27 = sphi %s14906_s27, %s18139_s27   ;;  %s14770_s26 = sphi %s14904_s26, %s18138_s26   ;;  %s14766_s25 = sphi %s14902_s25, %s18137_s25   ;;  %s14762_s24 = sphi %s14900_s24, %s18136_s24   ;;  %s14758_s23 = sphi %s14898_s23, %s18135_s23   ;;  %s14754_s22 = sphi %s14896_s22, %s18134_s22   ;;  %s14750_s21 = sphi %s14894_s21, %s18133_s21  }
  0x1b   : > { %18012 = sst [smem:[#allocation27_spill]] %s14754_s22  ;;  %p10606_p0 = scmp.ge.s32.totalorder %s14790_s0, 1 }
  0x1c   : > { %18013 = sst [smem:[#allocation28_spill]] %s14758_s23  ;;  %p14953_p1 = scmp.eq.s32.totalorder %s17971_s17, 0 }
  0x1d   : > { %18014 = sst [smem:[#allocation29_spill]] %s14774_s27  ;;  %p422_p2 = scmp.lt.s32.totalorder %s14790_s0, 5 }
  0x1e   : > { %18015 = sst [smem:[#allocation30_spill]] %s14778_s28  ;;  %s14792_s20 = smov [#allocation7]  }
  0x1f   : > { %s18016_s18 = scalar_select %p14953_p1, 1, 0 }
  0x20   : > { %p14958_p3 = pnand %p10606_p0, %p422_p2  ;;  %s434_s16 = sshll.u32 %s14792_s20, 4  ;;  %s14962_s16 = int_to_ptr.vmem [resolvable:$true] %s434_s16 }
  0x21   : > { %s14793_s17 = smov [#allocation10]   ;;  %s14794_s13 = smov [#allocation13]  }
  0x22   : > { %s18017_s19 = scalar_select %p14958_p3, 1, 0 }
  0x23   : > { %p13888_p4 = pneg %p14958_p3  ;;  %s460_s15 = sshll.u32 %s14793_s17, 4  ;;  %s14972_s15 = int_to_ptr.vmem [resolvable:$true] %s460_s15 }
  0x24   : > { %18018 = sst [smem:[#allocation31_spill]] %s18017_s19  ;;  %s14974_s7 = sshll.u32 %s14794_s13, 4  ;;  %s499_s7 = int_to_ptr.vmem [resolvable:$true] %s14974_s7 }
  0x25   : > { %p14968_p5 = pnand %p13888_p4, %p14953_p1  ;;  %s18020_s1 = sld [smem:[#allocation39_spill]] }
  0x27   : > { %p14984_p7 = pneg %p14968_p5 }
  0x2b   : > { %s14398_s20 = scalar_lea.hbm %s18020_s1, 1024 }
  0x2c   : > { %p14399_p6 = scmp.ne.s32.totalorder %s18020_s1, %s14398_s20  ;;  %p14405_p10 = scmp.lt.u32.totalorder %s14398_s20, %s18020_s1 }
  0x2e   : > { %p14401_p8 = pnand %p14984_p7, %p14399_p6 }
  0x30   : > { %p14402_p9 = pneg %p14401_p8 }
  0x32   : > { %p14407_p11 = pnand %p14405_p10, %p14402_p9 }
  0x34   : > { %14410 = shalt.err (!%p14407_p11)
}
  0x35   : > { %s14411_s5 = scalar_lea.vmem %s14962_s16, 1024  ;;  %p14419_p2 = scmp.lt.s32.totalorder %s14962_s16, %s14962_s16 }
  0x36   : > { %p14412_p12 = scmp.ne.s32.totalorder %s14962_s16, %s14411_s5  ;;  %p14420_p4 = scmp.lt.s32.totalorder %s14411_s5, %s14411_s5 }
  0x38   : > { %p14414_p13 = pnand %p14412_p12, %p14984_p7  ;;  %p14421_p6 = por %p14420_p4, %p14419_p2 }
  0x3a   : > { %p14415_p0 = pneg %p14414_p13 }
  0x3c   : > { %p14422_p8 = pnand %p14421_p6, %p14415_p0 }
  0x3e   : > { %14425 = shalt.err (!%p14422_p8)
}
  0x3f   : > { %s17980_s6 = smov 64   ;;  %s17981_s8 = smov 4  }
  0x40   : > { %13891 = dma.hbm_to_vmem [thread:$0]  (!%p14968_p5), %s18020_s1, 1024, %s14962_s16, [#allocation8], %s17980_s6, %s17980_s6, %s17981_s8  }
  0x41   : > { %s18022_s3 = sld [smem:[#allocation41_spill]] }
  0x47   : > { %s14426_s5 = scalar_lea.hbm %s18022_s3, 9216 }
  0x48   : > { %p14427_p9 = scmp.ne.s32.totalorder %s18022_s3, %s14426_s5  ;;  %p14433_p12 = scmp.lt.u32.totalorder %s14426_s5, %s18022_s3 }
  0x4a   : > { %p14429_p10 = pnand %p14427_p9, %p14984_p7 }
  0x4c   : > { %p14430_p11 = pneg %p14429_p10 }
  0x4e   : > { %p14435_p13 = pnand %p14433_p12, %p14430_p11 }
  0x50   : > { %14438 = shalt.err (!%p14435_p13)
}
  0x51   : > { %s14439_s16 = scalar_lea.vmem %s14972_s15, 9216  ;;  %p14447_p6 = scmp.lt.s32.totalorder %s14972_s15, %s14972_s15 }
  0x52   : > { %p14440_p0 = scmp.ne.s32.totalorder %s14972_s15, %s14439_s16  ;;  %p14448_p8 = scmp.lt.s32.totalorder %s14439_s16, %s14439_s16 }
  0x54   : > { %p14442_p2 = pnand %p14440_p0, %p14984_p7  ;;  %p14449_p9 = por %p14448_p8, %p14447_p6 }
  0x56   : > { %p14443_p4 = pneg %p14442_p2 }
  0x58   : > { %p14450_p10 = pnand %p14449_p9, %p14443_p4 }
  0x5a   : > { %14453 = shalt.err (!%p14450_p10)
}
  0x5b   : > { %13897 = dma.hbm_to_vmem [thread:$0]  (!%p14968_p5), %s18022_s3, 9216, %s14972_s15, [#allocation11], %s17980_s6, %s17980_s6, %s17981_s8  }
  0x5c   : > { %s14454_s10 = scalar_lea.hbm %s17961_s9, 1024 }
  0x5d   : > { %p14455_p11 = scmp.ne.s32.totalorder %s17961_s9, %s14454_s10  ;;  %p14461_p0 = scmp.lt.u32.totalorder %s14454_s10, %s17961_s9 }
  0x5f   : > { %p14457_p12 = pnand %p14455_p11, %p14984_p7 }
  0x61   : > { %p14458_p13 = pneg %p14457_p12 }
  0x63   : > { %p14463_p2 = pnand %p14461_p0, %p14458_p13 }
  0x65   : > { %14466 = shalt.err (!%p14463_p2)
}
  0x66   : > { %s14467_s16 = scalar_lea.vmem %s499_s7, 1024  ;;  %p14475_p9 = scmp.lt.s32.totalorder %s499_s7, %s499_s7 }
  0x67   : > { %p14468_p4 = scmp.ne.s32.totalorder %s499_s7, %s14467_s16  ;;  %p14476_p10 = scmp.lt.s32.totalorder %s14467_s16, %s14467_s16 }
  0x69   : > { %p14470_p6 = pnand %p14468_p4, %p14984_p7  ;;  %p14477_p3 = por %p14476_p10, %p14475_p9 }
  0x6b   : > { %p14471_p8 = pneg %p14470_p6 }
  0x6d   : > { %p14478_p1 = pnand %p14477_p3, %p14471_p8 }
  0x6f   : > { %14481 = shalt.err (!%p14478_p1)
}
  0x70   : > { %13903 = dma.hbm_to_vmem [thread:$0]  (!%p14968_p5), %s17961_s9, 1024, %s499_s7, [#allocation14], %s17980_s6, %s17980_s6, %s17981_s8  }
  0x71   : > { %s14797_s22 = smov [#allocation16]   ;;  %s14798_s19 = smov [#allocation9]  }
  0x72   : > { %s527_s23 = sshll.u32 %s14797_s22, 4  ;;  %s447_s10 = sshll.u32 %s14798_s19, 4  ;;  %s528_s23 = int_to_ptr.vmem [resolvable:$true] %s527_s23  ;;  %s448_s10 = int_to_ptr.vmem [resolvable:$true] %s447_s10 }
  0x73   : > { %s14482_s13 = scalar_lea.hbm %s17964_s12, 1024 }
  0x74   : > { %p14483_p1 = scmp.ne.s32.totalorder %s17964_s12, %s14482_s13  ;;  %p14489_p12 = scmp.lt.u32.totalorder %s14482_s13, %s17964_s12 }
  0x76   : > { %p14485_p3 = pnand %p14483_p1, %p14984_p7 }
  0x78   : > { %p14486_p11 = pneg %p14485_p3 }
  0x7a   : > { %p14491_p13 = pnand %p14489_p12, %p14486_p11 }
  0x7c   : > { %14494 = shalt.err (!%p14491_p13)
}
  0x7d   : > { %s14495_s7 = scalar_lea.vmem %s528_s23, 1024  ;;  %p14503_p6 = scmp.lt.s32.totalorder %s528_s23, %s528_s23 }
  0x7e   : > { %p14496_p0 = scmp.ne.s32.totalorder %s528_s23, %s14495_s7  ;;  %p14504_p8 = scmp.lt.s32.totalorder %s14495_s7, %s14495_s7 }
  0x80   : > { %p14498_p2 = pnand %p14496_p0, %p14984_p7  ;;  %p14505_p9 = por %p14504_p8, %p14503_p6 }
  0x82   : > { %p14499_p4 = pneg %p14498_p2 }
  0x84   : > { %p14506_p10 = pnand %p14505_p9, %p14499_p4 }
  0x86   : > { %14509 = shalt.err (!%p14506_p10)
}
  0x87   : > { %13909 = dma.hbm_to_vmem [thread:$0]  (!%p14968_p5), %s17964_s12, 1024, %s528_s23, [#allocation17], %s17980_s6, %s17980_s6, %s17981_s8  }
  0x88   : > { %s18023_s2 = sld [smem:[#allocation40_spill]] }
  0x8e   : > { %s14510_s20 = scalar_lea.hbm %s18023_s2, 9216 }
  0x8f   : > { %p14511_p1 = scmp.ne.s32.totalorder %s18023_s2, %s14510_s20  ;;  %p14517_p12 = scmp.lt.u32.totalorder %s14510_s20, %s18023_s2 }
  0x91   : > { %p14513_p3 = pnand %p14511_p1, %p14984_p7 }
  0x93   : > { %p14514_p11 = pneg %p14513_p3 }
  0x95   : > { %p14519_p13 = pnand %p14517_p12, %p14514_p11 }
  0x97   : > { %14522 = shalt.err (!%p14519_p13)
}
  0x98   : > { %s14523_s15 = scalar_lea.vmem %s448_s10, 9216  ;;  %p14531_p6 = scmp.lt.s32.totalorder %s448_s10, %s448_s10 }
  0x99   : > { %p14524_p0 = scmp.ne.s32.totalorder %s448_s10, %s14523_s15  ;;  %p14532_p8 = scmp.lt.s32.totalorder %s14523_s15, %s14523_s15 }
  0x9b   : > { %p14526_p2 = pnand %p14524_p0, %p14984_p7  ;;  %p14533_p9 = por %p14532_p8, %p14531_p6 }
  0x9d   : > { %p14527_p4 = pneg %p14526_p2 }
  0x9f   : > { %p14534_p10 = pnand %p14533_p9, %p14527_p4 }
  0xa1   : > { %14537 = shalt.err (!%p14534_p10)
}
  0xa2   : > { %13894 = dma.hbm_to_vmem [thread:$0]  (!%p14968_p5), %s18023_s2, 9216, %s448_s10, [#allocation8], %s17980_s6, %s17980_s6, %s17981_s8  }
  0xa3   : > { %s14799_s1 = smov [#allocation12]   ;;  %s14800_s22 = smov [#allocation15]  }
  0xa4   : > { %s473_s21 = sshll.u32 %s14799_s1, 4  ;;  %s514_s19 = sshll.u32 %s14800_s22, 4  ;;  %s474_s21 = int_to_ptr.vmem [resolvable:$true] %s473_s21  ;;  %s515_s19 = int_to_ptr.vmem [resolvable:$true] %s514_s19 }
  0xa5   : > { %s14538_s13 = scalar_lea.hbm %s17956_s4, 9216 }
  0xa6   : > { %p14539_p1 = scmp.ne.s32.totalorder %s17956_s4, %s14538_s13  ;;  %p14545_p12 = scmp.lt.u32.totalorder %s14538_s13, %s17956_s4 }
  0xa8   : > { %p14541_p3 = pnand %p14539_p1, %p14984_p7 }
  0xaa   : > { %p14542_p11 = pneg %p14541_p3 }
  0xac   : > { %p14547_p13 = pnand %p14545_p12, %p14542_p11 }
  0xae   : > { %14550 = shalt.err (!%p14547_p13)
}
  0xaf   : > { %s14551_s10 = scalar_lea.vmem %s474_s21, 9216  ;;  %p14559_p6 = scmp.lt.s32.totalorder %s474_s21, %s474_s21 }
  0xb0   : > { %p14552_p0 = scmp.ne.s32.totalorder %s474_s21, %s14551_s10  ;;  %p14560_p8 = scmp.lt.s32.totalorder %s14551_s10, %s14551_s10 }
  0xb2   : > { %p14554_p2 = pnand %p14552_p0, %p14984_p7  ;;  %p14561_p9 = por %p14560_p8, %p14559_p6 }
  0xb4   : > { %p14555_p4 = pneg %p14554_p2 }
  0xb6   : > { %p14562_p10 = pnand %p14561_p9, %p14555_p4 }
  0xb8   : > { %14565 = shalt.err (!%p14562_p10)
}
  0xb9   : > { %13900 = dma.hbm_to_vmem [thread:$0]  (!%p14968_p5), %s17956_s4, 9216, %s474_s21, [#allocation11], %s17980_s6, %s17980_s6, %s17981_s8  }
  0xba   : > { %s14566_s17 = scalar_lea.hbm %s17963_s11, 4096 }
  0xbb   : > { %p14567_p1 = scmp.ne.s32.totalorder %s17963_s11, %s14566_s17  ;;  %p14573_p12 = scmp.lt.u32.totalorder %s14566_s17, %s17963_s11 }
  0xbd   : > { %p14569_p3 = pnand %p14567_p1, %p14984_p7 }
  0xbf   : > { %p14570_p11 = pneg %p14569_p3 }
  0xc1   : > { %p14575_p13 = pnand %p14573_p12, %p14570_p11 }
  0xc3   : > { %14578 = shalt.err (!%p14575_p13)
}
  0xc4   : > { %s14579_s23 = scalar_lea.vmem %s515_s19, 4096  ;;  %p14587_p6 = scmp.lt.s32.totalorder %s515_s19, %s515_s19 }
  0xc5   : > { %p14580_p0 = scmp.ne.s32.totalorder %s515_s19, %s14579_s23  ;;  %p14588_p8 = scmp.lt.s32.totalorder %s14579_s23, %s14579_s23 }
  0xc7   : > { %p14582_p2 = pnand %p14580_p0, %p14984_p7  ;;  %p14589_p9 = por %p14588_p8, %p14587_p6 }
  0xc9   : > { %p14583_p4 = pneg %p14582_p2 }
  0xcb   : > { %p14590_p10 = pnand %p14589_p9, %p14583_p4 }
  0xcd   : > { %14593 = shalt.err (!%p14590_p10)
}
  0xce   : > { %13906 = dma.hbm_to_vmem [thread:$0]  (!%p14968_p5), %s17963_s11, 4096, %s515_s19, [#allocation14], %s17980_s6, %s17980_s6, %s17981_s8  }
  0xcf   : > { %s14801_s7 = smov [#allocation18]   ;;  %s14594_s17 = scalar_lea.hbm %s17966_s14, 1024 }
  0xd0   : > { %s543_s1 = sshll.u32 %s14801_s7, 4  ;;  %p14595_p1 = scmp.ne.s32.totalorder %s17966_s14, %s14594_s17  ;;  %s544_s1 = int_to_ptr.vmem [resolvable:$true] %s543_s1 }
  0xd1   : > { %p14601_p12 = scmp.lt.u32.totalorder %s14594_s17, %s17966_s14 }
  0xd2   : > { %p14597_p3 = pnand %p14595_p1, %p14984_p7 }
  0xd4   : > { %p14598_p11 = pneg %p14597_p3 }
  0xd6   : > { %p14603_p13 = pnand %p14601_p12, %p14598_p11 }
  0xd8   : > { %14606 = shalt.err (!%p14603_p13)
}
  0xd9   : > { %s14607_s19 = scalar_lea.vmem %s544_s1, 1024  ;;  %p14615_p6 = scmp.lt.s32.totalorder %s544_s1, %s544_s1 }
  0xda   : > { %p14608_p0 = scmp.ne.s32.totalorder %s544_s1, %s14607_s19  ;;  %p14616_p8 = scmp.lt.s32.totalorder %s14607_s19, %s14607_s19 }
  0xdc   : > { %p14610_p2 = pnand %p14608_p0, %p14984_p7  ;;  %p14617_p9 = por %p14616_p8, %p14615_p6 }
  0xde   : > { %p14611_p4 = pneg %p14610_p2 }
  0xe0   : > { %p14618_p10 = pnand %p14617_p9, %p14611_p4 }
  0xe2   : > { %14621 = shalt.err (!%p14618_p10)
}
  0xe3   : > { %13912 = dma.hbm_to_vmem [thread:$0]  (!%p14968_p5), %s17966_s14, 1024, %s544_s1, [#allocation17], %s17980_s6, %s17980_s6, %s17981_s8  }
  0xe4   : > { %s18024_s27 = sld [smem:[#allocation28_spill]]  ;;  %s10605_s28 = sadd.s32 4294967294, %s14790_s0  }
  0xe5   : > { %s18025_s10 = sld [smem:[#allocation27_spill]]  ;;  %s45_s7 = sadd.s32 1, %s14782_s29 }
  0xe6   : > { %p46_p7 = scmp.ge.s32.totalorder %s45_s7, 2  ;;  %s48_s22 = sadd.s32 1, %s14786_s30 }
  0xe7   : > { %s55_s20 = sadd.s32 1, %s14770_s26  ;;  %p62_p1 = scmp.ne.s32.totalorder %s14770_s26, %s14766_s25 }
  0xe8   : > { %s18144_s7 = smov (%p46_p7, %s45_s7), 0  ;;  %s18146_s22 = smov (!%p46_p7, %s48_s22), %s14786_s30 }
  0xe9   : > { %p63_p3 = scmp.eq.s32.totalorder %s14790_s0, 0  ;;  %p68_p11 = scmp.ne.s32.totalorder %s14766_s25, %s14762_s24 }
  0xea   : > { %s18026_s1 = sld [smem:[#allocation26_spill]]  ;;  %p50_p5 = scmp.ge.s32.totalorder %s18146_s22, 2 }
  0xeb   : > { %s394_s17 = ssub.s32 %s14782_s29, %s18144_s7  ;;  %p15175_p12 = por %p63_p3, %p62_p1 }
  0xec   : > { %p18028_p13 = scmp.ne.s32.totalorder %s18016_s18, 0  ;;  %s18148_s22 = smov (%p50_p5, %s18146_s22), 0 }
  0xed   : > { %s398_s16 = sadd.s32 1, %s18024_s27  ;;  %p408_p2 = scmp.ne.s32.totalorder %s18024_s27, %s18025_s10 }
  0xee   : > { %p15181_p0 = por %p18028_p13, %p68_p11  ;;  %s52_s24 = ssub.s32 %s14786_s30, %s18148_s22 }
  0xef   : > { %s18030_s15 = sadd.s32 4294967295, %s14790_s0   ;;  %p53_p6 = scmp.eq.s32.totalorder %s52_s24, 0 }
  0xf0   : > { %p409_p4 = scmp.eq.s32.totalorder %s18030_s15, 3  ;;  %s395_s19 = sor.u32 %s394_s17, %s52_s24 }
  0xf1   : > { %p396_p8 = scmp.eq.s32.totalorder %s395_s19, 0  ;;  %p414_p10 = scmp.ne.s32.totalorder %s18025_s10, %s18026_s1 }
  0xf2   : > { %p15194_p9 = por %p409_p4, %p408_p2  ;;  %p415_p7 = scmp.eq.s32.totalorder %s10605_s28, 3 }
  0xf3   : > { %s15199_s21 = scalar_select %p53_p6, %s14770_s26, %s55_s20  }
  0xf4   : > { %s18031_s23 = scalar_select %p15194_p9, 1, 0 }
  0xf5   : > { %s18150_s27 = smov (!%p396_p8, %s18024_s27), %s398_s16  ;;  %p13929_p1 = scmp.lt.s32.totalorder %s14790_s0, 4 }
  0xf6   : > { %s560_s6 = sand.u32 1, %s14770_s26   ;;  %p15208_p3 = por %p415_p7, %p414_p10 }
  0xf7   : > { %s10616_s15 = sshll.u32 %s560_s6, 7  ;;  %s11629_s2 = sshll.u32 %s14786_s30, 11 }
  0xf8   : > { %s18032_s8 = scalar_select %p15208_p3, 1, 0 }
  0xf9   : > { %s18033_s19 = sld [smem:[#allocation38_spill]]  ;;  %s564_s20 = scalar_lea.vmem [#allocation4], %s10616_s15 }
  0xfa   : > { %s571_s10 = sshll.u32 %s564_s20, 4  ;;  %p15220_p11 = pnand %p13929_p1, %p15175_p12  ;;  %s15224_s10 = int_to_ptr.vmem [resolvable:$true] %s571_s10 }
  0xfb   : > { %s15226_s1 = scalar_lea.sflag [#allocation5], %s560_s6 }
  0xfc   : > { %p14624_p13 = pneg %p15220_p11 }
  0xff   : > { %s15216_s3 = scalar_lea.hbm %s18033_s19, %s11629_s2  ;;  %s14627_s15 = scalar_lea.hbm %s18033_s19, 4096 }
 0x100   : > { %s14622_s16 = scalar_lea.hbm %s15216_s3, 2048  ;;  %p14628_p12 = scmp.lt.u32.totalorder %s15216_s3, %s18033_s19 }
 0x101   : > { %p14623_p5 = scmp.ne.s32.totalorder %s15216_s3, %s14622_s16  ;;  %p14629_p6 = scmp.lt.u32.totalorder %s14627_s15, %s14622_s16 }
 0x102   : > { %p14631_p10 = scmp.lt.u32.totalorder %s14622_s16, %s15216_s3 }
 0x103   : > { %p14625_p2 = pnand %p14624_p13, %p14623_p5  ;;  %p14630_p8 = por %p14629_p6, %p14628_p12 }
 0x105   : > { %p14626_p4 = pneg %p14625_p2  ;;  %p14632_p7 = por %p14631_p10, %p14630_p8 }
 0x107   : > { %p14633_p1 = pnand %p14632_p7, %p14626_p4 }
 0x109   : > { %14636 = shalt.err (!%p14633_p1)
}
 0x10a   : > { %s14637_s6 = scalar_lea.vmem %s15224_s10, 2048  ;;  %s14802_s20 = smov [#allocation4]  }
 0x10b   : > { %p14638_p5 = scmp.ne.s32.totalorder %s15224_s10, %s14637_s6  ;;  %s14642_s2 = sshll.u32 %s14802_s20, 4  ;;  %s14643_s2 = int_to_ptr.vmem [resolvable:$false] %s14642_s2 }
 0x10c   : > { %s14644_s13 = scalar_lea.vmem %s14643_s2, 4096  ;;  %p14645_p9 = scmp.lt.s32.totalorder %s15224_s10, %s14643_s2 }
 0x10d   : > { %p14640_p2 = pnand %p14638_p5, %p14624_p13  ;;  %p14646_p12 = scmp.lt.s32.totalorder %s14644_s13, %s14637_s6 }
 0x10f   : > { %p14641_p3 = pneg %p14640_p2  ;;  %p14647_p6 = por %p14646_p12, %p14645_p9 }
 0x111   : > { %p14648_p8 = pnand %p14647_p6, %p14641_p3 }
 0x113   : > { %14651 = shalt.err (!%p14648_p8)
}
 0x114   : > { %s18035_s16 = smov 4   ;;  %s18036_s15 = smov 64  }
 0x115   : > { %13916 = dma.hbm_to_vmem [thread:$0]  (!%p15220_p11), %s15216_s3, 2048, %s15224_s10, %s15226_s1, %s18036_s15, %s18036_s15, %s18035_s16  }
 0x116   : > { %s18037_s17 = sld [smem:[#allocation31_spill]] }
 0x11c   : > { %p18038_p13 = scmp.ne.s32.totalorder %s18037_s17, 0 }
 0x11e   : > { %583 = sbr.rel (%p18038_p13) target bundleno = 2550 (0x9f6), region = 84 }
 0x125   : > { %s585_s24 = sand.u32 1, %s14766_s25  }
 0x126   : > { %s10620_s20 = sshll.u32 %s585_s24, 7  ;;  %s586_s6 = scalar_lea.sflag [#allocation5], %s585_s24 }
 0x127   : > { %s15260_s2 = scalar_lea.vmem [#allocation4], %s10620_s20 }
 0x128   : > { %14725 = dma.done.wait (%p15181_p0), %s586_s6, 2048  }
 0x129   : > { %14727 = vsyncadd (%p15181_p0), %s586_s6, 4294965248  ;;  %p18039_p9 = scmp.ne.s32.totalorder %s18016_s18, 0 }
 0x12b   : > { %14729 = dma.done.wait (%p18039_p9), [#allocation8], 10240  }
 0x12c   : > { %14731 = vsyncadd (%p18039_p9), [#allocation8], 4294957056 }
 0x12d   : > { %14733 = dma.done.wait (%p18039_p9), [#allocation11], 18432  }
 0x12e   : > { %14735 = vsyncadd (%p18039_p9), [#allocation11], 4294948864 }
 0x12f   : > { %14737 = dma.done.wait (%p18039_p9), [#allocation14], 5120  }
 0x130   : > { %14739 = vsyncadd (%p18039_p9), [#allocation14], 4294962176 }
 0x131   : > { %14741 = dma.done.wait (%p18039_p9), [#allocation17], 2048  }
 0x132   : > { %14743 = vsyncadd (%p18039_p9), [#allocation17], 4294965248  ;;  %s18040_s3 = sld [smem:[#allocation27_spill]]  ;;  %s18041_s1 = sld [smem:[#allocation29_spill]] }
 0x138   : > { %s667_s5 = sand.u32 1, %s18040_s3   ;;  %p10630_p0 = scmp.ne.s32.totalorder %s18041_s1, 0 }
 0x139   : > { %s10629_s10 = sshll.u32 %s667_s5, 6  ;;  %v15289_v0 = vld [vmem:[%s15260_s2] sm:$0xff] (!%p10630_p0)   ;;  %v15292_v1 = vld [vmem:[%s15260_s2 + $0x8] sm:$0xff] (!%p10630_p0)   ;;  %v15295_v2 = vld [vmem:[%s15260_s2 + $0x10] sm:$0xff] (!%p10630_p0)   ;;  %v14803_v3 = vmov (!%p10630_p0), 0   ;;  %v14804_v7 = vmov (!%p10630_p0), 0.0  }
 0x13a   : > { %s15285_s28 = scalar_lea.vmem [#allocation19], %s10629_s10  ;;  %675 = sbr.rel (%p10630_p0) target bundleno = 1013 (0x3f5), region = 124  ;;  %676 = vst [vmem:[#allocation2] sm:$0xf] (!%p10630_p0), %v14803_v3  ;;  %677 = vst [vmem:[#allocation2 + $0x4] sm:$0xf] (!%p10630_p0), %v14803_v3  ;;  %12324 = vmatprep.subr.bf16.mxu0 (!%p10630_p0), %v14804_v7  ;;  %12344 = vmatprep.subr.bf16.mxu1 (!%p10630_p0), %v14804_v7 }
 0x13b   : > { %678 = vst [vmem:[#allocation2 + $0x8] sm:$0xf] (!%p10630_p0), %v14803_v3  ;;  %679 = vst [vmem:[#allocation2 + $0xc] sm:$0xf] (!%p10630_p0), %v14803_v3  ;;  %v1098_v4 = vld [vmem:[%s15260_s2 + $0x18] sm:$0xff] (!%p10630_p0)   ;;  %v1100_v5 = vld [vmem:[%s15260_s2 + $0x20] sm:$0xff] (!%p10630_p0)  }
 0x13c   : > { %680 = vst [vmem:[#allocation2 + $0x10] sm:$0xf] (!%p10630_p0), %v14803_v3  ;;  %681 = vst [vmem:[#allocation2 + $0x14] sm:$0xf] (!%p10630_p0), %v14803_v3  ;;  %v1102_v6 = vld [vmem:[%s15260_s2 + $0x28] sm:$0xff] (!%p10630_p0)   ;;  %vm14805_vm0 = vmmov (!%p10630_p0), 0  }
 0x13d   : > { %682 = vst [vmem:[#allocation2 + $0x18] sm:$0xf] (!%p10630_p0), %v14803_v3  ;;  %683 = vst [vmem:[#allocation2 + $0x1c] sm:$0x1] (!%p10630_p0), %v14803_v3  ;;  %12340 = vmatprep.mubr.msk.bf16.mxu0 (!%p10630_p0), %vm14805_vm0, %v14804_v7  ;;  %v1104_v8 = vld [vmem:[%s15260_s2 + $0x30] sm:$0xff] (!%p10630_p0)   ;;  %v1106_v9 = vld [vmem:[%s15260_s2 + $0x38] sm:$0xff] (!%p10630_p0)   ;;  %12360 = vmatprep.mubr.msk.bf16.mxu1 (!%p10630_p0), %vm14805_vm0, %v14804_v7 }
 0x13e   : > { %684 = vst [vmem:[#allocation2 + $0x20] sm:$0xf] (!%p10630_p0), %v14803_v3  ;;  %685 = vst [vmem:[#allocation2 + $0x24] sm:$0xf] (!%p10630_p0), %v14803_v3  ;;  %v1108_v10 = vld [vmem:[%s15260_s2 + $0x40] sm:$0xff] (!%p10630_p0)   ;;  %v1110_v11 = vld [vmem:[%s15260_s2 + $0x48] sm:$0xff] (!%p10630_p0)  }
 0x13f   : > { %686 = vst [vmem:[#allocation2 + $0x28] sm:$0xf] (!%p10630_p0), %v14803_v3  ;;  %687 = vst [vmem:[#allocation2 + $0x2c] sm:$0xf] (!%p10630_p0), %v14803_v3  ;;  %v1112_v12 = vld [vmem:[%s15260_s2 + $0x50] sm:$0xff] (!%p10630_p0)   ;;  %v1114_v13 = vld [vmem:[%s15260_s2 + $0x58] sm:$0xff] (!%p10630_p0)  }
 0x140   : > { %688 = vst [vmem:[#allocation2 + $0x30] sm:$0xf] (!%p10630_p0), %v14803_v3  ;;  %689 = vst [vmem:[#allocation2 + $0x34] sm:$0xf] (!%p10630_p0), %v14803_v3  ;;  %v1116_v14 = vld [vmem:[%s15260_s2 + $0x60] sm:$0xff] (!%p10630_p0)   ;;  %v1118_v15 = vld [vmem:[%s15260_s2 + $0x68] sm:$0xff] (!%p10630_p0)  }
 0x141   : > { %690 = vst [vmem:[#allocation2 + $0x38] sm:$0xf] %v14803_v3  ;;  %691 = vst [vmem:[#allocation2 + $0x3c] sm:$0x1] %v14803_v3  ;;  %v1120_v16 = vld [vmem:[%s15260_s2 + $0x70] sm:$0xff]   ;;  %v1122_v17 = vld [vmem:[%s15260_s2 + $0x78] sm:$0xff]  }
 0x142   : > { %692 = vst [vmem:[#allocation2 + $0x40] sm:$0xf] %v14803_v3  ;;  %693 = vst [vmem:[#allocation2 + $0x44] sm:$0xf] %v14803_v3  ;;  %v14042_v18 = vld [vmem:[#allocation13] sm:$0xff]   ;;  %v14043_v19 = vld [vmem:[#allocation13 + $0x8] sm:$0xff]  }
 0x143   : > { %694 = vst [vmem:[#allocation2 + $0x48] sm:$0xf] %v14803_v3  ;;  %695 = vst [vmem:[#allocation2 + $0x4c] sm:$0xf] %v14803_v3  ;;  %12325 = vmatpush3.bf16.msra.mxu0 %v14042_v18  ;;  %v14044_v20 = vld [vmem:[#allocation13 + $0x10] sm:$0xff]   ;;  %v11653_v21 = vld [vmem:[%s15260_s2] sm:$0xff]  }
 0x144   : > { %696 = vst [vmem:[#allocation2 + $0x50] sm:$0xf] %v14803_v3  ;;  %697 = vst [vmem:[#allocation2 + $0x54] sm:$0xf] %v14803_v3  ;;  %12326 = vmatprep.subr.bf16.mxu0 %v14804_v7  ;;  %v14045_v22 = vld [vmem:[#allocation13 + $0x18] sm:$0xff]   ;;  %v11756_v23 = vld [vmem:[%s15260_s2 + $0x8] sm:$0xff]   ;;  %v11654_v25 = vunpack.c.l.bf16 %v11653_v21  ;;  %v11655_v26 = vunpack.c.h.bf16 %v11653_v21 }
 0x145   : > { %698 = vst [vmem:[#allocation2 + $0x58] sm:$0xf] %v14803_v3  ;;  %699 = vst [vmem:[#allocation2 + $0x5c] sm:$0x1] %v14803_v3  ;;  %v14046_v24 = vld [vmem:[#allocation13 + $0x20] sm:$0xff]   ;;  %v11658_v28 = vunpack.c.l.bf16 %v11756_v23  ;;  %v11757_v29 = vld [vmem:[%s15260_s2 + $0x10] sm:$0xff]   ;;  %v11659_v31 = vunpack.c.h.bf16 %v11756_v23 }
 0x146   : > { %700 = vst [vmem:[#allocation2 + $0x60] sm:$0xf] %v14803_v3  ;;  %701 = vst [vmem:[#allocation2 + $0x64] sm:$0xf] %v14803_v3  ;;  %v14050_v27 = vld [vmem:[#allocation16] sm:$0xff]   ;;  %v14051_v30 = vld [vmem:[#allocation16 + $0x8] sm:$0xff]   ;;  %v1221_v32 = vadd.f32 %v11655_v26, %v11654_v25  ;;  %v11662_v34 = vunpack.c.l.bf16 %v11757_v29  ;;  %v11663_v38 = vunpack.c.h.bf16 %v11757_v29 }
 0x147   : > { %702 = vst [vmem:[#allocation2 + $0x68] sm:$0xf] %v14803_v3  ;;  %703 = vst [vmem:[#allocation2 + $0x6c] sm:$0xf] %v14803_v3  ;;  %12327 = vmatpush3.bf16.msra.mxu0 %v14043_v19  ;;  %12345 = vmatpush3.bf16.msra.mxu1 %v14050_v27  ;;  %v14047_v33 = vld [vmem:[#allocation13 + $0x28] sm:$0xff]   ;;  %v11758_v35 = vld [vmem:[%s15260_s2 + $0x18] sm:$0xff]  }
 0x148   : > { %704 = vst [vmem:[#allocation2 + $0x70] sm:$0xf] %v14803_v3  ;;  %705 = vst [vmem:[#allocation2 + $0x74] sm:$0xf] %v14803_v3  ;;  %12328 = vmatprep.subr.bf16.mxu0 %v14804_v7  ;;  %12346 = vmatprep.subr.bf16.mxu1 %v14804_v7  ;;  %v1222_v36 = vadd.f32 %v11658_v28, %v1221_v32  ;;  %v14052_v37 = vld [vmem:[#allocation16 + $0x10] sm:$0xff]   ;;  %v11666_v41 = vunpack.c.l.bf16 %v11758_v35  ;;  %v11759_v43 = vld [vmem:[%s15260_s2 + $0x20] sm:$0xff]   ;;  %v11667_v45 = vunpack.c.h.bf16 %v11758_v35 }
 0x149   : > { %706 = vst [vmem:[#allocation2 + $0x78] sm:$0xf] %v14803_v3  ;;  %707 = vst [vmem:[#allocation2 + $0x7c] sm:$0x1] %v14803_v3  ;;  %v14048_v40 = vld [vmem:[#allocation13 + $0x30] sm:$0xff]   ;;  %v14053_v44 = vld [vmem:[#allocation16 + $0x18] sm:$0xff]   ;;  %v11670_v48 = vunpack.c.l.bf16 %v11759_v43  ;;  %v11671_v52 = vunpack.c.h.bf16 %v11759_v43 }
 0x14a   : > { %708 = vst [vmem:[#allocation2 + $0x80] sm:$0xf] %v14803_v3  ;;  %709 = vst [vmem:[#allocation2 + $0x84] sm:$0xf] %v14803_v3  ;;  %v1223_v39 = vadd.f32 %v11659_v31, %v1222_v36  ;;  %v14049_v47 = vld [vmem:[#allocation13 + $0x38] sm:$0xff]   ;;  %v11760_v50 = vld [vmem:[%s15260_s2 + $0x28] sm:$0xff]  }
 0x14b   : > { %710 = vst [vmem:[#allocation2 + $0x88] sm:$0xf] %v14803_v3  ;;  %711 = vst [vmem:[#allocation2 + $0x8c] sm:$0xf] %v14803_v3  ;;  %12329 = vmatpush3.bf16.msra.mxu0 %v14044_v20  ;;  %12347 = vmatpush3.bf16.msra.mxu1 %v14051_v30  ;;  %v14054_v51 = vld [vmem:[#allocation16 + $0x20] sm:$0xff]   ;;  %v11674_v54 = vunpack.c.l.bf16 %v11760_v50  ;;  %v11761_v56 = vld [vmem:[%s15260_s2 + $0x30] sm:$0xff]   ;;  %v11675_v58 = vunpack.c.h.bf16 %v11760_v50 }
 0x14c   : > { %712 = vst [vmem:[#allocation2 + $0x90] sm:$0xf] %v14803_v3  ;;  %713 = vst [vmem:[#allocation2 + $0x94] sm:$0xf] %v14803_v3  ;;  %12330 = vmatprep.subr.bf16.mxu0 %v14804_v7  ;;  %12348 = vmatprep.subr.bf16.mxu1 %v14804_v7  ;;  %v1224_v42 = vadd.f32 %v11662_v34, %v1223_v39  ;;  %v14055_v57 = vld [vmem:[#allocation16 + $0x28] sm:$0xff]   ;;  %v11678_v60 = vunpack.c.l.bf16 %v11761_v56  ;;  %v11762_v62 = vld [vmem:[%s15260_s2 + $0x38] sm:$0xff]   ;;  %v11679_v63 = vunpack.c.h.bf16 %v11761_v56 }
 0x14d   : > { %714 = vst [vmem:[#allocation2 + $0x98] sm:$0xf] %v14803_v3  ;;  %715 = vst [vmem:[#allocation2 + $0x9c] sm:$0x1] %v14803_v3  ;;  %v11766_v19 = vld [vmem:[%s15260_s2 + $0x58] sm:$0xff]   ;;  %v11768_v29 = vld [vmem:[%s15260_s2 + $0x68] sm:$0xff]  }
 0x14e   : > { %716 = vst [vmem:[#allocation2 + $0xa0] sm:$0xf] %v14803_v3  ;;  %717 = vst [vmem:[#allocation2 + $0xa4] sm:$0xf] %v14803_v3  ;;  %v1225_v46 = vadd.f32 %v11663_v38, %v1224_v42  ;;  %v11699_v25 = vunpack.c.h.bf16 %v11766_v19  ;;  %v11706_v32 = vunpack.c.l.bf16 %v11768_v29  ;;  %v11769_v34 = vld [vmem:[%s15260_s2 + $0x70] sm:$0xff]   ;;  %v11707_v35 = vunpack.c.h.bf16 %v11768_v29  ;;  %v11770_v39 = vld [vmem:[%s15260_s2 + $0x78] sm:$0xff]  }
 0x14f   : > { %718 = vst [vmem:[#allocation2 + $0xa8] sm:$0xf] %v14803_v3  ;;  %719 = vst [vmem:[#allocation2 + $0xac] sm:$0xf] %v14803_v3  ;;  %12331 = vmatpush3.bf16.msra.mxu0 %v14045_v22  ;;  %12349 = vmatpush3.bf16.msra.mxu1 %v14052_v37  ;;  %v11698_v22 = vunpack.c.l.bf16 %v11766_v19  ;;  %v11710_v37 = vunpack.c.l.bf16 %v11769_v34  ;;  %v11714_v42 = vunpack.c.l.bf16 %v11770_v39  ;;  %v14056_v56 = vld [vmem:[#allocation16 + $0x30] sm:$0xff]   ;;  %s18042_s16 = sld [smem:[#allocation46_spill]] }
 0x150   : > { %720 = vst [vmem:[#allocation2 + $0xb0] sm:$0xf] %v14803_v3  ;;  %721 = vst [vmem:[#allocation2 + $0xb4] sm:$0xf] %v14803_v3  ;;  %12332 = vmatprep.subr.bf16.mxu0 %v14804_v7  ;;  %12350 = vmatprep.subr.bf16.mxu1 %v14804_v7  ;;  %v1226_v49 = vadd.f32 %v11666_v41, %v1225_v46 }
 0x151   : > { %722 = vst [vmem:[#allocation2 + $0xb8] sm:$0xf] %v14803_v3  ;;  %723 = vst [vmem:[#allocation2 + $0xbc] sm:$0x1] %v14803_v3 }
 0x152   : > { %724 = vst [vmem:[#allocation2 + $0xc0] sm:$0xf] %v14803_v3  ;;  %725 = vst [vmem:[#allocation2 + $0xc4] sm:$0xf] %v14803_v3  ;;  %v1227_v53 = vadd.f32 %v11667_v45, %v1226_v49 }
 0x153   : > { %726 = vst [vmem:[#allocation2 + $0xc8] sm:$0xf] %v14803_v3  ;;  %727 = vst [vmem:[#allocation2 + $0xcc] sm:$0xf] %v14803_v3  ;;  %12333 = vmatpush3.bf16.msra.mxu0 %v14046_v24  ;;  %12351 = vmatpush3.bf16.msra.mxu1 %v14053_v44  ;;  %v11767_v24 = vld [vmem:[%s15260_s2 + $0x60] sm:$0xff]   ;;  %v11715_v44 = vunpack.c.h.bf16 %v11770_v39 }
 0x154   : > { %728 = vst [vmem:[#allocation2 + $0xd0] sm:$0xf] %v14803_v3  ;;  %729 = vst [vmem:[#allocation2 + $0xd4] sm:$0xf] %v14803_v3  ;;  %12334 = vmatprep.subr.bf16.mxu0 %v14804_v7  ;;  %12352 = vmatprep.subr.bf16.mxu1 %v14804_v7  ;;  %v1228_v55 = vadd.f32 %v11670_v48, %v1227_v53  ;;  %v11702_v27 = vunpack.c.l.bf16 %v11767_v24  ;;  %v11703_v30 = vunpack.c.h.bf16 %v11767_v24 }
 0x155   : > { %730 = vst [vmem:[#allocation2 + $0xd8] sm:$0xf] %v14803_v3  ;;  %731 = vst [vmem:[#allocation2 + $0xdc] sm:$0x1] %v14803_v3 }
 0x156   : > { %732 = vst [vmem:[#allocation2 + $0xe0] sm:$0xf] %v14803_v3  ;;  %733 = vst [vmem:[#allocation2 + $0xe4] sm:$0xf] %v14803_v3  ;;  %v1229_v59 = vadd.f32 %v11671_v52, %v1228_v55 }
 0x157   : > { %734 = vst [vmem:[#allocation2 + $0xe8] sm:$0xf] %v14803_v3  ;;  %735 = vst [vmem:[#allocation2 + $0xec] sm:$0xf] %v14803_v3  ;;  %12335 = vmatpush3.bf16.msra.mxu0 %v14047_v33  ;;  %12353 = vmatpush3.bf16.msra.mxu1 %v14054_v51 }
 0x158   : > { %736 = vst [vmem:[#allocation2 + $0xf0] sm:$0xf] %v14803_v3  ;;  %737 = vst [vmem:[#allocation2 + $0xf4] sm:$0xf] %v14803_v3  ;;  %12336 = vmatprep.subr.bf16.mxu0 %v14804_v7  ;;  %12354 = vmatprep.subr.bf16.mxu1 %v14804_v7  ;;  %v1230_v61 = vadd.f32 %v11674_v54, %v1229_v59 }
 0x159   : > { %738 = vst [vmem:[#allocation2 + $0xf8] sm:$0xf] %v14803_v3  ;;  %739 = vst [vmem:[#allocation2 + $0xfc] sm:$0x1] %v14803_v3 }
 0x15a   : > { %740 = vst [vmem:[#allocation2 + $0x100] sm:$0xf] %v14803_v3  ;;  %741 = vst [vmem:[#allocation2 + $0x104] sm:$0xf] %v14803_v3 }
 0x15b   : > { %742 = vst [vmem:[#allocation2 + $0x108] sm:$0xf] %v14803_v3  ;;  %743 = vst [vmem:[#allocation2 + $0x10c] sm:$0xf] %v14803_v3  ;;  %12337 = vmatpush3.bf16.msra.mxu0 %v14048_v40  ;;  %12355 = vmatpush3.bf16.msra.mxu1 %v14055_v57  ;;  %v11711_v40 = vunpack.c.h.bf16 %v11769_v34  ;;  %v14057_v57 = vld [vmem:[#allocation16 + $0x38] sm:$0xff]  }
 0x15c   : > { %744 = vst [vmem:[#allocation2 + $0x110] sm:$0xf] %v14803_v3  ;;  %745 = vst [vmem:[#allocation2 + $0x114] sm:$0xf] %v14803_v3  ;;  %12338 = vmatprep.subr.bf16.mxu0 %v14804_v7  ;;  %12356 = vmatprep.subr.bf16.mxu1 %v14804_v7 }
 0x15d   : > { %746 = vst [vmem:[#allocation2 + $0x118] sm:$0xf] %v14803_v3  ;;  %747 = vst [vmem:[#allocation2 + $0x11c] sm:$0x1] %v14803_v3 }
 0x15e   : > { %748 = vst [vmem:[#allocation2 + $0x120] sm:$0xf] %v14803_v3  ;;  %749 = vst [vmem:[#allocation2 + $0x124] sm:$0xf] %v14803_v3 }
 0x15f   : > { %750 = vst [vmem:[#allocation2 + $0x128] sm:$0xf] %v14803_v3  ;;  %751 = vst [vmem:[#allocation2 + $0x12c] sm:$0xf] %v14803_v3  ;;  %12339 = vmatpush3.bf16.msra.mxu0 %v14049_v47  ;;  %12357 = vmatpush3.bf16.msra.mxu1 %v14056_v56 }
 0x160   : > { %752 = vst [vmem:[#allocation2 + $0x130] sm:$0xf] %v14803_v3  ;;  %753 = vst [vmem:[#allocation2 + $0x134] sm:$0xf] %v14803_v3  ;;  %12358 = vmatprep.subr.bf16.mxu1 %v14804_v7 }
 0x161   : > { %754 = vst [vmem:[#allocation2 + $0x138] sm:$0xf] %v14803_v3  ;;  %755 = vst [vmem:[#allocation2 + $0x13c] sm:$0x1] %v14803_v3 }
 0x162   : > { %756 = vst [vmem:[#allocation2 + $0x140] sm:$0xf] %v14803_v3  ;;  %757 = vst [vmem:[#allocation2 + $0x144] sm:$0xf] %v14803_v3 }
 0x163   : > { %758 = vst [vmem:[#allocation2 + $0x148] sm:$0xf] %v14803_v3  ;;  %759 = vst [vmem:[#allocation2 + $0x14c] sm:$0xf] %v14803_v3  ;;  %12359 = vmatpush3.bf16.msra.mxu1 %v14057_v57 }
 0x164   : > { %760 = vst [vmem:[#allocation2 + $0x150] sm:$0xf] %v14803_v3  ;;  %761 = vst [vmem:[#allocation2 + $0x154] sm:$0xf] %v14803_v3 }
 0x165   : > { %762 = vst [vmem:[#allocation2 + $0x158] sm:$0xf] %v14803_v3  ;;  %763 = vst [vmem:[#allocation2 + $0x15c] sm:$0x1] %v14803_v3 }
 0x166   : > { %764 = vst [vmem:[#allocation2 + $0x160] sm:$0xf] %v14803_v3  ;;  %765 = vst [vmem:[#allocation2 + $0x164] sm:$0xf] %v14803_v3 }
 0x167   : > { %766 = vst [vmem:[#allocation2 + $0x168] sm:$0xf] %v14803_v3  ;;  %767 = vst [vmem:[#allocation2 + $0x16c] sm:$0xf] %v14803_v3 }
 0x168   : > { %768 = vst [vmem:[#allocation2 + $0x170] sm:$0xf] %v14803_v3  ;;  %769 = vst [vmem:[#allocation2 + $0x174] sm:$0xf] %v14803_v3 }
 0x169   : > { %770 = vst [vmem:[#allocation2 + $0x178] sm:$0xf] %v14803_v3  ;;  %771 = vst [vmem:[#allocation2 + $0x17c] sm:$0x1] %v14803_v3 }
 0x16a   : > { %772 = vst [vmem:[#allocation2 + $0x180] sm:$0xf] %v14803_v3  ;;  %773 = vst [vmem:[#allocation2 + $0x184] sm:$0xf] %v14803_v3 }
 0x16b   : > { %774 = vst [vmem:[#allocation2 + $0x188] sm:$0xf] %v14803_v3  ;;  %775 = vst [vmem:[#allocation2 + $0x18c] sm:$0xf] %v14803_v3 }
 0x16c   : > { %776 = vst [vmem:[#allocation2 + $0x190] sm:$0xf] %v14803_v3  ;;  %777 = vst [vmem:[#allocation2 + $0x194] sm:$0xf] %v14803_v3 }
 0x16d   : > { %778 = vst [vmem:[#allocation2 + $0x198] sm:$0xf] %v14803_v3  ;;  %779 = vst [vmem:[#allocation2 + $0x19c] sm:$0x1] %v14803_v3 }
 0x16e   : > { %780 = vst [vmem:[#allocation2 + $0x1a0] sm:$0xf] %v14803_v3  ;;  %781 = vst [vmem:[#allocation2 + $0x1a4] sm:$0xf] %v14803_v3 }
 0x16f   : > { %782 = vst [vmem:[#allocation2 + $0x1a8] sm:$0xf] %v14803_v3  ;;  %783 = vst [vmem:[#allocation2 + $0x1ac] sm:$0xf] %v14803_v3 }
 0x170   : > { %784 = vst [vmem:[#allocation2 + $0x1b0] sm:$0xf] %v14803_v3  ;;  %785 = vst [vmem:[#allocation2 + $0x1b4] sm:$0xf] %v14803_v3 }
 0x171   : > { %786 = vst [vmem:[#allocation2 + $0x1b8] sm:$0xf] %v14803_v3  ;;  %787 = vst [vmem:[#allocation2 + $0x1bc] sm:$0x1] %v14803_v3 }
 0x172   : > { %788 = vst [vmem:[#allocation2 + $0x1c0] sm:$0xf] %v14803_v3  ;;  %789 = vst [vmem:[#allocation2 + $0x1c4] sm:$0xf] %v14803_v3 }
 0x173   : > { %790 = vst [vmem:[#allocation2 + $0x1c8] sm:$0xf] %v14803_v3  ;;  %791 = vst [vmem:[#allocation2 + $0x1cc] sm:$0xf] %v14803_v3 }
 0x174   : > { %792 = vst [vmem:[#allocation2 + $0x1d0] sm:$0xf] %v14803_v3  ;;  %793 = vst [vmem:[#allocation2 + $0x1d4] sm:$0xf] %v14803_v3 }
 0x175   : > { %794 = vst [vmem:[#allocation2 + $0x1d8] sm:$0xf] %v14803_v3  ;;  %795 = vst [vmem:[#allocation2 + $0x1dc] sm:$0x1] %v14803_v3 }
 0x176   : > { %796 = vst [vmem:[#allocation2 + $0x1e0] sm:$0xf] %v14803_v3  ;;  %797 = vst [vmem:[#allocation2 + $0x1e4] sm:$0xf] %v14803_v3 }
 0x177   : > { %798 = vst [vmem:[#allocation2 + $0x1e8] sm:$0xf] %v14803_v3  ;;  %799 = vst [vmem:[#allocation2 + $0x1ec] sm:$0xf] %v14803_v3 }
 0x178   : > { %800 = vst [vmem:[#allocation2 + $0x1f0] sm:$0xf] %v14803_v3  ;;  %801 = vst [vmem:[#allocation2 + $0x1f4] sm:$0xf] %v14803_v3 }
 0x179   : > { %802 = vst [vmem:[#allocation2 + $0x1f8] sm:$0xf] %v14803_v3  ;;  %803 = vst [vmem:[#allocation2 + $0x1fc] sm:$0x1] %v14803_v3 }
 0x17a   : > { %804 = vst [vmem:[#allocation2 + $0x200] sm:$0xf] %v14803_v3  ;;  %805 = vst [vmem:[#allocation2 + $0x204] sm:$0xf] %v14803_v3 }
 0x17b   : > { %806 = vst [vmem:[#allocation2 + $0x208] sm:$0xf] %v14803_v3  ;;  %807 = vst [vmem:[#allocation2 + $0x20c] sm:$0xf] %v14803_v3 }
 0x17c   : > { %808 = vst [vmem:[#allocation2 + $0x210] sm:$0xf] %v14803_v3  ;;  %809 = vst [vmem:[#allocation2 + $0x214] sm:$0xf] %v14803_v3 }
 0x17d   : > { %810 = vst [vmem:[#allocation2 + $0x218] sm:$0xf] %v14803_v3  ;;  %811 = vst [vmem:[#allocation2 + $0x21c] sm:$0x1] %v14803_v3 }
 0x17e   : > { %812 = vst [vmem:[#allocation2 + $0x220] sm:$0xf] %v14803_v3  ;;  %813 = vst [vmem:[#allocation2 + $0x224] sm:$0xf] %v14803_v3 }
 0x17f   : > { %814 = vst [vmem:[#allocation2 + $0x228] sm:$0xf] %v14803_v3  ;;  %815 = vst [vmem:[#allocation2 + $0x22c] sm:$0xf] %v14803_v3 }
 0x180   : > { %816 = vst [vmem:[#allocation2 + $0x230] sm:$0xf] %v14803_v3  ;;  %817 = vst [vmem:[#allocation2 + $0x234] sm:$0xf] %v14803_v3 }
 0x181   : > { %818 = vst [vmem:[#allocation2 + $0x238] sm:$0xf] %v14803_v3  ;;  %819 = vst [vmem:[#allocation2 + $0x23c] sm:$0x1] %v14803_v3 }
 0x182   : > { %820 = vst [vmem:[#allocation2 + $0x240] sm:$0xf] %v14803_v3  ;;  %821 = vst [vmem:[#allocation2 + $0x244] sm:$0xf] %v14803_v3 }
 0x183   : > { %822 = vst [vmem:[#allocation2 + $0x248] sm:$0xf] %v14803_v3  ;;  %823 = vst [vmem:[#allocation2 + $0x24c] sm:$0xf] %v14803_v3 }
 0x184   : > { %824 = vst [vmem:[#allocation2 + $0x250] sm:$0xf] %v14803_v3  ;;  %825 = vst [vmem:[#allocation2 + $0x254] sm:$0xf] %v14803_v3 }
 0x185   : > { %826 = vst [vmem:[#allocation2 + $0x258] sm:$0xf] %v14803_v3  ;;  %827 = vst [vmem:[#allocation2 + $0x25c] sm:$0x1] %v14803_v3 }
 0x186   : > { %828 = vst [vmem:[#allocation2 + $0x260] sm:$0xf] %v14803_v3  ;;  %829 = vst [vmem:[#allocation2 + $0x264] sm:$0xf] %v14803_v3 }
 0x187   : > { %830 = vst [vmem:[#allocation2 + $0x268] sm:$0xf] %v14803_v3  ;;  %831 = vst [vmem:[#allocation2 + $0x26c] sm:$0xf] %v14803_v3 }
 0x188   : > { %832 = vst [vmem:[#allocation2 + $0x270] sm:$0xf] %v14803_v3  ;;  %833 = vst [vmem:[#allocation2 + $0x274] sm:$0xf] %v14803_v3 }
 0x189   : > { %834 = vst [vmem:[#allocation2 + $0x278] sm:$0xf] %v14803_v3  ;;  %835 = vst [vmem:[#allocation2 + $0x27c] sm:$0x1] %v14803_v3 }
 0x18a   : > { %836 = vst [vmem:[#allocation2 + $0x280] sm:$0xf] %v14803_v3  ;;  %837 = vst [vmem:[#allocation2 + $0x284] sm:$0xf] %v14803_v3 }
 0x18b   : > { %838 = vst [vmem:[#allocation2 + $0x288] sm:$0xf] %v14803_v3  ;;  %839 = vst [vmem:[#allocation2 + $0x28c] sm:$0xf] %v14803_v3 }
 0x18c   : > { %840 = vst [vmem:[#allocation2 + $0x290] sm:$0xf] %v14803_v3  ;;  %841 = vst [vmem:[#allocation2 + $0x294] sm:$0xf] %v14803_v3 }
 0x18d   : > { %842 = vst [vmem:[#allocation2 + $0x298] sm:$0xf] %v14803_v3  ;;  %843 = vst [vmem:[#allocation2 + $0x29c] sm:$0x1] %v14803_v3 }
 0x18e   : > { %844 = vst [vmem:[#allocation2 + $0x2a0] sm:$0xf] %v14803_v3  ;;  %845 = vst [vmem:[#allocation2 + $0x2a4] sm:$0xf] %v14803_v3 }
 0x18f   : > { %846 = vst [vmem:[#allocation2 + $0x2a8] sm:$0xf] %v14803_v3  ;;  %847 = vst [vmem:[#allocation2 + $0x2ac] sm:$0xf] %v14803_v3 }
 0x190   : > { %848 = vst [vmem:[#allocation2 + $0x2b0] sm:$0xf] %v14803_v3  ;;  %849 = vst [vmem:[#allocation2 + $0x2b4] sm:$0xf] %v14803_v3 }
 0x191   : > { %850 = vst [vmem:[#allocation2 + $0x2b8] sm:$0xf] %v14803_v3  ;;  %851 = vst [vmem:[#allocation2 + $0x2bc] sm:$0x1] %v14803_v3 }
 0x192   : > { %852 = vst [vmem:[#allocation2 + $0x2c0] sm:$0xf] %v14803_v3  ;;  %853 = vst [vmem:[#allocation2 + $0x2c4] sm:$0xf] %v14803_v3 }
 0x193   : > { %854 = vst [vmem:[#allocation2 + $0x2c8] sm:$0xf] %v14803_v3  ;;  %855 = vst [vmem:[#allocation2 + $0x2cc] sm:$0xf] %v14803_v3 }
 0x194   : > { %856 = vst [vmem:[#allocation2 + $0x2d0] sm:$0xf] %v14803_v3  ;;  %857 = vst [vmem:[#allocation2 + $0x2d4] sm:$0xf] %v14803_v3 }
 0x195   : > { %858 = vst [vmem:[#allocation2 + $0x2d8] sm:$0xf] %v14803_v3  ;;  %859 = vst [vmem:[#allocation2 + $0x2dc] sm:$0x1] %v14803_v3 }
 0x196   : > { %860 = vst [vmem:[#allocation2 + $0x2e0] sm:$0xf] %v14803_v3  ;;  %861 = vst [vmem:[#allocation2 + $0x2e4] sm:$0xf] %v14803_v3 }
 0x197   : > { %862 = vst [vmem:[#allocation2 + $0x2e8] sm:$0xf] %v14803_v3  ;;  %863 = vst [vmem:[#allocation2 + $0x2ec] sm:$0xf] %v14803_v3 }
 0x198   : > { %864 = vst [vmem:[#allocation2 + $0x2f0] sm:$0xf] %v14803_v3  ;;  %865 = vst [vmem:[#allocation2 + $0x2f4] sm:$0xf] %v14803_v3 }
 0x199   : > { %866 = vst [vmem:[#allocation2 + $0x2f8] sm:$0xf] %v14803_v3  ;;  %867 = vst [vmem:[#allocation2 + $0x2fc] sm:$0x1] %v14803_v3 }
 0x19a   : > { %868 = vst [vmem:[#allocation2 + $0x300] sm:$0xf] %v14803_v3  ;;  %869 = vst [vmem:[#allocation2 + $0x304] sm:$0xf] %v14803_v3 }
 0x19b   : > { %870 = vst [vmem:[#allocation2 + $0x308] sm:$0xf] %v14803_v3  ;;  %871 = vst [vmem:[#allocation2 + $0x30c] sm:$0xf] %v14803_v3 }
 0x19c   : > { %872 = vst [vmem:[#allocation2 + $0x310] sm:$0xf] %v14803_v3  ;;  %873 = vst [vmem:[#allocation2 + $0x314] sm:$0xf] %v14803_v3 }
 0x19d   : > { %874 = vst [vmem:[#allocation2 + $0x318] sm:$0xf] %v14803_v3  ;;  %875 = vst [vmem:[#allocation2 + $0x31c] sm:$0x1] %v14803_v3 }
 0x19e   : > { %876 = vst [vmem:[#allocation2 + $0x320] sm:$0xf] %v14803_v3  ;;  %877 = vst [vmem:[#allocation2 + $0x324] sm:$0xf] %v14803_v3 }
 0x19f   : > { %878 = vst [vmem:[#allocation2 + $0x328] sm:$0xf] %v14803_v3  ;;  %879 = vst [vmem:[#allocation2 + $0x32c] sm:$0xf] %v14803_v3 }
 0x1a0   : > { %880 = vst [vmem:[#allocation2 + $0x330] sm:$0xf] %v14803_v3  ;;  %881 = vst [vmem:[#allocation2 + $0x334] sm:$0xf] %v14803_v3 }
 0x1a1   : > { %882 = vst [vmem:[#allocation2 + $0x338] sm:$0xf] %v14803_v3  ;;  %883 = vst [vmem:[#allocation2 + $0x33c] sm:$0x1] %v14803_v3 }
 0x1a2   : > { %884 = vst [vmem:[#allocation2 + $0x340] sm:$0xf] %v14803_v3  ;;  %885 = vst [vmem:[#allocation2 + $0x344] sm:$0xf] %v14803_v3 }
 0x1a3   : > { %886 = vst [vmem:[#allocation2 + $0x348] sm:$0xf] %v14803_v3  ;;  %887 = vst [vmem:[#allocation2 + $0x34c] sm:$0xf] %v14803_v3 }
 0x1a4   : > { %888 = vst [vmem:[#allocation2 + $0x350] sm:$0xf] %v14803_v3  ;;  %889 = vst [vmem:[#allocation2 + $0x354] sm:$0xf] %v14803_v3 }
 0x1a5   : > { %890 = vst [vmem:[#allocation2 + $0x358] sm:$0xf] %v14803_v3  ;;  %891 = vst [vmem:[#allocation2 + $0x35c] sm:$0x1] %v14803_v3 }
 0x1a6   : > { %892 = vst [vmem:[#allocation2 + $0x360] sm:$0xf] %v14803_v3  ;;  %893 = vst [vmem:[#allocation2 + $0x364] sm:$0xf] %v14803_v3 }
 0x1a7   : > { %894 = vst [vmem:[#allocation2 + $0x368] sm:$0xf] %v14803_v3  ;;  %895 = vst [vmem:[#allocation2 + $0x36c] sm:$0xf] %v14803_v3 }
 0x1a8   : > { %896 = vst [vmem:[#allocation2 + $0x370] sm:$0xf] %v14803_v3  ;;  %897 = vst [vmem:[#allocation2 + $0x374] sm:$0xf] %v14803_v3 }
 0x1a9   : > { %898 = vst [vmem:[#allocation2 + $0x378] sm:$0xf] %v14803_v3  ;;  %899 = vst [vmem:[#allocation2 + $0x37c] sm:$0x1] %v14803_v3 }
 0x1aa   : > { %900 = vst [vmem:[#allocation2 + $0x380] sm:$0xf] %v14803_v3  ;;  %901 = vst [vmem:[#allocation2 + $0x384] sm:$0xf] %v14803_v3 }
 0x1ab   : > { %902 = vst [vmem:[#allocation2 + $0x388] sm:$0xf] %v14803_v3  ;;  %903 = vst [vmem:[#allocation2 + $0x38c] sm:$0xf] %v14803_v3 }
 0x1ac   : > { %904 = vst [vmem:[#allocation2 + $0x390] sm:$0xf] %v14803_v3  ;;  %905 = vst [vmem:[#allocation2 + $0x394] sm:$0xf] %v14803_v3 }
 0x1ad   : > { %906 = vst [vmem:[#allocation2 + $0x398] sm:$0xf] %v14803_v3  ;;  %907 = vst [vmem:[#allocation2 + $0x39c] sm:$0x1] %v14803_v3 }
 0x1ae   : > { %908 = vst [vmem:[#allocation2 + $0x3a0] sm:$0xf] %v14803_v3  ;;  %909 = vst [vmem:[#allocation2 + $0x3a4] sm:$0xf] %v14803_v3 }
 0x1af   : > { %910 = vst [vmem:[#allocation2 + $0x3a8] sm:$0xf] %v14803_v3  ;;  %911 = vst [vmem:[#allocation2 + $0x3ac] sm:$0xf] %v14803_v3 }
 0x1b0   : > { %912 = vst [vmem:[#allocation2 + $0x3b0] sm:$0xf] %v14803_v3  ;;  %913 = vst [vmem:[#allocation2 + $0x3b4] sm:$0xf] %v14803_v3 }
 0x1b1   : > { %914 = vst [vmem:[#allocation2 + $0x3b8] sm:$0xf] %v14803_v3  ;;  %915 = vst [vmem:[#allocation2 + $0x3bc] sm:$0x1] %v14803_v3 }
 0x1b2   : > { %916 = vst [vmem:[#allocation2 + $0x3c0] sm:$0xf] %v14803_v3  ;;  %917 = vst [vmem:[#allocation2 + $0x3c4] sm:$0xf] %v14803_v3 }
 0x1b3   : > { %918 = vst [vmem:[#allocation2 + $0x3c8] sm:$0xf] %v14803_v3  ;;  %919 = vst [vmem:[#allocation2 + $0x3cc] sm:$0xf] %v14803_v3 }
 0x1b4   : > { %920 = vst [vmem:[#allocation2 + $0x3d0] sm:$0xf] %v14803_v3  ;;  %921 = vst [vmem:[#allocation2 + $0x3d4] sm:$0xf] %v14803_v3 }
 0x1b5   : > { %922 = vst [vmem:[#allocation2 + $0x3d8] sm:$0xf] %v14803_v3  ;;  %923 = vst [vmem:[#allocation2 + $0x3dc] sm:$0x1] %v14803_v3 }
 0x1b6   : > { %924 = vst [vmem:[#allocation2 + $0x3e0] sm:$0xf] %v14803_v3  ;;  %925 = vst [vmem:[#allocation2 + $0x3e4] sm:$0xf] %v14803_v3 }
 0x1b7   : > { %926 = vst [vmem:[#allocation2 + $0x3e8] sm:$0xf] %v14803_v3  ;;  %927 = vst [vmem:[#allocation2 + $0x3ec] sm:$0xf] %v14803_v3 }
 0x1b8   : > { %928 = vst [vmem:[#allocation2 + $0x3f0] sm:$0xf] %v14803_v3  ;;  %929 = vst [vmem:[#allocation2 + $0x3f4] sm:$0xf] %v14803_v3 }
 0x1b9   : > { %930 = vst [vmem:[#allocation2 + $0x3f8] sm:$0xf] %v14803_v3  ;;  %931 = vst [vmem:[#allocation2 + $0x3fc] sm:$0x1] %v14803_v3 }
 0x1ba   : > { %932 = vst [vmem:[#allocation2 + $0x400] sm:$0xf] %v14803_v3  ;;  %933 = vst [vmem:[#allocation2 + $0x404] sm:$0xf] %v14803_v3 }
 0x1bb   : > { %934 = vst [vmem:[#allocation2 + $0x408] sm:$0xf] %v14803_v3  ;;  %935 = vst [vmem:[#allocation2 + $0x40c] sm:$0xf] %v14803_v3 }
 0x1bc   : > { %936 = vst [vmem:[#allocation2 + $0x410] sm:$0xf] %v14803_v3  ;;  %937 = vst [vmem:[#allocation2 + $0x414] sm:$0xf] %v14803_v3 }
 0x1bd   : > { %938 = vst [vmem:[#allocation2 + $0x418] sm:$0xf] %v14803_v3  ;;  %939 = vst [vmem:[#allocation2 + $0x41c] sm:$0x1] %v14803_v3 }
 0x1be   : > { %940 = vst [vmem:[#allocation2 + $0x420] sm:$0xf] %v14803_v3  ;;  %941 = vst [vmem:[#allocation2 + $0x424] sm:$0xf] %v14803_v3 }
 0x1bf   : > { %942 = vst [vmem:[#allocation2 + $0x428] sm:$0xf] %v14803_v3  ;;  %943 = vst [vmem:[#allocation2 + $0x42c] sm:$0xf] %v14803_v3 }
 0x1c0   : > { %944 = vst [vmem:[#allocation2 + $0x430] sm:$0xf] %v14803_v3  ;;  %945 = vst [vmem:[#allocation2 + $0x434] sm:$0xf] %v14803_v3 }
 0x1c1   : > { %946 = vst [vmem:[#allocation2 + $0x438] sm:$0xf] %v14803_v3  ;;  %947 = vst [vmem:[#allocation2 + $0x43c] sm:$0x1] %v14803_v3 }
 0x1c2   : > { %948 = vst [vmem:[#allocation2 + $0x440] sm:$0xf] %v14803_v3  ;;  %949 = vst [vmem:[#allocation2 + $0x444] sm:$0xf] %v14803_v3 }
 0x1c3   : > { %950 = vst [vmem:[#allocation2 + $0x448] sm:$0xf] %v14803_v3  ;;  %951 = vst [vmem:[#allocation2 + $0x44c] sm:$0xf] %v14803_v3 }
 0x1c4   : > { %952 = vst [vmem:[#allocation2 + $0x450] sm:$0xf] %v14803_v3  ;;  %953 = vst [vmem:[#allocation2 + $0x454] sm:$0xf] %v14803_v3 }
 0x1c5   : > { %954 = vst [vmem:[#allocation2 + $0x458] sm:$0xf] %v14803_v3  ;;  %955 = vst [vmem:[#allocation2 + $0x45c] sm:$0x1] %v14803_v3 }
 0x1c6   : > { %956 = vst [vmem:[#allocation2 + $0x460] sm:$0xf] %v14803_v3  ;;  %957 = vst [vmem:[#allocation2 + $0x464] sm:$0xf] %v14803_v3 }
 0x1c7   : > { %958 = vst [vmem:[#allocation2 + $0x468] sm:$0xf] %v14803_v3  ;;  %959 = vst [vmem:[#allocation2 + $0x46c] sm:$0xf] %v14803_v3 }
 0x1c8   : > { %960 = vst [vmem:[#allocation2 + $0x470] sm:$0xf] %v14803_v3  ;;  %961 = vst [vmem:[#allocation2 + $0x474] sm:$0xf] %v14803_v3 }
 0x1c9   : > { %962 = vst [vmem:[#allocation2 + $0x478] sm:$0xf] %v14803_v3  ;;  %963 = vst [vmem:[#allocation2 + $0x47c] sm:$0x1] %v14803_v3 }
 0x1ca   : > { %964 = vst [vmem:[#allocation2 + $0x480] sm:$0xf] %v14803_v3  ;;  %965 = vst [vmem:[#allocation2 + $0x484] sm:$0xf] %v14803_v3 }
 0x1cb   : > { %966 = vst [vmem:[#allocation2 + $0x488] sm:$0xf] %v14803_v3  ;;  %967 = vst [vmem:[#allocation2 + $0x48c] sm:$0xf] %v14803_v3 }
 0x1cc   : > { %968 = vst [vmem:[#allocation2 + $0x490] sm:$0xf] %v14803_v3  ;;  %969 = vst [vmem:[#allocation2 + $0x494] sm:$0xf] %v14803_v3 }
 0x1cd   : > { %970 = vst [vmem:[#allocation2 + $0x498] sm:$0xf] %v14803_v3  ;;  %971 = vst [vmem:[#allocation2 + $0x49c] sm:$0x1] %v14803_v3 }
 0x1ce   : > { %972 = vst [vmem:[#allocation2 + $0x4a0] sm:$0xf] %v14803_v3  ;;  %973 = vst [vmem:[#allocation2 + $0x4a4] sm:$0xf] %v14803_v3 }
 0x1cf   : > { %974 = vst [vmem:[#allocation2 + $0x4a8] sm:$0xf] %v14803_v3  ;;  %975 = vst [vmem:[#allocation2 + $0x4ac] sm:$0xf] %v14803_v3 }
 0x1d0   : > { %976 = vst [vmem:[#allocation2 + $0x4b0] sm:$0xf] %v14803_v3  ;;  %977 = vst [vmem:[#allocation2 + $0x4b4] sm:$0xf] %v14803_v3 }
 0x1d1   : > { %978 = vst [vmem:[#allocation2 + $0x4b8] sm:$0xf] %v14803_v3  ;;  %979 = vst [vmem:[#allocation2 + $0x4bc] sm:$0x1] %v14803_v3 }
 0x1d2   : > { %980 = vst [vmem:[#allocation2 + $0x4c0] sm:$0xf] %v14803_v3  ;;  %981 = vst [vmem:[#allocation2 + $0x4c4] sm:$0xf] %v14803_v3 }
 0x1d3   : > { %982 = vst [vmem:[#allocation2 + $0x4c8] sm:$0xf] %v14803_v3  ;;  %983 = vst [vmem:[#allocation2 + $0x4cc] sm:$0xf] %v14803_v3 }
 0x1d4   : > { %984 = vst [vmem:[#allocation2 + $0x4d0] sm:$0xf] %v14803_v3  ;;  %985 = vst [vmem:[#allocation2 + $0x4d4] sm:$0xf] %v14803_v3 }
 0x1d5   : > { %986 = vst [vmem:[#allocation2 + $0x4d8] sm:$0xf] %v14803_v3  ;;  %987 = vst [vmem:[#allocation2 + $0x4dc] sm:$0x1] %v14803_v3 }
 0x1d6   : > { %988 = vst [vmem:[#allocation2 + $0x4e0] sm:$0xf] %v14803_v3  ;;  %989 = vst [vmem:[#allocation2 + $0x4e4] sm:$0xf] %v14803_v3 }
 0x1d7   : > { %990 = vst [vmem:[#allocation2 + $0x4e8] sm:$0xf] %v14803_v3  ;;  %991 = vst [vmem:[#allocation2 + $0x4ec] sm:$0xf] %v14803_v3 }
 0x1d8   : > { %992 = vst [vmem:[#allocation2 + $0x4f0] sm:$0xf] %v14803_v3  ;;  %993 = vst [vmem:[#allocation2 + $0x4f4] sm:$0xf] %v14803_v3 }
 0x1d9   : > { %994 = vst [vmem:[#allocation2 + $0x4f8] sm:$0xf] %v14803_v3  ;;  %995 = vst [vmem:[#allocation2 + $0x4fc] sm:$0x1] %v14803_v3 }
 0x1da   : > { %996 = vst [vmem:[#allocation2 + $0x500] sm:$0xf] %v14803_v3  ;;  %997 = vst [vmem:[#allocation2 + $0x504] sm:$0xf] %v14803_v3 }
 0x1db   : > { %998 = vst [vmem:[#allocation2 + $0x508] sm:$0xf] %v14803_v3  ;;  %999 = vst [vmem:[#allocation2 + $0x50c] sm:$0xf] %v14803_v3 }
 0x1dc   : > { %1000 = vst [vmem:[#allocation2 + $0x510] sm:$0xf] %v14803_v3  ;;  %1001 = vst [vmem:[#allocation2 + $0x514] sm:$0xf] %v14803_v3 }
 0x1dd   : > { %1002 = vst [vmem:[#allocation2 + $0x518] sm:$0xf] %v14803_v3  ;;  %1003 = vst [vmem:[#allocation2 + $0x51c] sm:$0x1] %v14803_v3 }
 0x1de   : > { %1004 = vst [vmem:[#allocation2 + $0x520] sm:$0xf] %v14803_v3  ;;  %1005 = vst [vmem:[#allocation2 + $0x524] sm:$0xf] %v14803_v3 }
 0x1df   : > { %1006 = vst [vmem:[#allocation2 + $0x528] sm:$0xf] %v14803_v3  ;;  %1007 = vst [vmem:[#allocation2 + $0x52c] sm:$0xf] %v14803_v3 }
 0x1e0   : > { %1008 = vst [vmem:[#allocation2 + $0x530] sm:$0xf] %v14803_v3  ;;  %1009 = vst [vmem:[#allocation2 + $0x534] sm:$0xf] %v14803_v3 }
 0x1e1   : > { %1010 = vst [vmem:[#allocation2 + $0x538] sm:$0xf] %v14803_v3  ;;  %1011 = vst [vmem:[#allocation2 + $0x53c] sm:$0x1] %v14803_v3 }
 0x1e2   : > { %1012 = vst [vmem:[#allocation2 + $0x540] sm:$0xf] %v14803_v3  ;;  %1013 = vst [vmem:[#allocation2 + $0x544] sm:$0xf] %v14803_v3 }
 0x1e3   : > { %1014 = vst [vmem:[#allocation2 + $0x548] sm:$0xf] %v14803_v3  ;;  %1015 = vst [vmem:[#allocation2 + $0x54c] sm:$0xf] %v14803_v3 }
 0x1e4   : > { %1016 = vst [vmem:[#allocation2 + $0x550] sm:$0xf] %v14803_v3  ;;  %1017 = vst [vmem:[#allocation2 + $0x554] sm:$0xf] %v14803_v3 }
 0x1e5   : > { %1018 = vst [vmem:[#allocation2 + $0x558] sm:$0xf] %v14803_v3  ;;  %1019 = vst [vmem:[#allocation2 + $0x55c] sm:$0x1] %v14803_v3 }
 0x1e6   : > { %1020 = vst [vmem:[#allocation2 + $0x560] sm:$0xf] %v14803_v3  ;;  %1021 = vst [vmem:[#allocation2 + $0x564] sm:$0xf] %v14803_v3 }
 0x1e7   : > { %1022 = vst [vmem:[#allocation2 + $0x568] sm:$0xf] %v14803_v3  ;;  %1023 = vst [vmem:[#allocation2 + $0x56c] sm:$0xf] %v14803_v3 }
 0x1e8   : > { %1024 = vst [vmem:[#allocation2 + $0x570] sm:$0xf] %v14803_v3  ;;  %1025 = vst [vmem:[#allocation2 + $0x574] sm:$0xf] %v14803_v3 }
 0x1e9   : > { %1026 = vst [vmem:[#allocation2 + $0x578] sm:$0xf] %v14803_v3  ;;  %1027 = vst [vmem:[#allocation2 + $0x57c] sm:$0x1] %v14803_v3 }
 0x1ea   : > { %1028 = vst [vmem:[#allocation2 + $0x580] sm:$0xf] %v14803_v3  ;;  %1029 = vst [vmem:[#allocation2 + $0x584] sm:$0xf] %v14803_v3 }
 0x1eb   : > { %1030 = vst [vmem:[#allocation2 + $0x588] sm:$0xf] %v14803_v3  ;;  %1031 = vst [vmem:[#allocation2 + $0x58c] sm:$0xf] %v14803_v3 }
 0x1ec   : > { %1032 = vst [vmem:[#allocation2 + $0x590] sm:$0xf] %v14803_v3  ;;  %1033 = vst [vmem:[#allocation2 + $0x594] sm:$0xf] %v14803_v3 }
 0x1ed   : > { %1034 = vst [vmem:[#allocation2 + $0x598] sm:$0xf] %v14803_v3  ;;  %1035 = vst [vmem:[#allocation2 + $0x59c] sm:$0x1] %v14803_v3 }
 0x1ee   : > { %1036 = vst [vmem:[#allocation2 + $0x5a0] sm:$0xf] %v14803_v3  ;;  %1037 = vst [vmem:[#allocation2 + $0x5a4] sm:$0xf] %v14803_v3 }
 0x1ef   : > { %1038 = vst [vmem:[#allocation2 + $0x5a8] sm:$0xf] %v14803_v3  ;;  %1039 = vst [vmem:[#allocation2 + $0x5ac] sm:$0xf] %v14803_v3 }
 0x1f0   : > { %1040 = vst [vmem:[#allocation2 + $0x5b0] sm:$0xf] %v14803_v3  ;;  %1041 = vst [vmem:[#allocation2 + $0x5b4] sm:$0xf] %v14803_v3 }
 0x1f1   : > { %1042 = vst [vmem:[#allocation2 + $0x5b8] sm:$0xf] %v14803_v3  ;;  %1043 = vst [vmem:[#allocation2 + $0x5bc] sm:$0x1] %v14803_v3 }
 0x1f2   : > { %1044 = vst [vmem:[#allocation2 + $0x5c0] sm:$0xf] %v14803_v3  ;;  %1045 = vst [vmem:[#allocation2 + $0x5c4] sm:$0xf] %v14803_v3 }
 0x1f3   : > { %1046 = vst [vmem:[#allocation2 + $0x5c8] sm:$0xf] %v14803_v3  ;;  %1047 = vst [vmem:[#allocation2 + $0x5cc] sm:$0xf] %v14803_v3 }
 0x1f4   : > { %1048 = vst [vmem:[#allocation2 + $0x5d0] sm:$0xf] %v14803_v3  ;;  %1049 = vst [vmem:[#allocation2 + $0x5d4] sm:$0xf] %v14803_v3 }
 0x1f5   : > { %1050 = vst [vmem:[#allocation2 + $0x5d8] sm:$0xf] %v14803_v3  ;;  %1051 = vst [vmem:[#allocation2 + $0x5dc] sm:$0x1] %v14803_v3 }
 0x1f6   : > { %1052 = vst [vmem:[#allocation2 + $0x5e0] sm:$0xf] %v14803_v3  ;;  %1053 = vst [vmem:[#allocation2 + $0x5e4] sm:$0xf] %v14803_v3 }
 0x1f7   : > { %1054 = vst [vmem:[#allocation2 + $0x5e8] sm:$0xf] %v14803_v3  ;;  %1055 = vst [vmem:[#allocation2 + $0x5ec] sm:$0xf] %v14803_v3 }
 0x1f8   : > { %1056 = vst [vmem:[#allocation2 + $0x5f0] sm:$0xf] %v14803_v3  ;;  %1057 = vst [vmem:[#allocation2 + $0x5f4] sm:$0xf] %v14803_v3 }
 0x1f9   : > { %1058 = vst [vmem:[#allocation2 + $0x5f8] sm:$0xf] %v14803_v3  ;;  %1059 = vst [vmem:[#allocation2 + $0x5fc] sm:$0x1] %v14803_v3 }
 0x1fa   : > { %1060 = vst [vmem:[#allocation2 + $0x600] sm:$0xf] %v14803_v3  ;;  %1061 = vst [vmem:[#allocation2 + $0x604] sm:$0xf] %v14803_v3 }
 0x1fb   : > { %1062 = vst [vmem:[#allocation2 + $0x608] sm:$0xf] %v14803_v3  ;;  %1063 = vst [vmem:[#allocation2 + $0x60c] sm:$0xf] %v14803_v3 }
 0x1fc   : > { %1064 = vst [vmem:[#allocation2 + $0x610] sm:$0xf] %v14803_v3  ;;  %1065 = vst [vmem:[#allocation2 + $0x614] sm:$0xf] %v14803_v3 }
 0x1fd   : > { %1066 = vst [vmem:[#allocation2 + $0x618] sm:$0xf] %v14803_v3  ;;  %1067 = vst [vmem:[#allocation2 + $0x61c] sm:$0x1] %v14803_v3 }
 0x1fe   : > { %1068 = vst [vmem:[#allocation2 + $0x620] sm:$0xf] %v14803_v3  ;;  %1069 = vst [vmem:[#allocation2 + $0x624] sm:$0xf] %v14803_v3 }
 0x1ff   : > { %1070 = vst [vmem:[#allocation2 + $0x628] sm:$0xf] %v14803_v3  ;;  %1071 = vst [vmem:[#allocation2 + $0x62c] sm:$0xf] %v14803_v3 }
 0x200   : > { %1072 = vst [vmem:[#allocation2 + $0x630] sm:$0xf] %v14803_v3  ;;  %1073 = vst [vmem:[#allocation2 + $0x634] sm:$0xf] %v14803_v3 }
 0x201   : > { %1074 = vst [vmem:[#allocation2 + $0x638] sm:$0xf] %v14803_v3  ;;  %1075 = vst [vmem:[#allocation2 + $0x63c] sm:$0x1] %v14803_v3 }
 0x202   : > { %1076 = vst [vmem:[#allocation2 + $0x640] sm:$0xf] %v14803_v3  ;;  %1077 = vst [vmem:[#allocation2 + $0x644] sm:$0xf] %v14803_v3 }
 0x203   : > { %1078 = vst [vmem:[#allocation2 + $0x648] sm:$0xf] %v14803_v3  ;;  %1079 = vst [vmem:[#allocation2 + $0x64c] sm:$0xf] %v14803_v3 }
 0x204   : > { %1080 = vst [vmem:[#allocation2 + $0x650] sm:$0xf] %v14803_v3  ;;  %1081 = vst [vmem:[#allocation2 + $0x654] sm:$0xf] %v14803_v3 }
 0x205   : > { %1082 = vst [vmem:[#allocation2 + $0x658] sm:$0xf] %v14803_v3  ;;  %1083 = vst [vmem:[#allocation2 + $0x65c] sm:$0x1] %v14803_v3 }
 0x206   : > { %1084 = vst [vmem:[#allocation2 + $0x660] sm:$0xf] %v14803_v3  ;;  %1085 = vst [vmem:[#allocation2 + $0x664] sm:$0xf] %v14803_v3 }
 0x207   : > { %1086 = vst [vmem:[#allocation2 + $0x668] sm:$0xf] %v14803_v3  ;;  %1087 = vst [vmem:[#allocation2 + $0x66c] sm:$0xf] %v14803_v3 }
 0x208   : > { %1088 = vst [vmem:[#allocation2 + $0x670] sm:$0xf] %v14803_v3  ;;  %1089 = vst [vmem:[#allocation2 + $0x674] sm:$0xf] %v14803_v3 }
 0x209   : > { %1090 = vst [vmem:[#allocation2 + $0x678] sm:$0xf] %v14803_v3  ;;  %1091 = vst [vmem:[#allocation2 + $0x67c] sm:$0x1] %v14803_v3  ;;  %v11763_v3 = vld [vmem:[%s15260_s2 + $0x40] sm:$0xff]  }
 0x20a   : > { %1125 = vst [vmem:[#allocation2 + $0x24c] sm:$0xff] %v15289_v0   ;;  %1127 = vst [vmem:[#allocation2 + $0x26c] sm:$0xff] %v15292_v1   ;;  %v1231_v0 = vadd.f32 %v11675_v58, %v1230_v61  ;;  %v11682_v1 = vunpack.c.l.bf16 %v11762_v62  ;;  %v1276_v58 = vld [vmem:[%s18042_s16] sm:$0x1] }
 0x20b   : > { %1129 = vst [vmem:[#allocation2 + $0x28c] sm:$0xff] %v15295_v2   ;;  %1131 = vst [vmem:[#allocation2 + $0x2ac] sm:$0xff] %v1098_v4   ;;  %v11683_v4 = vunpack.c.h.bf16 %v11762_v62 }
 0x20c   : > { %1133 = vst [vmem:[#allocation2 + $0x2cc] sm:$0xff] %v1100_v5   ;;  %1135 = vst [vmem:[#allocation2 + $0x2ec] sm:$0xff] %v1102_v6   ;;  %v1232_v2 = vadd.f32 %v11678_v60, %v1231_v0  ;;  %v11686_v6 = vunpack.c.l.bf16 %v11763_v3 }
 0x20d   : > { %1137 = vst [vmem:[#allocation2 + $0x30c] sm:$0xff] %v1104_v8   ;;  %1139 = vst [vmem:[#allocation2 + $0x32c] sm:$0xff] %v1106_v9   ;;  %v11764_v9 = vld [vmem:[%s15260_s2 + $0x48] sm:$0xff]  }
 0x20e   : > { %1141 = vst [vmem:[#allocation2 + $0x34c] sm:$0xff] %v1108_v10   ;;  %1143 = vst [vmem:[#allocation2 + $0x36c] sm:$0xff] %v1110_v11   ;;  %v1233_v5 = vadd.f32 %v11679_v63, %v1232_v2  ;;  %v11687_v10 = vunpack.c.h.bf16 %v11763_v3 }
 0x20f   : > { %1145 = vst [vmem:[#allocation2 + $0x38c] sm:$0xff] %v1112_v12   ;;  %1147 = vst [vmem:[#allocation2 + $0x3ac] sm:$0xff] %v1114_v13   ;;  %v11690_v12 = vunpack.c.l.bf16 %v11764_v9 }
 0x210   : > { %1149 = vst [vmem:[#allocation2 + $0x3cc] sm:$0xff] %v1116_v14   ;;  %1151 = vst [vmem:[#allocation2 + $0x3ec] sm:$0xff] %v1118_v15   ;;  %v1234_v8 = vadd.f32 %v11682_v1, %v1233_v5  ;;  %v11765_v14 = vld [vmem:[%s15260_s2 + $0x50] sm:$0xff]   ;;  %v11691_v15 = vunpack.c.h.bf16 %v11764_v9 }
 0x211   : > { %1153 = vst [vmem:[#allocation2 + $0x40c] sm:$0xff] %v1120_v16   ;;  %1155 = vst [vmem:[#allocation2 + $0x42c] sm:$0xff] %v1122_v17   ;;  %v11694_v17 = vunpack.c.l.bf16 %v11765_v14  ;;  %v11695_v20 = vunpack.c.h.bf16 %v11765_v14 }
 0x212   : > { %v1235_v11 = vadd.f32 %v11683_v4, %v1234_v8 }
 0x214   : > { %v1236_v13 = vadd.f32 %v11686_v6, %v1235_v11 }
 0x216   : > { %v1237_v16 = vadd.f32 %v11687_v10, %v1236_v13 }
 0x218   : > { %v1238_v18 = vadd.f32 %v11690_v12, %v1237_v16 }
 0x21a   : > { %v1239_v21 = vadd.f32 %v11691_v15, %v1238_v18 }
 0x21c   : > { %v1240_v23 = vadd.f32 %v11694_v17, %v1239_v21 }
 0x21e   : > { %v1241_v26 = vadd.f32 %v11695_v20, %v1240_v23 }
 0x220   : > { %v1242_v28 = vadd.f32 %v11698_v22, %v1241_v26 }
 0x222   : > { %v1243_v31 = vadd.f32 %v11699_v25, %v1242_v28 }
 0x224   : > { %v1244_v33 = vadd.f32 %v11702_v27, %v1243_v31 }
 0x226   : > { %v1245_v36 = vadd.f32 %v11703_v30, %v1244_v33 }
 0x228   : > { %v1246_v38 = vadd.f32 %v11706_v32, %v1245_v36 }
 0x22a   : > { %v1247_v41 = vadd.f32 %v11707_v35, %v1246_v38 }
 0x22c   : > { %v1248_v43 = vadd.f32 %v11710_v37, %v1247_v41 }
 0x22e   : > { %v1249_v45 = vadd.f32 %v11711_v40, %v1248_v43 }
 0x230   : > { %v1250_v46 = vadd.f32 %v11714_v42, %v1249_v45 }
 0x232   : > { %v1251_v47 = vadd.f32 %v11715_v44, %v1250_v46 }
 0x234   : > { %v1252_v48 = vrot.slane %v1251_v47, 4 }
 0x236   : > { %v1253_v49 = vadd.f32 %v1252_v48, %v1251_v47 }
 0x238   : > { %v1254_v50 = vrot.slane %v1253_v49, 2 }
 0x23a   : > { %v1255_v51 = vadd.f32 %v1254_v50, %v1253_v49 }
 0x23c   : > { %v1256_v52 = vrot.slane %v1255_v51, 1 }
 0x23e   : > { %v1257_v53 = vadd.f32 %v1256_v52, %v1255_v51 }
 0x240   : > { %v1258_v54 = vmul.f32 0.00390625, %v1257_v53 }
 0x242   : > { %v1259_v55 = vpack.c.bf16 %v1258_v54, %v1258_v54 }
 0x244   : > { %12341 = vmatmul.mubr.bf16.vlgmr.msra.gmra.mrb[0].mxu0 %v1259_v55 }
 0x317   : > { %v1359_v59 = vpop.f32.mrb[0].mxu0 }
 0x318   : > { %v1360_v60 = vadd.f32 %v1359_v59, %v1276_v58  ;;  %v12342_v61 = vpop.f32.mrb[1].mxu0 }
 0x319   : > { %v1362_v62 = vpop.f32.mrb[2].mxu0 }
 0x31a   : > { %v1365_v63 = vmax.f32 %v1360_v60, 0.0  ;;  %v12343_v0 = vpop.f32.mrb[3].mxu0 }
 0x31c   : > { %v1366_v1 = vpack.c.bf16 %v1365_v63, %v1365_v63 }
 0x31e   : > { %12361 = vmatmul.mubr.bf16.vlgmr.msra.gmra.mrb[0].mxu1 %v1366_v1 }
 0x3f1   : > { %v1465_v2 = vpop.f32.mrb[0].mxu1 }
 0x3f2   : > { %1471 = vst [vmem:[#allocation3] sm:$0x1] %v1465_v2  ;;  %v12362_v3 = vpop.f32.mrb[1].mxu1 }
 0x3f3   : > { %v1468_v4 = vpop.f32.mrb[2].mxu1 }
 0x3f4   : > { %v12363_v5 = vpop.f32.mrb[3].mxu1 }
 0x3f5 PF: > { %v14058_v7 = vld [vmem:[#allocation9] sm:$0xff]   ;;  %s18043_s15 = sld [smem:[#allocation29_spill]]  ;;  %v14059_v6 = vld [vmem:[#allocation9 + $0x8] sm:$0xff]   ;;  %v14060_v8 = vld [vmem:[#allocation9 + $0x10] sm:$0xff]   ;;  %vm1836_vm1 = vcmask 1042432   ;;  %vm1837_vm2 = vcmask 1046532  }
 0x3f6   : > { %12428 = vmatprep.subr.bf16.mxu1 %v14058_v7  ;;  %v14061_v9 = vld [vmem:[#allocation9 + $0x18] sm:$0xff]   ;;  %vm15774_vm3 = vmor %vm1836_vm1, %vm1837_vm2  ;;  %v18044_v13 = vmov 0  ;;  %v14062_v17 = vld [vmem:[#allocation9 + $0x20] sm:$0xff]   ;;  %vm3334_vm4 = vcmask 1040384   ;;  %vm3335_vm5 = vcmask 1044484   ;;  %s18113_s10 = sld [smem:[#allocation42_spill]] }
 0x3f7   : > { %12429 = vmatpush3.bf16.msra.mxu1 %v14058_v7  ;;  %v18045_v13 = vsel %vm15774_vm3, 4294967295, %v18044_v13  ;;  %v14063_v22 = vld [vmem:[#allocation9 + $0x28] sm:$0xff]   ;;  %v14064_v26 = vld [vmem:[#allocation9 + $0x30] sm:$0xff]   ;;  %v14065_v35 = vld [vmem:[#allocation9 + $0x38] sm:$0xff]   ;;  %s18116_s13 = sld [smem:[#allocation43_spill]]  ;;  %vm4581_vm7 = vcmask 1041408  }
 0x3f8   : > { %12430 = vmatprep.subr.bf16.mxu1 %v14059_v6  ;;  %18046 = vst [vmem:[#allocation32_spill] sm:$0xff] %v18045_v13  ;;  %v14067_v46 = vld [vmem:[#allocation9 + $0x180] sm:$0xff]   ;;  %v14068_v53 = vld [vmem:[#allocation9 + $0x188] sm:$0xff]   ;;  %v14069_v4 = vld [vmem:[#allocation9 + $0x190] sm:$0xff]   ;;  %vm4582_vm8 = vcmask 1045508   ;;  %s18121_s1 = sld [smem:[#allocation47_spill]] }
 0x3f9   : > { %vm16046_vm6 = vmor %vm3334_vm4, %vm3335_vm5  ;;  %s18122_s16 = sld [smem:[#allocation48_spill]]  ;;  %s18125_s18 = sld [smem:[#allocation49_spill]] }
 0x3fa   : > { %vm17299_vm9 = vmor %vm4581_vm7, %vm4582_vm8  ;;  %p18126_p11 = scmp.ne.s32.totalorder %s18031_s23, 0 }
 0x3fb   : > { %s11632_s17 = sshll.u32 %s18043_s15, 8  ;;  %12431 = vmatpush3.bf16.msra.mxu1 %v14059_v6  ;;  %s11631_s20 = sshll.u32 %s18043_s15, 6 }
 0x3fc   : > { %12432 = vmatprep.subr.bf16.mxu1 %v14060_v8  ;;  %s15767_s24 = scalar_lea.vmem [#allocation2], %s11632_s17  ;;  %s15958_s6 = scalar_lea.vmem %s15260_s2, %s11631_s20 [#allocation4] }
 0x3fd   : > { %v10669_v10 = vld [vmem:[%s15767_s24 + $0x188] sm:$0xe]  ;;  %v15771_v11 = vld [vmem:[%s15767_s24 + $0x18c] sm:$0xf]  ;;  %v10671_v12 = vld [vmem:[%s15767_s24 + $0x190] sm:$0x1] }
 0x3fe   : > { %v10729_v14 = vrot.slane %v10669_v10, 9  ;;  %v1841_v15 = vrot.slane %v15771_v11, 5  ;;  %v1844_v16 = vrot.slane %v10671_v12, 5  ;;  %v15784_v23 = vld [vmem:[%s15767_s24 + $0x1ac] sm:$0xf]  ;;  %s18119_s20 = sld [smem:[#allocation45_spill]] }
 0x3ff   : > { %12433 = vmatpush3.bf16.msra.mxu1 %v14060_v8  ;;  %v15787_v24 = vld [vmem:[%s15767_s24 + $0x1cc] sm:$0xf]  ;;  %v1848_v25 = vrot.slane %v15784_v23, 5  ;;  %v10672_v27 = vld [vmem:[%s15767_s24 + $0x1a8] sm:$0xe]  ;;  %s18120_s2 = sld [smem:[#allocation44_spill]] }
 0x400   : > { %v1842_v18 = vsel %vm15774_vm3, %v10729_v14, %v1841_v15  ;;  %v1843_v19 = vrot.slane %v1841_v15, 4  ;;  %12434 = vmatprep.subr.bf16.mxu1 %v14061_v9  ;;  %v10674_v28 = vld [vmem:[%s15767_s24 + $0x1b0] sm:$0x1]  ;;  %v1855_v29 = vrot.slane %v15787_v24, 5  ;;  %v10675_v30 = vld [vmem:[%s15767_s24 + $0x1c8] sm:$0xe] }
 0x401   : > { %v10677_v31 = vld [vmem:[%s15767_s24 + $0x1d0] sm:$0x1]  ;;  %v10730_v32 = vrot.slane %v10672_v27, 9  ;;  %v1850_v33 = vrot.slane %v1848_v25, 4  ;;  %v1851_v34 = vrot.slane %v10674_v28, 5  ;;  %v10731_v36 = vrot.slane %v10675_v30, 9 }
 0x402   : > { %v1845_v20 = vsel %vm15774_vm3, %v1843_v19, %v1844_v16  ;;  %v1857_v37 = vrot.slane %v1855_v29, 4  ;;  %v1858_v38 = vrot.slane %v10677_v31, 5  ;;  %v15796_v39 = vld [vmem:[%s15767_s24 + $0x1ec] sm:$0xf]  ;;  %v10678_v41 = vld [vmem:[%s15767_s24 + $0x1e8] sm:$0xe] }
 0x403   : > { %v10759_v21 = vcombine.low %v1842_v18, %v1845_v20  ;;  %12435 = vmatpush3.bf16.msra.mxu1 %v14061_v9  ;;  %v15799_v40 = vld [vmem:[%s15767_s24 + $0x20c] sm:$0xf]  ;;  %v10680_v42 = vld [vmem:[%s15767_s24 + $0x1f0] sm:$0x1]  ;;  %v1849_v43 = vsel %vm15774_vm3, %v10730_v32, %v1848_v25  ;;  %v1852_v44 = vsel %vm15774_vm3, %v1850_v33, %v1851_v34  ;;  %v1862_v45 = vrot.slane %v15796_v39, 5  ;;  %v14070_v18 = vld [vmem:[#allocation9 + $0x198] sm:$0xff]  }
 0x404   : > { %12436 = vmatprep.subr.bf16.mxu1 %v14062_v17  ;;  %v1856_v47 = vsel %vm15774_vm3, %v10731_v36, %v1855_v29  ;;  %v1859_v48 = vsel %vm15774_vm3, %v1857_v37, %v1858_v38  ;;  %v10681_v49 = vld [vmem:[%s15767_s24 + $0x208] sm:$0xe]  ;;  %v1869_v50 = vrot.slane %v15799_v40, 5  ;;  %v10683_v51 = vld [vmem:[%s15767_s24 + $0x210] sm:$0x1]  ;;  %v10760_v52 = vcombine.low %v1849_v43, %v1852_v44  ;;  %v14071_v31 = vld [vmem:[#allocation9 + $0x1a0] sm:$0xff]  }
 0x405   : > { %12444 = vmatprep.mubr.bf16.mxu1 %v10759_v21  ;;  %v10732_v54 = vrot.slane %v10678_v41, 9  ;;  %v1865_v55 = vrot.slane %v10680_v42, 5  ;;  %v10761_v56 = vcombine.low %v1856_v47, %v1859_v48  ;;  %v1864_v57 = vrot.slane %v1862_v45, 4  ;;  %v15816_v59 = vld [vmem:[%s15767_s24 + $0x22c] sm:$0xf]  ;;  %s18123_s17 = sld [smem:[#allocation30_spill]] }
 0x406   : > { %v10733_v58 = vrot.slane %v10681_v49, 9  ;;  %v1871_v60 = vrot.slane %v1869_v50, 4  ;;  %v1872_v61 = vrot.slane %v10683_v51, 5  ;;  %v15819_v62 = vld [vmem:[%s15767_s24 + $0x24c] sm:$0xf]  ;;  %v1876_v63 = vrot.slane %v15816_v59, 5 }
 0x407   : > { %12437 = vmatpush3.bf16.msra.mxu1 %v14062_v17  ;;  %v1863_v0 = vsel %vm15774_vm3, %v10732_v54, %v1862_v45  ;;  %v1866_v1 = vsel %vm15774_vm3, %v1864_v57, %v1865_v55  ;;  %v10684_v2 = vld [vmem:[%s15767_s24 + $0x228] sm:$0xe]  ;;  %v10686_v3 = vld [vmem:[%s15767_s24 + $0x230] sm:$0x1]  ;;  %v1883_v8 = vrot.slane %v15819_v62, 5  ;;  %v14073_v55 = vld [vmem:[#allocation9 + $0x1b0] sm:$0xff]  }
 0x408   : > { %12438 = vmatprep.subr.bf16.mxu1 %v14063_v22  ;;  %v1870_v5 = vsel %vm15774_vm3, %v10733_v58, %v1869_v50  ;;  %v1873_v7 = vsel %vm15774_vm3, %v1871_v60, %v1872_v61  ;;  %v10687_v6 = vld [vmem:[%s15767_s24 + $0x248] sm:$0xe]  ;;  %v10689_v9 = vld [vmem:[%s15767_s24 + $0x250] sm:$0x1]  ;;  %v10762_v10 = vcombine.low %v1863_v0, %v1866_v1  ;;  %v10734_v12 = vrot.slane %v10684_v2, 9 }
 0x409   : > { %v1878_v14 = vrot.slane %v1876_v63, 4  ;;  %v1879_v15 = vrot.slane %v10686_v3, 5  ;;  %v10763_v16 = vcombine.low %v1870_v5, %v1873_v7  ;;  %v15836_v17 = vld [vmem:[%s15767_s24 + $0x26c] sm:$0xf]  ;;  %v10735_v19 = vrot.slane %v10687_v6, 9 }
 0x40a   : > { %v1885_v20 = vrot.slane %v1883_v8, 4  ;;  %v1886_v21 = vrot.slane %v10689_v9, 5  ;;  %v15840_v25 = vld [vmem:[%s15767_s24 + $0x30c] sm:$0xf]  ;;  %v1890_v28 = vrot.slane %v15836_v17, 5 }
 0x40b   : > { %12439 = vmatpush3.bf16.msra.mxu1 %v14063_v22  ;;  %v10690_v22 = vld [vmem:[%s15767_s24 + $0x268] sm:$0xe]  ;;  %v1880_v27 = vsel %vm15774_vm3, %v1878_v14, %v1879_v15  ;;  %v10692_v29 = vld [vmem:[%s15767_s24 + $0x270] sm:$0x1]  ;;  %v1884_v32 = vsel %vm15774_vm3, %v10735_v19, %v1883_v8  ;;  %v1959_v34 = vrot.slane %v15840_v25, 5 }
 0x40c   : > { %12440 = vmatprep.subr.bf16.mxu1 %v14064_v26  ;;  %v10705_v30 = vld [vmem:[%s15767_s24 + $0x308] sm:$0xe]  ;;  %v1887_v33 = vsel %vm15774_vm3, %v1885_v20, %v1886_v21  ;;  %v10707_v36 = vld [vmem:[%s15767_s24 + $0x310] sm:$0x1]  ;;  %v10736_v38 = vrot.slane %v10690_v22, 9  ;;  %v1892_v41 = vrot.slane %v1890_v28, 4 }
 0x40d   : > { %v14072_v37 = vld [vmem:[#allocation9 + $0x1a8] sm:$0xff]   ;;  %v1893_v42 = vrot.slane %v10692_v29, 5  ;;  %v10741_v43 = vrot.slane %v10705_v30, 9  ;;  %v15855_v44 = vcombine.low %v1884_v32, %v1887_v33  ;;  %v1962_v47 = vrot.slane %v10707_v36, 5 }
 0x40e   : > { %v15858_v45 = vld [vmem:[%s15767_s24 + $0x32c] sm:$0xf]  ;;  %v10708_v49 = vld [vmem:[%s15767_s24 + $0x328] sm:$0xe]  ;;  %v10710_v50 = vld [vmem:[%s15767_s24 + $0x330] sm:$0x1] }
 0x40f   : > { %12441 = vmatpush3.bf16.msra.mxu1 %v14064_v26  ;;  %v1877_v26 = vsel %vm15774_vm3, %v10734_v12, %v1876_v63  ;;  %v15861_v48 = vld [vmem:[%s15767_s24 + $0x34c] sm:$0xf]  ;;  %v1966_v51 = vrot.slane %v15858_v45, 5  ;;  %v10711_v54 = vld [vmem:[%s15767_s24 + $0x348] sm:$0xe]  ;;  %v14074_v63 = vld [vmem:[#allocation9 + $0x1b8] sm:$0xff]  }
 0x410   : > { %12442 = vmatprep.subr.bf16.mxu1 %v14065_v35  ;;  %v2354_v58 = vrot.slane %v15861_v48, 5  ;;  %v10713_v60 = vld [vmem:[%s15767_s24 + $0x350] sm:$0x1]  ;;  %v10742_v0 = vrot.slane %v10708_v49, 9  ;;  %v1969_v1 = vrot.slane %v10710_v50, 5 }
 0x411   : > { %v1968_v3 = vrot.slane %v1966_v51, 4  ;;  %v15883_v5 = vld [vmem:[%s15767_s24 + $0x36c] sm:$0xf]  ;;  %v2357_v6 = vrot.slane %v10713_v60, 5  ;;  %v10714_v8 = vld [vmem:[%s15767_s24 + $0x368] sm:$0xe] }
 0x412   : > { %v2356_v7 = vrot.slane %v2354_v58, 4  ;;  %v15887_v9 = vld [vmem:[%s15767_s24 + $0x38c] sm:$0xf]  ;;  %v1967_v12 = vsel %vm15774_vm3, %v10742_v0, %v1966_v51  ;;  %v10716_v15 = vld [vmem:[%s15767_s24 + $0x370] sm:$0x1]  ;;  %v14077_v51 = vld [vmem:[#allocation9 + $0x50] sm:$0xff]  }
 0x413   : > { %12443 = vmatpush3.bf16.msra.mxu1 %v14065_v35  ;;  %v10764_v35 = vcombine.low %v1877_v26, %v1880_v27  ;;  %v1970_v14 = vsel %vm15774_vm3, %v1968_v3, %v1969_v1  ;;  %v10717_v20 = vld [vmem:[%s15767_s24 + $0x388] sm:$0xe]  ;;  %v10719_v21 = vld [vmem:[%s15767_s24 + $0x390] sm:$0x1]  ;;  %v2368_v22 = vrot.slane %v15887_v9, 5  ;;  %v10774_v26 = vrot.slane %v10714_v8, 9 }
 0x414   : > { %12460 = vmatprep.subr.bf16.mxu1 %v14067_v46  ;;  %v2358_v19 = vsel %vm15774_vm3, %v2356_v7, %v2357_v6  ;;  %v15905_v27 = vld [vmem:[%s15767_s24 + $0x3ac] sm:$0xf]  ;;  %v10775_v33 = vrot.slane %v10717_v20, 9  ;;  %v10720_v36 = vld [vmem:[%s15767_s24 + $0x3a8] sm:$0xe]  ;;  %v14079_v6 = vld [vmem:[#allocation9 + $0x60] sm:$0xff]  }
 0x415   : > { %v14076_v29 = vld [vmem:[#allocation9 + $0x48] sm:$0xff]   ;;  %v10776_v49 = vrot.slane %v10720_v36, 9  ;;  %v14082_v36 = vld [vmem:[#allocation9 + $0x78] sm:$0xff]  }
 0x416   : > { %12445 = vmatmul.mubr.bf16.vlgmr.msra.gmra.mrb[0].mxu1 %v10760_v52  ;;  %v1891_v52 = vsel %vm15774_vm3, %v10736_v38, %v1890_v28  ;;  %v15907_v28 = vcombine.low %v1967_v12, %v1970_v14  ;;  %v2375_v38 = vrot.slane %v15905_v27, 5  ;;  %v10726_v3 = vld [vmem:[%s15767_s24 + $0x3e8] sm:$0xe]  ;;  %v10728_v14 = vld [vmem:[%s15767_s24 + $0x3f0] sm:$0x1] }
 0x417   : > { %12461 = vmatpush3.bf16.msra.mxu1 %v14067_v46  ;;  %12448 = vmatprep.mubr.bf16.mxu1 %v10761_v56  ;;  %v1961_v46 = vrot.slane %v1959_v34, 4  ;;  %v1960_v56 = vsel %vm15774_vm3, %v10741_v43, %v1959_v34  ;;  %v2371_v34 = vrot.slane %v10719_v21, 5  ;;  %v2392_v20 = vrot.slane %v10728_v14, 5  ;;  %v14080_v21 = vld [vmem:[#allocation9 + $0x68] sm:$0xff]   ;;  %v14149_v14 = vld [vmem:[%s15958_s6 + $0x18] sm:$0xff]  }
 0x418   : > { %12462 = vmatprep.subr.bf16.mxu1 %v14068_v53 }
 0x419   : > { %v1963_v57 = vsel %vm15774_vm3, %v1961_v46, %v1962_v47  ;;  %v2369_v47 = vsel %vm15774_vm3, %v10775_v33, %v2368_v22 }
 0x41a   : > { %v15880_v2 = vcombine.low %v1960_v56, %v1963_v57 }
 0x41b   : > { %12463 = vmatpush3.bf16.msra.mxu1 %v14068_v53  ;;  %v1894_v53 = vsel %vm15774_vm3, %v1892_v41, %v1893_v42  ;;  %v10723_v41 = vld [vmem:[%s15767_s24 + $0x3c8] sm:$0xe]  ;;  %v15914_v42 = vld [vmem:[%s15767_s24 + $0x3cc] sm:$0xf] }
 0x41c   : > { %12464 = vmatprep.subr.bf16.mxu1 %v14069_v4  ;;  %v15878_v61 = vcombine.low %v1891_v52, %v1894_v53  ;;  %v2377_v53 = vrot.slane %v2375_v38, 4  ;;  %v2382_v56 = vrot.slane %v15914_v42, 5 }
 0x41e   : > { %12449 = vmatmul.mubr.bf16.gmra.mrb[4].mxu1 %v10762_v10  ;;  %v2361_v10 = vrot.slane %v15883_v5, 5  ;;  %v2384_v0 = vrot.slane %v2382_v56, 4 }
 0x41f   : > { %12465 = vmatpush3.bf16.msra.mxu1 %v14069_v4  ;;  %12452 = vmatprep.mubr.bf16.mxu1 %v10763_v16  ;;  %v10773_v4 = vrot.slane %v10711_v54, 9  ;;  %v14075_v16 = vld [vmem:[#allocation9 + $0x40] sm:$0xff]   ;;  %v10725_v54 = vld [vmem:[%s15767_s24 + $0x3d0] sm:$0x1] }
 0x420   : > { %12466 = vmatprep.subr.bf16.mxu1 %v14070_v18  ;;  %v2363_v30 = vrot.slane %v2361_v10, 4  ;;  %v2362_v43 = vsel %vm15774_vm3, %v10774_v26, %v2361_v10  ;;  %v2385_v1 = vrot.slane %v10725_v54, 5 }
 0x422   : > { %v2386_v12 = vsel %vm15774_vm3, %v2384_v0, %v2385_v1  ;;  %v14144_v0 = vld [vmem:[#allocation9 + $0xc0] sm:$0xff]   ;;  %v14093_v1 = vld [vmem:[#allocation9 + $0x128] sm:$0xff]  }
 0x423   : > { %12467 = vmatpush3.bf16.msra.mxu1 %v14070_v18  ;;  %v2355_v18 = vsel %vm15774_vm3, %v10773_v4, %v2354_v58  ;;  %v14078_v58 = vld [vmem:[#allocation9 + $0x58] sm:$0xff]   ;;  %v2376_v4 = vsel %vm15774_vm3, %v10776_v49, %v2375_v38  ;;  %v14084_v38 = vld [vmem:[#allocation9 + $0x100] sm:$0xff]   ;;  %v14085_v49 = vld [vmem:[#allocation9 + $0x108] sm:$0xff]  }
 0x424   : > { %12468 = vmatprep.subr.bf16.mxu1 %v14071_v31  ;;  %v10779_v32 = vcombine.low %v2355_v18, %v2358_v19 }
 0x426   : > { %12453 = vmatmul.mubr.bf16.gmra.mrb[8].mxu1 %v10764_v35  ;;  %v2370_v35 = vrot.slane %v2368_v22, 4  ;;  %v14126_v22 = vld [vmem:[#allocation7] sm:$0xff]  }
 0x427   : > { %12469 = vmatpush3.bf16.msra.mxu1 %v14071_v31  ;;  %12456 = vmatprep.mubr.bf16.mxu1 %v15855_v44  ;;  %v2364_v31 = vrot.slane %v10716_v15, 5 }
 0x428   : > { %12470 = vmatprep.subr.bf16.mxu1 %v14072_v37  ;;  %v2372_v52 = vsel %vm15774_vm3, %v2370_v35, %v2371_v34  ;;  %12364 = vmatprep.subr.bf16.mxu0 %v14126_v22  ;;  %v14130_v35 = vld [vmem:[#allocation7 + $0x10] sm:$0xff]  }
 0x429   : > { %v2365_v46 = vsel %vm15774_vm3, %v2363_v30, %v2364_v31  ;;  %v10781_v60 = vcombine.low %v2369_v47, %v2372_v52  ;;  %v14081_v30 = vld [vmem:[#allocation9 + $0x70] sm:$0xff]   ;;  %12365 = vmatpush3.bf16.msra.mxu0 %v14126_v22  ;;  %v14136_v52 = vld [vmem:[#allocation7 + $0x28] sm:$0xff]  }
 0x42a   : > { %v10780_v57 = vcombine.low %v2362_v43, %v2365_v46  ;;  %v10793_v31 = vld [vmem:[%s15767_s24 + $0x190] sm:$0xf]  ;;  %v14132_v43 = vld [vmem:[#allocation7 + $0x18] sm:$0xff]  }
 0x42b   : > { %12471 = vmatpush3.bf16.msra.mxu1 %v14072_v37  ;;  %v10722_v37 = vld [vmem:[%s15767_s24 + $0x3b0] sm:$0x1]  ;;  %v10813_v34 = vcombine.low %v15771_v11, %v10793_v31  ;;  %v14134_v11 = vld [vmem:[#allocation7 + $0x20] sm:$0xff]   ;;  %v14102_v31 = vld [vmem:[#allocation9 + $0x1d0] sm:$0xff]  }
 0x42c   : > { %12472 = vmatprep.subr.bf16.mxu1 %v14073_v55  ;;  %v2378_v50 = vrot.slane %v10722_v37, 5  ;;  %v10794_v37 = vld [vmem:[%s15767_s24 + $0x1b0] sm:$0xf] }
 0x42d   : > { %v10814_v46 = vcombine.low %v15784_v23, %v10794_v37  ;;  %v10797_v23 = vld [vmem:[%s15767_s24 + $0x210] sm:$0xf] }
 0x42e   : > { %12457 = vmatmul.mubr.bf16.gmra.mrb[12].mxu1 %v15878_v61  ;;  %v2379_v7 = vsel %vm15774_vm3, %v2377_v53, %v2378_v50  ;;  %v10796_v50 = vld [vmem:[%s15767_s24 + $0x1f0] sm:$0xf]  ;;  %v10817_v54 = vcombine.low %v15799_v40, %v10797_v23  ;;  %v10693_v23 = vld [vmem:[%s15767_s24 + $0x288] sm:$0xe] }
 0x42f   : > { %12473 = vmatpush3.bf16.msra.mxu1 %v14073_v55  ;;  %12476 = vmatprep.mubr.bf16.mxu1 %v15880_v2  ;;  %v10777_v55 = vrot.slane %v10723_v41, 9  ;;  %v10782_v15 = vcombine.low %v2376_v4, %v2379_v7  ;;  %v10795_v41 = vld [vmem:[%s15767_s24 + $0x1d0] sm:$0xf]  ;;  %v14143_v4 = vld [vmem:[%s15958_s6 + $0x8] sm:$0xff]  }
 0x430   : > { %12474 = vmatprep.subr.bf16.mxu1 %v14074_v63  ;;  %v10815_v47 = vcombine.low %v15787_v24, %v10795_v41  ;;  %v14138_v53 = vld [vmem:[#allocation7 + $0x30] sm:$0xff]   ;;  %v10816_v24 = vcombine.low %v15796_v39, %v10796_v50  ;;  %v14142_v39 = vld [vmem:[%s15958_s6] sm:$0xff]   ;;  %v14146_v7 = vld [vmem:[#allocation9 + $0xc8] sm:$0xff]  }
 0x431   : > { %v2383_v10 = vsel %vm15774_vm3, %v10777_v55, %v2382_v56  ;;  %v14089_v55 = vld [vmem:[#allocation9 + $0x118] sm:$0xff]   ;;  %v10798_v56 = vld [vmem:[%s15767_s24 + $0x230] sm:$0xf]  ;;  %12380 = vmatprep.mubr.bf16.mxu0 %v14142_v39 }
 0x432   : > { %v10783_v18 = vcombine.low %v2383_v10, %v2386_v12  ;;  %v10818_v40 = vcombine.low %v15816_v59, %v10798_v56  ;;  %v14096_v59 = vld [vmem:[#allocation9 + $0x130] sm:$0xff]   ;;  %v14097_v12 = vld [vmem:[#allocation9 + $0x138] sm:$0xff]   ;;  %v14099_v22 = vld [vmem:[#allocation9 + $0x1c8] sm:$0xff]  }
 0x433   : > { %12475 = vmatpush3.bf16.msra.mxu1 %v14074_v63  ;;  %v15928_v63 = vld [vmem:[%s15767_s24 + $0x3ec] sm:$0xf]  ;;  %v14150_v10 = vld [vmem:[#allocation9 + $0xd0] sm:$0xff]  }
 0x434   : > { %12492 = vmatprep.subr.bf16.mxu1 %v14075_v16  ;;  %v2389_v8 = vrot.slane %v15928_v63, 5  ;;  %v14162_v37 = vld [vmem:[#allocation9 + $0xf0] sm:$0xff]  }
 0x436   : > { %12477 = vmatmul.mubr.bf16.vlgmr.msra.gmra.mrb[0].mxu1 %v15907_v28  ;;  %v2391_v19 = vrot.slane %v2389_v8, 4 }
 0x437   : > { %12493 = vmatpush3.bf16.msra.mxu1 %v14075_v16  ;;  %12480 = vmatprep.mubr.bf16.mxu1 %v10779_v32  ;;  %v10778_v16 = vrot.slane %v10726_v3, 9  ;;  %v14128_v32 = vld [vmem:[#allocation7 + $0x8] sm:$0xff]  }
 0x438   : > { %12494 = vmatprep.subr.bf16.mxu1 %v14076_v29  ;;  %12366 = vmatprep.subr.bf16.mxu0 %v14128_v32 }
 0x439   : > { %v2390_v26 = vsel %vm15774_vm3, %v10778_v16, %v2389_v8  ;;  %12367 = vmatpush3.bf16.msra.mxu0 %v14128_v32  ;;  %v10800_v8 = vld [vmem:[%s15767_s24 + $0x270] sm:$0xf]  ;;  %v15970_v16 = vld [vmem:[%s15767_s24 + $0x28c] sm:$0xf] }
 0x43a   : > { %12368 = vmatprep.subr.bf16.mxu0 %v14130_v35  ;;  %v15981_v32 = vld [vmem:[%s15767_s24 + $0x2cc] sm:$0xf] }
 0x43b   : > { %12495 = vmatpush3.bf16.msra.mxu1 %v14076_v29  ;;  %v2393_v29 = vsel %vm15774_vm3, %v2391_v19, %v2392_v20  ;;  %v10801_v19 = vld [vmem:[%s15767_s24 + $0x290] sm:$0xf]  ;;  %v14156_v20 = vld [vmem:[#allocation9 + $0xe0] sm:$0xff]  }
 0x43c   : > { %12496 = vmatprep.subr.bf16.mxu1 %v14077_v51  ;;  %v10784_v33 = vcombine.low %v2390_v26, %v2393_v29  ;;  %v14155_v26 = vld [vmem:[%s15958_s6 + $0x28] sm:$0xff]  }
 0x43d   : > { %12369 = vmatpush3.bf16.msra.mxu0 %v14130_v35  ;;  %v15977_v29 = vld [vmem:[%s15767_s24 + $0x2ac] sm:$0xf]  ;;  %v14160_v35 = vld [vmem:[%s15958_s6 + $0x30] sm:$0xff]  }
 0x43e   : > { %12481 = vmatmul.mubr.bf16.gmra.mrb[4].mxu1 %v10780_v57  ;;  %12370 = vmatprep.subr.bf16.mxu0 %v14132_v43  ;;  %v14092_v57 = vld [vmem:[#allocation9 + $0x120] sm:$0xff]  }
 0x43f   : > { %12497 = vmatpush3.bf16.msra.mxu1 %v14077_v51  ;;  %12484 = vmatprep.mubr.bf16.mxu1 %v10781_v60  ;;  %v14088_v51 = vld [vmem:[#allocation9 + $0x110] sm:$0xff]  }
 0x440   : > { %12498 = vmatprep.subr.bf16.mxu1 %v14078_v58  ;;  %v10799_v60 = vld [vmem:[%s15767_s24 + $0x250] sm:$0xf] }
 0x441   : > { %12371 = vmatpush3.bf16.msra.mxu0 %v14132_v43  ;;  %v10819_v3 = vcombine.low %v15819_v62, %v10799_v60  ;;  %v10820_v62 = vcombine.low %v15836_v17, %v10800_v8  ;;  %v14154_v17 = vld [vmem:[%s15958_s6 + $0x20] sm:$0xff]   ;;  %v10698_v60 = vld [vmem:[%s15767_s24 + $0x2b0] sm:$0x1] }
 0x442   : > { %12372 = vmatprep.subr.bf16.mxu0 %v14134_v11  ;;  %v14103_v43 = vld [vmem:[#allocation9 + $0x1d8] sm:$0xff]  }
 0x443   : > { %12499 = vmatpush3.bf16.msra.mxu1 %v14078_v58  ;;  %v14140_v58 = vld [vmem:[#allocation7 + $0x38] sm:$0xff]  }
 0x444   : > { %12500 = vmatprep.subr.bf16.mxu1 %v14079_v6 }
 0x445   : > { %12373 = vmatpush3.bf16.msra.mxu0 %v14134_v11  ;;  %v15990_v11 = vld [vmem:[%s15767_s24 + $0x2ec] sm:$0xf] }
 0x446   : > { %12485 = vmatmul.mubr.bf16.gmra.mrb[8].mxu1 %v10782_v15  ;;  %12374 = vmatprep.subr.bf16.mxu0 %v14136_v52  ;;  %v14098_v15 = vld [vmem:[#allocation9 + $0x1c0] sm:$0xff]  }
 0x447   : > { %12501 = vmatpush3.bf16.msra.mxu1 %v14079_v6  ;;  %12488 = vmatprep.mubr.bf16.mxu1 %v10783_v18  ;;  %v14148_v6 = vld [vmem:[%s15958_s6 + $0x10] sm:$0xff]   ;;  %v14152_v18 = vld [vmem:[#allocation9 + $0xd8] sm:$0xff]  }
 0x448   : > { %12502 = vmatprep.subr.bf16.mxu1 %v14080_v21 }
 0x449   : > { %12375 = vmatpush3.bf16.msra.mxu0 %v14136_v52  ;;  %v10805_v52 = vld [vmem:[%s15767_s24 + $0x310] sm:$0xf] }
 0x44a   : > { %12376 = vmatprep.subr.bf16.mxu0 %v14138_v53  ;;  %v10833_v39 = vcombine.low %v15840_v25, %v10805_v52  ;;  %v10806_v25 = vld [vmem:[%s15767_s24 + $0x330] sm:$0xf] }
 0x44b   : > { %12503 = vmatpush3.bf16.msra.mxu1 %v14080_v21  ;;  %v10829_v21 = vcombine.low %v15970_v16, %v10801_v19 }
 0x44c   : > { %12504 = vmatprep.subr.bf16.mxu1 %v14081_v30 }
 0x44d   : > { %12377 = vmatpush3.bf16.msra.mxu0 %v14138_v53  ;;  %v1938_v53 = vrot.slane %v15977_v29, 5 }
 0x44e   : > { %12489 = vmatmul.mubr.bf16.gmra.mrb[12].mxu1 %v10784_v33  ;;  %12378 = vmatprep.subr.bf16.mxu0 %v14140_v58  ;;  %v14158_v33 = vld [vmem:[#allocation9 + $0xe8] sm:$0xff]  }
 0x44f   : > { %12505 = vmatpush3.bf16.msra.mxu1 %v14081_v30  ;;  %12508 = vmatprep.mubr.bf16.mxu1 %v10813_v34  ;;  %v10802_v30 = vld [vmem:[%s15767_s24 + $0x2b0] sm:$0xf] }
 0x450   : > { %12506 = vmatprep.subr.bf16.mxu1 %v14082_v36  ;;  %v10803_v34 = vld [vmem:[%s15767_s24 + $0x2d0] sm:$0xf] }
 0x451   : > { %12379 = vmatpush3.bf16.msra.mxu0 %v14140_v58  ;;  %v10831_v41 = vcombine.low %v15981_v32, %v10803_v34  ;;  %v10696_v58 = vld [vmem:[%s15767_s24 + $0x2a8] sm:$0xe] }
 0x452   : > { %12396 = vmatprep.subr.bf16.mxu0 %v14144_v0 }
 0x453   : > { %12507 = vmatpush3.bf16.msra.mxu1 %v14082_v36  ;;  %v10830_v36 = vcombine.low %v15977_v29, %v10802_v30 }
 0x454   : > { %12524 = vmatprep.subr.bf16.mxu1 %v14084_v38  ;;  %12381 = vmatmul.mubr.bf16.vlgmr.msra.gmra.mrb[0].mxu0 %v14143_v4  ;;  %v10738_v4 = vrot.slane %v10696_v58, 9  ;;  %v10860_v58 = vld [vmem:[%s15767_s24 + $0x1ac] sm:$0x8] }
 0x455   : > { %12397 = vmatpush3.bf16.msra.mxu0 %v14144_v0  ;;  %12384 = vmatprep.mubr.bf16.mxu0 %v14148_v6  ;;  %v10699_v6 = vld [vmem:[%s15767_s24 + $0x2c8] sm:$0xe] }
 0x456   : > { %12509 = vmatmul.mubr.bf16.vlgmr.msra.gmra.mrb[0].mxu1 %v10814_v46  ;;  %12398 = vmatprep.subr.bf16.mxu0 %v14146_v7  ;;  %v14161_v46 = vld [vmem:[%s15958_s6 + $0x38] sm:$0xff]  }
 0x457   : > { %12525 = vmatpush3.bf16.msra.mxu1 %v14084_v38  ;;  %12512 = vmatprep.mubr.bf16.mxu1 %v10815_v47  ;;  %v1931_v38 = vrot.slane %v15970_v16, 5  ;;  %v10804_v47 = vld [vmem:[%s15767_s24 + $0x2f0] sm:$0xf] }
 0x458   : > { %12526 = vmatprep.subr.bf16.mxu1 %v14085_v49  ;;  %v10832_v56 = vcombine.low %v15990_v11, %v10804_v47  ;;  %v10858_v47 = vld [vmem:[%s15767_s24 + $0x190] sm:$0xf] }
 0x459   : > { %12399 = vmatpush3.bf16.msra.mxu0 %v14146_v7  ;;  %v1933_v50 = vrot.slane %v1931_v38, 4  ;;  %v1941_v7 = vrot.slane %v10698_v60, 5  ;;  %v14124_v60 = vld [vmem:[#allocation9 + $0xb0] sm:$0xff]  }
 0x45a   : > { %12400 = vmatprep.subr.bf16.mxu0 %v14150_v10 }
 0x45b   : > { %12527 = vmatpush3.bf16.msra.mxu1 %v14085_v49  ;;  %v14106_v49 = vld [vmem:[#allocation9 + $0x1e0] sm:$0xff]  }
 0x45c   : > { %12528 = vmatprep.subr.bf16.mxu1 %v14088_v51  ;;  %12385 = vmatmul.mubr.bf16.gmra.mrb[4].mxu0 %v14149_v14  ;;  %v1952_v14 = vrot.slane %v15990_v11, 5  ;;  %v14117_v11 = vld [vmem:[#allocation9 + $0x98] sm:$0xff]  }
 0x45d   : > { %12401 = vmatpush3.bf16.msra.mxu0 %v14150_v10  ;;  %12388 = vmatprep.mubr.bf16.mxu0 %v14154_v17 }
 0x45e   : > { %12513 = vmatmul.mubr.bf16.gmra.mrb[4].mxu1 %v10816_v24  ;;  %12402 = vmatprep.subr.bf16.mxu0 %v14152_v18  ;;  %v10695_v24 = vld [vmem:[%s15767_s24 + $0x290] sm:$0x1] }
 0x45f   : > { %12529 = vmatpush3.bf16.msra.mxu1 %v14088_v51  ;;  %12516 = vmatprep.mubr.bf16.mxu1 %v10817_v54  ;;  %v14164_v51 = vld [vmem:[#allocation9 + $0xf8] sm:$0xff]   ;;  %v10737_v54 = vrot.slane %v10693_v23, 9 }
 0x460   : > { %12530 = vmatprep.subr.bf16.mxu1 %v14089_v55 }
 0x461   : > { %12403 = vmatpush3.bf16.msra.mxu0 %v14152_v18  ;;  %v10834_v18 = vcombine.low %v15858_v45, %v10806_v25  ;;  %v14112_v45 = vld [vmem:[#allocation9 + $0x80] sm:$0xff]   ;;  %v10866_v25 = vld [vmem:[%s15767_s24 + $0x1ec] sm:$0x8] }
 0x462   : > { %12404 = vmatprep.subr.bf16.mxu0 %v14156_v20 }
 0x463   : > { %12531 = vmatpush3.bf16.msra.mxu1 %v14089_v55  ;;  %v1945_v55 = vrot.slane %v15981_v32, 5  ;;  %v10807_v32 = vld [vmem:[%s15767_s24 + $0x350] sm:$0xf] }
 0x464   : > { %12532 = vmatprep.subr.bf16.mxu1 %v14092_v57  ;;  %12389 = vmatmul.mubr.bf16.gmra.mrb[8].mxu0 %v14155_v26  ;;  %v1954_v26 = vrot.slane %v1952_v14, 4 }
 0x465   : > { %12405 = vmatpush3.bf16.msra.mxu0 %v14156_v20  ;;  %12392 = vmatprep.mubr.bf16.mxu0 %v14160_v35  ;;  %v1947_v8 = vrot.slane %v1945_v55, 4  ;;  %v10702_v20 = vld [vmem:[%s15767_s24 + $0x2e8] sm:$0xe]  ;;  %v10843_v35 = vcombine.low %v15861_v48, %v10807_v32 }
 0x466   : > { %12517 = vmatmul.mubr.bf16.gmra.mrb[8].mxu1 %v10818_v40  ;;  %12406 = vmatprep.subr.bf16.mxu0 %v14158_v33  ;;  %v1932_v40 = vsel %vm15774_vm3, %v10737_v54, %v1931_v38  ;;  %v10740_v30 = vrot.slane %v10702_v20, 9  ;;  %v10808_v38 = vld [vmem:[%s15767_s24 + $0x370] sm:$0xf] }
 0x467   : > { %12533 = vmatpush3.bf16.msra.mxu1 %v14092_v57  ;;  %12520 = vmatprep.mubr.bf16.mxu1 %v10819_v3  ;;  %v1934_v57 = vrot.slane %v10695_v24, 5  ;;  %v14121_v24 = vld [vmem:[#allocation9 + $0xa8] sm:$0xff]  }
 0x468   : > { %12534 = vmatprep.subr.bf16.mxu1 %v14093_v1 }
 0x469   : > { %12407 = vmatpush3.bf16.msra.mxu0 %v14158_v33  ;;  %v1935_v0 = vsel %vm15774_vm3, %v1933_v50, %v1934_v57  ;;  %v1953_v33 = vsel %vm15774_vm3, %v10740_v30, %v1952_v14  ;;  %v10811_v50 = vld [vmem:[%s15767_s24 + $0x3d0] sm:$0xf] }
 0x46a   : > { %12408 = vmatprep.subr.bf16.mxu0 %v14162_v37  ;;  %v10847_v23 = vcombine.low %v15914_v42, %v10811_v50  ;;  %v10812_v57 = vld [vmem:[%s15767_s24 + $0x3f0] sm:$0xf]  ;;  %v10862_v42 = vld [vmem:[%s15767_s24 + $0x1b4] sm:$0x7] }
 0x46b   : > { %12535 = vmatpush3.bf16.msra.mxu1 %v14093_v1  ;;  %v1940_v1 = vrot.slane %v1938_v53, 4 }
 0x46c   : > { %12536 = vmatprep.subr.bf16.mxu1 %v14096_v59  ;;  %12393 = vmatmul.mubr.bf16.gmra.mrb[12].mxu0 %v14161_v46  ;;  %v10844_v46 = vcombine.low %v15883_v5, %v10808_v38  ;;  %v3339_v5 = vrot.slane %v10858_v47, 7  ;;  %v14129_v38 = vld [vmem:[#allocation9 + $0x148] sm:$0xff]   ;;  %v14131_v47 = vld [vmem:[#allocation9 + $0x150] sm:$0xff]  }
 0x46d   : > { %12409 = vmatpush3.bf16.msra.mxu0 %v14162_v37  ;;  %12412 = vmatprep.mubr.bf16.mxu0 %v15855_v44  ;;  %v14107_v44 = vld [vmem:[#allocation9 + $0x1e8] sm:$0xff]   ;;  %v1942_v16 = vsel %vm15774_vm3, %v1940_v1, %v1941_v7  ;;  %v10848_v7 = vcombine.low %v15928_v63, %v10812_v57  ;;  %v10868_v63 = vld [vmem:[%s15767_s24 + $0x1f4] sm:$0x7] }
 0x46e   : > { %12521 = vmatmul.mubr.bf16.gmra.mrb[12].mxu1 %v10820_v62  ;;  %12410 = vmatprep.subr.bf16.mxu0 %v14164_v51 }
 0x46f   : > { %12537 = vmatpush3.bf16.msra.mxu1 %v14096_v59  ;;  %12540 = vmatprep.mubr.bf16.mxu1 %v10819_v3  ;;  %v10745_v3 = vcombine.low %v1932_v40, %v1935_v0  ;;  %v10701_v59 = vld [vmem:[%s15767_s24 + $0x2d0] sm:$0x1]  ;;  %v10863_v40 = vld [vmem:[%s15767_s24 + $0x1cc] sm:$0x8] }
 0x470   : > { %12538 = vmatprep.subr.bf16.mxu1 %v14097_v12  ;;  %v1948_v10 = vrot.slane %v10701_v59, 5  ;;  %v3349_v59 = vrot.slane %v10862_v42, 7  ;;  %v16108_v42 = vld [vmem:[%s15767_s24 + $0x294] sm:$0x7] }
 0x471   : > { %12411 = vmatpush3.bf16.msra.mxu0 %v14164_v51  ;;  %v10857_v51 = vld [vmem:[%s15767_s24 + $0x18c] sm:$0x8] }
 0x472   : > { %v1949_v19 = vsel %vm15774_vm3, %v1947_v8, %v1948_v10  ;;  %v10917_v54 = vrot.slane %v10857_v51, 11  ;;  %v14125_v10 = vld [vmem:[#allocation9 + $0xb8] sm:$0xff]  }
 0x473   : > { %12539 = vmatpush3.bf16.msra.mxu1 %v14097_v12  ;;  %v14110_v12 = vld [vmem:[#allocation9 + $0x1f0] sm:$0xff]  }
 0x474   : > { %12556 = vmatprep.subr.bf16.mxu1 %v14098_v15  ;;  %12413 = vmatmul.mubr.bf16.vlgmr.msra.gmra.mrb[16].mxu0 %v15878_v61  ;;  %v10704_v61 = vld [vmem:[%s15767_s24 + $0x2f0] sm:$0x1]  ;;  %v3340_v0 = vsel %vm16046_vm6, %v10917_v54, %v3339_v5  ;;  %v16095_v54 = vld [vmem:[%s15767_s24 + $0x26c] sm:$0x8] }
 0x475   : > { %12416 = vmatprep.mubr.bf16.mxu0 %v10745_v3  ;;  %v10918_v3 = vrot.slane %v10860_v58, 11 }
 0x476   : > { %12541 = vmatmul.mubr.bf16.vlgmr.msra.gmra.mrb[0].mxu1 %v10820_v62  ;;  %v10739_v62 = vrot.slane %v10699_v6, 9 }
 0x477   : > { %12557 = vmatpush3.bf16.msra.mxu1 %v14098_v15  ;;  %12544 = vmatprep.mubr.bf16.mxu1 %v10829_v21  ;;  %v1939_v15 = vsel %vm15774_vm3, %v10738_v4, %v1938_v53  ;;  %v14111_v21 = vld [vmem:[#allocation9 + $0x1f8] sm:$0xff]   ;;  %v10861_v53 = vld [vmem:[%s15767_s24 + $0x1b0] sm:$0xf] }
 0x478   : > { %12558 = vmatprep.subr.bf16.mxu1 %v14099_v22  ;;  %v1946_v17 = vsel %vm15774_vm3, %v10739_v62, %v1945_v55  ;;  %v3341_v55 = vrot.slane %v3339_v5, 4  ;;  %v10867_v62 = vld [vmem:[%s15767_s24 + $0x1f0] sm:$0xf] }
 0x479   : > { %v10747_v29 = vcombine.low %v1946_v17, %v1949_v19  ;;  %v14127_v17 = vld [vmem:[#allocation9 + $0x140] sm:$0xff]   ;;  %v10920_v19 = vrot.slane %v10866_v25, 11  ;;  %v3360_v20 = vrot.slane %v10867_v62, 7  ;;  %v3626_v62 = vrot.slane %v16108_v42, 7  ;;  %v16261_v42 = vld [vmem:[%s15767_s24 + $0x3cc] sm:$0x8] }
 0x47b   : > { %12559 = vmatpush3.bf16.msra.mxu1 %v14099_v22  ;;  %v10746_v22 = vcombine.low %v1939_v15, %v1942_v16  ;;  %v10870_v16 = vld [vmem:[%s15767_s24 + $0x210] sm:$0xf] }
 0x47c   : > { %12560 = vmatprep.subr.bf16.mxu1 %v14102_v31 }
 0x47d   : > { %12417 = vmatmul.mubr.bf16.gmra.mrb[20].mxu0 %v10746_v22  ;;  %v10869_v22 = vld [vmem:[%s15767_s24 + $0x20c] sm:$0x8] }
 0x47e   : > { %12545 = vmatmul.mubr.bf16.gmra.mrb[4].mxu1 %v10830_v36  ;;  %12420 = vmatprep.mubr.bf16.mxu0 %v10747_v29  ;;  %v14113_v36 = vld [vmem:[#allocation9 + $0x88] sm:$0xff]  }
 0x47f   : > { %12561 = vmatpush3.bf16.msra.mxu1 %v14102_v31  ;;  %12548 = vmatprep.mubr.bf16.mxu1 %v10831_v41  ;;  %v1955_v31 = vrot.slane %v10704_v61, 5  ;;  %v14116_v41 = vld [vmem:[#allocation9 + $0x90] sm:$0xff]  }
 0x480   : > { %12562 = vmatprep.subr.bf16.mxu1 %v14103_v43 }
 0x481   : > { %v1956_v34 = vsel %vm15774_vm3, %v1954_v26, %v1955_v31  ;;  %v10871_v26 = vld [vmem:[%s15767_s24 + $0x214] sm:$0x7]  ;;  %v3367_v31 = vrot.slane %v10870_v16, 7 }
 0x482   : > { %v10748_v37 = vcombine.low %v1953_v33, %v1956_v34  ;;  %v3362_v34 = vrot.slane %v3360_v20, 4 }
 0x483   : > { %12563 = vmatpush3.bf16.msra.mxu1 %v14103_v43  ;;  %v10809_v43 = vld [vmem:[%s15767_s24 + $0x390] sm:$0xf] }
 0x484   : > { %12564 = vmatprep.subr.bf16.mxu1 %v14106_v49  ;;  %v10845_v48 = vcombine.low %v15887_v9, %v10809_v43  ;;  %v10859_v9 = vld [vmem:[%s15767_s24 + $0x194] sm:$0x7]  ;;  %v3369_v43 = vrot.slane %v3367_v31, 4 }
 0x485   : > { %12421 = vmatmul.mubr.bf16.gmra.mrb[24].mxu0 %v10748_v37  ;;  %v10874_v37 = vld [vmem:[%s15767_s24 + $0x234] sm:$0x7] }
 0x486   : > { %12549 = vmatmul.mubr.bf16.gmra.mrb[8].mxu1 %v10832_v56  ;;  %12424 = vmatprep.mubr.bf16.mxu0 %v15880_v2  ;;  %v14120_v2 = vld [vmem:[#allocation9 + $0xa0] sm:$0xff]   ;;  %v3342_v56 = vrot.slane %v10859_v9, 7  ;;  %v3377_v51 = vrot.slane %v10874_v37, 7  ;;  %v10875_v9 = vld [vmem:[%s15767_s24 + $0x24c] sm:$0x8] }
 0x487   : > { %12565 = vmatpush3.bf16.msra.mxu1 %v14106_v49  ;;  %12552 = vmatprep.mubr.bf16.mxu1 %v10833_v39  ;;  %v10810_v49 = vld [vmem:[%s15767_s24 + $0x3b0] sm:$0xf] }
 0x488   : > { %12566 = vmatprep.subr.bf16.mxu1 %v14107_v44  ;;  %v10846_v52 = vcombine.low %v15905_v27, %v10810_v49  ;;  %v10864_v27 = vld [vmem:[%s15767_s24 + $0x1d0] sm:$0xf]  ;;  %v3343_v1 = vsel %vm16046_vm6, %v3341_v55, %v3342_v56  ;;  %v16098_v55 = vld [vmem:[%s15767_s24 + $0x274] sm:$0x7] }
 0x489   : > { %v3353_v4 = vrot.slane %v10864_v27, 7  ;;  %v10925_v6 = vcombine.low %v3340_v0, %v3343_v1  ;;  %v16102_v27 = vld [vmem:[%s15767_s24 + $0x28c] sm:$0x8]  ;;  %v10924_v1 = vrot.slane %v16095_v54, 11  ;;  %v16166_v37 = vld [vmem:[%s15767_s24 + $0x330] sm:$0xf] }
 0x48a   : > { %v16200_v54 = vld [vmem:[%s15767_s24 + $0x354] sm:$0x7] }
 0x48b   : > { %12567 = vmatpush3.bf16.msra.mxu1 %v14107_v44  ;;  %v10865_v44 = vld [vmem:[%s15767_s24 + $0x1d4] sm:$0x7]  ;;  %v3355_v14 = vrot.slane %v3353_v4, 4 }
 0x48c   : > { %12568 = vmatprep.subr.bf16.mxu1 %v14110_v12  ;;  %v3356_v15 = vrot.slane %v10865_v44, 7 }
 0x48d   : > { %12425 = vmatmul.mubr.bf16.gmra.mrb[28].mxu0 %v15907_v28  ;;  %v14200_v28 = vld [vmem:[#allocation12 + $0x100] sm:$0xff]  }
 0x48e   : > { %12553 = vmatmul.mubr.bf16.gmra.mrb[12].mxu1 %v10834_v18  ;;  %v3357_v30 = vsel %vm16046_vm6, %v3355_v14, %v3356_v15  ;;  %v16126_v14 = vld [vmem:[%s15767_s24 + $0x2ac] sm:$0x8]  ;;  %v16129_v15 = vld [vmem:[%s15767_s24 + $0x2b4] sm:$0x7] }
 0x48f   : > { %12569 = vmatpush3.bf16.msra.mxu1 %v14110_v12  ;;  %12572 = vmatprep.mubr.bf16.mxu1 %v10833_v39  ;;  %v3346_v39 = vrot.slane %v10861_v53, 7  ;;  %v10919_v12 = vrot.slane %v10863_v40, 11  ;;  %v10923_v40 = vrot.slane %v10875_v9, 11  ;;  %v17984_v9 = vrot.slane %v16166_v37, 7 }
 0x490   : > { %12570 = vmatprep.subr.bf16.mxu1 %v14111_v21 }
 0x491   : > { %v3348_v8 = vrot.slane %v3346_v39, 4  ;;  %v3347_v61 = vsel %vm16046_vm6, %v10918_v3, %v3346_v39  ;;  %v3354_v29 = vsel %vm16046_vm6, %v10919_v12, %v3353_v4  ;;  %v14133_v39 = vld [vmem:[#allocation9 + $0x158] sm:$0xff]   ;;  %v3391_v3 = vrot.slane %v16098_v55, 7  ;;  %v16113_v4 = vld [vmem:[%s15767_s24 + $0x2b0] sm:$0xf] }
 0x492   : > { %v10927_v33 = vcombine.low %v3354_v29, %v3357_v30  ;;  %v16150_v29 = vld [vmem:[%s15767_s24 + $0x2f4] sm:$0x7]  ;;  %v14137_v30 = vld [vmem:[#allocation9 + $0x168] sm:$0xff]  }
 0x493   : > { %12571 = vmatpush3.bf16.msra.mxu1 %v14111_v21  ;;  %v3350_v21 = vsel %vm16046_vm6, %v3348_v8, %v3349_v59  ;;  %v10941_v59 = vrot.slane %v16102_v27, 11 }
 0x494   : > { %12588 = vmatprep.subr.bf16.mxu1 %v14112_v45  ;;  %v10926_v32 = vcombine.low %v3347_v61, %v3350_v21 }
 0x496   : > { %12573 = vmatmul.mubr.bf16.vlgmr.msra.gmra.mrb[0].mxu1 %v10834_v18  ;;  %v16064_v18 = vld [vmem:[%s15767_s24 + $0x230] sm:$0xf] }
 0x497   : > { %12589 = vmatpush3.bf16.msra.mxu1 %v14112_v45  ;;  %12576 = vmatprep.mubr.bf16.mxu1 %v10843_v35  ;;  %v3374_v45 = vrot.slane %v16064_v18, 7  ;;  %v3363_v35 = vrot.slane %v10868_v63, 7  ;;  %v16137_v63 = vld [vmem:[%s15767_s24 + $0x2cc] sm:$0x8] }
 0x498   : > { %12590 = vmatprep.subr.bf16.mxu1 %v14113_v36 }
 0x499   : > { %v3376_v50 = vrot.slane %v3374_v45, 4  ;;  %v3364_v5 = vsel %vm16046_vm6, %v3362_v34, %v3363_v35  ;;  %v10943_v34 = vrot.slane %v16137_v63, 11  ;;  %v16367_v63 = vld [vmem:[%s15767_s24 + $0x268] sm:$0x7] }
 0x49b   : > { %12591 = vmatpush3.bf16.msra.mxu1 %v14113_v36  ;;  %v10872_v36 = vld [vmem:[%s15767_s24 + $0x22c] sm:$0x8]  ;;  %v3378_v12 = vsel %vm16046_vm6, %v3376_v50, %v3377_v51  ;;  %v16183_v50 = vld [vmem:[%s15767_s24 + $0x314] sm:$0x7] }
 0x49c   : > { %12592 = vmatprep.subr.bf16.mxu1 %v14116_v41  ;;  %v10922_v49 = vrot.slane %v10872_v36, 11  ;;  %v16163_v36 = vld [vmem:[%s15767_s24 + $0x310] sm:$0xf] }
 0x49d   : > { %v3651_v51 = vrot.slane %v16163_v36, 7  ;;  %v16394_v36 = vld [vmem:[%s15767_s24 + $0x2a0] sm:$0x8] }
 0x49e   : > { %12577 = vmatmul.mubr.bf16.gmra.mrb[4].mxu1 %v10844_v46  ;;  %v3370_v46 = vrot.slane %v10871_v26, 7  ;;  %v16147_v26 = vld [vmem:[%s15767_s24 + $0x2f0] sm:$0xf] }
 0x49f   : > { %12593 = vmatpush3.bf16.msra.mxu1 %v14116_v41  ;;  %12580 = vmatprep.mubr.bf16.mxu1 %v10845_v48  ;;  %v10921_v41 = vrot.slane %v10869_v22, 11  ;;  %v10876_v48 = vld [vmem:[%s15767_s24 + $0x250] sm:$0xf]  ;;  %v16144_v22 = vld [vmem:[%s15767_s24 + $0x2ec] sm:$0x8] }
 0x4a0   : > { %12594 = vmatprep.subr.bf16.mxu1 %v14117_v11  ;;  %v3371_v53 = vsel %vm16046_vm6, %v3369_v43, %v3370_v46  ;;  %v10944_v43 = vrot.slane %v16144_v22, 11  ;;  %v3644_v46 = vrot.slane %v16147_v26, 7 }
 0x4a2   : > { %v16204_v55 = vrot.slane %v3644_v46, 4 }
 0x4a3   : > { %12595 = vmatpush3.bf16.msra.mxu1 %v14117_v11  ;;  %v16082_v11 = vld [vmem:[%s15767_s24 + $0x270] sm:$0xf] }
 0x4a4   : > { %12596 = vmatprep.subr.bf16.mxu1 %v14120_v2  ;;  %v3388_v56 = vrot.slane %v16082_v11, 7 }
 0x4a6   : > { %12581 = vmatmul.mubr.bf16.gmra.mrb[8].mxu1 %v10846_v52  ;;  %v10877_v52 = vld [vmem:[%s15767_s24 + $0x254] sm:$0x7]  ;;  %v3390_v8 = vrot.slane %v3388_v56, 4  ;;  %v3389_v11 = vsel %vm16046_vm6, %v10924_v1, %v3388_v56  ;;  %v14145_v1 = vld [vmem:[#allocation9 + $0x200] sm:$0xff]  }
 0x4a7   : > { %12597 = vmatpush3.bf16.msra.mxu1 %v14120_v2  ;;  %12584 = vmatprep.mubr.bf16.mxu1 %v10847_v23  ;;  %v3361_v2 = vsel %vm16046_vm6, %v10920_v19, %v3360_v20  ;;  %v3368_v23 = vsel %vm16046_vm6, %v10921_v41, %v3367_v31  ;;  %v3384_v0 = vrot.slane %v10877_v52, 7  ;;  %v16140_v19 = vld [vmem:[%s15767_s24 + $0x2d4] sm:$0x7] }
 0x4a8   : > { %12598 = vmatprep.subr.bf16.mxu1 %v14121_v24  ;;  %v10928_v57 = vcombine.low %v3361_v2, %v3364_v5  ;;  %v10929_v58 = vcombine.low %v3368_v23, %v3371_v53  ;;  %v3640_v35 = vrot.slane %v16140_v19, 7  ;;  %v16187_v2 = vld [vmem:[%s15767_s24 + $0x32c] sm:$0x8]  ;;  %v16190_v5 = vld [vmem:[%s15767_s24 + $0x334] sm:$0x7]  ;;  %v14141_v23 = vld [vmem:[#allocation9 + $0x178] sm:$0xff]  }
 0x4a9   : > { %v16194_v53 = vld [vmem:[%s15767_s24 + $0x34c] sm:$0x8]  ;;  %v16330_v19 = vld [vmem:[%s15767_s24 + $0x264] sm:$0xf] }
 0x4ab   : > { %12599 = vmatpush3.bf16.msra.mxu1 %v14121_v24  ;;  %v3381_v24 = vrot.slane %v10876_v48, 7  ;;  %v3647_v48 = vrot.slane %v16150_v29, 7  ;;  %v16390_v29 = vld [vmem:[%s15767_s24 + $0x288] sm:$0x7] }
 0x4ac   : > { %12600 = vmatprep.subr.bf16.mxu1 %v14124_v60 }
 0x4ad   : > { %v3383_v44 = vrot.slane %v3381_v24, 4  ;;  %v3382_v16 = vsel %vm16046_vm6, %v10923_v40, %v3381_v24  ;;  %v16197_v24 = vld [vmem:[%s15767_s24 + $0x350] sm:$0xf]  ;;  %v3654_v40 = vrot.slane %v16183_v50, 7  ;;  %v3648_v22 = vsel %vm16046_vm6, %v16204_v55, %v3647_v48 }
 0x4ae   : > { %12585 = vmatmul.mubr.bf16.gmra.mrb[12].mxu1 %v10848_v7  ;;  %v16116_v7 = vld [vmem:[%s15767_s24 + $0x2d0] sm:$0xf] }
 0x4af   : > { %12601 = vmatpush3.bf16.msra.mxu1 %v14124_v60  ;;  %12604 = vmatprep.mubr.bf16.mxu1 %v10925_v6  ;;  %v16105_v60 = vld [vmem:[%s15767_s24 + $0x290] sm:$0xf]  ;;  %v14135_v6 = vld [vmem:[#allocation9 + $0x160] sm:$0xff]   ;;  %v3385_v18 = vsel %vm16046_vm6, %v3383_v44, %v3384_v0  ;;  %v3637_v20 = vrot.slane %v16116_v7, 7 }
 0x4b0   : > { %12602 = vmatprep.subr.bf16.mxu1 %v14125_v10  ;;  %v3623_v25 = vrot.slane %v16105_v60, 7  ;;  %v10931_v21 = vcombine.low %v3382_v16, %v3385_v18  ;;  %v14147_v60 = vld [vmem:[#allocation9 + $0x208] sm:$0xff]  }
 0x4b1   : > { %v16170_v41 = vrot.slane %v3637_v20, 4  ;;  %v16255_v16 = vld [vmem:[%s15767_s24 + $0x3b0] sm:$0xf] }
 0x4b2   : > { %v3625_v31 = vrot.slane %v3623_v25, 4  ;;  %v17990_v0 = vrot.slane %v16255_v16, 7  ;;  %v14159_v55 = vld [vmem:[#allocation9 + $0x228] sm:$0xff]  }
 0x4b3   : > { %12603 = vmatpush3.bf16.msra.mxu1 %v14125_v10  ;;  %v3375_v10 = vsel %vm16046_vm6, %v10922_v49, %v3374_v45  ;;  %v10942_v45 = vrot.slane %v16126_v14, 11  ;;  %v16180_v49 = vld [vmem:[%s15767_s24 + $0x30c] sm:$0x8]  ;;  %v3638_v14 = vsel %vm16046_vm6, %v10943_v34, %v3637_v20  ;;  %v16327_v20 = vld [vmem:[%s15767_s24 + $0x244] sm:$0xf] }
 0x4b4   : > { %12620 = vmatprep.subr.bf16.mxu1 %v14127_v17  ;;  %v10930_v61 = vcombine.low %v3375_v10, %v3378_v12  ;;  %v10945_v56 = vrot.slane %v16180_v49, 11  ;;  %v16228_v12 = vld [vmem:[%s15767_s24 + $0x374] sm:$0x7]  ;;  %v16272_v10 = vld [vmem:[%s15767_s24 + $0x3f0] sm:$0xf]  ;;  %v16334_v34 = vrot.slane %v17990_v0, 4 }
 0x4b5   : > { %v16397_v49 = vld [vmem:[%s15767_s24 + $0x2a8] sm:$0x7] }
 0x4b6   : > { %12605 = vmatmul.mubr.bf16.vlgmr.msra.gmra.mrb[0].mxu1 %v10926_v32  ;;  %v3652_v26 = vsel %vm16046_vm6, %v10945_v56, %v3651_v51  ;;  %v16436_v0 = vld [vmem:[%s15767_s24 + $0x2c8] sm:$0x7] }
 0x4b7   : > { %12621 = vmatpush3.bf16.msra.mxu1 %v14127_v17  ;;  %12608 = vmatprep.mubr.bf16.mxu1 %v10927_v33  ;;  %v3630_v17 = vrot.slane %v16113_v4, 7  ;;  %v3633_v33 = vrot.slane %v16129_v15, 7  ;;  %v17986_v4 = vrot.slane %v16272_v10, 7  ;;  %v3641_v15 = vsel %vm16046_vm6, %v16170_v41, %v3640_v35  ;;  %v16360_v41 = vld [vmem:[%s15767_s24 + $0x248] sm:$0x7]  ;;  %18051 = vst [vmem:[#allocation35_spill] sm:$0xff] %v16436_v0 }
 0x4b8   : > { %12622 = vmatprep.subr.bf16.mxu1 %v14129_v38 }
 0x4b9   : > { %v16157_v32 = vrot.slane %v3630_v17, 4 }
 0x4bb   : > { %12623 = vmatpush3.bf16.msra.mxu1 %v14129_v38  ;;  %v14139_v38 = vld [vmem:[#allocation9 + $0x170] sm:$0xff]   ;;  %v3634_v44 = vsel %vm16046_vm6, %v16157_v32, %v3633_v33  ;;  %v10949_v32 = vcombine.low %v3638_v14, %v3641_v15  ;;  %v14153_v33 = vld [vmem:[#allocation9 + $0x218] sm:$0xff]   ;;  %v16351_v14 = vld [vmem:[%s15767_s24 + $0x2a4] sm:$0xf]  ;;  %v3645_v15 = vsel %vm16046_vm6, %v10944_v43, %v3644_v46 }
 0x4bc   : > { %12624 = vmatprep.subr.bf16.mxu1 %v14131_v47  ;;  %v16387_v46 = vld [vmem:[%s15767_s24 + $0x280] sm:$0x8]  ;;  %v17992_v50 = vrot.slane %v16351_v14, 7 }
 0x4be   : > { %12609 = vmatmul.mubr.bf16.gmra.mrb[4].mxu1 %v10928_v57  ;;  %v16208_v57 = vld [vmem:[%s15767_s24 + $0x36c] sm:$0x8] }
 0x4bf   : > { %12625 = vmatpush3.bf16.msra.mxu1 %v14131_v47  ;;  %12612 = vmatprep.mubr.bf16.mxu1 %v10929_v58  ;;  %v3392_v47 = vsel %vm16046_vm6, %v3390_v8, %v3391_v3  ;;  %v16211_v58 = vld [vmem:[%s15767_s24 + $0x370] sm:$0xf]  ;;  %v16222_v3 = vrot.slane %v17984_v9, 4  ;;  %v17983_v8 = vrot.slane %v16197_v24, 7  ;;  %v16285_v9 = vld [vmem:[%s15767_s24 + $0x3d4] sm:$0x7] }
 0x4c0   : > { %12626 = vmatprep.subr.bf16.mxu1 %v14133_v39  ;;  %v10932_v52 = vcombine.low %v3389_v11, %v3392_v47  ;;  %v17985_v18 = vrot.slane %v16211_v58, 7  ;;  %v16249_v11 = vld [vmem:[%s15767_s24 + $0x394] sm:$0x7]  ;;  %v16252_v47 = vld [vmem:[%s15767_s24 + $0x3ac] sm:$0x8] }
 0x4c3   : > { %12627 = vmatpush3.bf16.msra.mxu1 %v14133_v39  ;;  %v16215_v39 = vrot.slane %v3651_v51, 4  ;;  %v10950_v51 = vcombine.low %v3645_v15, %v3648_v22  ;;  %v16416_v22 = vld [vmem:[%s15767_s24 + $0x2e4] sm:$0xf] }
 0x4c4   : > { %12628 = vmatprep.subr.bf16.mxu1 %v14135_v6 }
 0x4c5   : > { %v3655_v43 = vsel %vm16046_vm6, %v16215_v39, %v3654_v40  ;;  %v18052_v40 = vrot.slane %v16166_v37, 7  ;;  %v14165_v37 = vld [vmem:[#allocation9 + $0x238] sm:$0xff]  }
 0x4c6   : > { %12613 = vmatmul.mubr.bf16.gmra.mrb[8].mxu1 %v10930_v61  ;;  %v3624_v61 = vsel %vm16046_vm6, %v10941_v59, %v3623_v25  ;;  %v16258_v59 = vld [vmem:[%s15767_s24 + $0x3b4] sm:$0x7]  ;;  %v16265_v25 = vrot.slane %v17983_v8, 4  ;;  %v10951_v56 = vcombine.low %v3652_v26, %v3655_v43  ;;  %v16419_v26 = vld [vmem:[%s15767_s24 + $0x304] sm:$0xf] }
 0x4c7   : > { %12629 = vmatpush3.bf16.msra.mxu1 %v14135_v6  ;;  %12616 = vmatprep.mubr.bf16.mxu1 %v10931_v21  ;;  %v14151_v8 = vld [vmem:[#allocation9 + $0x210] sm:$0xff]   ;;  %v16451_v6 = vld [vmem:[%s15767_s24 + $0x2e0] sm:$0x8] }
 0x4c8   : > { %12630 = vmatprep.subr.bf16.mxu1 %v14137_v30  ;;  %18055 = vst [vmem:[#allocation36_spill] sm:$0xff] %v16451_v6  ;;  %v16509_v6 = vld [vmem:[%s15767_s24 + $0x4] sm:$0xf] }
 0x4cb   : > { %12631 = vmatpush3.bf16.msra.mxu1 %v14137_v30  ;;  %v16243_v30 = vld [vmem:[%s15767_s24 + $0x38c] sm:$0x8] }
 0x4cc   : > { %12632 = vmatprep.subr.bf16.mxu1 %v14139_v38 }
 0x4ce   : > { %12617 = vmatmul.mubr.bf16.gmra.mrb[12].mxu1 %v10932_v52 }
 0x4cf   : > { %12633 = vmatpush3.bf16.msra.mxu1 %v14139_v38  ;;  %12636 = vmatprep.mubr.bf16.mxu1 %v10931_v21  ;;  %v3627_v21 = vsel %vm16046_vm6, %v3625_v31, %v3626_v62  ;;  %v16246_v38 = vld [vmem:[%s15767_s24 + $0x390] sm:$0xf] }
 0x4d0   : > { %12634 = vmatprep.subr.bf16.mxu1 %v14141_v23  ;;  %v10947_v27 = vcombine.low %v3624_v61, %v3627_v21  ;;  %v16269_v31 = vld [vmem:[%s15767_s24 + $0x3d0] sm:$0xf]  ;;  %v17993_v21 = vrot.slane %v16246_v38, 7  ;;  %v16454_v61 = vld [vmem:[%s15767_s24 + $0x2e8] sm:$0x7] }
 0x4d1   : > { %v17987_v62 = vrot.slane %v16269_v31, 7 }
 0x4d2   : > { %v16323_v7 = vrot.slane %v17993_v21, 4  ;;  %v16462_v21 = vld [vmem:[%s15767_s24 + $0x308] sm:$0x7] }
 0x4d3   : > { %12635 = vmatpush3.bf16.msra.mxu1 %v14141_v23  ;;  %v16276_v23 = vrot.slane %v17985_v18, 4  ;;  %v16301_v18 = vld [vmem:[%s15767_s24 + $0x3ec] sm:$0x8]  ;;  %v16338_v35 = vrot.slane %v17987_v62, 4  ;;  %v16408_v62 = vld [vmem:[%s15767_s24 + $0x2c4] sm:$0xf] }
 0x4d4   : > { %12652 = vmatprep.subr.bf16.mxu1 %v14145_v1 }
 0x4d6   : > { %12637 = vmatmul.mubr.bf16.vlgmr.msra.gmra.mrb[0].mxu1 %v10932_v52  ;;  %v3631_v52 = vsel %vm16046_vm6, %v10942_v45, %v3630_v17  ;;  %v16319_v17 = vld [vmem:[%s15767_s24 + $0x240] sm:$0x8] }
 0x4d7   : > { %12653 = vmatpush3.bf16.msra.mxu1 %v14145_v1  ;;  %12640 = vmatprep.mubr.bf16.mxu1 %v10947_v27  ;;  %v16304_v1 = vld [vmem:[%s15767_s24 + $0x3f4] sm:$0x7]  ;;  %v10948_v45 = vcombine.low %v3631_v52, %v3634_v44  ;;  %v16348_v52 = vld [vmem:[%s15767_s24 + $0x284] sm:$0xf]  ;;  %v17989_v27 = vrot.slane %v16327_v20, 7 }
 0x4d8   : > { %12654 = vmatprep.subr.bf16.mxu1 %v14147_v60  ;;  %v14157_v44 = vld [vmem:[#allocation9 + $0x220] sm:$0xff]   ;;  %v17991_v48 = vrot.slane %v16348_v52, 7 }
 0x4d9   : > { %v16402_v39 = vrot.slane %v17989_v27, 4  ;;  %v16433_v27 = vld [vmem:[%s15767_s24 + $0x2c0] sm:$0x8] }
 0x4da   : > { %v16423_v43 = vrot.slane %v17991_v48, 4  ;;  %18050 = vst [vmem:[#allocation34_spill] sm:$0xff] %v16433_v27  ;;  %v16473_v48 = vld [vmem:[%s15767_s24 + $0x328] sm:$0x7] }
 0x4db   : > { %12655 = vmatpush3.bf16.msra.mxu1 %v14147_v60  ;;  %v16344_v60 = vrot.slane %v17986_v4, 4  ;;  %v16364_v4 = vld [vmem:[%s15767_s24 + $0x260] sm:$0x8] }
 0x4dc   : > { %12656 = vmatprep.subr.bf16.mxu1 %v14151_v8 }
 0x4de   : > { %12641 = vmatmul.mubr.bf16.gmra.mrb[4].mxu1 %v10948_v45  ;;  %v17988_v45 = vrot.slane %v16330_v19, 7 }
 0x4df   : > { %12657 = vmatpush3.bf16.msra.mxu1 %v14151_v8  ;;  %12644 = vmatprep.mubr.bf16.mxu1 %v10949_v32 }
 0x4e0   : > { %12658 = vmatprep.subr.bf16.mxu1 %v14153_v33  ;;  %v16412_v15 = vrot.slane %v17988_v45, 4  ;;  %v16430_v45 = vrot.slane %v17992_v50, 4  ;;  %v18054_v50 = vrot.slane %v16190_v5, 7 }
 0x4e2   : > { %18049 = vst [vmem:[#allocation33_spill] sm:$0xff] %v16430_v45  ;;  %v3662_v32 = vsel %vm16046_vm6, %v16222_v3, %v18054_v50  ;;  %v16470_v50 = vld [vmem:[%s15767_s24 + $0x324] sm:$0xf]  ;;  %v18060_v3 = vrot.slane %v16197_v24, 7  ;;  %v14167_v24 = vld [vmem:[#allocation12 + $0xc8] sm:$0xff]  }
 0x4e3   : > { %12659 = vmatpush3.bf16.msra.mxu1 %v14153_v33  ;;  %v14163_v33 = vld [vmem:[#allocation9 + $0x230] sm:$0xff]   ;;  %v14166_v45 = vld [vmem:[#allocation12 + $0xc0] sm:$0xff]  }
 0x4e4   : > { %12660 = vmatprep.subr.bf16.mxu1 %v14157_v44 }
 0x4e6   : > { %12645 = vmatmul.mubr.bf16.gmra.mrb[8].mxu1 %v10950_v51  ;;  %v18053_v51 = vrot.slane %v16187_v2, 11  ;;  %v16459_v2 = vld [vmem:[%s15767_s24 + $0x300] sm:$0x8] }
 0x4e7   : > { %12661 = vmatpush3.bf16.msra.mxu1 %v14157_v44  ;;  %12648 = vmatprep.mubr.bf16.mxu1 %v10951_v56  ;;  %v18056_v44 = vrot.slane %v16408_v62, 7 }
 0x4e8   : > { %v3659_v8 = vsel %vm16046_vm6, %v18053_v51, %v18052_v40  ;;  %12662 = vmatprep.subr.bf16.mxu1 %v14159_v55  ;;  %v16465_v40 = vld [vmem:[%s15767_s24 + $0x320] sm:$0x8]  ;;  %v18059_v51 = vrot.slane %v16419_v26, 7 }
 0x4e9   : > { %v10952_v5 = vcombine.low %v3659_v8, %v3662_v32  ;;  %v16477_v13 = vrot.slane %v18056_v44, 4  ;;  %v18057_v8 = vrot.slane %v16416_v22, 7  ;;  %v18061_v32 = vrot.slane %v16194_v53, 11 }
 0x4ea   : > { %v16488_v0 = vrot.slane %v18059_v51, 4  ;;  %v18062_v44 = vrot.slane %v16200_v54, 7  ;;  %v18063_v53 = vrot.slane %v16470_v50, 7  ;;  %v18067_v54 = vrot.slane %v16246_v38, 7 }
 0x4eb   : > { %12663 = vmatpush3.bf16.msra.mxu1 %v14159_v55  ;;  %v16482_v55 = vrot.slane %v18057_v8, 4  ;;  %v3886_v51 = vsel %vm16046_vm6, %v18061_v32, %v18060_v3  ;;  %v16512_v8 = vld [vmem:[%s15767_s24 + $0x8] sm:$0x7]  ;;  %v7391_v3 = vrot.slane %v16509_v6, 7  ;;  %v14168_v32 = vld [vmem:[#allocation12 + $0xd0] sm:$0xff]  }
 0x4ec   : > { %12664 = vmatprep.subr.bf16.mxu1 %v14163_v33  ;;  %v3889_v27 = vsel %vm16046_vm6, %v16265_v25, %v18062_v44  ;;  %v16522_v44 = vld [vmem:[%s15767_s24 + $0x20] sm:$0x8] }
 0x4ed   : > { %18058 = vst [vmem:[#allocation37_spill] sm:$0xff] %v16482_v55  ;;  %v16495_v55 = vld [vmem:[%s15767_s24] sm:$0x8]  ;;  %v11396_v38 = vrot.slane %v16522_v44, 11 }
 0x4ee   : > { %12649 = vmatmul.mubr.bf16.gmra.mrb[12].mxu1 %v10952_v5  ;;  %v14182_v6 = vld [vmem:[#allocation12 + $0x180] sm:$0xff]  }
 0x4ef   : > { %12665 = vmatpush3.bf16.msra.mxu1 %v14163_v33  ;;  %12668 = vmatprep.mubr.bf16.mxu1 %v10951_v56  ;;  %v10967_v56 = vcombine.low %v3886_v51, %v3889_v27  ;;  %v16516_v33 = vrot.slane %v18063_v53, 4  ;;  %v18064_v27 = vrot.slane %v16211_v58, 7  ;;  %v18066_v53 = vrot.slane %v16228_v12, 7 }
 0x4f0   : > { %12666 = vmatprep.subr.bf16.mxu1 %v14165_v37 }
 0x4f1   : > { %v3896_v25 = vsel %vm16046_vm6, %v16276_v23, %v18066_v53  ;;  %v16555_v53 = vld [vmem:[%s15767_s24 + $0x44] sm:$0xf] }
 0x4f3   : > { %12667 = vmatpush3.bf16.msra.mxu1 %v14165_v37  ;;  %v18065_v37 = vrot.slane %v16208_v57, 11  ;;  %v18069_v57 = vrot.slane %v16249_v11, 7  ;;  %v14170_v11 = vld [vmem:[#allocation12 + $0xe0] sm:$0xff]  }
 0x4f4   : > { %13068 = vmatprep.subr.bf16.mxu1 %v14166_v45 }
 0x4f5   : > { %v3893_v51 = vsel %vm16046_vm6, %v18065_v37, %v18064_v27  ;;  %v3903_v12 = vsel %vm16046_vm6, %v16323_v7, %v18069_v57  ;;  %v16550_v27 = vld [vmem:[%s15767_s24 + $0x28] sm:$0x7]  ;;  %v16559_v7 = vrot.slane %v7391_v3, 4 }
 0x4f6   : > { %12669 = vmatmul.mubr.bf16.vlgmr.msra.gmra.mrb[0].mxu1 %v10952_v5  ;;  %v16536_v5 = vld [vmem:[%s15767_s24 + $0x24] sm:$0xf]  ;;  %v10968_v23 = vcombine.low %v3893_v51, %v3896_v25  ;;  %v18071_v25 = vrot.slane %v16252_v47, 11  ;;  %v18073_v47 = vrot.slane %v16269_v31, 7 }
 0x4f7   : > { %12672 = vmatprep.mubr.bf16.mxu1 %v10967_v56  ;;  %13069 = vmatpush3.bf16.msra.mxu1 %v14166_v45  ;;  %v18068_v56 = vrot.slane %v16243_v30, 11  ;;  %v14169_v45 = vld [vmem:[#allocation12 + $0xd8] sm:$0xff]   ;;  %v7398_v30 = vrot.slane %v16536_v5, 7 }
 0x4f8   : > { %13070 = vmatprep.subr.bf16.mxu1 %v14167_v24 }
 0x4f9   : > { %v3900_v58 = vsel %vm16046_vm6, %v18068_v56, %v18067_v54  ;;  %v7401_v54 = vrot.slane %v16550_v27, 7  ;;  %v18072_v56 = vrot.slane %v16258_v59, 7  ;;  %v16575_v57 = vrot.slane %v7398_v30, 4 }
 0x4fa   : > { %v10969_v37 = vcombine.low %v3900_v58, %v3903_v12  ;;  %v18074_v12 = vrot.slane %v16261_v42, 11  ;;  %v18075_v59 = vrot.slane %v16285_v9, 7  ;;  %v16599_v42 = vld [vmem:[%s15767_s24 + $0x64] sm:$0xf]  ;;  %v18076_v9 = vrot.slane %v16272_v10, 7 }
 0x4fb   : > { %13071 = vmatpush3.bf16.msra.mxu1 %v14167_v24  ;;  %v18070_v24 = vrot.slane %v16255_v16, 7  ;;  %v3910_v58 = vsel %vm16046_vm6, %v16334_v34, %v18072_v56  ;;  %v7405_v16 = vrot.slane %v16555_v53, 7  ;;  %v16596_v56 = vld [vmem:[%s15767_s24 + $0x60] sm:$0x8]  ;;  %v14184_v53 = vld [vmem:[#allocation12 + $0x190] sm:$0xff]  }
 0x4fc   : > { %13072 = vmatprep.subr.bf16.mxu1 %v14168_v32  ;;  %v3917_v34 = vsel %vm16046_vm6, %v16338_v35, %v18075_v59  ;;  %v18077_v35 = vrot.slane %v16301_v18, 11  ;;  %v14173_v18 = vld [vmem:[#allocation12 + $0xf8] sm:$0xff]   ;;  %v16639_v59 = vld [vmem:[%s15767_s24 + $0x84] sm:$0xf] }
 0x4fd   : > { %v3907_v51 = vsel %vm16046_vm6, %v18071_v25, %v18070_v24  ;;  %v14171_v25 = vld [vmem:[#allocation12 + $0xe8] sm:$0xff]   ;;  %v16619_v10 = vrot.slane %v7405_v16, 4 }
 0x4fe   : > { %12673 = vmatmul.mubr.bf16.gmra.mrb[4].mxu1 %v10968_v23  ;;  %v3914_v23 = vsel %vm16046_vm6, %v18074_v12, %v18073_v47  ;;  %v10970_v24 = vcombine.low %v3907_v51, %v3910_v58  ;;  %v16602_v47 = vld [vmem:[%s15767_s24 + $0x68] sm:$0x7]  ;;  %v3921_v12 = vsel %vm16046_vm6, %v18077_v35, %v18076_v9  ;;  %v18078_v51 = vrot.slane %v16304_v1, 7  ;;  %v14172_v58 = vld [vmem:[#allocation12 + $0xf0] sm:$0xff]   ;;  %v16636_v35 = vld [vmem:[%s15767_s24 + $0x80] sm:$0x8] }
 0x4ff   : > { %12676 = vmatprep.mubr.bf16.mxu1 %v10969_v37  ;;  %13073 = vmatpush3.bf16.msra.mxu1 %v14168_v32  ;;  %v16590_v32 = vld [vmem:[%s15767_s24 + $0x40] sm:$0x8]  ;;  %v16593_v37 = vld [vmem:[%s15767_s24 + $0x48] sm:$0x7]  ;;  %v10971_v31 = vcombine.low %v3914_v23, %v3917_v34  ;;  %v7412_v1 = vrot.slane %v16599_v42, 7 }
 0x500   : > { %13074 = vmatprep.subr.bf16.mxu1 %v14169_v45  ;;  %v11397_v23 = vrot.slane %v16590_v32, 11  ;;  %v18110_v44 = vrot.slane %v16593_v37, 7  ;;  %v16828_v37 = vld [vmem:[%s15767_s24 + $0x484] sm:$0xf] }
 0x502   : > { %v7409_v5 = vsel %vm16046_vm6, %v16619_v10, %v18110_v44 }
 0x503   : > { %13075 = vmatpush3.bf16.msra.mxu1 %v14169_v45  ;;  %v3924_v45 = vsel %vm16046_vm6, %v16344_v60, %v18078_v51  ;;  %v18079_v60 = vrot.slane %v16327_v20, 7  ;;  %v16642_v20 = vld [vmem:[%s15767_s24 + $0x88] sm:$0x7] }
 0x504   : > { %13076 = vmatprep.subr.bf16.mxu1 %v14170_v11  ;;  %v10972_v51 = vcombine.low %v3921_v12, %v3924_v45  ;;  %v18083_v12 = vrot.slane %v16364_v4, 11 }
 0x506   : > { %12677 = vmatmul.mubr.bf16.gmra.mrb[8].mxu1 %v10970_v24  ;;  %v18080_v24 = vrot.slane %v16319_v17, 11  ;;  %v14174_v17 = vld [vmem:[#allocation12] sm:$0xff]  }
 0x507   : > { %12680 = vmatprep.mubr.bf16.mxu1 %v10971_v31  ;;  %13077 = vmatpush3.bf16.msra.mxu1 %v14170_v11  ;;  %v18081_v11 = vrot.slane %v16360_v41, 7  ;;  %v16646_v41 = vrot.slane %v7412_v1, 4 }
 0x508   : > { %13078 = vmatprep.subr.bf16.mxu1 %v14171_v25  ;;  %v7488_v9 = vsel %vm16046_vm6, %v18080_v24, %v18079_v60  ;;  %v18084_v60 = vrot.slane %v16367_v63, 7 }
 0x509   : > { %v7491_v31 = vsel %vm16046_vm6, %v16402_v39, %v18081_v11  ;;  %v11399_v39 = vrot.slane %v16636_v35, 11  ;;  %v7422_v11 = vrot.slane %v16642_v20, 7  ;;  %v7938_v20 = vrot.slane %v16828_v37, 7  ;;  %v14188_v37 = vld [vmem:[#allocation12 + $0x1b0] sm:$0xff]  }
 0x50a   : > { %v11411_v34 = vcombine.low %v7488_v9, %v7491_v31  ;;  %v7498_v24 = vsel %vm16046_vm6, %v16412_v15, %v18084_v60  ;;  %v7419_v9 = vrot.slane %v16639_v59, 7  ;;  %v14175_v31 = vld [vmem:[#allocation12 + $0x8] sm:$0xff]   ;;  %v14176_v60 = vld [vmem:[#allocation12 + $0x10] sm:$0xff]  }
 0x50b   : > { %13079 = vmatpush3.bf16.msra.mxu1 %v14171_v25  ;;  %v18082_v25 = vrot.slane %v16330_v19, 7  ;;  %v18086_v19 = vrot.slane %v16387_v46, 11  ;;  %v18089_v46 = vrot.slane %v16394_v36, 11 }
 0x50c   : > { %13080 = vmatprep.subr.bf16.mxu1 %v14172_v58 }
 0x50d   : > { %v7495_v45 = vsel %vm16046_vm6, %v18083_v12, %v18082_v25  ;;  %v16674_v25 = vld [vmem:[%s15767_s24 + $0xa0] sm:$0x8]  ;;  %v16677_v12 = vld [vmem:[%s15767_s24 + $0xa4] sm:$0xf] }
 0x50e   : > { %12681 = vmatmul.mubr.bf16.gmra.mrb[12].mxu1 %v10972_v51  ;;  %v11412_v15 = vcombine.low %v7495_v45, %v7498_v24  ;;  %v11400_v36 = vrot.slane %v16674_v25, 11  ;;  %v7426_v24 = vrot.slane %v16677_v12, 7 }
 0x50f   : > { %13081 = vmatpush3.bf16.msra.mxu1 %v14172_v58  ;;  %13084 = vmatprep.mubr.bf16.mxu1 %v11411_v34  ;;  %v18085_v58 = vrot.slane %v16348_v52, 7  ;;  %v18087_v34 = vrot.slane %v16390_v29, 7  ;;  %v18088_v52 = vrot.slane %v16351_v14, 7  ;;  %v16695_v14 = vrot.slane %v7419_v9, 4 }
 0x510   : > { %13082 = vmatprep.subr.bf16.mxu1 %v14173_v18 }
 0x511   : > { %v7502_v4 = vsel %vm16046_vm6, %v18086_v19, %v18085_v58  ;;  %v7505_v63 = vsel %vm16046_vm6, %v16423_v43, %v18087_v34  ;;  %v7509_v29 = vsel %vm16046_vm6, %v18089_v46, %v18088_v52  ;;  %v16686_v58 = vld [vmem:[%s15767_s24 + $0xa8] sm:$0x7]  ;;  %v18090_v43 = vrot.slane %v16397_v49, 7  ;;  %v14177_v46 = vld [vmem:[#allocation12 + $0x18] sm:$0xff]  }
 0x512   : > { %v11413_v51 = vcombine.low %v7502_v4, %v7505_v63  ;;  %v14217_v19 = vld [vmem:[#allocation15 + $0x40] sm:$0xff]   ;;  %v18093_v4 = vld [vmem:[#allocation34_spill] sm:$0xff]  ;;  %v18095_v63 = vld [vmem:[#allocation35_spill] sm:$0xff]  ;;  %v7423_v42 = vsel %vm16046_vm6, %v16695_v14, %v7422_v11 }
 0x513   : > { %13083 = vmatpush3.bf16.msra.mxu1 %v14173_v18  ;;  %v18091_v18 = vld [vmem:[#allocation33_spill] sm:$0xff]  ;;  %v18094_v49 = vrot.slane %v18093_v4, 11  ;;  %12684 = vmatprep.subr.bf16.mxu0 %v14217_v19  ;;  %v16715_v4 = vld [vmem:[%s15767_s24 + $0xc4] sm:$0xf] }
 0x514   : > { %13100 = vmatprep.subr.bf16.mxu1 %v14174_v17  ;;  %v7512_v45 = vsel %vm16046_vm6, %v18091_v18, %v18090_v43  ;;  %12685 = vmatpush3.bf16.msra.mxu0 %v14217_v19  ;;  %v7429_v18 = vrot.slane %v16686_v58, 7 }
 0x515   : > { %v11414_v52 = vcombine.low %v7509_v29, %v7512_v45  ;;  %v18097_v29 = vrot.slane %v16416_v22, 7  ;;  %v18098_v45 = vld [vmem:[#allocation36_spill] sm:$0xff]  ;;  %v18102_v22 = vrot.slane %v16419_v26, 7 }
 0x516   : > { %13085 = vmatmul.mubr.bf16.vlgmr.msra.gmra.mrb[16].mxu1 %v11412_v15  ;;  %v18096_v15 = vrot.slane %v18095_v63, 7  ;;  %v18099_v19 = vrot.slane %v18098_v45, 11  ;;  %v18100_v63 = vrot.slane %v16454_v61, 7  ;;  %v18104_v61 = vrot.slane %v16462_v21, 7  ;;  %v16752_v26 = vld [vmem:[%s15767_s24 + $0xe0] sm:$0x8] }
 0x517   : > { %13101 = vmatpush3.bf16.msra.mxu1 %v14174_v17  ;;  %13088 = vmatprep.mubr.bf16.mxu1 %v11413_v51  ;;  %v18092_v17 = vrot.slane %v16408_v62, 7  ;;  %v16712_v62 = vld [vmem:[%s15767_s24 + $0xc0] sm:$0x8]  ;;  %v18106_v21 = vrot.slane %v16465_v40, 11 }
 0x518   : > { %13102 = vmatprep.subr.bf16.mxu1 %v14175_v31  ;;  %v7519_v51 = vsel %vm16046_vm6, %v16477_v13, %v18096_v15  ;;  %v16719_v13 = vrot.slane %v7426_v24, 4  ;;  %v18101_v15 = vld [vmem:[#allocation37_spill] sm:$0xff]  ;;  %v7533_v45 = vsel %vm16046_vm6, %v16488_v0, %v18104_v61  ;;  %v18105_v0 = vrot.slane %v16470_v50, 7 }
 0x519   : > { %v7516_v34 = vsel %vm16046_vm6, %v18094_v49, %v18092_v17  ;;  %v14219_v17 = vld [vmem:[#allocation15 + $0x48] sm:$0xff]   ;;  %v14178_v49 = vld [vmem:[#allocation12 + $0x20] sm:$0xff]  }
 0x51a   : > { %v11415_v43 = vcombine.low %v7516_v34, %v7519_v51  ;;  %12686 = vmatprep.subr.bf16.mxu0 %v14219_v17  ;;  %v7523_v34 = vsel %vm16046_vm6, %v18099_v19, %v18097_v29  ;;  %v7526_v51 = vsel %vm16046_vm6, %v18101_v15, %v18100_v63  ;;  %v16749_v19 = vld [vmem:[%s15767_s24 + $0xc8] sm:$0x7]  ;;  %v7430_v25 = vsel %vm16046_vm6, %v16719_v13, %v7429_v18  ;;  %v16890_v13 = vld [vmem:[%s15767_s24 + $0x4c4] sm:$0xf] }
 0x51b   : > { %13103 = vmatpush3.bf16.msra.mxu1 %v14175_v31  ;;  %12687 = vmatpush3.bf16.msra.mxu0 %v14219_v17  ;;  %v16735_v17 = vld [vmem:[%s15767_s24 + $0xe4] sm:$0xf]  ;;  %v11416_v63 = vcombine.low %v7523_v34, %v7526_v51  ;;  %v14179_v15 = vld [vmem:[#allocation12 + $0x28] sm:$0xff]   ;;  %v7537_v34 = vsel %vm16046_vm6, %v18106_v21, %v18105_v0  ;;  %v14180_v51 = vld [vmem:[#allocation12 + $0x30] sm:$0xff]  }
 0x51c   : > { %13104 = vmatprep.subr.bf16.mxu1 %v14176_v60  ;;  %v14181_v0 = vld [vmem:[#allocation12 + $0x38] sm:$0xff]  }
 0x51e   : > { %13089 = vmatmul.mubr.bf16.gmra.mrb[20].mxu1 %v11414_v52  ;;  %v7433_v52 = vrot.slane %v16715_v4, 7 }
 0x51f   : > { %13105 = vmatpush3.bf16.msra.mxu1 %v14176_v60  ;;  %13092 = vmatprep.mubr.bf16.mxu1 %v11415_v43  ;;  %v14223_v60 = vld [vmem:[#allocation15 + $0x50] sm:$0xff]   ;;  %v18103_v43 = vrot.slane %v16459_v2, 11  ;;  %v16755_v2 = vld [vmem:[%s15767_s24 + $0xe8] sm:$0x7] }
 0x520   : > { %13106 = vmatprep.subr.bf16.mxu1 %v14177_v46  ;;  %12688 = vmatprep.subr.bf16.mxu0 %v14223_v60  ;;  %v16773_v40 = vrot.slane %v7433_v52, 4 }
 0x521   : > { %v7530_v29 = vsel %vm16046_vm6, %v18103_v43, %v18102_v22  ;;  %12689 = vmatpush3.bf16.msra.mxu0 %v14223_v60  ;;  %v7440_v22 = vrot.slane %v16735_v17, 7  ;;  %v14225_v43 = vld [vmem:[#allocation15 + $0x58] sm:$0xff]   ;;  %v11402_v60 = vrot.slane %v16752_v26, 11 }
 0x522   : > { %v11417_v31 = vcombine.low %v7530_v29, %v7533_v45  ;;  %12690 = vmatprep.subr.bf16.mxu0 %v14225_v43  ;;  %v18107_v29 = vrot.slane %v16473_v48, 7  ;;  %v7443_v45 = vrot.slane %v16755_v2, 7  ;;  %v18108_v48 = vrot.slane %v16495_v55, 11 }
 0x523   : > { %13107 = vmatpush3.bf16.msra.mxu1 %v14177_v46  ;;  %v7436_v46 = vrot.slane %v16749_v19, 7  ;;  %v16777_v50 = vrot.slane %v7440_v22, 4  ;;  %v7399_v55 = vsel %vm16046_vm6, %v11396_v38, %v7398_v30  ;;  %v14183_v38 = vld [vmem:[#allocation12 + $0x188] sm:$0xff]  }
 0x524   : > { %13108 = vmatprep.subr.bf16.mxu1 %v14178_v49  ;;  %v7540_v61 = vsel %vm16046_vm6, %v16516_v33, %v18107_v29  ;;  %v18109_v33 = vrot.slane %v16512_v8, 7  ;;  %v7402_v8 = vsel %vm16046_vm6, %v16575_v57, %v7401_v54  ;;  %v18111_v54 = vrot.slane %v16596_v56, 11 }
 0x525   : > { %12691 = vmatpush3.bf16.msra.mxu0 %v14225_v43  ;;  %v11418_v43 = vcombine.low %v7537_v34, %v7540_v61  ;;  %v11428_v27 = vcombine.low %v7399_v55, %v7402_v8  ;;  %v7420_v56 = vsel %vm16046_vm6, %v11399_v39, %v7419_v9  ;;  %v7427_v29 = vsel %vm16046_vm6, %v11400_v36, %v7426_v24  ;;  %v14186_v61 = vld [vmem:[#allocation12 + $0x1a0] sm:$0xff]  }
 0x526   : > { %13093 = vmatmul.mubr.bf16.gmra.mrb[24].mxu1 %v11416_v63  ;;  %v14229_v63 = vld [vmem:[#allocation15 + $0x60] sm:$0xff]   ;;  %v7413_v57 = vsel %vm16046_vm6, %v18111_v54, %v7412_v1  ;;  %v14185_v1 = vld [vmem:[#allocation12 + $0x198] sm:$0xff]   ;;  %v11431_v59 = vcombine.low %v7420_v56, %v7423_v42  ;;  %v7437_v58 = vsel %vm16046_vm6, %v16773_v40, %v7436_v46 }
 0x527   : > { %13109 = vmatpush3.bf16.msra.mxu1 %v14178_v49  ;;  %13096 = vmatprep.mubr.bf16.mxu1 %v11417_v31  ;;  %v7392_v49 = vsel %vm16046_vm6, %v18108_v48, %v7391_v3  ;;  %v7395_v31 = vsel %vm16046_vm6, %v16559_v7, %v18109_v33  ;;  %v7406_v3 = vsel %vm16046_vm6, %v11397_v23, %v7405_v16  ;;  %v16814_v7 = vld [vmem:[%s15767_s24 + $0x480] sm:$0x8]  ;;  %v18112_v16 = vrot.slane %v16602_v47, 7  ;;  %v16833_v23 = vld [vmem:[%s18113_s10] ss:$0 sm:$0xff]  ;;  %v12382_v39 = vpop.f32.mrb[0].mxu0 }
 0x528   : > { %13110 = vmatprep.subr.bf16.mxu1 %v14179_v15  ;;  %12692 = vmatprep.subr.bf16.mxu0 %v14229_v63  ;;  %v11427_v21 = vcombine.low %v7392_v49, %v7395_v31  ;;  %v11429_v30 = vcombine.low %v7406_v3, %v7409_v5  ;;  %v16847_v47 = vld [vmem:[%s15767_s24 + $0x488] sm:$0x7]  ;;  %v11443_v35 = vrot.slane %v16814_v7, 11  ;;  %v1654_v9 = vadd.f32 %v12382_v39, %v16833_v23  ;;  %v1645_v11 = vpop.f32.mrb[1].mxu0  ;;  %v16893_v55 = vld [vmem:[%s15767_s24 + $0x4e4] sm:$0xf] }
 0x529   : > { %12693 = vmatpush3.bf16.msra.mxu0 %v14229_v63  ;;  %v7416_v32 = vsel %vm16046_vm6, %v16646_v41, %v18112_v16  ;;  %v16850_v41 = vld [vmem:[%s15767_s24 + $0x4a0] sm:$0x8]  ;;  %v7941_v14 = vrot.slane %v16847_v47, 7  ;;  %v1646_v34 = vadd.f32 %v16833_v23, %v1645_v11  ;;  %v16867_v63 = vld [vmem:[%s15767_s24 + $0x4a8] sm:$0x7]  ;;  %v18114_v31 = vrot.slane %v16712_v62, 11 }
 0x52a   : > { %v11430_v10 = vcombine.low %v7413_v57, %v7416_v32  ;;  %v1710_v48 = vmax.f32 %v1654_v9, 0.0  ;;  %v11444_v12 = vrot.slane %v16850_v41, 11  ;;  %v11432_v62 = vcombine.low %v7427_v29, %v7430_v25  ;;  %v16899_v46 = vld [vmem:[%s15767_s24 + $0x4c0] sm:$0x8]  ;;  %v16902_v40 = vld [vmem:[%s15767_s24 + $0x4c8] sm:$0x7] }
 0x52b   : > { %13111 = vmatpush3.bf16.msra.mxu1 %v14179_v15  ;;  %v16854_v15 = vld [vmem:[%s15767_s24 + $0x4a4] sm:$0xf]  ;;  %v1708_v36 = vmax.f32 %v1646_v34, 0.0  ;;  %v7948_v8 = vrot.slane %v16867_v63, 7  ;;  %v7952_v7 = vrot.slane %v16890_v13, 7  ;;  %v7441_v16 = vsel %vm16046_vm6, %v11402_v60, %v7440_v22  ;;  %v14189_v11 = vld [vmem:[#allocation12 + $0x1b8] sm:$0xff]  }
 0x52c   : > { %13112 = vmatprep.subr.bf16.mxu1 %v14180_v51  ;;  %v7945_v18 = vrot.slane %v16854_v15, 7  ;;  %v7444_v32 = vsel %vm16046_vm6, %v16777_v50, %v7443_v45  ;;  %v7939_v17 = vsel %vm16046_vm6, %v11443_v35, %v7938_v20  ;;  %v7959_v26 = vrot.slane %v16893_v55, 7  ;;  %v16944_v34 = vld [vmem:[%s15767_s24 + $0x500] sm:$0x8]  ;;  %v16990_v63 = vld [vmem:[%s15767_s24 + $0x528] sm:$0x7] }
 0x52d   : > { %v11445_v50 = vrot.slane %v16899_v46, 11  ;;  %v7955_v45 = vrot.slane %v16902_v40, 7  ;;  %v11434_v9 = vcombine.low %v7441_v16, %v7444_v32  ;;  %v16961_v25 = vld [vmem:[%s15767_s24 + $0x520] sm:$0x8]  ;;  %v11447_v15 = vrot.slane %v16944_v34, 11  ;;  %v14191_v16 = vld [vmem:[#allocation12 + $0x48] sm:$0xff]  }
 0x52e   : > { %13097 = vmatmul.mubr.bf16.gmra.mrb[28].mxu1 %v11418_v43  ;;  %v7434_v43 = vsel %vm16046_vm6, %v18114_v31, %v7433_v52  ;;  %v16908_v5 = vrot.slane %v7945_v18, 4  ;;  %v14235_v31 = vld [vmem:[#allocation15 + $0x70] sm:$0xff]   ;;  %s10429_s10 = sshll.u32 %s15285_s28, 4  ;;  %s17885_s10 = int_to_ptr.vmem [resolvable:$true] %s10429_s10 }
 0x52f   : > { %13113 = vmatpush3.bf16.msra.mxu1 %v14180_v51  ;;  %13116 = vmatprep.mubr.bf16.mxu1 %v11427_v21  ;;  %v12383_v51 = vpop.f32.mrb[2].mxu0  ;;  %v7940_v21 = vrot.slane %v7938_v20, 4  ;;  %v11433_v19 = vcombine.low %v7434_v43, %v7437_v58  ;;  %v7953_v40 = vsel %vm16046_vm6, %v11445_v50, %v7952_v7  ;;  %v7976_v50 = vrot.slane %v16990_v63, 7 }
 0x530   : > { %13114 = vmatprep.subr.bf16.mxu1 %v14181_v0  ;;  %v1657_v49 = vadd.f32 %v12383_v51, %v16833_v23  ;;  %v1648_v33 = vpop.f32.mrb[3].mxu0  ;;  %v7949_v41 = vsel %vm16046_vm6, %v16908_v5, %v7948_v8  ;;  %v14237_v8 = vld [vmem:[#allocation15 + $0x78] sm:$0xff]  }
 0x531   : > { %v1649_v24 = vadd.f32 %v16833_v23, %v1648_v33  ;;  %v12386_v44 = vpop.f32.mrb[4].mxu0  ;;  %v7942_v60 = vsel %vm16046_vm6, %v7940_v21, %v7941_v14  ;;  %v16947_v14 = vld [vmem:[%s15767_s24 + $0x504] sm:$0xf]  ;;  %v16958_v33 = vld [vmem:[%s15767_s24 + $0x508] sm:$0x7]  ;;  %v7946_v21 = vsel %vm16046_vm6, %v11444_v12, %v7945_v18 }
 0x532   : > { %v11451_v29 = vcombine.low %v7939_v17, %v7942_v60  ;;  %v7966_v43 = vrot.slane %v16947_v14, 7  ;;  %v11452_v13 = vcombine.low %v7946_v21, %v7949_v41  ;;  %v7359_v17 = vld [vmem:[%s15767_s24 + $0x540] sm:$0x8] }
 0x533   : > { %13115 = vmatpush3.bf16.msra.mxu1 %v14181_v0  ;;  %v1711_v0 = vmax.f32 %v1657_v49, 0.0  ;;  %v1709_v4 = vmax.f32 %v1649_v24, 0.0  ;;  %v17002_v60 = vld [vmem:[#allocation15] sm:$0xff]  }
 0x534   : > { %13132 = vmatprep.subr.bf16.mxu1 %v14182_v6  ;;  %v7968_v5 = vrot.slane %v7966_v43, 4 }
 0x535   : > { %v16895_v52 = vpack.c.bf16 %v1711_v0, %v1710_v48  ;;  %v16904_v3 = vpack.c.bf16 %v1709_v4, %v1708_v36  ;;  %v14190_v4 = vld [vmem:[#allocation12 + $0x40] sm:$0xff]  }
 0x536   : > { %13117 = vmatmul.mubr.bf16.vlgmr.msra.gmra.mrb[16].mxu1 %v11428_v27  ;;  %v16911_v27 = vld [vmem:[%s15767_s24 + $0x4e0] sm:$0x8] }
 0x537   : > { %13133 = vmatpush3.bf16.msra.mxu1 %v14182_v6  ;;  %13120 = vmatprep.mubr.bf16.mxu1 %v11429_v30  ;;  %v14187_v6 = vld [vmem:[#allocation12 + $0x1a8] sm:$0xff]   ;;  %v1670_v30 = vadd.f32 %v12386_v44, %v16833_v23  ;;  %v11446_v35 = vrot.slane %v16911_v27, 11 }
 0x538   : > { %13134 = vmatprep.subr.bf16.mxu1 %v14183_v38 }
 0x539   : > { %v1714_v56 = vmax.f32 %v1670_v30, 0.0 }
 0x53b   : > { %13135 = vmatpush3.bf16.msra.mxu1 %v14183_v38  ;;  %v16914_v38 = vld [vmem:[%s15767_s24 + $0x4e8] sm:$0x7] }
 0x53c   : > { %13136 = vmatprep.subr.bf16.mxu1 %v14184_v53  ;;  %v7962_v39 = vrot.slane %v16914_v38, 7 }
 0x53e   : > { %13121 = vmatmul.mubr.bf16.gmra.mrb[20].mxu1 %v11430_v10 }
 0x53f   : > { %13137 = vmatpush3.bf16.msra.mxu1 %v14184_v53  ;;  %13124 = vmatprep.mubr.bf16.mxu1 %v11431_v59  ;;  %v1661_v53 = vpop.f32.mrb[5].mxu0  ;;  %v7954_v59 = vrot.slane %v7952_v7, 4 }
 0x540   : > { %13138 = vmatprep.subr.bf16.mxu1 %v14185_v1  ;;  %v1662_v54 = vadd.f32 %v16833_v23, %v1661_v53  ;;  %v12387_v57 = vpop.f32.mrb[6].mxu0  ;;  %v7969_v53 = vrot.slane %v16958_v33, 7  ;;  %v11449_v33 = vrot.slane %v7359_v17, 11  ;;  %v14198_v17 = vld [vmem:[%s15767_s24 + $0xc] sm:$0xff]  }
 0x541   : > { %v1673_v42 = vadd.f32 %v12387_v57, %v16833_v23  ;;  %v1664_v47 = vpop.f32.mrb[7].mxu0  ;;  %v7956_v44 = vsel %vm16046_vm6, %v7954_v59, %v7955_v45  ;;  %v14192_v59 = vld [vmem:[#allocation12 + $0x50] sm:$0xff]  }
 0x542   : > { %v1712_v22 = vmax.f32 %v1662_v54, 0.0  ;;  %v1665_v2 = vadd.f32 %v16833_v23, %v1664_v47  ;;  %v12390_v49 = vpop.f32.mrb[8].mxu0  ;;  %v11448_v54 = vrot.slane %v16961_v25, 11  ;;  %v11453_v7 = vcombine.low %v7953_v40, %v7956_v44 }
 0x543   : > { %13139 = vmatpush3.bf16.msra.mxu1 %v14185_v1  ;;  %v1715_v10 = vmax.f32 %v1673_v42, 0.0  ;;  %v14231_v1 = vld [vmem:[#allocation15 + $0x68] sm:$0xff]   ;;  %v1686_v36 = vadd.f32 %v12390_v49, %v16833_v23  ;;  %v1677_v24 = vpop.f32.mrb[9].mxu0  ;;  %v7970_v14 = vsel %vm16046_vm6, %v7968_v5, %v7969_v53 }
 0x544   : > { %13140 = vmatprep.subr.bf16.mxu1 %v14186_v61  ;;  %v1713_v20 = vmax.f32 %v1665_v2, 0.0  ;;  %12694 = vmatprep.subr.bf16.mxu0 %v14231_v1  ;;  %v1678_v58 = vadd.f32 %v16833_v23, %v1677_v24  ;;  %v12391_v0 = vpop.f32.mrb[10].mxu0 }
 0x545   : > { %v16949_v51 = vpack.c.bf16 %v1715_v10, %v1714_v56  ;;  %12695 = vmatpush3.bf16.msra.mxu0 %v14231_v1  ;;  %v1680_v46 = vpop.f32.mrb[11].mxu0  ;;  %v7360_v56 = vld [vmem:[%s15767_s24 + $0x544] sm:$0xf]  ;;  %v7960_v1 = vsel %vm16046_vm6, %v11446_v35, %v7959_v26  ;;  %v7967_v35 = vsel %vm16046_vm6, %v11447_v15, %v7966_v43 }
 0x546   : > { %13125 = vmatmul.mubr.bf16.gmra.mrb[24].mxu1 %v11432_v62  ;;  %v16955_v48 = vpack.c.bf16 %v1713_v20, %v1712_v22  ;;  %v16973_v62 = vld [vmem:[%s15767_s24 + $0x524] sm:$0xf]  ;;  %12696 = vmatprep.subr.bf16.mxu0 %v14235_v31  ;;  %v1716_v12 = vmax.f32 %v1678_v58, 0.0  ;;  %v1681_v18 = vadd.f32 %v16833_v23, %v1680_v46  ;;  %v12394_v47 = vpop.f32.mrb[12].mxu0  ;;  %v7980_v49 = vrot.slane %v7360_v56, 7  ;;  %v14196_v56 = vld [vmem:[#allocation12 + $0x70] sm:$0xff]  }
 0x547   : > { %13141 = vmatpush3.bf16.msra.mxu1 %v14186_v61  ;;  %13128 = vmatprep.mubr.bf16.mxu1 %v11433_v19  ;;  %v16953_v61 = vrot.slane %v7959_v26, 4  ;;  %v1689_v19 = vadd.f32 %v12391_v0, %v16833_v23  ;;  %v1702_v22 = vadd.f32 %v12394_v47, %v16833_v23  ;;  %v1693_v2 = vpop.f32.mrb[13].mxu0 }
 0x548   : > { %13142 = vmatprep.subr.bf16.mxu1 %v14187_v6  ;;  %v1717_v57 = vmax.f32 %v1681_v18, 0.0  ;;  %v1694_v45 = vadd.f32 %v16833_v23, %v1693_v2  ;;  %v12395_v10 = vpop.f32.mrb[14].mxu0  ;;  %v7982_v21 = vrot.slane %v7980_v49, 4  ;;  %v14194_v18 = vld [vmem:[#allocation12 + $0x60] sm:$0xff]   ;;  %v7981_v40 = vsel %vm16046_vm6, %v11449_v33, %v7980_v49  ;;  %v14197_v2 = vld [vmem:[#allocation12 + $0x78] sm:$0xff]   ;;  %v14207_v49 = vld [vmem:[%s15767_s24 + $0xac] sm:$0xff]  }
 0x549   : > { %v1719_v30 = vmax.f32 %v1689_v19, 0.0  ;;  %12697 = vmatpush3.bf16.msra.mxu0 %v14235_v31  ;;  %v1722_v20 = vmax.f32 %v1702_v22, 0.0  ;;  %v7963_v55 = vsel %vm16046_vm6, %v16953_v61, %v7962_v39  ;;  %v14193_v61 = vld [vmem:[#allocation12 + $0x58] sm:$0xff]   ;;  %v14209_v33 = vld [vmem:[#allocation12 + $0x128] sm:$0xff]  }
 0x54a   : > { %12698 = vmatprep.subr.bf16.mxu0 %v14237_v8  ;;  %v16998_v42 = vpack.c.bf16 %v1717_v57, %v1716_v12  ;;  %v1720_v34 = vmax.f32 %v1694_v45, 0.0  ;;  %v11454_v39 = vcombine.low %v7960_v1, %v7963_v55  ;;  %v14199_v1 = vld [vmem:[%s15767_s24 + $0x2c] sm:$0xff]  }
 0x54b   : > { %13143 = vmatpush3.bf16.msra.mxu1 %v14187_v6  ;;  %v1718_v6 = vmax.f32 %v1686_v36, 0.0  ;;  %v7363_v36 = vld [vmem:[%s15767_s24 + $0x564] sm:$0xf] }
 0x54c   : > { %13144 = vmatprep.subr.bf16.mxu1 %v14188_v37  ;;  %v7987_v46 = vrot.slane %v7363_v36, 7  ;;  %v14212_v36 = vld [vmem:[#allocation12 + $0x130] sm:$0xff]  }
 0x54d   : > { %v16994_v32 = vpack.c.bf16 %v1719_v30, %v1718_v6  ;;  %12699 = vmatpush3.bf16.msra.mxu0 %v14237_v8 }
 0x54e   : > { %13129 = vmatmul.mubr.bf16.gmra.mrb[28].mxu1 %v11434_v9  ;;  %v1705_v9 = vadd.f32 %v12395_v10, %v16833_v23  ;;  %12716 = vmatprep.subr.bf16.mxu0 %v17002_v60  ;;  %v7989_v25 = vrot.slane %v7987_v46, 4 }
 0x54f   : > { %13145 = vmatpush3.bf16.msra.mxu1 %v14188_v37  ;;  %13148 = vmatprep.mubr.bf16.mxu1 %v11451_v29  ;;  %v7973_v37 = vrot.slane %v16973_v62, 7  ;;  %v7361_v29 = vld [vmem:[%s15767_s24 + $0x548] sm:$0x7] }
 0x550   : > { %13146 = vmatprep.subr.bf16.mxu1 %v14189_v11  ;;  %v1723_v38 = vmax.f32 %v1705_v9, 0.0  ;;  %v7983_v58 = vrot.slane %v7361_v29, 7  ;;  %v7364_v62 = vld [vmem:[%s15767_s24 + $0x568] sm:$0x7] }
 0x551   : > { %v7975_v27 = vrot.slane %v7973_v37, 4  ;;  %v7974_v15 = vsel %vm16046_vm6, %v11448_v54, %v7973_v37  ;;  %v7990_v30 = vrot.slane %v7364_v62, 7  ;;  %v14195_v54 = vld [vmem:[#allocation12 + $0x68] sm:$0xff]   ;;  %v14208_v29 = vld [vmem:[#allocation12 + $0x120] sm:$0xff]   ;;  %v14222_v62 = vld [vmem:[#allocation12 + $0x1d0] sm:$0xff]  }
 0x552   : > { %v17026_v31 = vpack.c.bf16 %v1723_v38, %v1722_v20  ;;  %v7984_v44 = vsel %vm16046_vm6, %v7982_v21, %v7983_v58  ;;  %v14201_v9 = vld [vmem:[#allocation12 + $0x108] sm:$0xff]  }
 0x553   : > { %13147 = vmatpush3.bf16.msra.mxu1 %v14189_v11  ;;  %v1696_v11 = vpop.f32.mrb[15].mxu0  ;;  %v7977_v12 = vsel %vm16046_vm6, %v7975_v27, %v7976_v50  ;;  %v11457_v5 = vcombine.low %v7981_v40, %v7984_v44  ;;  %v7991_v37 = vsel %vm16046_vm6, %v7989_v25, %v7990_v30  ;;  %v14210_v38 = vld [vmem:[%s15767_s24 + $0xcc] sm:$0xff]   ;;  %v14236_v25 = vld [vmem:[#allocation12 + $0x1f8] sm:$0xff]  }
 0x554   : > { %13164 = vmatprep.subr.bf16.mxu1 %v14190_v4  ;;  %v1697_v26 = vadd.f32 %v16833_v23, %v1696_v11  ;;  %v11455_v23 = vcombine.low %v7967_v35, %v7970_v14  ;;  %v17030_v43 = vpop.f32.mrb[16].mxu0  ;;  %v11456_v8 = vcombine.low %v7974_v15, %v7977_v12  ;;  %v14206_v35 = vld [vmem:[%s15767_s24 + $0x8c] sm:$0xff]   ;;  %v14205_v14 = vld [vmem:[#allocation12 + $0x118] sm:$0xff]  }
 0x555   : > { %v17034_v6 = vpop.f32.mrb[17].mxu0  ;;  %v14215_v58 = vld [vmem:[%s15767_s24 + $0x26c] sm:$0xff]   ;;  %v14224_v12 = vld [vmem:[#allocation12 + $0x1d8] sm:$0xff]  }
 0x556   : > { %13149 = vmatmul.mubr.bf16.vlgmr.msra.gmra.mrb[16].mxu1 %v11452_v13  ;;  %v1721_v24 = vmax.f32 %v1697_v26, 0.0  ;;  %v17036_v19 = vpop.f32.mrb[18].mxu0  ;;  %v14203_v26 = vld [vmem:[%s15767_s24 + $0x6c] sm:$0xff]  }
 0x557   : > { %13165 = vmatpush3.bf16.msra.mxu1 %v14190_v4  ;;  %13152 = vmatprep.mubr.bf16.mxu1 %v11453_v7  ;;  %v7362_v4 = vld [vmem:[%s15767_s24 + $0x560] sm:$0x8]  ;;  %v17038_v41 = vpop.f32.mrb[19].mxu0  ;;  %v14220_v21 = vld [vmem:[%s15767_s24 + $0x28c] sm:$0xff]  }
 0x558   : > { %13166 = vmatprep.subr.bf16.mxu1 %v14191_v16  ;;  %v17028_v0 = vpack.c.bf16 %v1721_v24, %v1720_v34  ;;  %v11450_v63 = vrot.slane %v7362_v4, 11  ;;  %v17050_v53 = vpop.f32.mrb[20].mxu0  ;;  %v14204_v34 = vld [vmem:[#allocation12 + $0x110] sm:$0xff]   ;;  %v14218_v4 = vld [vmem:[#allocation12 + $0x1c8] sm:$0xff]  }
 0x559   : > { %v17052_v57 = vpop.f32.mrb[21].mxu0  ;;  %v14211_v24 = vld [vmem:[%s15767_s24 + $0xec] sm:$0xff]  }
 0x55a   : > { %v17054_v13 = vpop.f32.mrb[22].mxu0  ;;  %v7988_v7 = vsel %vm16046_vm6, %v11450_v63, %v7987_v46  ;;  %v14221_v46 = vld [vmem:[%s15767_s24 + $0x2ac] sm:$0xff]  }
 0x55b   : > { %13167 = vmatpush3.bf16.msra.mxu1 %v14191_v16  ;;  %v17056_v16 = vpop.f32.mrb[23].mxu0  ;;  %v11458_v47 = vcombine.low %v7988_v7, %v7991_v37  ;;  %v14226_v15 = vld [vmem:[%s15767_s24 + $0x2cc] sm:$0xff]  }
 0x55c   : > { %13168 = vmatprep.subr.bf16.mxu1 %v14192_v59  ;;  %v17063_v22 = vpop.f32.mrb[24].mxu0  ;;  %v14227_v40 = vld [vmem:[%s15767_s24 + $0x2ec] sm:$0xff]  }
 0x55d   : > { %v17065_v50 = vpop.f32.mrb[25].mxu0  ;;  %v14232_v44 = vld [vmem:[%s15767_s24 + $0x30c] sm:$0xff]  }
 0x55e   : > { %13153 = vmatmul.mubr.bf16.gmra.mrb[20].mxu1 %v11454_v39  ;;  %v17067_v45 = vpop.f32.mrb[26].mxu0  ;;  %v14214_v39 = vld [vmem:[%s15767_s24 + $0x24c] sm:$0xff]  }
 0x55f   : > { %13169 = vmatpush3.bf16.msra.mxu1 %v14192_v59  ;;  %13156 = vmatprep.mubr.bf16.mxu1 %v11455_v23  ;;  %v17069_v10 = vpop.f32.mrb[27].mxu0  ;;  %v14202_v59 = vld [vmem:[%s15767_s24 + $0x4c] sm:$0xff]   ;;  %v14216_v23 = vld [vmem:[#allocation12 + $0x1c0] sm:$0xff]  }
 0x560   : > { %13170 = vmatprep.subr.bf16.mxu1 %v14193_v61  ;;  %v17073_v20 = vpop.f32.mrb[28].mxu0  ;;  %v14230_v63 = vld [vmem:[#allocation12 + $0x1e8] sm:$0xff]   ;;  %v14234_v30 = vld [vmem:[#allocation12 + $0x1f0] sm:$0xff]  }
 0x561   : > { %v17075_v11 = vpop.f32.mrb[29].mxu0  ;;  %v14239_v7 = vld [vmem:[%s15767_s24 + $0x4ac] sm:$0xff]  }
 0x562   : > { %v17077_v55 = vpop.f32.mrb[30].mxu0  ;;  %v14244_v37 = vld [vmem:[%s15767_s24 + $0x4cc] sm:$0xff]  }
 0x563   : > { %13171 = vmatpush3.bf16.msra.mxu1 %v14193_v61  ;;  %v17079_v27 = vpop.f32.mrb[31].mxu0  ;;  %v14213_v61 = vld [vmem:[#allocation12 + $0x138] sm:$0xff]  }
 0x564   : > { %13172 = vmatprep.subr.bf16.mxu1 %v14194_v18 }
 0x566   : > { %13157 = vmatmul.mubr.bf16.gmra.mrb[24].mxu1 %v11456_v8  ;;  %v14233_v8 = vld [vmem:[%s15767_s24 + $0x32c] sm:$0xff]  }
 0x567   : > { %13173 = vmatpush3.bf16.msra.mxu1 %v14194_v18  ;;  %13160 = vmatprep.mubr.bf16.mxu1 %v11457_v5  ;;  %v14228_v18 = vld [vmem:[#allocation12 + $0x1e0] sm:$0xff]   ;;  %v14238_v5 = vld [vmem:[%s15767_s24 + $0x48c] sm:$0xff]  }
 0x568   : > { %13174 = vmatprep.subr.bf16.mxu1 %v14195_v54 }
 0x56b   : > { %13175 = vmatpush3.bf16.msra.mxu1 %v14195_v54  ;;  %v14240_v54 = vld [vmem:[#allocation12 + $0x80] sm:$0xff]  }
 0x56c   : > { %13176 = vmatprep.subr.bf16.mxu1 %v14196_v56 }
 0x56e   : > { %13161 = vmatmul.mubr.bf16.gmra.mrb[28].mxu1 %v11458_v47  ;;  %v14246_v47 = vld [vmem:[#allocation12 + $0x90] sm:$0xff]  }
 0x56f   : > { %13177 = vmatpush3.bf16.msra.mxu1 %v14196_v56  ;;  %13180 = vmatprep.mubr.bf16.mxu1 %v14198_v17  ;;  %v14242_v56 = vld [vmem:[#allocation12 + $0x88] sm:$0xff]  }
 0x570   : > { %13178 = vmatprep.subr.bf16.mxu1 %v14197_v2  ;;  %v14245_v17 = vld [vmem:[%s15767_s24 + $0x4ec] sm:$0xff]  }
 0x573   : > { %13179 = vmatpush3.bf16.msra.mxu1 %v14197_v2  ;;  %v14250_v2 = vld [vmem:[%s15767_s24 + $0x50c] sm:$0xff]  }
 0x574   : > { %13196 = vmatprep.subr.bf16.mxu1 %v14200_v28 }
 0x576   : > { %13181 = vmatmul.mubr.bf16.vlgmr.msra.gmra.mrb[16].mxu1 %v14199_v1  ;;  %v8929_v1 = vld [vmem:[%s15767_s24 + $0x18] sm:$0xf] }
 0x577   : > { %13197 = vmatpush3.bf16.msra.mxu1 %v14200_v28  ;;  %13184 = vmatprep.mubr.bf16.mxu1 %v14202_v59  ;;  %v14248_v28 = vld [vmem:[#allocation12 + $0x98] sm:$0xff]   ;;  %v14252_v59 = vld [vmem:[#allocation12 + $0xa0] sm:$0xff]  }
 0x578   : > { %13198 = vmatprep.subr.bf16.mxu1 %v14201_v9 }
 0x57b   : > { %13199 = vmatpush3.bf16.msra.mxu1 %v14201_v9  ;;  %v9026_v9 = vrot.slane %v8929_v1, 5 }
 0x57c   : > { %13200 = vmatprep.subr.bf16.mxu1 %v14204_v34 }
 0x57e   : > { %13185 = vmatmul.mubr.bf16.gmra.mrb[20].mxu1 %v14203_v26  ;;  %v8930_v26 = vld [vmem:[%s15767_s24 + $0x1c] sm:$0x1] }
 0x57f   : > { %13201 = vmatpush3.bf16.msra.mxu1 %v14204_v34  ;;  %13188 = vmatprep.mubr.bf16.mxu1 %v14206_v35  ;;  %v8928_v34 = vld [vmem:[%s15767_s24 + $0x14] sm:$0xe]  ;;  %v8932_v35 = vld [vmem:[%s15767_s24 + $0x38] sm:$0xf] }
 0x580   : > { %13202 = vmatprep.subr.bf16.mxu1 %v14205_v14 }
 0x583   : > { %13203 = vmatpush3.bf16.msra.mxu1 %v14205_v14  ;;  %v14251_v14 = vld [vmem:[%s15767_s24 + $0x52c] sm:$0xff]  }
 0x584   : > { %13204 = vmatprep.subr.bf16.mxu1 %v14208_v29 }
 0x586   : > { %13189 = vmatmul.mubr.bf16.gmra.mrb[24].mxu1 %v14207_v49  ;;  %v14256_v49 = vld [vmem:[%s15767_s24 + $0x54c] sm:$0xff]  }
 0x587   : > { %13205 = vmatpush3.bf16.msra.mxu1 %v14208_v29  ;;  %13192 = vmatprep.mubr.bf16.mxu1 %v14210_v38  ;;  %v14254_v29 = vld [vmem:[#allocation12 + $0xa8] sm:$0xff]   ;;  %v11515_v38 = vrot.slane %v8928_v34, 9 }
 0x588   : > { %13206 = vmatprep.subr.bf16.mxu1 %v14209_v33 }
 0x58b   : > { %13207 = vmatpush3.bf16.msra.mxu1 %v14209_v33  ;;  %v9028_v33 = vrot.slane %v9026_v9, 4 }
 0x58c   : > { %13208 = vmatprep.subr.bf16.mxu1 %v14212_v36 }
 0x58e   : > { %13193 = vmatmul.mubr.bf16.gmra.mrb[28].mxu1 %v14211_v24  ;;  %v8931_v24 = vld [vmem:[%s15767_s24 + $0x34] sm:$0xe] }
 0x58f   : > { %13209 = vmatpush3.bf16.msra.mxu1 %v14212_v36  ;;  %13212 = vmatprep.mubr.bf16.mxu1 %v14214_v39  ;;  %v9029_v36 = vrot.slane %v8930_v26, 5  ;;  %v9033_v39 = vrot.slane %v8932_v35, 5  ;;  %v17134_v35 = vld [vmem:[%s15767_s24 + $0x98] sm:$0xf] }
 0x590   : > { %13210 = vmatprep.subr.bf16.mxu1 %v14213_v61 }
 0x593   : > { %13211 = vmatpush3.bf16.msra.mxu1 %v14213_v61  ;;  %v8933_v61 = vld [vmem:[%s15767_s24 + $0x3c] sm:$0x1] }
 0x594   : > { %13228 = vmatprep.subr.bf16.mxu1 %v14216_v23 }
 0x596   : > { %13213 = vmatmul.mubr.bf16.vlgmr.msra.gmra.mrb[16].mxu1 %v14215_v58  ;;  %v11516_v58 = vrot.slane %v8931_v24, 9  ;;  %v14262_v24 = vld [vmem:[#allocation12 + $0x140] sm:$0xff]  }
 0x597   : > { %13229 = vmatpush3.bf16.msra.mxu1 %v14216_v23  ;;  %13216 = vmatprep.mubr.bf16.mxu1 %v14220_v21  ;;  %v8935_v23 = vld [vmem:[%s15767_s24 + $0x58] sm:$0xf] }
 0x598   : > { %13230 = vmatprep.subr.bf16.mxu1 %v14218_v4  ;;  %v14258_v21 = vld [vmem:[#allocation12 + $0xb0] sm:$0xff]  }
 0x59b   : > { %13231 = vmatpush3.bf16.msra.mxu1 %v14218_v4 }
 0x59c   : > { %13232 = vmatprep.subr.bf16.mxu1 %v14222_v62 }
 0x59e   : > { %13217 = vmatmul.mubr.bf16.gmra.mrb[20].mxu1 %v14221_v46  ;;  %v9030_v46 = vsel %vm15774_vm3, %v9028_v33, %v9029_v36  ;;  %v8939_v33 = vld [vmem:[%s15767_s24 + $0x7c] sm:$0x1] }
 0x59f   : > { %13233 = vmatpush3.bf16.msra.mxu1 %v14222_v62  ;;  %13220 = vmatprep.mubr.bf16.mxu1 %v14226_v15  ;;  %v9027_v62 = vsel %vm15774_vm3, %v11515_v38, %v9026_v9  ;;  %v9035_v15 = vrot.slane %v9033_v39, 4 }
 0x5a0   : > { %13234 = vmatprep.subr.bf16.mxu1 %v14224_v12 }
 0x5a3   : > { %13235 = vmatpush3.bf16.msra.mxu1 %v14224_v12  ;;  %v9036_v12 = vrot.slane %v8933_v61, 5  ;;  %v8940_v61 = vld [vmem:[%s15767_s24 + $0x94] sm:$0xe] }
 0x5a4   : > { %13236 = vmatprep.subr.bf16.mxu1 %v14228_v18 }
 0x5a6   : > { %13221 = vmatmul.mubr.bf16.gmra.mrb[24].mxu1 %v14227_v40  ;;  %v17115_v40 = vld [vmem:[%s18116_s13] ss:$0 sm:$0xff] }
 0x5a7   : > { %13237 = vmatpush3.bf16.msra.mxu1 %v14228_v18  ;;  %13224 = vmatprep.mubr.bf16.mxu1 %v14232_v44  ;;  %v8934_v44 = vld [vmem:[%s15767_s24 + $0x54] sm:$0xe] }
 0x5a8   : > { %13238 = vmatprep.subr.bf16.mxu1 %v14230_v63  ;;  %v11517_v1 = vrot.slane %v8934_v44, 9 }
 0x5ab   : > { %13239 = vmatpush3.bf16.msra.mxu1 %v14230_v63  ;;  %v9040_v63 = vrot.slane %v8935_v23, 5  ;;  %v9054_v23 = vrot.slane %v17134_v35, 5  ;;  %v14247_v35 = vld [vmem:[#allocation15 + $0x10] sm:$0xff]  }
 0x5ac   : > { %13240 = vmatprep.subr.bf16.mxu1 %v14234_v30 }
 0x5ad   : > { %v9042_v34 = vrot.slane %v9040_v63, 4 }
 0x5ae   : > { %13225 = vmatmul.mubr.bf16.gmra.mrb[28].mxu1 %v14233_v8 }
 0x5af   : > { %13241 = vmatpush3.bf16.msra.mxu1 %v14234_v30  ;;  %13244 = vmatprep.mubr.bf16.mxu1 %v14238_v5  ;;  %v14257_v5 = vld [vmem:[%s15767_s24 + $0x56c] sm:$0xff]  }
 0x5b0   : > { %13242 = vmatprep.subr.bf16.mxu1 %v14236_v25 }
 0x5b3   : > { %13243 = vmatpush3.bf16.msra.mxu1 %v14236_v25  ;;  %v8936_v25 = vld [vmem:[%s15767_s24 + $0x5c] sm:$0x1] }
 0x5b4   : > { %13260 = vmatprep.subr.bf16.mxu1 %v14240_v54  ;;  %v9043_v26 = vrot.slane %v8936_v25, 5 }
 0x5b6   : > { %13245 = vmatmul.mubr.bf16.vlgmr.msra.gmra.mrb[16].mxu1 %v14239_v7 }
 0x5b7   : > { %13261 = vmatpush3.bf16.msra.mxu1 %v14240_v54  ;;  %13248 = vmatprep.mubr.bf16.mxu1 %v14244_v37  ;;  %v11523_v37 = vcombine.low %v9027_v62, %v9030_v46 }
 0x5b8   : > { %13262 = vmatprep.subr.bf16.mxu1 %v14242_v56 }
 0x5bb   : > { %13263 = vmatpush3.bf16.msra.mxu1 %v14242_v56  ;;  %v9034_v56 = vsel %vm15774_vm3, %v11516_v58, %v9033_v39  ;;  %v9041_v39 = vsel %vm15774_vm3, %v11517_v1, %v9040_v63 }
 0x5bc   : > { %13264 = vmatprep.subr.bf16.mxu1 %v14246_v47 }
 0x5be   : > { %13249 = vmatmul.mubr.bf16.gmra.mrb[20].mxu1 %v14245_v17 }
 0x5bf   : > { %13265 = vmatpush3.bf16.msra.mxu1 %v14246_v47  ;;  %13252 = vmatprep.mubr.bf16.mxu1 %v14250_v2  ;;  %v17125_v47 = vld [vmem:[%s15767_s24 + $0x78] sm:$0xf] }
 0x5c0   : > { %13266 = vmatprep.subr.bf16.mxu1 %v14248_v28 }
 0x5c3   : > { %13267 = vmatpush3.bf16.msra.mxu1 %v14248_v28  ;;  %v14260_v28 = vld [vmem:[#allocation12 + $0xb8] sm:$0xff]  }
 0x5c4   : > { %13268 = vmatprep.subr.bf16.mxu1 %v14252_v59 }
 0x5c6   : > { %13253 = vmatmul.mubr.bf16.gmra.mrb[24].mxu1 %v14251_v14 }
 0x5c7   : > { %13269 = vmatpush3.bf16.msra.mxu1 %v14252_v59  ;;  %13256 = vmatprep.mubr.bf16.mxu1 %v14256_v49 }
 0x5c8   : > { %13270 = vmatprep.subr.bf16.mxu1 %v14254_v29 }
 0x5c9   : > { %v12670_v18 = vpop.f32.mrb[0].mxu1 }
 0x5ca   : > { %v13420_v30 = vadd.f32 %v12670_v18, %v17030_v43  ;;  %v4048_v8 = vpop.f32.mrb[1].mxu1 }
 0x5cb   : > { %v13421_v54 = vadd.f32 %v4048_v8, %v17034_v6  ;;  %v12671_v7 = vpop.f32.mrb[2].mxu1  ;;  %13271 = vmatpush3.bf16.msra.mxu1 %v14254_v29  ;;  %v9037_v6 = vsel %vm15774_vm3, %v9035_v15, %v9036_v12  ;;  %v9047_v29 = vrot.slane %v17125_v47, 5  ;;  %v8942_v12 = vld [vmem:[%s15767_s24 + $0x9c] sm:$0x1] }
 0x5cc   : > { %v4136_v17 = vadd.f32 %v13420_v30, %v17115_v40  ;;  %v13422_v2 = vadd.f32 %v12671_v7, %v17036_v19  ;;  %v4051_v43 = vpop.f32.mrb[3].mxu1  ;;  %13272 = vmatprep.subr.bf16.mxu1 %v14258_v21  ;;  %v8937_v19 = vld [vmem:[%s15767_s24 + $0x74] sm:$0xe]  ;;  %v11524_v38 = vcombine.low %v9034_v56, %v9037_v6  ;;  %v11519_v7 = vrot.slane %v8940_v61, 9 }
 0x5cd   : > { %v4134_v59 = vadd.f32 %v13421_v54, %v17115_v40  ;;  %v13423_v9 = vadd.f32 %v4051_v43, %v17038_v41  ;;  %v11518_v15 = vrot.slane %v8937_v19, 9  ;;  %v9049_v8 = vrot.slane %v9047_v29, 4  ;;  %v8943_v19 = vld [vmem:[%s15767_s24 + $0xb4] sm:$0xe] }
 0x5ce   : > { %v4137_v14 = vadd.f32 %v13422_v2, %v17115_v40  ;;  %13257 = vmatmul.mubr.bf16.gmra.mrb[28].mxu1 %v14257_v5  ;;  %v4152_v36 = vmax.f32 %v4136_v17, 0.0  ;;  %v9050_v5 = vrot.slane %v8939_v33, 5  ;;  %v14243_v2 = vld [vmem:[#allocation15 + $0x8] sm:$0xff]   ;;  %v9056_v43 = vrot.slane %v9054_v23, 4 }
 0x5cf   : > { %v4135_v49 = vadd.f32 %v13423_v9, %v17115_v40  ;;  %13273 = vmatpush3.bf16.msra.mxu1 %v14258_v21  ;;  %13276 = vmatprep.mubr.bf16.mxu1 %v11523_v37  ;;  %v4150_v58 = vmax.f32 %v4134_v59, 0.0  ;;  %v9044_v21 = vsel %vm15774_vm3, %v9042_v34, %v9043_v26  ;;  %v17151_v37 = vld [vmem:[%s15767_s24 + $0xb8] sm:$0xf]  ;;  %v9057_v6 = vrot.slane %v8942_v12, 5 }
 0x5d0   : > { %v4153_v41 = vmax.f32 %v4137_v14, 0.0  ;;  %13274 = vmatprep.subr.bf16.mxu1 %v14260_v28  ;;  %v9051_v9 = vsel %vm15774_vm3, %v9049_v8, %v9050_v5  ;;  %v9061_v34 = vrot.slane %v17151_v37, 5  ;;  %v17164_v26 = vld [vmem:[%s15767_s24 + $0xd8] sm:$0xf] }
 0x5d1   : > { %v4151_v62 = vmax.f32 %v4135_v49, 0.0  ;;  %v12674_v46 = vpop.f32.mrb[4].mxu1  ;;  %v14266_v14 = vld [vmem:[#allocation12 + $0x150] sm:$0xff]   ;;  %v9058_v33 = vsel %vm15774_vm3, %v9056_v43, %v9057_v6  ;;  %v14249_v5 = vld [vmem:[#allocation15 + $0x18] sm:$0xff]  }
 0x5d2   : > { %v4167_v18 = vpack.c.bf16 %v4153_v41, %v4152_v36  ;;  %v13424_v44 = vadd.f32 %v12674_v46, %v17050_v53  ;;  %v4064_v30 = vpop.f32.mrb[5].mxu1  ;;  %v14264_v53 = vld [vmem:[#allocation12 + $0x148] sm:$0xff]   ;;  %v8945_v36 = vld [vmem:[%s15767_s24 + $0xbc] sm:$0x1]  ;;  %v17175_v41 = vld [vmem:[%s15767_s24 + $0xf8] sm:$0xf] }
 0x5d3   : > { %v13425_v63 = vadd.f32 %v4064_v30, %v17052_v57  ;;  %v12675_v25 = vpop.f32.mrb[6].mxu1  ;;  %v4166_v54 = vpack.c.bf16 %v4151_v62, %v4150_v58  ;;  %13275 = vmatpush3.bf16.msra.mxu1 %v14260_v28  ;;  %v11525_v28 = vcombine.low %v9041_v39, %v9044_v21  ;;  %v8946_v58 = vld [vmem:[%s15767_s24 + $0xd4] sm:$0xe]  ;;  %v9068_v62 = vrot.slane %v17164_v26, 5  ;;  %v14268_v37 = vld [vmem:[#allocation12 + $0x158] sm:$0xff]   ;;  %v14253_v26 = vld [vmem:[#allocation15 + $0x20] sm:$0xff]  }
 0x5d4   : > { %v4140_v56 = vadd.f32 %v13424_v44, %v17115_v40  ;;  %v13426_v47 = vadd.f32 %v12675_v25, %v17054_v13  ;;  %v4067_v17 = vpop.f32.mrb[7].mxu1  ;;  %13292 = vmatprep.subr.bf16.mxu1 %v14262_v24  ;;  %v9048_v13 = vsel %vm15774_vm3, %v11518_v15, %v9047_v29  ;;  %v9063_v12 = vrot.slane %v9061_v34, 4 }
 0x5d5   : > { %v4138_v1 = vadd.f32 %v13425_v63, %v17115_v40  ;;  %v13427_v57 = vadd.f32 %v4067_v17, %v17056_v16  ;;  %12700 = vmatprep.mubr.bf16.mxu0 %v4166_v54  ;;  %v11526_v61 = vcombine.low %v9048_v13, %v9051_v9  ;;  %v9064_v25 = vrot.slane %v8945_v36, 5 }
 0x5d6   : > { %v4141_v59 = vadd.f32 %v13426_v47, %v17115_v40  ;;  %12701 = vmatmul.mubr.bf16.vlgmr.msra.gmra.mrb[32].mxu0 %v4167_v18  ;;  %13277 = vmatmul.mubr.bf16.vlgmr.msra.gmra.mrb[16].mxu1 %v11524_v38  ;;  %v4156_v49 = vmax.f32 %v4140_v56, 0.0  ;;  %v9055_v38 = vsel %vm15774_vm3, %v11519_v7, %v9054_v23  ;;  %v11520_v23 = vrot.slane %v8943_v19, 9  ;;  %v8948_v18 = vld [vmem:[%s15767_s24 + $0xdc] sm:$0x1]  ;;  %v8949_v47 = vld [vmem:[%s15767_s24 + $0xf4] sm:$0xe] }
 0x5d7   : > { %v4139_v16 = vadd.f32 %v13427_v57, %v17115_v40  ;;  %12717 = vmatpush3.bf16.msra.mxu0 %v17002_v60  ;;  %13293 = vmatpush3.bf16.msra.mxu1 %v14262_v24  ;;  %v4154_v60 = vmax.f32 %v4138_v1, 0.0  ;;  %v11527_v63 = vcombine.low %v9055_v38, %v9058_v33  ;;  %v11521_v56 = vrot.slane %v8946_v58, 9 }
 0x5d8   : > { %v4157_v29 = vmax.f32 %v4141_v59, 0.0  ;;  %12718 = vmatprep.subr.bf16.mxu0 %v14243_v2  ;;  %13294 = vmatprep.subr.bf16.mxu1 %v14264_v53  ;;  %v9071_v43 = vrot.slane %v8948_v18, 5  ;;  %v9062_v57 = vsel %vm15774_vm3, %v11520_v23, %v9061_v34  ;;  %v11522_v59 = vrot.slane %v8949_v47, 9  ;;  %v14274_v47 = vld [vmem:[#allocation12 + $0x170] sm:$0xff]  }
 0x5d9   : > { %v4155_v39 = vmax.f32 %v4139_v16, 0.0  ;;  %v12678_v24 = vpop.f32.mrb[8].mxu1  ;;  %13280 = vmatprep.mubr.bf16.mxu1 %v11525_v28  ;;  %v9065_v28 = vsel %vm15774_vm3, %v9063_v12, %v9064_v25  ;;  %v14270_v16 = vld [vmem:[#allocation12 + $0x160] sm:$0xff]   ;;  %v9069_v19 = vsel %vm15774_vm3, %v11521_v56, %v9068_v62  ;;  %v14272_v12 = vld [vmem:[#allocation12 + $0x168] sm:$0xff]   ;;  %v14259_v56 = vld [vmem:[#allocation15 + $0x30] sm:$0xff]  }
 0x5da   : > { %v13428_v46 = vadd.f32 %v12678_v24, %v17063_v22  ;;  %v4080_v21 = vpop.f32.mrb[9].mxu1  ;;  %v4169_v15 = vpack.c.bf16 %v4157_v29, %v4156_v49 }
 0x5db   : > { %v13429_v44 = vadd.f32 %v4080_v21, %v17065_v50  ;;  %v12679_v30 = vpop.f32.mrb[10].mxu1  ;;  %12719 = vmatpush3.bf16.msra.mxu0 %v14243_v2  ;;  %v4168_v8 = vpack.c.bf16 %v4155_v39, %v4154_v60  ;;  %13295 = vmatpush3.bf16.msra.mxu1 %v14264_v53  ;;  %v9075_v50 = vrot.slane %v17175_v41, 5  ;;  %v9070_v53 = vrot.slane %v9068_v62, 4  ;;  %v8952_v62 = vld [vmem:[%s15767_s24 + $0x254] sm:$0xe] }
 0x5dc   : > { %v4144_v54 = vadd.f32 %v13428_v46, %v17115_v40  ;;  %v13430_v7 = vadd.f32 %v12679_v30, %v17067_v45  ;;  %v4083_v22 = vpop.f32.mrb[11].mxu1  ;;  %12720 = vmatprep.subr.bf16.mxu0 %v14247_v35  ;;  %13296 = vmatprep.subr.bf16.mxu1 %v14266_v14  ;;  %v8951_v45 = vld [vmem:[%s15767_s24 + $0xfc] sm:$0x1]  ;;  %v11528_v60 = vcombine.low %v9062_v57, %v9065_v28 }
 0x5dd   : > { %v4142_v17 = vadd.f32 %v13429_v44, %v17115_v40  ;;  %v13431_v2 = vadd.f32 %v4083_v22, %v17069_v10  ;;  %12704 = vmatprep.mubr.bf16.mxu0 %v4168_v8  ;;  %v17196_v10 = vld [vmem:[%s15767_s24 + $0x258] sm:$0xf]  ;;  %v9072_v29 = vsel %vm15774_vm3, %v9070_v53, %v9071_v43  ;;  %v9078_v38 = vrot.slane %v8951_v45, 5  ;;  %v8954_v46 = vld [vmem:[%s15767_s24 + $0x25c] sm:$0x1] }
 0x5de   : > { %v4145_v6 = vadd.f32 %v13430_v7, %v17115_v40  ;;  %12705 = vmatmul.mubr.bf16.gmra.mrb[36].mxu0 %v4169_v15  ;;  %13281 = vmatmul.mubr.bf16.gmra.mrb[20].mxu1 %v11526_v61  ;;  %v4160_v13 = vmax.f32 %v4144_v54, 0.0  ;;  %v9316_v39 = vrot.slane %v17196_v10, 5  ;;  %v11529_v18 = vcombine.low %v9069_v19, %v9072_v29  ;;  %v8956_v54 = vld [vmem:[%s15767_s24 + $0x278] sm:$0xf]  ;;  %v8955_v45 = vld [vmem:[%s15767_s24 + $0x274] sm:$0xe] }
 0x5df   : > { %v4143_v1 = vadd.f32 %v13431_v2, %v17115_v40  ;;  %12721 = vmatpush3.bf16.msra.mxu0 %v14247_v35  ;;  %13297 = vmatpush3.bf16.msra.mxu1 %v14266_v14  ;;  %v9077_v35 = vrot.slane %v9075_v50, 4  ;;  %v4158_v14 = vmax.f32 %v4142_v17, 0.0  ;;  %v9076_v30 = vsel %vm15774_vm3, %v11522_v59, %v9075_v50  ;;  %v8958_v59 = vld [vmem:[%s15767_s24 + $0x294] sm:$0xe]  ;;  %v8960_v10 = vld [vmem:[%s15767_s24 + $0x29c] sm:$0x1] }
 0x5e0   : > { %v4161_v9 = vmax.f32 %v4145_v6, 0.0  ;;  %12722 = vmatprep.subr.bf16.mxu0 %v14249_v5  ;;  %13298 = vmatprep.subr.bf16.mxu1 %v14268_v37  ;;  %v9319_v25 = vrot.slane %v8954_v46, 5  ;;  %v9323_v53 = vrot.slane %v8956_v54, 5  ;;  %v8962_v29 = vld [vmem:[%s15767_s24 + $0x2b8] sm:$0xf] }
 0x5e1   : > { %v4159_v49 = vmax.f32 %v4143_v1, 0.0  ;;  %v12682_v34 = vpop.f32.mrb[12].mxu1  ;;  %13284 = vmatprep.mubr.bf16.mxu1 %v11527_v63  ;;  %v9079_v8 = vsel %vm15774_vm3, %v9077_v35, %v9078_v38  ;;  %v9318_v63 = vrot.slane %v9316_v39, 4  ;;  %v8957_v1 = vld [vmem:[%s15767_s24 + $0x27c] sm:$0x1] }
 0x5e2   : > { %v13432_v33 = vadd.f32 %v12682_v34, %v17073_v20  ;;  %v4096_v36 = vpop.f32.mrb[13].mxu1  ;;  %v4171_v41 = vpack.c.bf16 %v4161_v9, %v4160_v13  ;;  %v14255_v20 = vld [vmem:[#allocation15 + $0x28] sm:$0xff]   ;;  %v11530_v2 = vcombine.low %v9076_v30, %v9079_v8  ;;  %v14261_v13 = vld [vmem:[#allocation15 + $0x38] sm:$0xff]   ;;  %v9325_v19 = vrot.slane %v9323_v53, 4  ;;  %v8964_v46 = vld [vmem:[%s15767_s24 + $0x2d4] sm:$0xe] }
 0x5e3   : > { %v13433_v24 = vadd.f32 %v4096_v36, %v17075_v11  ;;  %v12683_v61 = vpop.f32.mrb[14].mxu1  ;;  %12723 = vmatpush3.bf16.msra.mxu0 %v14249_v5  ;;  %v4170_v58 = vpack.c.bf16 %v4159_v49, %v4158_v14  ;;  %13299 = vmatpush3.bf16.msra.mxu1 %v14268_v37  ;;  %v11539_v5 = vrot.slane %v8952_v62, 9  ;;  %v9320_v6 = vsel %vm15774_vm3, %v9318_v63, %v9319_v25  ;;  %v14276_v9 = vld [vmem:[#allocation12 + $0x178] sm:$0xff]   ;;  %v14267_v25 = vld [vmem:[#allocation10 + $0xd0] sm:$0xff]  }
 0x5e4   : > { %v4148_v21 = vadd.f32 %v13432_v33, %v17115_v40  ;;  %v13434_v15 = vadd.f32 %v12683_v61, %v17077_v55  ;;  %v4099_v23 = vpop.f32.mrb[15].mxu1  ;;  %12724 = vmatprep.subr.bf16.mxu0 %v14253_v26  ;;  %13300 = vmatprep.subr.bf16.mxu1 %v14270_v16  ;;  %v9326_v35 = vrot.slane %v8957_v1, 5  ;;  %v11541_v14 = vrot.slane %v8958_v59, 9  ;;  %v8965_v38 = vld [vmem:[%s15767_s24 + $0x2d8] sm:$0xf]  ;;  %v14263_v33 = vld [vmem:[#allocation10 + $0xc0] sm:$0xff]  }
 0x5e5   : > { %v4146_v11 = vadd.f32 %v13433_v24, %v17115_v40  ;;  %v13435_v44 = vadd.f32 %v4099_v23, %v17079_v27  ;;  %12708 = vmatprep.mubr.bf16.mxu0 %v4170_v58  ;;  %v8959_v27 = vld [vmem:[%s15767_s24 + $0x298] sm:$0xf]  ;;  %v9333_v34 = vrot.slane %v8960_v10, 5  ;;  %v8961_v61 = vld [vmem:[%s15767_s24 + $0x2b4] sm:$0xe]  ;;  %v9344_v62 = vrot.slane %v8965_v38, 5 }
 0x5e6   : > { %v4149_v55 = vadd.f32 %v13434_v15, %v17115_v40  ;;  %12709 = vmatmul.mubr.bf16.gmra.mrb[40].mxu0 %v4171_v41  ;;  %13285 = vmatmul.mubr.bf16.gmra.mrb[24].mxu1 %v11528_v60  ;;  %v4164_v22 = vmax.f32 %v4148_v21, 0.0  ;;  %v9330_v57 = vrot.slane %v8959_v27, 5  ;;  %v9327_v41 = vsel %vm15774_vm3, %v9325_v19, %v9326_v35  ;;  %v14278_v60 = vld [vmem:[#allocation12 + $0x200] sm:$0xff]   ;;  %v8963_v58 = vld [vmem:[%s15767_s24 + $0x2bc] sm:$0x1]  ;;  %v14265_v15 = vld [vmem:[#allocation10 + $0xc8] sm:$0xff]  }
 0x5e7   : > { %v4147_v7 = vadd.f32 %v13435_v44, %v17115_v40  ;;  %12725 = vmatpush3.bf16.msra.mxu0 %v14253_v26  ;;  %13301 = vmatpush3.bf16.msra.mxu1 %v14270_v16  ;;  %v4162_v50 = vmax.f32 %v4146_v11, 0.0  ;;  %v9317_v40 = vsel %vm15774_vm3, %v11539_v5, %v9316_v39  ;;  %v11540_v16 = vrot.slane %v8955_v45, 9  ;;  %v8966_v21 = vld [vmem:[%s15767_s24 + $0x2dc] sm:$0x1]  ;;  %v14280_v44 = vld [vmem:[#allocation12 + $0x208] sm:$0xff]   ;;  %v14286_v38 = vld [vmem:[#allocation12 + $0x220] sm:$0xff]  }
 0x5e8   : > { %v4165_v37 = vmax.f32 %v4149_v55, 0.0  ;;  %12726 = vmatprep.subr.bf16.mxu0 %v14255_v20  ;;  %13302 = vmatprep.subr.bf16.mxu1 %v14272_v12  ;;  %v11547_v26 = vcombine.low %v9317_v40, %v9320_v6  ;;  %v9332_v49 = vrot.slane %v9330_v57, 4  ;;  %v9337_v39 = vrot.slane %v8962_v29, 5  ;;  %v8968_v5 = vld [vmem:[%s15767_s24 + $0x2f8] sm:$0xf] }
 0x5e9   : > { %v4163_v17 = vmax.f32 %v4147_v7, 0.0  ;;  %13288 = vmatprep.mubr.bf16.mxu1 %v11529_v18  ;;  %v9324_v36 = vsel %vm15774_vm3, %v11540_v16, %v9323_v53  ;;  %v9331_v24 = vsel %vm15774_vm3, %v11541_v14, %v9330_v57  ;;  %v9340_v11 = vrot.slane %v8963_v58, 5  ;;  %v8971_v63 = vld [vmem:[%s15767_s24 + $0x318] sm:$0xf]  ;;  %v11024_v16 = vld [vmem:[%s15767_s24 + $0x244] sm:$0xc] }
 0x5ea   : > { %v4173_v43 = vpack.c.bf16 %v4165_v37, %v4164_v22  ;;  %v11548_v23 = vcombine.low %v9324_v36, %v9327_v41  ;;  %v9339_v18 = vrot.slane %v9337_v39, 4  ;;  %v11543_v30 = vrot.slane %v8964_v46, 9  ;;  %v8967_v37 = vld [vmem:[%s15767_s24 + $0x2f4] sm:$0xe]  ;;  %v14284_v57 = vld [vmem:[#allocation12 + $0x218] sm:$0xff]  }
 0x5eb   : > { %12727 = vmatpush3.bf16.msra.mxu0 %v14255_v20  ;;  %v4172_v28 = vpack.c.bf16 %v4163_v17, %v4162_v50  ;;  %13303 = vmatpush3.bf16.msra.mxu1 %v14272_v12  ;;  %v11542_v12 = vrot.slane %v8961_v61, 9  ;;  %v9346_v8 = vrot.slane %v9344_v62, 4  ;;  %v9347_v55 = vrot.slane %v8966_v21, 5  ;;  %v8970_v50 = vld [vmem:[%s15767_s24 + $0x314] sm:$0xe] }
 0x5ec   : > { %12728 = vmatprep.subr.bf16.mxu0 %v14259_v56  ;;  %13304 = vmatprep.subr.bf16.mxu1 %v14274_v47  ;;  %v9341_v54 = vsel %vm15774_vm3, %v9339_v18, %v9340_v11  ;;  %v9351_v7 = vrot.slane %v8968_v5, 5  ;;  %v9345_v27 = vsel %vm15774_vm3, %v11543_v30, %v9344_v62  ;;  %v8972_v17 = vld [vmem:[%s15767_s24 + $0x31c] sm:$0x1]  ;;  %v11544_v6 = vrot.slane %v8967_v37, 9  ;;  %v17272_v19 = vld [vmem:[%s15767_s24 + $0x268] sm:$0xf] }
 0x5ed   : > { %12712 = vmatprep.mubr.bf16.mxu0 %v4172_v28  ;;  %v9348_v22 = vsel %vm15774_vm3, %v9346_v8, %v9347_v55  ;;  %v11545_v28 = vrot.slane %v8970_v50, 9  ;;  %v9361_v10 = vrot.slane %v8972_v17, 5  ;;  %v11026_v35 = vld [vmem:[%s15767_s24 + $0x24c] sm:$0x3]  ;;  %v17281_v29 = vld [vmem:[%s15767_s24 + $0x264] sm:$0xc] }
 0x5ee   : > { %12713 = vmatmul.mubr.bf16.gmra.mrb[44].mxu0 %v4173_v43  ;;  %13289 = vmatmul.mubr.bf16.gmra.mrb[28].mxu1 %v11530_v2  ;;  %v14269_v2 = vld [vmem:[#allocation10 + $0xd8] sm:$0xff]   ;;  %v17259_v43 = vld [vmem:[%s15767_s24 + $0x248] sm:$0xf]  ;;  %v11551_v40 = vcombine.low %v9345_v27, %v9348_v22  ;;  %v9353_v45 = vrot.slane %v9351_v7, 4  ;;  %v8973_v41 = vld [vmem:[%s15767_s24 + $0x334] sm:$0xe] }
 0x5ef   : > { %12729 = vmatpush3.bf16.msra.mxu0 %v14259_v56  ;;  %12732 = vmatprep.mubr.bf16.mxu0 %v16904_v3  ;;  %v9334_v3 = vsel %vm15774_vm3, %v9332_v49, %v9333_v34  ;;  %v8969_v56 = vld [vmem:[%s15767_s24 + $0x2fc] sm:$0x1]  ;;  %v14273_v34 = vld [vmem:[#allocation10 + $0xe8] sm:$0xff]   ;;  %v8976_v61 = vld [vmem:[%s15767_s24 + $0x494] sm:$0xe]  ;;  %v4685_v46 = vrot.slane %v11026_v35, 6 }
 0x5f0   : > { %12730 = vmatprep.subr.bf16.mxu0 %v14261_v13  ;;  %13305 = vmatpush3.bf16.msra.mxu1 %v14274_v47  ;;  %v11549_v20 = vcombine.low %v9331_v24, %v9334_v3  ;;  %v9358_v47 = vrot.slane %v8971_v63, 5  ;;  %v9354_v1 = vrot.slane %v8969_v56, 5  ;;  %v11080_v24 = vrot.slane %v11024_v16, 10  ;;  %v8978_v58 = vld [vmem:[%s15767_s24 + $0x49c] sm:$0x1]  ;;  %v14288_v8 = vld [vmem:[#allocation12 + $0x228] sm:$0xff]  }
 0x5f1   : > { %13306 = vmatprep.subr.bf16.mxu1 %v14276_v9  ;;  %13308 = vmatprep.mubr.bf16.mxu1 %v11547_v26  ;;  %v17267_v26 = vld [vmem:[%s15767_s24 + $0x498] sm:$0xf]  ;;  %v4689_v3 = vrot.slane %v17272_v19, 6  ;;  %v11029_v21 = vld [vmem:[%s15767_s24 + $0x26c] sm:$0x3]  ;;  %v11546_v11 = vrot.slane %v8973_v41, 9 }
 0x5f2   : > { %v9360_v59 = vrot.slane %v9358_v47, 4  ;;  %v9355_v14 = vsel %vm15774_vm3, %v9353_v45, %v9354_v1  ;;  %v11563_v55 = vrot.slane %v8976_v61, 9  ;;  %v9609_v63 = vrot.slane %v8978_v58, 5  ;;  %v8981_v45 = vld [vmem:[%s15767_s24 + $0x4bc] sm:$0x1]  ;;  %v14279_v58 = vld [vmem:[#allocation10] sm:$0xff]  }
 0x5f3   : > { %12731 = vmatpush3.bf16.msra.mxu0 %v14261_v13  ;;  %v17263_v13 = vld [vmem:[%s15767_s24 + $0x338] sm:$0xf]  ;;  %v17349_v19 = vld [vmem:[%s15767_s24 + $0x2ac] sm:$0x3] }
 0x5f4   : > { %12748 = vmatprep.subr.bf16.mxu0 %v14263_v33  ;;  %13307 = vmatpush3.bf16.msra.mxu1 %v14276_v9  ;;  %v14271_v9 = vld [vmem:[#allocation10 + $0xe0] sm:$0xff]   ;;  %v9365_v49 = vrot.slane %v17263_v13, 5  ;;  %v9362_v36 = vsel %vm15774_vm3, %v9360_v59, %v9361_v10  ;;  %v8982_v13 = vld [vmem:[%s15767_s24 + $0x4d4] sm:$0xe] }
 0x5f5   : > { %13324 = vmatprep.subr.bf16.mxu1 %v14278_v60  ;;  %v11033_v10 = vld [vmem:[%s15767_s24 + $0x2a4] sm:$0xc] }
 0x5f6   : > { %12733 = vmatmul.mubr.bf16.vlgmr.msra.gmra.mrb[32].mxu0 %v16895_v52  ;;  %v9338_v52 = vsel %vm15774_vm3, %v11542_v12, %v9337_v39  ;;  %v9606_v39 = vrot.slane %v17267_v26, 5  ;;  %v17304_v12 = vld [vmem:[%s15767_s24 + $0x284] sm:$0xc]  ;;  %v9366_v50 = vsel %vm15774_vm3, %v11546_v11, %v9365_v49  ;;  %v14277_v26 = vld [vmem:[#allocation10 + $0xf8] sm:$0xff]  }
 0x5f7   : > { %12736 = vmatprep.mubr.bf16.mxu0 %v16955_v48  ;;  %12749 = vmatpush3.bf16.msra.mxu0 %v14263_v33  ;;  %v14282_v48 = vld [vmem:[#allocation12 + $0x210] sm:$0xff]   ;;  %v11550_v53 = vcombine.low %v9338_v52, %v9341_v54  ;;  %v9359_v33 = vsel %vm15774_vm3, %v11545_v28, %v9358_v47  ;;  %v11081_v52 = vrot.slane %v17281_v29, 10  ;;  %v4691_v54 = vrot.slane %v4689_v3, 4  ;;  %v17323_v47 = vld [vmem:[%s15767_s24 + $0x2a8] sm:$0xf] }
 0x5f8   : > { %12750 = vmatprep.subr.bf16.mxu0 %v14265_v15  ;;  %13309 = vmatmul.mubr.bf16.vlgmr.msra.gmra.mrb[16].mxu1 %v11548_v23  ;;  %v11553_v18 = vcombine.low %v9359_v33, %v9362_v36  ;;  %v9608_v5 = vrot.slane %v9606_v39, 4  ;;  %v11082_v56 = vrot.slane %v17304_v12, 10  ;;  %v4703_v35 = vrot.slane %v17323_v47, 6  ;;  %v14292_v33 = vld [vmem:[#allocation12 + $0x238] sm:$0xff]  }
 0x5f9   : > { %13325 = vmatpush3.bf16.msra.mxu1 %v14278_v60  ;;  %13312 = vmatprep.mubr.bf16.mxu1 %v11549_v20  ;;  %v8975_v60 = vld [vmem:[%s15767_s24 + $0x33c] sm:$0x1]  ;;  %v17339_v28 = vsel %vm17299_vm9, %v11081_v52, %v4689_v3  ;;  %v11565_v36 = vrot.slane %v8982_v13, 9  ;;  %v17360_v3 = vld [vmem:[%s15767_s24 + $0x518] sm:$0xf] }
 0x5fa   : > { %13326 = vmatprep.subr.bf16.mxu1 %v14280_v44  ;;  %v9368_v30 = vrot.slane %v8975_v60, 5 }
 0x5fb   : > { %12751 = vmatpush3.bf16.msra.mxu0 %v14265_v15  ;;  %v17295_v15 = vld [vmem:[%s15767_s24 + $0x288] sm:$0xf] }
 0x5fc   : > { %12752 = vmatprep.subr.bf16.mxu0 %v14267_v25  ;;  %v4696_v37 = vrot.slane %v17295_v15, 6  ;;  %v11036_v15 = vld [vmem:[%s15767_s24 + $0x2c4] sm:$0xc] }
 0x5fd   : > { %13327 = vmatpush3.bf16.msra.mxu1 %v14280_v44  ;;  %v9367_v44 = vrot.slane %v9365_v49, 4 }
 0x5fe   : > { %12737 = vmatmul.mubr.bf16.gmra.mrb[36].mxu0 %v16949_v51  ;;  %13328 = vmatprep.subr.bf16.mxu1 %v14282_v48  ;;  %v4682_v51 = vrot.slane %v17259_v43, 6  ;;  %v9607_v43 = vsel %vm15774_vm3, %v11563_v55, %v9606_v39  ;;  %v4698_v16 = vrot.slane %v4696_v37, 4  ;;  %v17357_v39 = vld [vmem:[%s15767_s24 + $0x4f8] sm:$0xf]  ;;  %v8985_v55 = vld [vmem:[%s15767_s24 + $0x4f4] sm:$0xe] }
 0x5ff   : > { %12740 = vmatprep.mubr.bf16.mxu0 %v16998_v42  ;;  %12753 = vmatpush3.bf16.msra.mxu0 %v14267_v25  ;;  %v9352_v42 = vsel %vm15774_vm3, %v11544_v6, %v9351_v7  ;;  %v17308_v25 = vld [vmem:[%s15767_s24 + $0x4b8] sm:$0xf]  ;;  %v4692_v7 = vrot.slane %v11029_v21, 6  ;;  %v9369_v17 = vsel %vm15774_vm3, %v9367_v44, %v9368_v30  ;;  %v8979_v6 = vld [vmem:[%s15767_s24 + $0x4b4] sm:$0xe]  ;;  %v4706_v21 = vrot.slane %v17349_v19, 6 }
 0x600   : > { %12754 = vmatprep.subr.bf16.mxu0 %v14269_v2  ;;  %13313 = vmatmul.mubr.bf16.gmra.mrb[20].mxu1 %v11550_v53  ;;  %v4684_v62 = vrot.slane %v4682_v51, 4  ;;  %v11552_v23 = vcombine.low %v9352_v42, %v9355_v14  ;;  %v4683_v27 = vsel %vm17299_vm9, %v11080_v24, %v4682_v51  ;;  %v14290_v53 = vld [vmem:[#allocation12 + $0x230] sm:$0xff]   ;;  %v11554_v42 = vcombine.low %v9366_v50, %v9369_v17  ;;  %v17353_v14 = vld [vmem:[%s15767_s24 + $0x2c8] sm:$0xf]  ;;  %v11044_v19 = vld [vmem:[%s15767_s24 + $0x30c] sm:$0x3] }
 0x601   : > { %13329 = vmatpush3.bf16.msra.mxu1 %v14282_v48  ;;  %13316 = vmatprep.mubr.bf16.mxu1 %v11551_v40  ;;  %v17313_v48 = vld [vmem:[%s15767_s24 + $0x4d8] sm:$0xf]  ;;  %v9610_v40 = vsel %vm15774_vm3, %v9608_v5, %v9609_v63  ;;  %v17343_v59 = vsel %vm17299_vm9, %v4691_v54, %v4692_v7  ;;  %v11083_v24 = vrot.slane %v11033_v10, 10  ;;  %v9627_v11 = vrot.slane %v17357_v39, 5  ;;  %v8987_v5 = vld [vmem:[%s15767_s24 + $0x4fc] sm:$0x1] }
 0x602   : > { %13330 = vmatprep.subr.bf16.mxu1 %v14284_v57  ;;  %v4686_v22 = vsel %vm17299_vm9, %v4684_v62, %v4685_v46  ;;  %v9620_v1 = vrot.slane %v17313_v48, 5  ;;  %v11571_v49 = vcombine.low %v9607_v43, %v9610_v40  ;;  %v11089_v61 = vcombine.low %v17339_v28, %v17343_v59  ;;  %v8988_v54 = vld [vmem:[%s15767_s24 + $0x514] sm:$0xe]  ;;  %v8990_v7 = vld [vmem:[%s15767_s24 + $0x51c] sm:$0x1]  ;;  %v14281_v48 = vld [vmem:[#allocation10 + $0x8] sm:$0xff]  }
 0x603   : > { %12755 = vmatpush3.bf16.msra.mxu0 %v14269_v2  ;;  %v9613_v2 = vrot.slane %v17308_v25, 5  ;;  %v4710_v46 = vrot.slane %v17353_v14, 6  ;;  %v4705_v44 = vrot.slane %v4703_v35, 4  ;;  %v9634_v63 = vrot.slane %v17360_v3, 5  ;;  %v17404_v28 = vld [vmem:[%s15767_s24 + $0x558] sm:$0xf] }
 0x604   : > { %12756 = vmatprep.subr.bf16.mxu0 %v14271_v9  ;;  %v9622_v41 = vrot.slane %v9620_v1, 4  ;;  %v9621_v30 = vsel %vm15774_vm3, %v11565_v36, %v9620_v1  ;;  %v17386_v52 = vsel %vm17299_vm9, %v11083_v24, %v4703_v35  ;;  %v11566_v50 = vrot.slane %v8985_v55, 9  ;;  %v11039_v1 = vld [vmem:[%s15767_s24 + $0x2e4] sm:$0xc]  ;;  %v14283_v59 = vld [vmem:[#allocation10 + $0x10] sm:$0xff]  }
 0x605   : > { %13331 = vmatpush3.bf16.msra.mxu1 %v14284_v57  ;;  %v11088_v57 = vcombine.low %v4683_v27, %v4686_v22  ;;  %v9615_v29 = vrot.slane %v9613_v2, 4  ;;  %v4712_v27 = vrot.slane %v4710_v46, 4  ;;  %v9629_v17 = vrot.slane %v9627_v11, 4  ;;  %v8994_v24 = vld [vmem:[%s15767_s24 + $0x554] sm:$0xe] }
 0x606   : > { %12741 = vmatmul.mubr.bf16.gmra.mrb[40].mxu0 %v16994_v32  ;;  %13332 = vmatprep.subr.bf16.mxu1 %v14286_v38  ;;  %v14275_v32 = vld [vmem:[#allocation10 + $0xf0] sm:$0xff]   ;;  %v11567_v43 = vrot.slane %v8988_v54, 9  ;;  %v9636_v40 = vrot.slane %v9634_v63, 4  ;;  %v9628_v35 = vsel %vm15774_vm3, %v11566_v50, %v9627_v11  ;;  %v9648_v36 = vrot.slane %v17404_v28, 5  ;;  %v8996_v3 = vld [vmem:[%s15767_s24 + $0x55c] sm:$0x1] }
 0x607   : > { %12744 = vmatprep.mubr.bf16.mxu0 %v17028_v0  ;;  %12757 = vmatpush3.bf16.msra.mxu0 %v14271_v9  ;;  %v11032_v0 = vld [vmem:[%s15767_s24 + $0x28c] sm:$0x3]  ;;  %v8984_v9 = vld [vmem:[%s15767_s24 + $0x4dc] sm:$0x1]  ;;  %v8998_v55 = vld [vmem:[%s15767_s24 + $0x578] sm:$0xf] }
 0x608   : > { %12758 = vmatprep.subr.bf16.mxu0 %v14273_v34  ;;  %13317 = vmatmul.mubr.bf16.gmra.mrb[24].mxu1 %v11552_v23  ;;  %v4699_v51 = vrot.slane %v11032_v0, 6  ;;  %v9623_v60 = vrot.slane %v8984_v9, 5  ;;  %v11038_v23 = vld [vmem:[%s15767_s24 + $0x2cc] sm:$0x3] }
 0x609   : > { %13333 = vmatpush3.bf16.msra.mxu1 %v14286_v38  ;;  %13320 = vmatprep.mubr.bf16.mxu1 %v11553_v18  ;;  %v9616_v38 = vrot.slane %v8981_v45, 5  ;;  %v4713_v22 = vrot.slane %v11038_v23, 6  ;;  %v17399_v45 = vld [vmem:[%s15767_s24 + $0x538] sm:$0xf]  ;;  %v11041_v9 = vld [vmem:[%s15767_s24 + $0x2ec] sm:$0x3] }
 0x60a   : > { %13334 = vmatprep.subr.bf16.mxu1 %v14288_v8  ;;  %v4700_v62 = vsel %vm17299_vm9, %v4698_v16, %v4699_v51  ;;  %v11042_v51 = vld [vmem:[%s15767_s24 + $0x304] sm:$0xc]  ;;  %v9641_v14 = vrot.slane %v17399_v45, 5  ;;  %v4720_v39 = vrot.slane %v11041_v9, 6 }
 0x60b   : > { %12759 = vmatpush3.bf16.msra.mxu0 %v14273_v34  ;;  %v11564_v34 = vrot.slane %v8979_v6, 9  ;;  %v9617_v18 = vsel %vm15774_vm3, %v9615_v29, %v9616_v38  ;;  %v9637_v6 = vrot.slane %v8990_v7, 5  ;;  %v4714_v13 = vsel %vm17299_vm9, %v4712_v27, %v4713_v22  ;;  %v8991_v38 = vld [vmem:[%s15767_s24 + $0x534] sm:$0xe]  ;;  %v11000_v22 = vld [vmem:[%s15767_s24 + $0xc4] sm:$0xc] }
 0x60c   : > { %12760 = vmatprep.subr.bf16.mxu0 %v14275_v32  ;;  %v11072_v28 = vrot.slane %v11000_v22, 10 }
 0x60d   : > { %13335 = vmatpush3.bf16.msra.mxu1 %v14288_v8  ;;  %v9614_v12 = vsel %vm15774_vm3, %v11564_v34, %v9613_v2  ;;  %v9624_v8 = vsel %vm15774_vm3, %v9622_v41, %v9623_v60  ;;  %v9630_v2 = vrot.slane %v8987_v5, 5  ;;  %v9635_v34 = vsel %vm15774_vm3, %v11567_v43, %v9634_v63  ;;  %v8999_v43 = vld [vmem:[%s15767_s24 + $0x57c] sm:$0x1] }
 0x60e   : > { %12745 = vmatmul.mubr.bf16.gmra.mrb[44].mxu0 %v17026_v31  ;;  %13336 = vmatprep.subr.bf16.mxu1 %v14290_v53  ;;  %v4697_v31 = vsel %vm17299_vm9, %v11082_v56, %v4696_v37  ;;  %v17391_v37 = vld [vmem:[%s15767_s24 + $0x2e8] sm:$0xf]  ;;  %v11572_v0 = vcombine.low %v9614_v12, %v9617_v18  ;;  %v11573_v47 = vcombine.low %v9621_v30, %v9624_v8  ;;  %v11568_v12 = vrot.slane %v8991_v38, 9 }
 0x60f   : > { %12761 = vmatpush3.bf16.msra.mxu0 %v14275_v32  ;;  %12764 = vmatprep.mubr.bf16.mxu0 %v11088_v57  ;;  %v11090_v25 = vcombine.low %v4697_v31, %v4700_v62  ;;  %v11084_v32 = vrot.slane %v11036_v15, 10  ;;  %v17394_v56 = vld [vmem:[%s15767_s24 + $0x308] sm:$0xf]  ;;  %v4717_v57 = vrot.slane %v17391_v37, 6  ;;  %v9638_v29 = vsel %vm15774_vm3, %v9636_v40, %v9637_v6  ;;  %v11002_v37 = vld [vmem:[%s15767_s24 + $0xcc] sm:$0x3] }
 0x610   : > { %12762 = vmatprep.subr.bf16.mxu0 %v14277_v26  ;;  %13321 = vmatmul.mubr.bf16.gmra.mrb[28].mxu1 %v11554_v42  ;;  %v9631_v42 = vsel %vm15774_vm3, %v9629_v17, %v9630_v2  ;;  %v4727_v62 = vrot.slane %v11044_v19, 6  ;;  %v11001_v15 = vld [vmem:[%s15767_s24 + $0xc8] sm:$0xf]  ;;  %v11575_v23 = vcombine.low %v9635_v34, %v9638_v29  ;;  %v9643_v18 = vrot.slane %v9641_v14, 4  ;;  %v14291_v34 = vld [vmem:[#allocation10 + $0x30] sm:$0xff]  }
 0x611   : > { %13337 = vmatpush3.bf16.msra.mxu1 %v14290_v53  ;;  %13340 = vmatprep.mubr.bf16.mxu1 %v11571_v49  ;;  %v4707_v53 = vsel %vm17299_vm9, %v4705_v44, %v4706_v21  ;;  %v4711_v10 = vsel %vm17299_vm9, %v11084_v32, %v4710_v46  ;;  %v11085_v49 = vrot.slane %v11039_v1, 10  ;;  %v4719_v60 = vrot.slane %v4717_v57, 4  ;;  %v11046_v46 = vld [vmem:[%s15767_s24 + $0x328] sm:$0xf]  ;;  %v11047_v32 = vld [vmem:[%s15767_s24 + $0x32c] sm:$0x3] }
 0x612   : > { %13338 = vmatprep.subr.bf16.mxu1 %v14292_v33  ;;  %v11091_v16 = vcombine.low %v17386_v52, %v4707_v53  ;;  %v11092_v41 = vcombine.low %v4711_v10, %v4714_v13  ;;  %v11574_v21 = vcombine.low %v9628_v35, %v9631_v42  ;;  %v11569_v44 = vrot.slane %v8994_v24, 9  ;;  %v14287_v52 = vld [vmem:[#allocation10 + $0x20] sm:$0xff]   ;;  %v8997_v53 = vld [vmem:[%s15767_s24 + $0x574] sm:$0xe] }
 0x613   : > { %12763 = vmatpush3.bf16.msra.mxu0 %v14277_v26  ;;  %v4724_v26 = vrot.slane %v17394_v56, 6  ;;  %v9650_v30 = vrot.slane %v9648_v36, 4  ;;  %v9651_v8 = vrot.slane %v8996_v3, 5  ;;  %v4718_v5 = vsel %vm17299_vm9, %v11085_v49, %v4717_v57  ;;  %v14289_v57 = vld [vmem:[#allocation10 + $0x28] sm:$0xff]  }
 0x614   : > { %12780 = vmatprep.subr.bf16.mxu0 %v14279_v58  ;;  %v4721_v63 = vsel %vm17299_vm9, %v4719_v60, %v4720_v39  ;;  %v4586_v27 = vrot.slane %v11001_v15, 6  ;;  %v9649_v17 = vsel %vm15774_vm3, %v11569_v44, %v9648_v36  ;;  %v4734_v1 = vrot.slane %v11047_v32, 6  ;;  %v11004_v13 = vld [vmem:[%s15767_s24 + $0xe8] sm:$0xf]  ;;  %v11005_v36 = vld [vmem:[%s15767_s24 + $0xec] sm:$0x3] }
 0x615   : > { %13339 = vmatpush3.bf16.msra.mxu1 %v14292_v33  ;;  %v8993_v33 = vld [vmem:[%s15767_s24 + $0x53c] sm:$0x1]  ;;  %v4726_v31 = vrot.slane %v4724_v26, 4  ;;  %v11093_v50 = vcombine.low %v4718_v5, %v4721_v63  ;;  %v9652_v2 = vsel %vm15774_vm3, %v9650_v30, %v9651_v8  ;;  %v4589_v10 = vrot.slane %v11002_v37, 6  ;;  %v11006_v60 = vld [vmem:[%s15767_s24 + $0x104] sm:$0xc] }
 0x616   : > { %12765 = vmatmul.mubr.bf16.vlgmr.msra.gmra.mrb[48].mxu0 %v11089_v61  ;;  %v14285_v61 = vld [vmem:[#allocation10 + $0x18] sm:$0xff]   ;;  %v9644_v11 = vrot.slane %v8993_v33, 5  ;;  %v9658_v35 = vrot.slane %v8999_v43, 5  ;;  %v4593_v49 = vrot.slane %v11004_v13, 6  ;;  %v4587_v29 = vsel %vm17299_vm9, %v11072_v28, %v4586_v27  ;;  %v11003_v33 = vld [vmem:[%s15767_s24 + $0xe4] sm:$0xc] }
 0x617   : > { %12781 = vmatpush3.bf16.msra.mxu0 %v14279_v58  ;;  %12768 = vmatprep.mubr.bf16.mxu0 %v11090_v25  ;;  %v11086_v58 = vrot.slane %v11042_v51, 10  ;;  %v4731_v25 = vrot.slane %v11046_v46, 6  ;;  %v4728_v7 = vsel %vm17299_vm9, %v4726_v31, %v4727_v62  ;;  %v11570_v51 = vrot.slane %v8997_v53, 9  ;;  %v11008_v39 = vld [vmem:[%s15767_s24 + $0x10c] sm:$0x3] }
 0x618   : > { %12782 = vmatprep.subr.bf16.mxu0 %v14281_v48  ;;  %13341 = vmatmul.mubr.bf16.vlgmr.msra.gmra.mrb[16].mxu1 %v11572_v0  ;;  %v9642_v0 = vsel %vm15774_vm3, %v11568_v12, %v9641_v14  ;;  %v9645_v56 = vsel %vm15774_vm3, %v9643_v18, %v9644_v11  ;;  %v11073_v31 = vrot.slane %v11003_v33, 10  ;;  %v4595_v62 = vrot.slane %v4593_v49, 4  ;;  %v11010_v18 = vld [vmem:[%s15767_s24 + $0x128] sm:$0xf]  ;;  %v11015_v28 = vld [vmem:[%s15767_s24 + $0x164] sm:$0xc] }
 0x619   : > { %13344 = vmatprep.mubr.bf16.mxu1 %v11573_v47  ;;  %v4725_v54 = vsel %vm17299_vm9, %v11086_v58, %v4724_v26  ;;  %v9655_v47 = vrot.slane %v8998_v55, 5  ;;  %v4733_v45 = vrot.slane %v4731_v25, 4  ;;  %v11576_v9 = vcombine.low %v9642_v0, %v9645_v56  ;;  %v11007_v26 = vld [vmem:[%s15767_s24 + $0x108] sm:$0xf]  ;;  %v11018_v13 = vld [vmem:[%s15767_s24 + $0x184] sm:$0xc] }
 0x61a   : > { %v11094_v40 = vcombine.low %v4725_v54, %v4728_v7  ;;  %v4596_v46 = vrot.slane %v11005_v36, 6  ;;  %v11074_v15 = vrot.slane %v11006_v60, 10  ;;  %v4603_v12 = vrot.slane %v11008_v39, 6  ;;  %v11013_v44 = vld [vmem:[%s15767_s24 + $0x148] sm:$0xf] }
 0x61b   : > { %12783 = vmatpush3.bf16.msra.mxu0 %v14281_v48  ;;  %v11045_v48 = vld [vmem:[%s15767_s24 + $0x324] sm:$0xc]  ;;  %v9657_v19 = vrot.slane %v9655_v47, 4  ;;  %v4735_v14 = vsel %vm17299_vm9, %v4733_v45, %v4734_v1  ;;  %v9656_v24 = vsel %vm15774_vm3, %v11570_v51, %v9655_v47  ;;  %v4594_v4 = vsel %vm17299_vm9, %v11073_v31, %v4593_v49  ;;  %v14295_v56 = vld [vmem:[#allocation10 + $0x188] sm:$0xff]   ;;  %v14296_v45 = vld [vmem:[#allocation10 + $0x190] sm:$0xff]  }
 0x61c   : > { %12784 = vmatprep.subr.bf16.mxu0 %v14283_v59  ;;  %v11087_v6 = vrot.slane %v11045_v48, 10  ;;  %v4597_v30 = vsel %vm17299_vm9, %v4595_v62, %v4596_v46  ;;  %v4607_v8 = vrot.slane %v11010_v18, 6  ;;  %v14294_v55 = vld [vmem:[#allocation10 + $0x180] sm:$0xff]   ;;  %v4614_v54 = vrot.slane %v11013_v44, 6  ;;  %v11014_v48 = vld [vmem:[%s15767_s24 + $0x14c] sm:$0x3] }
 0x61d   : > { %v9659_v3 = vsel %vm15774_vm3, %v9657_v19, %v9658_v35  ;;  %v11012_v7 = vld [vmem:[%s15767_s24 + $0x144] sm:$0xc]  ;;  %v11105_v32 = vcombine.low %v4594_v4, %v4597_v30  ;;  %v11019_v53 = vld [vmem:[%s15767_s24 + $0x188] sm:$0xf]  ;;  %v11077_v51 = vrot.slane %v11015_v28, 10 }
 0x61e   : > { %12769 = vmatmul.mubr.bf16.gmra.mrb[52].mxu0 %v11091_v16  ;;  %v11577_v16 = vcombine.low %v9649_v17, %v9652_v2  ;;  %v4732_v42 = vsel %vm17299_vm9, %v11087_v6, %v4731_v25  ;;  %v11578_v11 = vcombine.low %v9656_v24, %v9659_v3  ;;  %v11009_v25 = vld [vmem:[%s15767_s24 + $0x124] sm:$0xc]  ;;  %v4609_v37 = vrot.slane %v4607_v8, 4  ;;  %v11016_v2 = vld [vmem:[%s15767_s24 + $0x168] sm:$0xf] }
 0x61f   : > { %12785 = vmatpush3.bf16.msra.mxu0 %v14283_v59  ;;  %12772 = vmatprep.mubr.bf16.mxu0 %v11092_v41  ;;  %v4588_v59 = vrot.slane %v4586_v27, 4  ;;  %v4600_v41 = vrot.slane %v11007_v26, 6  ;;  %v11075_v22 = vrot.slane %v11009_v25, 10  ;;  %v11076_v47 = vrot.slane %v11012_v7, 10  ;;  %v14298_v60 = vld [vmem:[#allocation10 + $0x1a0] sm:$0xff]   ;;  %v14299_v18 = vld [vmem:[#allocation10 + $0x1a8] sm:$0xff]  }
 0x620   : > { %12786 = vmatprep.subr.bf16.mxu0 %v14285_v61  ;;  %13345 = vmatmul.mubr.bf16.gmra.mrb[20].mxu1 %v11574_v21  ;;  %v14293_v21 = vld [vmem:[#allocation10 + $0x38] sm:$0xff]   ;;  %v4617_v17 = vrot.slane %v11014_v48, 6  ;;  %v4621_v6 = vrot.slane %v11016_v2, 6  ;;  %v11021_v3 = vld [vmem:[%s15767_s24 + $0x1a4] sm:$0xc]  ;;  %v14300_v25 = vld [vmem:[#allocation10 + $0x1b0] sm:$0xff]  }
 0x621   : > { %13348 = vmatprep.mubr.bf16.mxu1 %v11575_v23  ;;  %v4590_v38 = vsel %vm17299_vm9, %v4588_v59, %v4589_v10  ;;  %v4602_v23 = vrot.slane %v4600_v41, 4  ;;  %v4601_v5 = vsel %vm17299_vm9, %v11074_v15, %v4600_v41  ;;  %v4608_v43 = vsel %vm17299_vm9, %v11075_v22, %v4607_v8  ;;  %v11017_v59 = vld [vmem:[%s15767_s24 + $0x16c] sm:$0x3]  ;;  %v11048_v31 = vld [vmem:[%s15767_s24 + $0x3c4] sm:$0xc] }
 0x622   : > { %v11104_v58 = vcombine.low %v4587_v29, %v4590_v38  ;;  %v4615_v1 = vsel %vm17299_vm9, %v11076_v47, %v4614_v54  ;;  %v4628_v10 = vrot.slane %v11019_v53, 6  ;;  %v4623_v19 = vrot.slane %v4621_v6, 4  ;;  %v11022_v29 = vld [vmem:[%s15767_s24 + $0x1a8] sm:$0xf]  ;;  %v11050_v62 = vld [vmem:[%s15767_s24 + $0x3cc] sm:$0x3] }
 0x623   : > { %12787 = vmatpush3.bf16.msra.mxu0 %v14285_v61  ;;  %v11095_v61 = vcombine.low %v4732_v42, %v4735_v14  ;;  %v4604_v63 = vsel %vm17299_vm9, %v4602_v23, %v4603_v12  ;;  %v4624_v35 = vrot.slane %v11017_v59, 6  ;;  %v14297_v42 = vld [vmem:[#allocation10 + $0x198] sm:$0xff]   ;;  %v11078_v14 = vrot.slane %v11018_v13, 10  ;;  %v11049_v38 = vld [vmem:[%s15767_s24 + $0x3c8] sm:$0xf] }
 0x624   : > { %12788 = vmatprep.subr.bf16.mxu0 %v14287_v52  ;;  %v11106_v27 = vcombine.low %v4601_v5, %v4604_v63  ;;  %v4630_v49 = vrot.slane %v4628_v10, 4  ;;  %v4622_v33 = vsel %vm17299_vm9, %v11077_v51, %v4621_v6  ;;  %v4635_v41 = vrot.slane %v11022_v29, 6  ;;  %v11052_v30 = vld [vmem:[%s15767_s24 + $0x3e8] sm:$0xf]  ;;  %v11051_v7 = vld [vmem:[%s15767_s24 + $0x3e4] sm:$0xc] }
 0x625   : > { %v4625_v36 = vsel %vm17299_vm9, %v4623_v19, %v4624_v35  ;;  %v4629_v39 = vsel %vm17299_vm9, %v11078_v14, %v4628_v10  ;;  %v11079_v15 = vrot.slane %v11021_v3, 10  ;;  %v5136_v4 = vrot.slane %v11050_v62, 6  ;;  %v11055_v8 = vld [vmem:[%s15767_s24 + $0x408] sm:$0xf]  ;;  %v11053_v48 = vld [vmem:[%s15767_s24 + $0x3ec] sm:$0x3] }
 0x626   : > { %12773 = vmatmul.mubr.bf16.gmra.mrb[56].mxu0 %v11093_v50  ;;  %v4616_v50 = vrot.slane %v4614_v54, 4  ;;  %v11109_v46 = vcombine.low %v4622_v33, %v4625_v36  ;;  %v4637_v23 = vrot.slane %v4635_v41, 4  ;;  %v5140_v63 = vrot.slane %v11052_v30, 6  ;;  %v11056_v22 = vld [vmem:[%s15767_s24 + $0x40c] sm:$0x3]  ;;  %v14302_v28 = vld [vmem:[#allocation10 + $0x40] sm:$0xff]  }
 0x627   : > { %12789 = vmatpush3.bf16.msra.mxu0 %v14287_v52  ;;  %12776 = vmatprep.mubr.bf16.mxu0 %v11094_v40  ;;  %v11011_v52 = vld [vmem:[%s15767_s24 + $0x12c] sm:$0x3]  ;;  %v11061_v6 = vld [vmem:[%s15767_s24 + $0x448] sm:$0xf]  ;;  %v11057_v13 = vld [vmem:[%s15767_s24 + $0x424] sm:$0xc] }
 0x628   : > { %12790 = vmatprep.subr.bf16.mxu0 %v14289_v57  ;;  %13349 = vmatmul.mubr.bf16.gmra.mrb[24].mxu1 %v11576_v9  ;;  %v4610_v0 = vrot.slane %v11011_v52, 6  ;;  %v11020_v9 = vld [vmem:[%s15767_s24 + $0x18c] sm:$0x3]  ;;  %v5142_v47 = vrot.slane %v5140_v63, 4  ;;  %v11064_v36 = vld [vmem:[%s15767_s24 + $0x468] sm:$0xf] }
 0x629   : > { %13352 = vmatprep.mubr.bf16.mxu1 %v11577_v16  ;;  %v11062_v51 = vld [vmem:[%s15767_s24 + $0x44c] sm:$0x3]  ;;  %v14304_v3 = vld [vmem:[#allocation10 + $0x50] sm:$0xff]  }
 0x62a   : > { %v4611_v40 = vsel %vm17299_vm9, %v4609_v37, %v4610_v0  ;;  %v5164_v33 = vrot.slane %v11062_v51, 6  ;;  %v11065_v62 = vld [vmem:[%s15767_s24 + $0x46c] sm:$0x3] }
 0x62b   : > { %12791 = vmatpush3.bf16.msra.mxu0 %v14289_v57  ;;  %v4618_v57 = vsel %vm17299_vm9, %v4616_v50, %v4617_v17  ;;  %v11107_v26 = vcombine.low %v4608_v43, %v4611_v40  ;;  %v5143_v50 = vrot.slane %v11053_v48, 6  ;;  %v14301_v17 = vld [vmem:[#allocation10 + $0x1b8] sm:$0xff]   ;;  %v5150_v43 = vrot.slane %v11056_v22, 6  ;;  %v11058_v40 = vld [vmem:[%s15767_s24 + $0x428] sm:$0xf]  ;;  %v14322_v51 = vld [vmem:[%s15767_s24 + $0x18c] sm:$0xff]  }
 0x62c   : > { %12792 = vmatprep.subr.bf16.mxu0 %v14291_v34  ;;  %v11108_v16 = vcombine.low %v4615_v1, %v4618_v57  ;;  %v5154_v57 = vrot.slane %v11058_v40, 6  ;;  %v14310_v40 = vld [vmem:[%s15767_s24 + $0xcc] sm:$0xff]  }
 0x62d   : > { %v5144_v1 = vsel %vm17299_vm9, %v5142_v47, %v5143_v50  ;;  %v14307_v50 = vld [vmem:[#allocation10 + $0x68] sm:$0xff]  }
 0x62e   : > { %12777 = vmatmul.mubr.bf16.gmra.mrb[60].mxu0 %v11095_v61  ;;  %v11023_v61 = vld [vmem:[%s15767_s24 + $0x1ac] sm:$0x3]  ;;  %v5156_v14 = vrot.slane %v5154_v57, 4 }
 0x62f   : > { %12793 = vmatpush3.bf16.msra.mxu0 %v14291_v34  ;;  %12796 = vmatprep.mubr.bf16.mxu0 %v11104_v58  ;;  %v4631_v34 = vrot.slane %v11020_v9, 6  ;;  %v5133_v58 = vrot.slane %v11049_v38, 6  ;;  %v4638_v12 = vrot.slane %v11023_v61, 6  ;;  %v11059_v9 = vld [vmem:[%s15767_s24 + $0x42c] sm:$0x3] }
 0x630   : > { %12794 = vmatprep.subr.bf16.mxu0 %v14293_v21  ;;  %13353 = vmatmul.mubr.bf16.gmra.mrb[28].mxu1 %v11578_v11  ;;  %v11120_v11 = vrot.slane %v11048_v31, 10  ;;  %v11063_v31 = vld [vmem:[%s15767_s24 + $0x464] sm:$0xc] }
 0x631   : > { %v4632_v24 = vsel %vm17299_vm9, %v4630_v49, %v4631_v34  ;;  %v5135_v44 = vrot.slane %v5133_v58, 4  ;;  %v4639_v5 = vsel %vm17299_vm9, %v4637_v23, %v4638_v12  ;;  %v5157_v49 = vrot.slane %v11059_v9, 6  ;;  %v14303_v34 = vld [vmem:[#allocation10 + $0x48] sm:$0xff]   ;;  %v14317_v9 = vld [vmem:[#allocation10 + $0x118] sm:$0xff]  }
 0x632   : > { %v5134_v52 = vsel %vm17299_vm9, %v11120_v11, %v5133_v58 }
 0x633   : > { %12795 = vmatpush3.bf16.msra.mxu0 %v14293_v21  ;;  %v11110_v21 = vcombine.low %v4629_v39, %v4632_v24  ;;  %v5137_v54 = vsel %vm17299_vm9, %v5135_v44, %v5136_v4  ;;  %v5158_v39 = vsel %vm17299_vm9, %v5156_v14, %v5157_v49  ;;  %v5168_v24 = vrot.slane %v11064_v36, 6  ;;  %v14305_v4 = vld [vmem:[#allocation10 + $0x58] sm:$0xff]   ;;  %v14326_v14 = vld [vmem:[%s15767_s24 + $0x24c] sm:$0xff]  }
 0x634   : > { %12812 = vmatprep.subr.bf16.mxu0 %v14294_v55  ;;  %v11128_v0 = vcombine.low %v5134_v52, %v5137_v54  ;;  %v5171_v44 = vrot.slane %v11065_v62, 6  ;;  %v14306_v54 = vld [vmem:[#allocation10 + $0x60] sm:$0xff]   ;;  %v14325_v49 = vld [vmem:[#allocation10 + $0x138] sm:$0xff]   ;;  %v14332_v36 = vld [vmem:[#allocation10 + $0x1d0] sm:$0xff]  }
 0x635   : > { %v5170_v11 = vrot.slane %v5168_v24, 4  ;;  %v14339_v62 = vld [vmem:[%s15767_s24 + $0x32c] sm:$0xff]  }
 0x636   : > { %12797 = vmatmul.mubr.bf16.vlgmr.msra.gmra.mrb[48].mxu0 %v11105_v32  ;;  %v5147_v32 = vrot.slane %v11055_v8, 6 }
 0x637   : > { %12813 = vmatpush3.bf16.msra.mxu0 %v14294_v55  ;;  %12800 = vmatprep.mubr.bf16.mxu0 %v11106_v27  ;;  %v4636_v55 = vsel %vm17299_vm9, %v11079_v15, %v4635_v41  ;;  %v11054_v27 = vld [vmem:[%s15767_s24 + $0x404] sm:$0xc]  ;;  %v11067_v41 = vld [vmem:[%s15767_s24 + $0x488] sm:$0xf]  ;;  %v11068_v15 = vld [vmem:[%s15767_s24 + $0x48c] sm:$0x3] }
 0x638   : > { %12814 = vmatprep.subr.bf16.mxu0 %v14295_v56  ;;  %v11111_v37 = vcombine.low %v4636_v55, %v4639_v5  ;;  %v11122_v2 = vrot.slane %v11054_v27, 10  ;;  %v5149_v53 = vrot.slane %v5147_v32, 4  ;;  %v5178_v55 = vrot.slane %v11068_v15, 6  ;;  %v11070_v5 = vld [vmem:[%s15767_s24 + $0x4a8] sm:$0xf] }
 0x639   : > { %v5182_v52 = vrot.slane %v11070_v5, 6  ;;  %v11071_v27 = vld [vmem:[%s15767_s24 + $0x4ac] sm:$0x3]  ;;  %v14344_v15 = vld [vmem:[#allocation10 + $0x80] sm:$0xff]  }
 0x63a   : > { %v5148_v59 = vsel %vm17299_vm9, %v11122_v2, %v5147_v32  ;;  %v5151_v10 = vsel %vm17299_vm9, %v5149_v53, %v5150_v43  ;;  %v11069_v32 = vld [vmem:[%s15767_s24 + $0x4a4] sm:$0xc]  ;;  %v5185_v47 = vrot.slane %v11071_v27, 6  ;;  %v14308_v53 = vld [vmem:[#allocation10 + $0x70] sm:$0xff]  }
 0x63b   : > { %12815 = vmatpush3.bf16.msra.mxu0 %v14295_v56  ;;  %v11121_v56 = vrot.slane %v11051_v7, 10  ;;  %v11130_v35 = vcombine.low %v5148_v59, %v5151_v10  ;;  %v14316_v59 = vld [vmem:[#allocation10 + $0x110] sm:$0xff]  }
 0x63c   : > { %12816 = vmatprep.subr.bf16.mxu0 %v14296_v45  ;;  %v14315_v10 = vld [vmem:[%s15767_s24 + $0x12c] sm:$0xff]  }
 0x63e   : > { %12801 = vmatmul.mubr.bf16.gmra.mrb[52].mxu0 %v11107_v26  ;;  %v5161_v26 = vrot.slane %v11061_v6, 6  ;;  %v14309_v6 = vld [vmem:[#allocation10 + $0x78] sm:$0xff]  }
 0x63f   : > { %12817 = vmatpush3.bf16.msra.mxu0 %v14296_v45  ;;  %12804 = vmatprep.mubr.bf16.mxu0 %v11108_v16  ;;  %v5141_v45 = vsel %vm17299_vm9, %v11121_v56, %v5140_v63  ;;  %v11060_v16 = vld [vmem:[%s15767_s24 + $0x444] sm:$0xc]  ;;  %v5184_v56 = vrot.slane %v5182_v52, 4 }
 0x640   : > { %12818 = vmatprep.subr.bf16.mxu0 %v14297_v42  ;;  %v11129_v19 = vcombine.low %v5141_v45, %v5144_v1  ;;  %v11124_v29 = vrot.slane %v11060_v16, 10  ;;  %v5163_v38 = vrot.slane %v5161_v26, 4  ;;  %v14312_v45 = vld [vmem:[#allocation10 + $0x100] sm:$0xff]   ;;  %v14311_v1 = vld [vmem:[%s15767_s24 + $0xec] sm:$0xff]  }
 0x641   : > { %v5186_v2 = vsel %vm17299_vm9, %v5184_v56, %v5185_v47  ;;  %v14319_v16 = vld [vmem:[%s15767_s24 + $0x16c] sm:$0xff]  }
 0x642   : > { %v5162_v61 = vsel %vm17299_vm9, %v11124_v29, %v5161_v26  ;;  %v5165_v58 = vsel %vm17299_vm9, %v5163_v38, %v5164_v33  ;;  %v14320_v26 = vld [vmem:[#allocation10 + $0x120] sm:$0xff]   ;;  %v14327_v29 = vld [vmem:[%s15767_s24 + $0x26c] sm:$0xff]  }
 0x643   : > { %12819 = vmatpush3.bf16.msra.mxu0 %v14297_v42  ;;  %v11123_v42 = vrot.slane %v11057_v13, 10  ;;  %v11132_v12 = vcombine.low %v5162_v61, %v5165_v58  ;;  %v14318_v13 = vld [vmem:[%s15767_s24 + $0x14c] sm:$0xff]  }
 0x644   : > { %12820 = vmatprep.subr.bf16.mxu0 %v14298_v60  ;;  %v14330_v38 = vld [vmem:[%s15767_s24 + $0x28c] sm:$0xff]  }
 0x645   : > { %v14329_v33 = vld [vmem:[#allocation10 + $0x1c8] sm:$0xff]   ;;  %v14356_v56 = vld [vmem:[#allocation10 + $0xb0] sm:$0xff]  }
 0x646   : > { %12805 = vmatmul.mubr.bf16.gmra.mrb[56].mxu0 %v11109_v46  ;;  %v5175_v46 = vrot.slane %v11067_v41, 6  ;;  %v14331_v41 = vld [vmem:[%s15767_s24 + $0x2ac] sm:$0xff]  }
 0x647   : > { %12821 = vmatpush3.bf16.msra.mxu0 %v14298_v60  ;;  %12808 = vmatprep.mubr.bf16.mxu0 %v11110_v21  ;;  %v5155_v60 = vsel %vm17299_vm9, %v11123_v42, %v5154_v57  ;;  %v11066_v21 = vld [vmem:[%s15767_s24 + $0x484] sm:$0xc]  ;;  %v14314_v57 = vld [vmem:[%s15767_s24 + $0x10c] sm:$0xff]  }
 0x648   : > { %12822 = vmatprep.subr.bf16.mxu0 %v14299_v18  ;;  %v11131_v23 = vcombine.low %v5155_v60, %v5158_v39  ;;  %v11126_v30 = vrot.slane %v11066_v21, 10  ;;  %v5177_v8 = vrot.slane %v5175_v46, 4  ;;  %v14323_v42 = vld [vmem:[%s15767_s24 + $0x1ac] sm:$0xff]   ;;  %v14333_v39 = vld [vmem:[#allocation10 + $0x1d8] sm:$0xff]  }
 0x649   : > { %v14334_v60 = vld [vmem:[%s15767_s24 + $0x2cc] sm:$0xff]   ;;  %v14341_v21 = vld [vmem:[#allocation10 + $0x1f8] sm:$0xff]  }
 0x64a   : > { %v5176_v7 = vsel %vm17299_vm9, %v11126_v30, %v5175_v46  ;;  %v5179_v48 = vsel %vm17299_vm9, %v5177_v8, %v5178_v55  ;;  %v14338_v61 = vld [vmem:[%s15767_s24 + $0x30c] sm:$0xff]   ;;  %v14349_v30 = vld [vmem:[#allocation10 + $0x98] sm:$0xff]   ;;  %v11241_v8 = vld [vmem:[%s15767_s24 + $0xd4] sm:$0xf] }
 0x64b   : > { %12823 = vmatpush3.bf16.msra.mxu0 %v14299_v18  ;;  %v11125_v18 = vrot.slane %v11063_v31, 10  ;;  %v14337_v58 = vld [vmem:[#allocation10 + $0x1e8] sm:$0xff]   ;;  %v14340_v31 = vld [vmem:[#allocation10 + $0x1f0] sm:$0xff]   ;;  %v14352_v55 = vld [vmem:[#allocation10 + $0xa0] sm:$0xff]   ;;  %v6221_v5 = vrot.slane %v11241_v8, 6 }
 0x64c   : > { %12824 = vmatprep.subr.bf16.mxu0 %v14300_v25  ;;  %v14342_v46 = vld [vmem:[%s15767_s24 + $0x3cc] sm:$0xff]  }
 0x64d   : > { %v5169_v63 = vsel %vm17299_vm9, %v11125_v18, %v5168_v24  ;;  %v14336_v24 = vld [vmem:[#allocation10 + $0x1e0] sm:$0xff]   ;;  %v14345_v18 = vld [vmem:[#allocation10 + $0x88] sm:$0xff]  }
 0x64e   : > { %12809 = vmatmul.mubr.bf16.gmra.mrb[60].mxu0 %v11111_v37  ;;  %v11134_v37 = vcombine.low %v5176_v7, %v5179_v48  ;;  %v14353_v7 = vld [vmem:[#allocation10 + $0xa8] sm:$0xff]  }
 0x64f   : > { %12825 = vmatpush3.bf16.msra.mxu0 %v14300_v25  ;;  %12828 = vmatprep.mubr.bf16.mxu0 %v11128_v0  ;;  %v5172_v25 = vsel %vm17299_vm9, %v5170_v11, %v5171_v44  ;;  %v11127_v0 = vrot.slane %v11069_v32, 10  ;;  %v14348_v11 = vld [vmem:[#allocation10 + $0x90] sm:$0xff]   ;;  %v6223_v32 = vrot.slane %v6221_v5, 4 }
 0x650   : > { %12826 = vmatprep.subr.bf16.mxu0 %v14301_v17  ;;  %v11133_v22 = vcombine.low %v5169_v63, %v5172_v25  ;;  %v14347_v44 = vld [vmem:[%s15767_s24 + $0x42c] sm:$0xff]   ;;  %v11242_v25 = vld [vmem:[%s15767_s24 + $0xd8] sm:$0x3] }
 0x651   : > { %v11240_v63 = vld [vmem:[%s15767_s24 + $0xd0] sm:$0xc]  ;;  %v6224_v27 = vrot.slane %v11242_v25, 6 }
 0x652   : > { %v11312_v48 = vrot.slane %v11240_v63, 10 }
 0x653   : > { %12827 = vmatpush3.bf16.msra.mxu0 %v14301_v17  ;;  %v5183_v17 = vsel %vm17299_vm9, %v11127_v0, %v5182_v52  ;;  %v14351_v52 = vld [vmem:[%s15767_s24 + $0x46c] sm:$0xff]  }
 0x654   : > { %12844 = vmatprep.subr.bf16.mxu0 %v14302_v28  ;;  %v11135_v43 = vcombine.low %v5183_v17, %v5186_v2  ;;  %v6222_v47 = vsel %vm17299_vm9, %v11312_v48, %v6221_v5  ;;  %v11243_v17 = vld [vmem:[%s15767_s24 + $0xf0] sm:$0xc]  ;;  %v11245_v2 = vld [vmem:[%s15767_s24 + $0xf8] sm:$0x3] }
 0x655   : > { %v11260_v5 = vld [vmem:[%s15767_s24 + $0x198] sm:$0x3] }
 0x656   : > { %12829 = vmatmul.mubr.bf16.vlgmr.msra.gmra.mrb[48].mxu0 %v11129_v19  ;;  %v14321_v19 = vld [vmem:[#allocation10 + $0x128] sm:$0xff]   ;;  %v14361_v48 = vld [vmem:[#allocation10 + $0x158] sm:$0xff]  }
 0x657   : > { %12845 = vmatpush3.bf16.msra.mxu0 %v14302_v28  ;;  %12832 = vmatprep.mubr.bf16.mxu0 %v11130_v35  ;;  %v14313_v28 = vld [vmem:[#allocation10 + $0x108] sm:$0xff]   ;;  %v14324_v35 = vld [vmem:[#allocation10 + $0x130] sm:$0xff]  }
 0x658   : > { %12846 = vmatprep.subr.bf16.mxu0 %v14303_v34 }
 0x65b   : > { %12847 = vmatpush3.bf16.msra.mxu0 %v14303_v34  ;;  %v14328_v34 = vld [vmem:[#allocation10 + $0x1c0] sm:$0xff]  }
 0x65c   : > { %12848 = vmatprep.subr.bf16.mxu0 %v14304_v3 }
 0x65e   : > { %12833 = vmatmul.mubr.bf16.gmra.mrb[52].mxu0 %v11131_v23  ;;  %v14343_v23 = vld [vmem:[%s15767_s24 + $0x3ec] sm:$0xff]  }
 0x65f   : > { %12849 = vmatpush3.bf16.msra.mxu0 %v14304_v3  ;;  %12836 = vmatprep.mubr.bf16.mxu0 %v11132_v12  ;;  %v14335_v3 = vld [vmem:[%s15767_s24 + $0x2ec] sm:$0xff]  }
 0x660   : > { %12850 = vmatprep.subr.bf16.mxu0 %v14305_v4  ;;  %v14346_v12 = vld [vmem:[%s15767_s24 + $0x40c] sm:$0xff]  }
 0x663   : > { %12851 = vmatpush3.bf16.msra.mxu0 %v14305_v4  ;;  %v14350_v4 = vld [vmem:[%s15767_s24 + $0x44c] sm:$0xff]  }
 0x664   : > { %12852 = vmatprep.subr.bf16.mxu0 %v14306_v54 }
 0x666   : > { %12837 = vmatmul.mubr.bf16.gmra.mrb[56].mxu0 %v11133_v22  ;;  %v11244_v22 = vld [vmem:[%s15767_s24 + $0xf4] sm:$0xf] }
 0x667   : > { %12853 = vmatpush3.bf16.msra.mxu0 %v14306_v54  ;;  %12840 = vmatprep.mubr.bf16.mxu0 %v11134_v37  ;;  %v14354_v54 = vld [vmem:[%s15767_s24 + $0x48c] sm:$0xff]   ;;  %v11247_v37 = vld [vmem:[%s15767_s24 + $0x114] sm:$0xf]  ;;  %v6228_v0 = vrot.slane %v11244_v22, 6  ;;  %v6266_v22 = vrot.slane %v11260_v5, 6 }
 0x668   : > { %12854 = vmatprep.subr.bf16.mxu0 %v14307_v50 }
 0x66b   : > { %12855 = vmatpush3.bf16.msra.mxu0 %v14307_v50  ;;  %v6225_v50 = vsel %vm17299_vm9, %v6223_v32, %v6224_v27 }
 0x66c   : > { %12856 = vmatprep.subr.bf16.mxu0 %v14308_v53 }
 0x66e   : > { %12841 = vmatmul.mubr.bf16.gmra.mrb[60].mxu0 %v11135_v43  ;;  %v11246_v43 = vld [vmem:[%s15767_s24 + $0x110] sm:$0xc] }
 0x66f   : > { %12857 = vmatpush3.bf16.msra.mxu0 %v14308_v53  ;;  %12860 = vmatprep.mubr.bf16.mxu0 %v14310_v40  ;;  %v6235_v53 = vrot.slane %v11247_v37, 6  ;;  %v11248_v40 = vld [vmem:[%s15767_s24 + $0x118] sm:$0x3]  ;;  %v11262_v37 = vld [vmem:[%s15767_s24 + $0x1b4] sm:$0xf] }
 0x670   : > { %12858 = vmatprep.subr.bf16.mxu0 %v14309_v6 }
 0x673   : > { %12859 = vmatpush3.bf16.msra.mxu0 %v14309_v6  ;;  %v14355_v6 = vld [vmem:[%s15767_s24 + $0x4ac] sm:$0xff]  }
 0x674   : > { %12876 = vmatprep.subr.bf16.mxu0 %v14312_v45 }
 0x676   : > { %12861 = vmatmul.mubr.bf16.vlgmr.msra.gmra.mrb[48].mxu0 %v14311_v1  ;;  %v11313_v1 = vrot.slane %v11243_v17, 10  ;;  %v14362_v17 = vld [vmem:[#allocation10 + $0x160] sm:$0xff]  }
 0x677   : > { %12877 = vmatpush3.bf16.msra.mxu0 %v14312_v45  ;;  %12864 = vmatprep.mubr.bf16.mxu0 %v14314_v57  ;;  %v11320_v45 = vcombine.low %v6222_v47, %v6225_v50  ;;  %v6230_v57 = vrot.slane %v6228_v0, 4  ;;  %v6270_v50 = vrot.slane %v11262_v37, 6 }
 0x678   : > { %12878 = vmatprep.subr.bf16.mxu0 %v14313_v28 }
 0x67b   : > { %12879 = vmatpush3.bf16.msra.mxu0 %v14313_v28  ;;  %v6231_v28 = vrot.slane %v11245_v2, 6 }
 0x67c   : > { %12880 = vmatprep.subr.bf16.mxu0 %v14316_v59 }
 0x67e   : > { %12865 = vmatmul.mubr.bf16.gmra.mrb[52].mxu0 %v14315_v10  ;;  %v11314_v10 = vrot.slane %v11246_v43, 10  ;;  %v11261_v43 = vld [vmem:[%s15767_s24 + $0x1b0] sm:$0xc] }
 0x67f   : > { %12881 = vmatpush3.bf16.msra.mxu0 %v14316_v59  ;;  %12868 = vmatprep.mubr.bf16.mxu0 %v14318_v13  ;;  %v14357_v59 = vld [vmem:[#allocation10 + $0xb8] sm:$0xff]   ;;  %v6237_v13 = vrot.slane %v6235_v53, 4 }
 0x680   : > { %12882 = vmatprep.subr.bf16.mxu0 %v14317_v9 }
 0x683   : > { %12883 = vmatpush3.bf16.msra.mxu0 %v14317_v9  ;;  %v6238_v9 = vrot.slane %v11248_v40, 6  ;;  %v11263_v40 = vld [vmem:[%s15767_s24 + $0x1b8] sm:$0x3] }
 0x684   : > { %12884 = vmatprep.subr.bf16.mxu0 %v14320_v26 }
 0x686   : > { %12869 = vmatmul.mubr.bf16.gmra.mrb[56].mxu0 %v14319_v16  ;;  %v11253_v16 = vld [vmem:[%s15767_s24 + $0x154] sm:$0xf] }
 0x687   : > { %12885 = vmatpush3.bf16.msra.mxu0 %v14320_v26  ;;  %12872 = vmatprep.mubr.bf16.mxu0 %v14322_v51  ;;  %v11250_v26 = vld [vmem:[%s15767_s24 + $0x134] sm:$0xf]  ;;  %v6229_v51 = vsel %vm17299_vm9, %v11313_v1, %v6228_v0  ;;  %v11266_v1 = vld [vmem:[%s15767_s24 + $0x258] sm:$0x3] }
 0x688   : > { %12886 = vmatprep.subr.bf16.mxu0 %v14321_v19  ;;  %v11265_v0 = vld [vmem:[%s15767_s24 + $0x254] sm:$0xf] }
 0x68b   : > { %12887 = vmatpush3.bf16.msra.mxu0 %v14321_v19  ;;  %v6232_v19 = vsel %vm17299_vm9, %v6230_v57, %v6231_v28 }
 0x68c   : > { %12888 = vmatprep.subr.bf16.mxu0 %v14324_v35 }
 0x68e   : > { %12873 = vmatmul.mubr.bf16.gmra.mrb[60].mxu0 %v14323_v42  ;;  %v14358_v42 = vld [vmem:[#allocation10 + $0x140] sm:$0xff]  }
 0x68f   : > { %12889 = vmatpush3.bf16.msra.mxu0 %v14324_v35  ;;  %12892 = vmatprep.mubr.bf16.mxu0 %v14326_v14  ;;  %v6242_v35 = vrot.slane %v11250_v26, 6  ;;  %v6236_v14 = vsel %vm17299_vm9, %v11314_v10, %v6235_v53  ;;  %v6272_v10 = vrot.slane %v6270_v50, 4 }
 0x690   : > { %12890 = vmatprep.subr.bf16.mxu0 %v14325_v49 }
 0x693   : > { %12891 = vmatpush3.bf16.msra.mxu0 %v14325_v49  ;;  %v6239_v49 = vsel %vm17299_vm9, %v6237_v13, %v6238_v9  ;;  %v6273_v13 = vrot.slane %v11263_v40, 6  ;;  %v14363_v9 = vld [vmem:[#allocation10 + $0x168] sm:$0xff]  }
 0x694   : > { %12908 = vmatprep.subr.bf16.mxu0 %v14328_v34 }
 0x696   : > { %12893 = vmatmul.mubr.bf16.vlgmr.msra.gmra.mrb[48].mxu0 %v14327_v29  ;;  %v11251_v29 = vld [vmem:[%s15767_s24 + $0x138] sm:$0x3] }
 0x697   : > { %12909 = vmatpush3.bf16.msra.mxu0 %v14328_v34  ;;  %12896 = vmatprep.mubr.bf16.mxu0 %v14330_v38  ;;  %v11249_v34 = vld [vmem:[%s15767_s24 + $0x130] sm:$0xc]  ;;  %v6249_v38 = vrot.slane %v11253_v16, 6 }
 0x698   : > { %12910 = vmatprep.subr.bf16.mxu0 %v14329_v33 }
 0x69b   : > { %12911 = vmatpush3.bf16.msra.mxu0 %v14329_v33  ;;  %v11252_v33 = vld [vmem:[%s15767_s24 + $0x150] sm:$0xc] }
 0x69c   : > { %12912 = vmatprep.subr.bf16.mxu0 %v14332_v36 }
 0x69e   : > { %12897 = vmatmul.mubr.bf16.gmra.mrb[52].mxu0 %v14331_v41  ;;  %v11321_v41 = vcombine.low %v6229_v51, %v6232_v19  ;;  %v6514_v51 = vrot.slane %v11266_v1, 6  ;;  %v11268_v19 = vld [vmem:[%s15767_s24 + $0x274] sm:$0xf] }
 0x69f   : > { %12913 = vmatpush3.bf16.msra.mxu0 %v14332_v36  ;;  %12900 = vmatprep.mubr.bf16.mxu0 %v14334_v60  ;;  %v11254_v36 = vld [vmem:[%s15767_s24 + $0x158] sm:$0x3]  ;;  %v11322_v60 = vcombine.low %v6236_v14, %v6239_v49  ;;  %v6274_v14 = vsel %vm17299_vm9, %v6272_v10, %v6273_v13  ;;  %v11267_v49 = vld [vmem:[%s15767_s24 + $0x270] sm:$0xc] }
 0x6a0   : > { %12914 = vmatprep.subr.bf16.mxu0 %v14333_v39 }
 0x6a3   : > { %12915 = vmatpush3.bf16.msra.mxu0 %v14333_v39  ;;  %v11315_v39 = vrot.slane %v11249_v34, 10  ;;  %v6518_v34 = vrot.slane %v11268_v19, 6  ;;  %v11283_v19 = vld [vmem:[%s15767_s24 + $0x314] sm:$0xf] }
 0x6a4   : > { %12916 = vmatprep.subr.bf16.mxu0 %v14336_v24 }
 0x6a6   : > { %12901 = vmatmul.mubr.bf16.gmra.mrb[56].mxu0 %v14335_v3  ;;  %v6245_v3 = vrot.slane %v11251_v29, 6  ;;  %v14364_v29 = vld [vmem:[#allocation10 + $0x170] sm:$0xff]  }
 0x6a7   : > { %12917 = vmatpush3.bf16.msra.mxu0 %v14336_v24  ;;  %12904 = vmatprep.mubr.bf16.mxu0 %v14338_v61  ;;  %v6244_v24 = vrot.slane %v6242_v35, 4  ;;  %v14359_v61 = vld [vmem:[#allocation10 + $0x148] sm:$0xff]  }
 0x6a8   : > { %12918 = vmatprep.subr.bf16.mxu0 %v14337_v58 }
 0x6ab   : > { %12919 = vmatpush3.bf16.msra.mxu0 %v14337_v58  ;;  %v11316_v58 = vrot.slane %v11252_v33, 10 }
 0x6ac   : > { %12920 = vmatprep.subr.bf16.mxu0 %v14340_v31 }
 0x6ae   : > { %12905 = vmatmul.mubr.bf16.gmra.mrb[60].mxu0 %v14339_v62  ;;  %v6252_v62 = vrot.slane %v11254_v36, 6  ;;  %v11269_v36 = vld [vmem:[%s15767_s24 + $0x278] sm:$0x3] }
 0x6af   : > { %12921 = vmatpush3.bf16.msra.mxu0 %v14340_v31  ;;  %12924 = vmatprep.mubr.bf16.mxu0 %v14342_v46  ;;  %v6251_v31 = vrot.slane %v6249_v38, 4  ;;  %v11256_v46 = vld [vmem:[%s15767_s24 + $0x174] sm:$0xf] }
 0x6b0   : > { %12922 = vmatprep.subr.bf16.mxu0 %v14341_v21 }
 0x6b3   : > { %12923 = vmatpush3.bf16.msra.mxu0 %v14341_v21  ;;  %v11259_v21 = vld [vmem:[%s15767_s24 + $0x194] sm:$0xf] }
 0x6b4   : > { %12940 = vmatprep.subr.bf16.mxu0 %v14344_v15  ;;  %v6263_v8 = vrot.slane %v11259_v21, 6 }
 0x6b6   : > { %12925 = vmatmul.mubr.bf16.vlgmr.msra.gmra.mrb[48].mxu0 %v14343_v23  ;;  %v6246_v23 = vsel %vm17299_vm9, %v6244_v24, %v6245_v3  ;;  %v6265_v27 = vrot.slane %v6263_v8, 4  ;;  %v17667_v24 = vld [vmem:[%s18119_s20] ss:$0 sm:$0xff]  ;;  %s11624_s20 = sshll.u32 %s18043_s15, 4 }
 0x6b7   : > { %12941 = vmatpush3.bf16.msra.mxu0 %v14344_v15  ;;  %12928 = vmatprep.mubr.bf16.mxu0 %v14346_v12  ;;  %v6243_v15 = vsel %vm17299_vm9, %v11315_v39, %v6242_v35  ;;  %v6256_v12 = vrot.slane %v11256_v46, 6  ;;  %v11271_v35 = vld [vmem:[%s15767_s24 + $0x294] sm:$0xf]  ;;  %v11272_v39 = vld [vmem:[%s15767_s24 + $0x298] sm:$0x3]  ;;  %v6521_v46 = vrot.slane %v11269_v36, 6 }
 0x6b8   : > { %12942 = vmatprep.subr.bf16.mxu0 %v14345_v18  ;;  %v11323_v63 = vcombine.low %v6243_v15, %v6246_v23  ;;  %v6267_v53 = vsel %vm17299_vm9, %v6265_v27, %v6266_v22  ;;  %v14366_v27 = vld [vmem:[#allocation10 + $0x200] sm:$0xff]  }
 0x6bb   : > { %12943 = vmatpush3.bf16.msra.mxu0 %v14345_v18  ;;  %v14360_v18 = vld [vmem:[#allocation10 + $0x150] sm:$0xff]  }
 0x6bc   : > { %12944 = vmatprep.subr.bf16.mxu0 %v14348_v11 }
 0x6be   : > { %12929 = vmatmul.mubr.bf16.gmra.mrb[52].mxu0 %v14347_v44  ;;  %v6253_v44 = vsel %vm17299_vm9, %v6251_v31, %v6252_v62  ;;  %v6520_v62 = vrot.slane %v6518_v34, 4 }
 0x6bf   : > { %12945 = vmatpush3.bf16.msra.mxu0 %v14348_v11  ;;  %12932 = vmatprep.mubr.bf16.mxu0 %v14350_v4  ;;  %v6250_v11 = vsel %vm17299_vm9, %v11316_v58, %v6249_v38  ;;  %v11255_v4 = vld [vmem:[%s15767_s24 + $0x170] sm:$0xc]  ;;  %v14365_v58 = vld [vmem:[#allocation10 + $0x178] sm:$0xff]  }
 0x6c0   : > { %12946 = vmatprep.subr.bf16.mxu0 %v14349_v30  ;;  %v11324_v25 = vcombine.low %v6250_v11, %v6253_v44 }
 0x6c3   : > { %12947 = vmatpush3.bf16.msra.mxu0 %v14349_v30  ;;  %v11257_v30 = vld [vmem:[%s15767_s24 + $0x178] sm:$0x3] }
 0x6c4   : > { %12948 = vmatprep.subr.bf16.mxu0 %v14352_v55 }
 0x6c6   : > { %12933 = vmatmul.mubr.bf16.gmra.mrb[56].mxu0 %v14351_v52  ;;  %v11317_v52 = vrot.slane %v11255_v4, 10  ;;  %v11277_v4 = vld [vmem:[%s15767_s24 + $0x2d4] sm:$0xf] }
 0x6c7   : > { %12949 = vmatpush3.bf16.msra.mxu0 %v14352_v55  ;;  %12936 = vmatprep.mubr.bf16.mxu0 %v14354_v54  ;;  %v11258_v55 = vld [vmem:[%s15767_s24 + $0x190] sm:$0xc]  ;;  %v6258_v54 = vrot.slane %v6256_v12, 4 }
 0x6c8   : > { %12950 = vmatprep.subr.bf16.mxu0 %v14353_v7  ;;  %v11318_v32 = vrot.slane %v11258_v55, 10 }
 0x6ca   : > { %v6264_v2 = vsel %vm17299_vm9, %v11318_v32, %v6263_v8 }
 0x6cb   : > { %12951 = vmatpush3.bf16.msra.mxu0 %v14353_v7  ;;  %v6259_v7 = vrot.slane %v11257_v30, 6  ;;  %v11326_v28 = vcombine.low %v6264_v2, %v6267_v53 }
 0x6cc   : > { %12952 = vmatprep.subr.bf16.mxu0 %v14356_v56 }
 0x6cd   : > { %v6260_v47 = vsel %vm17299_vm9, %v6258_v54, %v6259_v7  ;;  %v11273_v54 = vld [vmem:[%s15767_s24 + $0x2b0] sm:$0xc] }
 0x6ce   : > { %12937 = vmatmul.mubr.bf16.gmra.mrb[60].mxu0 %v14355_v6  ;;  %v6511_v6 = vrot.slane %v11265_v0, 6  ;;  %v11275_v0 = vld [vmem:[%s15767_s24 + $0x2b8] sm:$0x3] }
 0x6cf   : > { %12953 = vmatpush3.bf16.msra.mxu0 %v14356_v56  ;;  %12956 = vmatprep.mubr.bf16.mxu0 %v11320_v45  ;;  %v6257_v56 = vsel %vm17299_vm9, %v11317_v52, %v6256_v12  ;;  %v11264_v45 = vld [vmem:[%s15767_s24 + $0x250] sm:$0xc]  ;;  %v6528_v12 = vrot.slane %v11272_v39, 6  ;;  %v6522_v52 = vsel %vm17299_vm9, %v6520_v62, %v6521_v46 }
 0x6d0   : > { %12954 = vmatprep.subr.bf16.mxu0 %v14357_v59  ;;  %v11325_v57 = vcombine.low %v6257_v56, %v6260_v47  ;;  %v11336_v26 = vrot.slane %v11264_v45, 10  ;;  %v6513_v16 = vrot.slane %v6511_v6, 4  ;;  %v6539_v56 = vrot.slane %v11277_v4, 6  ;;  %v14368_v39 = vld [vmem:[#allocation10 + $0x210] sm:$0xff]  }
 0x6d1   : > { %v11282_v46 = vld [vmem:[%s15767_s24 + $0x310] sm:$0xc] }
 0x6d2   : > { %v6512_v38 = vsel %vm17299_vm9, %v11336_v26, %v6511_v6  ;;  %v6515_v33 = vsel %vm17299_vm9, %v6513_v16, %v6514_v51  ;;  %v14367_v6 = vld [vmem:[#allocation10 + $0x208] sm:$0xff]   ;;  %v6541_v13 = vrot.slane %v6539_v56, 4  ;;  %v11280_v26 = vld [vmem:[%s15767_s24 + $0x2f4] sm:$0xf] }
 0x6d3   : > { %12955 = vmatpush3.bf16.msra.mxu0 %v14357_v59  ;;  %v11319_v59 = vrot.slane %v11261_v43, 10  ;;  %v11344_v31 = vcombine.low %v6512_v38, %v6515_v33  ;;  %v11339_v43 = vrot.slane %v11273_v54, 10  ;;  %v11279_v33 = vld [vmem:[%s15767_s24 + $0x2f0] sm:$0xc]  ;;  %v6546_v36 = vrot.slane %v11280_v26, 6 }
 0x6d4   : > { %12972 = vmatprep.subr.bf16.mxu0 %v14358_v42 }
 0x6d5   : > { %v6548_v4 = vrot.slane %v6546_v36, 4 }
 0x6d6   : > { %12957 = vmatmul.mubr.bf16.vlgmr.msra.gmra.mrb[48].mxu0 %v11321_v41  ;;  %v6525_v41 = vrot.slane %v11271_v35, 6 }
 0x6d7   : > { %12973 = vmatpush3.bf16.msra.mxu0 %v14358_v42  ;;  %12960 = vmatprep.mubr.bf16.mxu0 %v11322_v60  ;;  %v6271_v42 = vsel %vm17299_vm9, %v11319_v59, %v6270_v50  ;;  %v11270_v60 = vld [vmem:[%s15767_s24 + $0x290] sm:$0xc] }
 0x6d8   : > { %12974 = vmatprep.subr.bf16.mxu0 %v14359_v61  ;;  %v11327_v3 = vcombine.low %v6271_v42, %v6274_v14  ;;  %v11338_v15 = vrot.slane %v11270_v60, 10  ;;  %v6527_v23 = vrot.slane %v6525_v41, 4  ;;  %v11276_v50 = vld [vmem:[%s15767_s24 + $0x2d0] sm:$0xc] }
 0x6d9   : > { %v11340_v10 = vrot.slane %v11276_v50, 10  ;;  %v11285_v50 = vld [vmem:[%s15767_s24 + $0x330] sm:$0xc] }
 0x6da   : > { %v6526_v22 = vsel %vm17299_vm9, %v11338_v15, %v6525_v41  ;;  %v6529_v37 = vsel %vm17299_vm9, %v6527_v23, %v6528_v12  ;;  %v11341_v12 = vrot.slane %v11279_v33, 10 }
 0x6db   : > { %12975 = vmatpush3.bf16.msra.mxu0 %v14359_v61  ;;  %v11337_v61 = vrot.slane %v11267_v49, 10  ;;  %v11346_v45 = vcombine.low %v6526_v22, %v6529_v37 }
 0x6dc   : > { %12976 = vmatprep.subr.bf16.mxu0 %v14360_v18  ;;  %v6547_v22 = vsel %vm17299_vm9, %v11341_v12, %v6546_v36  ;;  %v11292_v36 = vld [vmem:[%s15767_s24 + $0x3f4] sm:$0xf] }
 0x6dd   : > { %v6519_v55 = vsel %vm17299_vm9, %v11337_v61, %v6518_v34 }
 0x6de   : > { %12961 = vmatmul.mubr.bf16.gmra.mrb[52].mxu0 %v11323_v63  ;;  %v11345_v53 = vcombine.low %v6519_v55, %v6522_v52  ;;  %v11286_v52 = vld [vmem:[%s15767_s24 + $0x334] sm:$0xf] }
 0x6df   : > { %12977 = vmatpush3.bf16.msra.mxu0 %v14360_v18  ;;  %12964 = vmatprep.mubr.bf16.mxu0 %v11324_v25  ;;  %v11274_v18 = vld [vmem:[%s15767_s24 + $0x2b4] sm:$0xf] }
 0x6e0   : > { %12978 = vmatprep.subr.bf16.mxu0 %v14361_v48  ;;  %v6532_v7 = vrot.slane %v11274_v18, 6 }
 0x6e2   : > { %v6534_v1 = vrot.slane %v6532_v7, 4  ;;  %v6533_v14 = vsel %vm17299_vm9, %v11339_v43, %v6532_v7  ;;  %v14370_v43 = vld [vmem:[#allocation10 + $0x220] sm:$0xff]  }
 0x6e3   : > { %12979 = vmatpush3.bf16.msra.mxu0 %v14361_v48 }
 0x6e4   : > { %12980 = vmatprep.subr.bf16.mxu0 %v14362_v17 }
 0x6e6   : > { %12965 = vmatmul.mubr.bf16.gmra.mrb[56].mxu0 %v11325_v57  ;;  %v6535_v57 = vrot.slane %v11275_v0, 6 }
 0x6e7   : > { %12981 = vmatpush3.bf16.msra.mxu0 %v14362_v17  ;;  %12968 = vmatprep.mubr.bf16.mxu0 %v11326_v28  ;;  %v11278_v17 = vld [vmem:[%s15767_s24 + $0x2d8] sm:$0x3] }
 0x6e8   : > { %12982 = vmatprep.subr.bf16.mxu0 %v14363_v9  ;;  %v6536_v38 = vsel %vm17299_vm9, %v6534_v1, %v6535_v57  ;;  %v11287_v1 = vld [vmem:[%s15767_s24 + $0x338] sm:$0x3] }
 0x6e9   : > { %v11347_v23 = vcombine.low %v6533_v14, %v6536_v38  ;;  %v6563_v14 = vrot.slane %v11287_v1, 6 }
 0x6eb   : > { %12983 = vmatpush3.bf16.msra.mxu0 %v14363_v9  ;;  %v13342_v21 = vpop.f32.mrb[16].mxu1  ;;  %v6542_v9 = vrot.slane %v11278_v17, 6  ;;  %v6560_v17 = vrot.slane %v11286_v52, 6  ;;  %v11296_v52 = vld [vmem:[%s15767_s24 + $0x418] sm:$0x3] }
 0x6ec   : > { %12984 = vmatprep.subr.bf16.mxu0 %v14364_v29  ;;  %v9879_v11 = vadd.f32 %v13342_v21, %v17667_v24  ;;  %v9791_v44 = vpop.f32.mrb[17].mxu1  ;;  %v11284_v21 = vld [vmem:[%s15767_s24 + $0x318] sm:$0x3] }
 0x6ed   : > { %v9877_v30 = vadd.f32 %v17667_v24, %v9791_v44  ;;  %v13343_v8 = vpop.f32.mrb[18].mxu1  ;;  %v6543_v61 = vsel %vm17299_vm9, %v6541_v13, %v6542_v9  ;;  %v11290_v13 = vld [vmem:[%s15767_s24 + $0x3d8] sm:$0x3] }
 0x6ee   : > { %12969 = vmatmul.mubr.bf16.gmra.mrb[60].mxu0 %v11327_v3  ;;  %v9895_v5 = vmax.f32 %v9879_v11, 0.0  ;;  %v9880_v63 = vadd.f32 %v13343_v8, %v17667_v24  ;;  %v9794_v25 = vpop.f32.mrb[19].mxu1  ;;  %v6540_v3 = vsel %vm17299_vm9, %v11340_v10, %v6539_v56  ;;  %v14369_v11 = vld [vmem:[#allocation10 + $0x218] sm:$0xff]   ;;  %v11288_v10 = vld [vmem:[%s15767_s24 + $0x3d0] sm:$0xc]  ;;  %v6804_v33 = vrot.slane %v11290_v13, 6 }
 0x6ef   : > { %12985 = vmatpush3.bf16.msra.mxu0 %v14364_v29  ;;  %12988 = vmatprep.mubr.bf16.mxu0 %v11344_v31  ;;  %v9893_v48 = vmax.f32 %v9877_v30, 0.0  ;;  %v9878_v32 = vadd.f32 %v17667_v24, %v9794_v25  ;;  %v6553_v31 = vrot.slane %v11283_v19, 6  ;;  %v11348_v44 = vcombine.low %v6540_v3, %v6543_v61  ;;  %v14371_v19 = vld [vmem:[#allocation10 + $0x228] sm:$0xff]   ;;  %v14374_v13 = vld [vmem:[#allocation15 + $0x80] sm:$0xff]  }
 0x6f0   : > { %12986 = vmatprep.subr.bf16.mxu0 %v14365_v58  ;;  %v9896_v47 = vmax.f32 %v9880_v63, 0.0  ;;  %v6556_v25 = vrot.slane %v11284_v21, 6 }
 0x6f1   : > { %v9894_v2 = vmax.f32 %v9878_v32, 0.0  ;;  %v6555_v63 = vrot.slane %v6553_v31, 4 }
 0x6f2   : > { %v17687_v40 = vpack.c.bf16 %v9896_v47, %v9895_v5  ;;  %v11342_v5 = vrot.slane %v11282_v46, 10 }
 0x6f3   : > { %12987 = vmatpush3.bf16.msra.mxu0 %v14365_v58  ;;  %v17689_v28 = vpack.c.bf16 %v9894_v2, %v9893_v48  ;;  %v13346_v59 = vpop.f32.mrb[20].mxu1  ;;  %v11281_v58 = vld [vmem:[%s15767_s24 + $0x2f8] sm:$0x3]  ;;  %v11289_v48 = vld [vmem:[%s15767_s24 + $0x3d4] sm:$0xf] }
 0x6f4   : > { %13004 = vmatprep.subr.bf16.mxu0 %v14366_v27  ;;  %v9883_v16 = vadd.f32 %v13346_v59, %v17667_v24  ;;  %v9807_v51 = vpop.f32.mrb[21].mxu1  ;;  %v6549_v30 = vrot.slane %v11281_v58, 6  ;;  %v6801_v57 = vrot.slane %v11289_v48, 6 }
 0x6f5   : > { %v9881_v35 = vadd.f32 %v17667_v24, %v9807_v51  ;;  %v13347_v42 = vpop.f32.mrb[22].mxu1 }
 0x6f6   : > { %12989 = vmatmul.mubr.bf16.vlgmr.msra.gmra.mrb[48].mxu0 %v11345_v53  ;;  %v9899_v49 = vmax.f32 %v9883_v16, 0.0  ;;  %v9884_v34 = vadd.f32 %v13347_v42, %v17667_v24  ;;  %v9810_v29 = vpop.f32.mrb[23].mxu1  ;;  %v6550_v47 = vsel %vm17299_vm9, %v6548_v4, %v6549_v30  ;;  %v11343_v16 = vrot.slane %v11285_v50, 10 }
 0x6f7   : > { %13005 = vmatpush3.bf16.msra.mxu0 %v14366_v27  ;;  %12992 = vmatprep.mubr.bf16.mxu0 %v11346_v45  ;;  %v9897_v41 = vmax.f32 %v9881_v35, 0.0  ;;  %v9882_v60 = vadd.f32 %v17667_v24, %v9810_v29  ;;  %v6557_v45 = vsel %vm17299_vm9, %v6555_v63, %v6556_v25  ;;  %v11349_v26 = vcombine.low %v6547_v22, %v6550_v47  ;;  %v11294_v25 = vld [vmem:[%s15767_s24 + $0x410] sm:$0xc] }
 0x6f8   : > { %13006 = vmatprep.subr.bf16.mxu0 %v14367_v6  ;;  %v9900_v62 = vmax.f32 %v9884_v34, 0.0  ;;  %v6562_v42 = vrot.slane %v6560_v17, 4  ;;  %v11360_v29 = vrot.slane %v11288_v10, 10  ;;  %v6803_v38 = vrot.slane %v6801_v57, 4 }
 0x6f9   : > { %v9898_v15 = vmax.f32 %v9882_v60, 0.0  ;;  %v6561_v58 = vsel %vm17299_vm9, %v11343_v16, %v6560_v17  ;;  %v6818_v50 = vrot.slane %v11296_v52, 6  ;;  %v11298_v17 = vld [vmem:[%s15767_s24 + $0x434] sm:$0xf]  ;;  %v14377_v52 = vld [vmem:[#allocation15 + $0x98] sm:$0xff]  }
 0x6fa   : > { %v17709_v18 = vpack.c.bf16 %v9900_v62, %v9899_v49  ;;  %v6564_v21 = vsel %vm17299_vm9, %v6562_v42, %v6563_v14  ;;  %v6802_v4 = vsel %vm17299_vm9, %v11360_v29, %v6801_v57  ;;  %v6805_v30 = vsel %vm17299_vm9, %v6803_v38, %v6804_v33  ;;  %v11297_v57 = vld [vmem:[%s15767_s24 + $0x430] sm:$0xc]  ;;  %v11304_v33 = vld [vmem:[%s15767_s24 + $0x474] sm:$0xf] }
 0x6fb   : > { %13007 = vmatpush3.bf16.msra.mxu0 %v14367_v6  ;;  %v17711_v8 = vpack.c.bf16 %v9898_v15, %v9897_v41  ;;  %v13350_v55 = vpop.f32.mrb[24].mxu1  ;;  %v6554_v6 = vsel %vm17299_vm9, %v11342_v5, %v6553_v31  ;;  %v11291_v15 = vld [vmem:[%s15767_s24 + $0x3f0] sm:$0xc] }
 0x6fc   : > { %13008 = vmatprep.subr.bf16.mxu0 %v14368_v39  ;;  %v9887_v54 = vadd.f32 %v13350_v55, %v17667_v24  ;;  %v9823_v7 = vpop.f32.mrb[25].mxu1  ;;  %v11350_v35 = vcombine.low %v6554_v6, %v6557_v45  ;;  %v11293_v55 = vld [vmem:[%s15767_s24 + $0x3f8] sm:$0x3]  ;;  %v11361_v48 = vrot.slane %v11291_v15, 10  ;;  %v6822_v6 = vrot.slane %v11298_v17, 6 }
 0x6fd   : > { %v9885_v32 = vadd.f32 %v17667_v24, %v9823_v7  ;;  %v13351_v27 = vpop.f32.mrb[26].mxu1  ;;  %v11351_v7 = vcombine.low %v6561_v58, %v6564_v21  ;;  %v6811_v22 = vrot.slane %v11293_v55, 6  ;;  %v14376_v21 = vld [vmem:[#allocation15 + $0x90] sm:$0xff]  }
 0x6fe   : > { %12993 = vmatmul.mubr.bf16.gmra.mrb[52].mxu0 %v11347_v23  ;;  %v9903_v37 = vmax.f32 %v9887_v54, 0.0  ;;  %v9888_v0 = vadd.f32 %v13351_v27, %v17667_v24  ;;  %v9826_v56 = vpop.f32.mrb[27].mxu1  ;;  %v6808_v23 = vrot.slane %v11292_v36, 6  ;;  %v6824_v42 = vrot.slane %v6822_v6, 4  ;;  %v14375_v36 = vld [vmem:[#allocation15 + $0x88] sm:$0xff]  }
 0x6ff   : > { %13009 = vmatpush3.bf16.msra.mxu0 %v14368_v39  ;;  %12996 = vmatprep.mubr.bf16.mxu0 %v11348_v44  ;;  %v9901_v2 = vmax.f32 %v9885_v32, 0.0  ;;  %v9886_v53 = vadd.f32 %v17667_v24, %v9826_v56  ;;  %v11295_v39 = vld [vmem:[%s15767_s24 + $0x414] sm:$0xf]  ;;  %v11362_v56 = vrot.slane %v11294_v25, 10  ;;  %v11306_v15 = vld [vmem:[%s15767_s24 + $0x490] sm:$0xc] }
 0x700   : > { %13010 = vmatprep.subr.bf16.mxu0 %v14369_v11  ;;  %v9904_v59 = vmax.f32 %v9888_v0, 0.0  ;;  %v14372_v44 = vld [vmem:[#allocation10 + $0x230] sm:$0xff]   ;;  %v6815_v5 = vrot.slane %v11295_v39, 6  ;;  %v6810_v27 = vrot.slane %v6808_v23, 4  ;;  %v14373_v0 = vld [vmem:[#allocation10 + $0x238] sm:$0xff]   ;;  %v11366_v55 = vrot.slane %v11306_v15, 10 }
 0x701   : > { %v9902_v9 = vmax.f32 %v9886_v53, 0.0  ;;  %v6809_v53 = vsel %vm17299_vm9, %v11361_v48, %v6808_v23  ;;  %v11308_v23 = vld [vmem:[%s15767_s24 + $0x498] sm:$0x3]  ;;  %v11310_v25 = vld [vmem:[%s15767_s24 + $0x4b4] sm:$0xf] }
 0x702   : > { %v17731_v51 = vpack.c.bf16 %v9904_v59, %v9903_v37  ;;  %v6817_v47 = vrot.slane %v6815_v5, 4  ;;  %v6816_v45 = vsel %vm17299_vm9, %v11362_v56, %v6815_v5  ;;  %v11299_v59 = vld [vmem:[%s15767_s24 + $0x438] sm:$0x3]  ;;  %v6850_v48 = vrot.slane %v11310_v25, 6  ;;  %v14378_v56 = vld [vmem:[#allocation15 + $0xa0] sm:$0xff]  }
 0x703   : > { %13011 = vmatpush3.bf16.msra.mxu0 %v14369_v11  ;;  %v17733_v49 = vpack.c.bf16 %v9902_v9, %v9901_v2  ;;  %v13354_v34 = vpop.f32.mrb[28].mxu1  ;;  %v11301_v2 = vld [vmem:[%s15767_s24 + $0x454] sm:$0xf]  ;;  %v11300_v9 = vld [vmem:[%s15767_s24 + $0x450] sm:$0xc]  ;;  %v6825_v14 = vrot.slane %v11299_v59, 6 }
 0x704   : > { %13012 = vmatprep.subr.bf16.mxu0 %v14370_v43  ;;  %v9891_v41 = vadd.f32 %v13354_v34, %v17667_v24  ;;  %v9839_v60 = vpop.f32.mrb[29].mxu1  ;;  %v6819_v1 = vsel %vm17299_vm9, %v6817_v47, %v6818_v50  ;;  %v6829_v10 = vrot.slane %v11301_v2, 6  ;;  %v11364_v34 = vrot.slane %v11300_v9, 10  ;;  %v14381_v59 = vld [vmem:[#allocation15 + $0xb8] sm:$0xff]  }
 0x705   : > { %v9889_v3 = vadd.f32 %v17667_v24, %v9839_v60  ;;  %v13355_v61 = vpop.f32.mrb[30].mxu1  ;;  %v6826_v39 = vsel %vm17299_vm9, %v6824_v42, %v6825_v14  ;;  %v6852_v2 = vrot.slane %v6850_v48, 4  ;;  %v14385_v25 = vld [vmem:[#allocation15 + $0xd8] sm:$0xff]  }
 0x706   : > { %12997 = vmatmul.mubr.bf16.gmra.mrb[56].mxu0 %v11349_v26  ;;  %v9907_v31 = vmax.f32 %v9891_v41, 0.0  ;;  %v9892_v62 = vadd.f32 %v13355_v61, %v17667_v24  ;;  %v9842_v46 = vpop.f32.mrb[31].mxu1  ;;  %v11302_v26 = vld [vmem:[%s15767_s24 + $0x458] sm:$0x3]  ;;  %v6831_v29 = vrot.slane %v6829_v10, 4  ;;  %v6830_v61 = vsel %vm17299_vm9, %v11364_v34, %v6829_v10  ;;  %v14382_v10 = vld [vmem:[#allocation15 + $0xc0] sm:$0xff]  }
 0x707   : > { %13013 = vmatpush3.bf16.msra.mxu0 %v14370_v43  ;;  %13000 = vmatprep.mubr.bf16.mxu0 %v11350_v35  ;;  %v9905_v12 = vmax.f32 %v9889_v3, 0.0  ;;  %v9890_v11 = vadd.f32 %v17667_v24, %v9842_v46  ;;  %v11368_v24 = vcombine.low %v6802_v4, %v6805_v30  ;;  %v6812_v43 = vsel %vm17299_vm9, %v6810_v27, %v6811_v22  ;;  %v11307_v41 = vld [vmem:[%s15767_s24 + $0x494] sm:$0xf]  ;;  %v11309_v22 = vld [vmem:[%s15767_s24 + $0x4b0] sm:$0xc] }
 0x708   : > { %13014 = vmatprep.subr.bf16.mxu0 %v14371_v19  ;;  %v9908_v63 = vmax.f32 %v9892_v62, 0.0  ;;  %v11369_v16 = vcombine.low %v6809_v53, %v6812_v43  ;;  %v11363_v35 = vrot.slane %v11297_v57, 10  ;;  %v6832_v38 = vrot.slane %v11302_v26, 6  ;;  %v11305_v62 = vld [vmem:[%s15767_s24 + $0x478] sm:$0x3]  ;;  %v14379_v43 = vld [vmem:[#allocation15 + $0xa8] sm:$0xff]  }
 0x709   : > { %v9906_v54 = vmax.f32 %v9890_v11, 0.0  ;;  %v6836_v3 = vrot.slane %v11304_v33, 6  ;;  %v6843_v46 = vrot.slane %v11307_v41, 6  ;;  %v6839_v30 = vrot.slane %v11305_v62, 6  ;;  %v14380_v57 = vld [vmem:[#allocation15 + $0xb0] sm:$0xff]  }
 0x70a   : > { %v17753_v32 = vpack.c.bf16 %v9908_v63, %v9907_v31  ;;  %v6823_v60 = vsel %vm17299_vm9, %v11363_v35, %v6822_v6  ;;  %v6833_v58 = vsel %vm17299_vm9, %v6831_v29, %v6832_v38  ;;  %v11303_v31 = vld [vmem:[%s15767_s24 + $0x470] sm:$0xc]  ;;  %v6846_v63 = vrot.slane %v11308_v23, 6 }
 0x70b   : > { %13015 = vmatpush3.bf16.msra.mxu0 %v14371_v19  ;;  %v17755_v37 = vpack.c.bf16 %v9906_v54, %v9905_v12  ;;  %v11370_v19 = vcombine.low %v6816_v45, %v6819_v1  ;;  %v11371_v12 = vcombine.low %v6823_v60, %v6826_v39  ;;  %v11372_v11 = vcombine.low %v6830_v61, %v6833_v58  ;;  %v14383_v61 = vld [vmem:[#allocation15 + $0xc8] sm:$0xff]  }
 0x70c   : > { %13016 = vmatprep.subr.bf16.mxu0 %v14372_v44  ;;  %v6838_v4 = vrot.slane %v6836_v3, 4  ;;  %v6845_v5 = vrot.slane %v6843_v46, 4  ;;  %v11367_v17 = vrot.slane %v11309_v22, 10 }
 0x70e   : > { %13001 = vmatmul.mubr.bf16.gmra.mrb[60].mxu0 %v11351_v7  ;;  %v6840_v7 = vsel %vm17299_vm9, %v6838_v4, %v6839_v30  ;;  %v6847_v27 = vsel %vm17299_vm9, %v6845_v5, %v6846_v63  ;;  %v6851_v6 = vsel %vm17299_vm9, %v11367_v17, %v6850_v48 }
 0x70f   : > { %13017 = vmatpush3.bf16.msra.mxu0 %v14372_v44  ;;  %13020 = vmatprep.mubr.bf16.mxu0 %v11368_v24  ;;  %v11365_v44 = vrot.slane %v11303_v31, 10  ;;  %v6844_v24 = vsel %vm17299_vm9, %v11366_v55, %v6843_v46 }
 0x710   : > { %13018 = vmatprep.subr.bf16.mxu0 %v14373_v0  ;;  %v11374_v50 = vcombine.low %v6844_v24, %v6847_v27 }
 0x711   : > { %v6837_v54 = vsel %vm17299_vm9, %v11365_v44, %v6836_v3 }
 0x712   : > { %v11373_v47 = vcombine.low %v6837_v54, %v6840_v7 }
 0x713   : > { %13019 = vmatpush3.bf16.msra.mxu0 %v14373_v0  ;;  %v11311_v0 = vld [vmem:[%s15767_s24 + $0x4b8] sm:$0x3]  ;;  %s11625_s24 = sshll.u32 %s18123_s17, 5  ;;  %s14652_s17 = scalar_lea.vmem %s17885_s10, 1024 }
 0x714   : > { %13036 = vmatprep.subr.bf16.mxu0 %v14374_v13  ;;  %v6853_v53 = vrot.slane %v11311_v0, 6  ;;  %v14386_v0 = vld [vmem:[#allocation15 + $0xe0] sm:$0xff]   ;;  %s10426_s6 = sadd.s32 %s11625_s24, %s11624_s20  ;;  %p14653_p3 = scmp.ne.s32.totalorder %s17885_s10, %s14652_s17 }
 0x715   : > { %s11626_s3 = sshll.u32 %s10426_s6, 6  ;;  %s14806_s20 = smov [#allocation19]  }
 0x716   : > { %13021 = vmatmul.mubr.bf16.vlgmr.msra.gmra.mrb[48].mxu0 %v11369_v16  ;;  %v6854_v45 = vsel %vm17299_vm9, %v6852_v2, %v6853_v53  ;;  %s17883_s13 = scalar_lea.hbm %s18125_s18, %s11626_s3  ;;  %p14654_p4 = pnand %p14653_p3, %p18126_p11 }
 0x717   : > { %13024 = vmatprep.mubr.bf16.mxu0 %v11370_v19  ;;  %13037 = vmatpush3.bf16.msra.mxu0 %v14374_v13  ;;  %v11375_v1 = vcombine.low %v6851_v6, %v6854_v45  ;;  %v17803_v13 = vld [vmem:[%s18120_s2] ss:$0 sm:$0xff]  ;;  %v14387_v6 = vld [vmem:[#allocation15 + $0xe8] sm:$0xff]   ;;  %s14656_s24 = sshll.u32 %s14806_s20, 4  ;;  %s14657_s24 = int_to_ptr.vmem [resolvable:$false] %s14656_s24 }
 0x718   : > { %13038 = vmatprep.subr.bf16.mxu0 %v14375_v36  ;;  %p14655_p10 = pneg %p14654_p4  ;;  %s14658_s6 = scalar_lea.vmem %s14657_s24, 2048 }
 0x719   : > { %p14659_p7 = scmp.lt.s32.totalorder %s17885_s10, %s14657_s24  ;;  %p14660_p1 = scmp.lt.s32.totalorder %s14658_s6, %s14652_s17 }
 0x71b   : > { %13039 = vmatpush3.bf16.msra.mxu0 %v14375_v36  ;;  %p14661_p5 = por %p14660_p1, %p14659_p7 }
 0x71c   : > { %13040 = vmatprep.subr.bf16.mxu0 %v14376_v21 }
 0x71d   : > { %p14662_p2 = pnand %p14661_p5, %p14655_p10 }
 0x71e   : > { %13025 = vmatmul.mubr.bf16.gmra.mrb[52].mxu0 %v11371_v12  ;;  %v14384_v12 = vld [vmem:[#allocation15 + $0xd0] sm:$0xff]  }
 0x71f   : > { %13028 = vmatprep.mubr.bf16.mxu0 %v11372_v11  ;;  %13041 = vmatpush3.bf16.msra.mxu0 %v14376_v21 }
 0x720   : > { %13042 = vmatprep.subr.bf16.mxu0 %v14377_v52 }
 0x723   : > { %13043 = vmatpush3.bf16.msra.mxu0 %v14377_v52 }
 0x724   : > { %13044 = vmatprep.subr.bf16.mxu0 %v14378_v56 }
 0x726   : > { %13029 = vmatmul.mubr.bf16.gmra.mrb[56].mxu0 %v11373_v47 }
 0x727   : > { %13032 = vmatprep.mubr.bf16.mxu0 %v11374_v50  ;;  %13045 = vmatpush3.bf16.msra.mxu0 %v14378_v56 }
 0x728   : > { %13046 = vmatprep.subr.bf16.mxu0 %v14379_v43 }
 0x72b   : > { %13047 = vmatpush3.bf16.msra.mxu0 %v14379_v43 }
 0x72c   : > { %13048 = vmatprep.subr.bf16.mxu0 %v14380_v57 }
 0x72e   : > { %13033 = vmatmul.mubr.bf16.gmra.mrb[60].mxu0 %v11375_v1 }
 0x72f   : > { %13049 = vmatpush3.bf16.msra.mxu0 %v14380_v57 }
 0x730   : > { %13050 = vmatprep.subr.bf16.mxu0 %v14381_v59 }
 0x733   : > { %13051 = vmatpush3.bf16.msra.mxu0 %v14381_v59 }
 0x734   : > { %13356 = vmatprep.subr.bf16.mxu0 %v14382_v10 }
 0x7e9   : > { %v13022_v20 = vpop.f32.mrb[48].mxu0 }
 0x7ea   : > { %v7074_v9 = vadd.f32 %v13022_v20, %v17803_v13  ;;  %v6986_v26 = vpop.f32.mrb[49].mxu0 }
 0x7eb   : > { %v7072_v16 = vadd.f32 %v17803_v13, %v6986_v26  ;;  %v13023_v19 = vpop.f32.mrb[50].mxu0  ;;  %v14388_v26 = vld [vmem:[#allocation15 + $0xf0] sm:$0xff]  }
 0x7ec   : > { %v7075_v35 = vadd.f32 %v13023_v19, %v17803_v13  ;;  %v6989_v42 = vpop.f32.mrb[51].mxu0  ;;  %v7090_v34 = vmax.f32 %v7074_v9, 0.0 }
 0x7ed   : > { %v7073_v14 = vadd.f32 %v17803_v13, %v6989_v42  ;;  %v7088_v38 = vmax.f32 %v7072_v16, 0.0 }
 0x7ee   : > { %v7091_v29 = vmax.f32 %v7075_v35, 0.0 }
 0x7ef   : > { %v7089_v33 = vmax.f32 %v7073_v14, 0.0  ;;  %v14389_v14 = vld [vmem:[#allocation15 + $0xf8] sm:$0xff]  }
 0x7f0   : > { %v7105_v36 = vpack.c.bf16 %v7091_v29, %v7090_v34  ;;  %v14390_v34 = vld [vmem:[#allocation18] sm:$0xff]   ;;  %v14392_v29 = vld [vmem:[#allocation18 + $0x10] sm:$0xff]  }
 0x7f1   : > { %v7104_v41 = vpack.c.bf16 %v7089_v33, %v7088_v38  ;;  %v13026_v60 = vpop.f32.mrb[52].mxu0  ;;  %v14393_v38 = vld [vmem:[#allocation18 + $0x18] sm:$0xff]  }
 0x7f2   : > { %v7078_v39 = vadd.f32 %v13026_v60, %v17803_v13  ;;  %v7002_v3 = vpop.f32.mrb[53].mxu0 }
 0x7f3   : > { %v7076_v58 = vadd.f32 %v17803_v13, %v7002_v3  ;;  %v13027_v31 = vpop.f32.mrb[54].mxu0  ;;  %13052 = vmatprep.mubr.bf16.mxu0 %v7104_v41 }
 0x7f4   : > { %v7079_v62 = vadd.f32 %v13027_v31, %v17803_v13  ;;  %v7005_v46 = vpop.f32.mrb[55].mxu0  ;;  %13053 = vmatmul.mubr.bf16.vlgmr.msra.gmra.mrb[32].mxu0 %v7105_v36  ;;  %v7094_v15 = vmax.f32 %v7078_v39, 0.0 }
 0x7f5   : > { %v7077_v21 = vadd.f32 %v17803_v13, %v7005_v46  ;;  %13357 = vmatpush3.bf16.msra.mxu0 %v14382_v10  ;;  %v7092_v11 = vmax.f32 %v7076_v58, 0.0 }
 0x7f6   : > { %v7095_v23 = vmax.f32 %v7079_v62, 0.0  ;;  %13358 = vmatprep.subr.bf16.mxu0 %v14383_v61 }
 0x7f7   : > { %v7093_v44 = vmax.f32 %v7077_v21, 0.0 }
 0x7f8   : > { %v7107_v4 = vpack.c.bf16 %v7095_v23, %v7094_v15 }
 0x7f9   : > { %v7106_v30 = vpack.c.bf16 %v7093_v44, %v7092_v11  ;;  %v13030_v55 = vpop.f32.mrb[56].mxu0  ;;  %13359 = vmatpush3.bf16.msra.mxu0 %v14383_v61 }
 0x7fa   : > { %v7082_v5 = vadd.f32 %v13030_v55, %v17803_v13  ;;  %v7018_v63 = vpop.f32.mrb[57].mxu0  ;;  %13360 = vmatprep.subr.bf16.mxu0 %v14384_v12 }
 0x7fb   : > { %v7080_v52 = vadd.f32 %v17803_v13, %v7018_v63  ;;  %v13031_v54 = vpop.f32.mrb[58].mxu0  ;;  %13056 = vmatprep.mubr.bf16.mxu0 %v7106_v30 }
 0x7fc   : > { %v7083_v7 = vadd.f32 %v13031_v54, %v17803_v13  ;;  %v7021_v48 = vpop.f32.mrb[59].mxu0  ;;  %13057 = vmatmul.mubr.bf16.gmra.mrb[36].mxu0 %v7107_v4  ;;  %v7098_v27 = vmax.f32 %v7082_v5, 0.0 }
 0x7fd   : > { %v7081_v24 = vadd.f32 %v17803_v13, %v7021_v48  ;;  %13361 = vmatpush3.bf16.msra.mxu0 %v14384_v12  ;;  %v7096_v56 = vmax.f32 %v7080_v52, 0.0 }
 0x7fe   : > { %v7099_v22 = vmax.f32 %v7083_v7, 0.0  ;;  %13362 = vmatprep.subr.bf16.mxu0 %v14385_v25 }
 0x7ff   : > { %v7097_v47 = vmax.f32 %v7081_v24, 0.0 }
 0x800   : > { %v7109_v50 = vpack.c.bf16 %v7099_v22, %v7098_v27 }
 0x801   : > { %v7108_v17 = vpack.c.bf16 %v7097_v47, %v7096_v56  ;;  %v13034_v2 = vpop.f32.mrb[60].mxu0  ;;  %13363 = vmatpush3.bf16.msra.mxu0 %v14385_v25 }
 0x802   : > { %v7086_v53 = vadd.f32 %v13034_v2, %v17803_v13  ;;  %v7034_v43 = vpop.f32.mrb[61].mxu0  ;;  %13364 = vmatprep.subr.bf16.mxu0 %v14386_v0 }
 0x803   : > { %v7084_v45 = vadd.f32 %v17803_v13, %v7034_v43  ;;  %v13035_v1 = vpop.f32.mrb[62].mxu0  ;;  %13060 = vmatprep.mubr.bf16.mxu0 %v7108_v17 }
 0x804   : > { %v7087_v57 = vadd.f32 %v13035_v1, %v17803_v13  ;;  %v7037_v59 = vpop.f32.mrb[63].mxu0  ;;  %13061 = vmatmul.mubr.bf16.gmra.mrb[40].mxu0 %v7109_v50  ;;  %v7102_v20 = vmax.f32 %v7086_v53, 0.0 }
 0x805   : > { %v7085_v10 = vadd.f32 %v17803_v13, %v7037_v59  ;;  %13365 = vmatpush3.bf16.msra.mxu0 %v14386_v0  ;;  %v7100_v16 = vmax.f32 %v7084_v45, 0.0  ;;  %v14391_v13 = vld [vmem:[#allocation18 + $0x8] sm:$0xff]  }
 0x806   : > { %v7103_v9 = vmax.f32 %v7087_v57, 0.0  ;;  %13366 = vmatprep.subr.bf16.mxu0 %v14387_v6 }
 0x807   : > { %v7101_v19 = vmax.f32 %v7085_v10, 0.0 }
 0x808   : > { %v7111_v35 = vpack.c.bf16 %v7103_v9, %v7102_v20 }
 0x809   : > { %v7110_v42 = vpack.c.bf16 %v7101_v19, %v7100_v16  ;;  %13367 = vmatpush3.bf16.msra.mxu0 %v14387_v6 }
 0x80a   : > { %13368 = vmatprep.subr.bf16.mxu0 %v14388_v26 }
 0x80b   : > { %13064 = vmatprep.mubr.bf16.mxu0 %v7110_v42 }
 0x80c   : > { %13065 = vmatmul.mubr.bf16.gmra.mrb[44].mxu0 %v7111_v35 }
 0x80d   : > { %13369 = vmatpush3.bf16.msra.mxu0 %v14388_v26  ;;  %13372 = vmatprep.mubr.bf16.mxu0 %v17689_v28  ;;  %v14394_v28 = vld [vmem:[#allocation18 + $0x20] sm:$0xff]  }
 0x80e   : > { %13370 = vmatprep.subr.bf16.mxu0 %v14389_v14 }
 0x811   : > { %13371 = vmatpush3.bf16.msra.mxu0 %v14389_v14 }
 0x812   : > { %13388 = vmatprep.subr.bf16.mxu0 %v14390_v34 }
 0x814   : > { %13373 = vmatmul.mubr.bf16.vlgmr.msra.gmra.mrb[32].mxu0 %v17687_v40  ;;  %v14395_v40 = vld [vmem:[#allocation18 + $0x28] sm:$0xff]  }
 0x815   : > { %13376 = vmatprep.mubr.bf16.mxu0 %v17711_v8  ;;  %13389 = vmatpush3.bf16.msra.mxu0 %v14390_v34  ;;  %v14396_v8 = vld [vmem:[#allocation18 + $0x30] sm:$0xff]  }
 0x816   : > { %13390 = vmatprep.subr.bf16.mxu0 %v14391_v13 }
 0x819   : > { %13391 = vmatpush3.bf16.msra.mxu0 %v14391_v13 }
 0x81a   : > { %13392 = vmatprep.subr.bf16.mxu0 %v14392_v29 }
 0x81c   : > { %13377 = vmatmul.mubr.bf16.gmra.mrb[36].mxu0 %v17709_v18  ;;  %v14397_v18 = vld [vmem:[#allocation18 + $0x38] sm:$0xff]  }
 0x81d   : > { %13380 = vmatprep.mubr.bf16.mxu0 %v17733_v49  ;;  %13393 = vmatpush3.bf16.msra.mxu0 %v14392_v29  ;;  %v17829_v49 = vld [vmem:[#allocation3] ss:$0 sm:$0xff] }
 0x81e   : > { %13394 = vmatprep.subr.bf16.mxu0 %v14393_v38 }
 0x821   : > { %13395 = vmatpush3.bf16.msra.mxu0 %v14393_v38 }
 0x822   : > { %13396 = vmatprep.subr.bf16.mxu0 %v14394_v28 }
 0x824   : > { %13381 = vmatmul.mubr.bf16.gmra.mrb[40].mxu0 %v17731_v51  ;;  %v17834_v51 = vld [vmem:[%s18121_s1] ss:$0 sm:$0xff] }
 0x825   : > { %13384 = vmatprep.mubr.bf16.mxu0 %v17755_v37  ;;  %13397 = vmatpush3.bf16.msra.mxu0 %v14394_v28 }
 0x826   : > { %13398 = vmatprep.subr.bf16.mxu0 %v14395_v40 }
 0x829   : > { %13399 = vmatpush3.bf16.msra.mxu0 %v14395_v40 }
 0x82a   : > { %13400 = vmatprep.subr.bf16.mxu0 %v14396_v8 }
 0x82c   : > { %13385 = vmatmul.mubr.bf16.gmra.mrb[44].mxu0 %v17753_v32 }
 0x82d   : > { %13401 = vmatpush3.bf16.msra.mxu0 %v14396_v8 }
 0x82e   : > { %13402 = vmatprep.subr.bf16.mxu0 %v14397_v18 }
 0x831   : > { %13403 = vmatpush3.bf16.msra.mxu0 %v14397_v18 }
 0x8e7   : > { %v13374_v33 = vpop.f32.mrb[32].mxu0 }
 0x8e8   : > { %v10104_v37 = vadd.f32 %v13374_v33, %v17829_v49  ;;  %v10016_v32 = vpop.f32.mrb[33].mxu0 }
 0x8e9   : > { %v10102_v36 = vadd.f32 %v17829_v49, %v10016_v32  ;;  %v13375_v41 = vpop.f32.mrb[34].mxu0 }
 0x8ea   : > { %v10127_v60 = vadd.f32 %v17834_v51, %v10104_v37  ;;  %v10105_v39 = vadd.f32 %v13375_v41, %v17829_v49  ;;  %v10019_v3 = vpop.f32.mrb[35].mxu0 }
 0x8eb   : > { %v10125_v61 = vadd.f32 %v17834_v51, %v10102_v36  ;;  %v10103_v58 = vadd.f32 %v17829_v49, %v10019_v3 }
 0x8ec   : > { %v10128_v31 = vadd.f32 %v17834_v51, %v10105_v39  ;;  %v10143_v46 = vmax.f32 %v10127_v60, 0.0 }
 0x8ed   : > { %v10126_v62 = vadd.f32 %v17834_v51, %v10103_v58  ;;  %v10141_v15 = vmax.f32 %v10125_v61, 0.0 }
 0x8ee   : > { %v10144_v21 = vmax.f32 %v10128_v31, 0.0 }
 0x8ef   : > { %v10142_v23 = vmax.f32 %v10126_v62, 0.0  ;;  %v13378_v12 = vpop.f32.mrb[36].mxu0 }
 0x8f0   : > { %v10158_v11 = vpack.c.bf16 %v10144_v21, %v10143_v46  ;;  %v10108_v44 = vadd.f32 %v13378_v12, %v17829_v49  ;;  %v10032_v4 = vpop.f32.mrb[37].mxu0 }
 0x8f1   : > { %v10106_v30 = vadd.f32 %v17829_v49, %v10032_v4  ;;  %v13379_v55 = vpop.f32.mrb[38].mxu0  ;;  %v10157_v5 = vpack.c.bf16 %v10142_v23, %v10141_v15 }
 0x8f2   : > { %v10131_v63 = vadd.f32 %v17834_v51, %v10108_v44  ;;  %v10109_v25 = vadd.f32 %v13379_v55, %v17829_v49  ;;  %v10035_v52 = vpop.f32.mrb[39].mxu0 }
 0x8f3   : > { %v10129_v54 = vadd.f32 %v17834_v51, %v10106_v30  ;;  %v10107_v7 = vadd.f32 %v17829_v49, %v10035_v52  ;;  %13404 = vmatprep.mubr.bf16.mxu0 %v10157_v5 }
 0x8f4   : > { %v10132_v48 = vadd.f32 %v17834_v51, %v10109_v25  ;;  %13405 = vmatmul.mubr.bf16.vlgmr.msra.gmra.mrb[64].mxu0 %v10158_v11  ;;  %v10147_v27 = vmax.f32 %v10131_v63, 0.0 }
 0x8f5   : > { %v10130_v24 = vadd.f32 %v17834_v51, %v10107_v7  ;;  %v10145_v0 = vmax.f32 %v10129_v54, 0.0 }
 0x8f6   : > { %v10148_v22 = vmax.f32 %v10132_v48, 0.0 }
 0x8f7   : > { %v10146_v56 = vmax.f32 %v10130_v24, 0.0  ;;  %v13382_v47 = vpop.f32.mrb[40].mxu0 }
 0x8f8   : > { %v10112_v50 = vadd.f32 %v13382_v47, %v17829_v49  ;;  %v10048_v17 = vpop.f32.mrb[41].mxu0  ;;  %v10160_v2 = vpack.c.bf16 %v10148_v22, %v10147_v27 }
 0x8f9   : > { %v10110_v53 = vadd.f32 %v17829_v49, %v10048_v17  ;;  %v13383_v43 = vpop.f32.mrb[42].mxu0  ;;  %v10159_v6 = vpack.c.bf16 %v10146_v56, %v10145_v0 }
 0x8fa   : > { %v10135_v45 = vadd.f32 %v17834_v51, %v10112_v50  ;;  %v10113_v1 = vadd.f32 %v13383_v43, %v17829_v49  ;;  %v10051_v57 = vpop.f32.mrb[43].mxu0 }
 0x8fb   : > { %v10133_v59 = vadd.f32 %v17834_v51, %v10110_v53  ;;  %v10111_v10 = vadd.f32 %v17829_v49, %v10051_v57  ;;  %13408 = vmatprep.mubr.bf16.mxu0 %v10159_v6 }
 0x8fc   : > { %v10136_v20 = vadd.f32 %v17834_v51, %v10113_v1  ;;  %13409 = vmatmul.mubr.bf16.gmra.mrb[68].mxu0 %v10160_v2  ;;  %v10151_v26 = vmax.f32 %v10135_v45, 0.0 }
 0x8fd   : > { %v10134_v9 = vadd.f32 %v17834_v51, %v10111_v10  ;;  %v10149_v19 = vmax.f32 %v10133_v59, 0.0 }
 0x8fe   : > { %v10152_v16 = vmax.f32 %v10136_v20, 0.0 }
 0x8ff   : > { %v10150_v35 = vmax.f32 %v10134_v9, 0.0  ;;  %v13386_v42 = vpop.f32.mrb[44].mxu0 }
 0x900   : > { %v10116_v14 = vadd.f32 %v13386_v42, %v17829_v49  ;;  %v10064_v34 = vpop.f32.mrb[45].mxu0  ;;  %v10162_v13 = vpack.c.bf16 %v10152_v16, %v10151_v26 }
 0x901   : > { %v10114_v29 = vadd.f32 %v17829_v49, %v10064_v34  ;;  %v13387_v38 = vpop.f32.mrb[46].mxu0  ;;  %v10161_v28 = vpack.c.bf16 %v10150_v35, %v10149_v19 }
 0x902   : > { %v10139_v40 = vadd.f32 %v17834_v51, %v10116_v14  ;;  %v10117_v8 = vadd.f32 %v13387_v38, %v17829_v49  ;;  %v10067_v18 = vpop.f32.mrb[47].mxu0 }
 0x903   : > { %v10137_v33 = vadd.f32 %v17834_v51, %v10114_v29  ;;  %v10115_v37 = vadd.f32 %v17829_v49, %v10067_v18  ;;  %13412 = vmatprep.mubr.bf16.mxu0 %v10161_v28  ;;  %v11598_v49 = vld [vmem:[%s18122_s16] ss:$0 sm:$0xff]  ;;  %s17891_s16 = scalar_lea.sflag [#allocation6], %s667_s5 }
 0x904   : > { %v10140_v32 = vadd.f32 %v17834_v51, %v10117_v8  ;;  %13413 = vmatmul.mubr.bf16.gmra.mrb[72].mxu0 %v10162_v13  ;;  %v10155_v41 = vmax.f32 %v10139_v40, 0.0 }
 0x905   : > { %v10138_v36 = vadd.f32 %v17834_v51, %v10115_v37  ;;  %v10153_v39 = vmax.f32 %v10137_v33, 0.0 }
 0x906   : > { %v10156_v60 = vmax.f32 %v10140_v32, 0.0 }
 0x907   : > { %v10154_v3 = vmax.f32 %v10138_v36, 0.0 }
 0x908   : > { %v10164_v61 = vpack.c.bf16 %v10156_v60, %v10155_v41 }
 0x909   : > { %v10163_v58 = vpack.c.bf16 %v10154_v3, %v10153_v39 }
 0x90b   : > { %13416 = vmatprep.mubr.bf16.mxu0 %v10163_v58 }
 0x90c   : > { %13417 = vmatmul.mubr.bf16.gmra.mrb[76].mxu0 %v10164_v61 }
 0x9c7   : > { %v13406_v31 = vpop.f32.mrb[64].mxu0 }
 0x9c8   : > { %v10270_v62 = vpop.f32.mrb[65].mxu0  ;;  %v10279_v21 = vadd.f32 %v13406_v31, %v11598_v49 }
 0x9c9   : > { %v13407_v46 = vpop.f32.mrb[66].mxu0  ;;  %v10271_v23 = vadd.f32 %v11598_v49, %v10270_v62 }
 0x9ca   : > { %v10282_v15 = vadd.f32 %v13407_v46, %v11598_v49  ;;  %v10273_v51 = vpop.f32.mrb[67].mxu0 }
 0x9cb   : > { %v10274_v12 = vadd.f32 %v11598_v49, %v10273_v51 }
 0x9cc   : > { %v11724_v11 = vpack.c.bf16 %v10282_v15, %v10279_v21 }
 0x9cd   : > { %v11719_v44 = vpack.c.bf16 %v10274_v12, %v10271_v23 }
 0x9ce   : > { %11771 = vst [vmem:[%s15285_s28 + $0x8] sm:$0xff] %v11724_v11  }
 0x9cf   : > { %11720 = vst [vmem:[%s15285_s28] sm:$0xff] %v11719_v44   ;;  %v13410_v4 = vpop.f32.mrb[68].mxu0 }
 0x9d0   : > { %v10286_v30 = vpop.f32.mrb[69].mxu0  ;;  %v10295_v5 = vadd.f32 %v13410_v4, %v11598_v49 }
 0x9d1   : > { %v13411_v55 = vpop.f32.mrb[70].mxu0  ;;  %v10287_v52 = vadd.f32 %v11598_v49, %v10286_v30 }
 0x9d2   : > { %v10298_v63 = vadd.f32 %v13411_v55, %v11598_v49  ;;  %v10289_v25 = vpop.f32.mrb[71].mxu0 }
 0x9d3   : > { %v10290_v54 = vadd.f32 %v11598_v49, %v10289_v25 }
 0x9d4   : > { %v11734_v7 = vpack.c.bf16 %v10298_v63, %v10295_v5 }
 0x9d5   : > { %v11729_v48 = vpack.c.bf16 %v10290_v54, %v10287_v52 }
 0x9d6   : > { %11773 = vst [vmem:[%s15285_s28 + $0x18] sm:$0xff] %v11734_v7  }
 0x9d7   : > { %11772 = vst [vmem:[%s15285_s28 + $0x10] sm:$0xff] %v11729_v48   ;;  %v13414_v24 = vpop.f32.mrb[72].mxu0 }
 0x9d8   : > { %v10302_v27 = vpop.f32.mrb[73].mxu0  ;;  %v10311_v0 = vadd.f32 %v13414_v24, %v11598_v49 }
 0x9d9   : > { %v13415_v22 = vpop.f32.mrb[74].mxu0  ;;  %v10303_v50 = vadd.f32 %v11598_v49, %v10302_v27 }
 0x9da   : > { %v10314_v56 = vadd.f32 %v13415_v22, %v11598_v49  ;;  %v10305_v47 = vpop.f32.mrb[75].mxu0 }
 0x9db   : > { %v10306_v17 = vadd.f32 %v11598_v49, %v10305_v47 }
 0x9dc   : > { %v11744_v2 = vpack.c.bf16 %v10314_v56, %v10311_v0 }
 0x9dd   : > { %v11739_v53 = vpack.c.bf16 %v10306_v17, %v10303_v50 }
 0x9de   : > { %11775 = vst [vmem:[%s15285_s28 + $0x28] sm:$0xff] %v11744_v2  }
 0x9df   : > { %11774 = vst [vmem:[%s15285_s28 + $0x20] sm:$0xff] %v11739_v53   ;;  %v13418_v43 = vpop.f32.mrb[76].mxu0 }
 0x9e0   : > { %v10318_v6 = vpop.f32.mrb[77].mxu0  ;;  %v10327_v1 = vadd.f32 %v13418_v43, %v11598_v49 }
 0x9e1   : > { %v13419_v45 = vpop.f32.mrb[78].mxu0  ;;  %v10319_v10 = vadd.f32 %v11598_v49, %v10318_v6 }
 0x9e2   : > { %v10330_v57 = vadd.f32 %v13419_v45, %v11598_v49  ;;  %v10321_v59 = vpop.f32.mrb[79].mxu0 }
 0x9e3   : > { %v10322_v20 = vadd.f32 %v11598_v49, %v10321_v59 }
 0x9e4   : > { %v11754_v9 = vpack.c.bf16 %v10330_v57, %v10327_v1 }
 0x9e5   : > { %v11749_v26 = vpack.c.bf16 %v10322_v20, %v10319_v10 }
 0x9e6   : > { %11777 = vst [vmem:[%s15285_s28 + $0x38] sm:$0xff] %v11754_v9  }
 0x9e7   : > { %11776 = vst [vmem:[%s15285_s28 + $0x30] sm:$0xff] %v11749_v26  }
 0x9e8   : > { %14665 = shalt.err (!%p14662_p2)
}
 0x9e9   : > { %s14666_s5 = scalar_lea.hbm %s17883_s13, 1024  ;;  %s14670_s3 = scalar_lea.hbm %s18125_s18, 4096 }
 0x9ea   : > { %p14667_p12 = scmp.ne.s32.totalorder %s17883_s13, %s14666_s5  ;;  %p14671_p13 = scmp.lt.u32.totalorder %s17883_s13, %s18125_s18 }
 0x9eb   : > { %p14672_p9 = scmp.lt.u32.totalorder %s14670_s3, %s14666_s5  ;;  %p14674_p3 = scmp.lt.u32.totalorder %s14666_s5, %s17883_s13 }
 0x9ec   : > { %p14668_p6 = pnand %p14667_p12, %p18126_p11 }
 0x9ed   : > { %p14673_p0 = por %p14672_p9, %p14671_p13 }
 0x9ee   : > { %p14669_p8 = pneg %p14668_p6 }
 0x9ef   : > { %p14675_p4 = por %p14674_p3, %p14673_p0 }
 0x9f1   : > { %p14676_p10 = pnand %p14675_p4, %p14669_p8 }
 0x9f3   : > { %14679 = shalt.err (!%p14676_p10)
}
 0x9f4   : > { %s14807_s17 = smov 64   ;;  %s14808_s20 = smov 4  }
 0x9f5   : > { %13886 = dma.vmem_to_hbm [thread:$0]  (%p18126_p11), %s17885_s10, 1024, %s17883_s13, %s17891_s16, %s14807_s17, %s14807_s17, %s14808_s20  }
 0x9f6 PF: > { %s18127_s24 = sld [smem:[#allocation26_spill]]  ;;  %p13938_p7 = scmp.ge.s32.totalorder %s14790_s0, 2 }
 0x9f7   : > { %p18128_p1 = scmp.ne.s32.totalorder %s18032_s8, 0 }
 0x9f9   : > { %p13918_p5 = pnand %p13938_p7, %p18128_p1 }
 0x9fc   : > { %s10444_s6 = sand.u32 1, %s18127_s24  }
 0x9fd   : > { %s10445_s5 = scalar_lea.sflag [#allocation6], %s10444_s6 }
 0x9fe   : > { %14745 = dma.done.wait (!%p13918_p5), %s10445_s5, 1024  }
 0x9ff   : > { %14747 = vsyncadd (!%p13918_p5), %s10445_s5, 4294966272  ;;  %s36_s0 = sadd.s32 1, %s14790_s0   ;;  %s18129_s28 = sld [smem:[#allocation27_spill]] }
 0xa00   : > { %p33_p2 = scmp.ge.s32.totalorder %s36_s0, 6   ;;  %s18130_s2 = sld [smem:[#allocation28_spill]] }
 0xa01   : > { %s18131_s10 = smov %s15199_s21  ;;  %s18132_s13 = smov %s18148_s22 }
 0xa02   : > { %s18135_s23 = smov %s18150_s27  ;;  %s18136_s24 = smov %s14766_s25 }
 0xa03   : > { %s18137_s25 = smov %s14770_s26  ;;  %s18138_s26 = smov %s18131_s10 }
 0xa04   : > { %s18139_s27 = smov %s14782_s29  ;;  %s18141_s29 = smov %s18144_s7 }
 0xa05   : > { %s18133_s21 = smov %s18129_s28  ;;  %s18140_s28 = smov %s14786_s30 }
 0xa06   : > { %s18134_s22 = smov %s18130_s2  ;;  %s18142_s30 = smov %s18132_s13 }
 0xa07   :  { %35 = sbr.rel (!%p33_p2) target bundleno = 26 (0x1a), region = 197 }
 0xa0e   :  { %10450 = vsyncpa [#allocation5], 1 }
 0xa0f   :  { %10452 = vsyncpa [#allocation5 + $0x1], 1 }
 0xa10   :  { %10453 = vsyncpa [#allocation8], 1 }
 0xa11   :  { %10454 = vsyncpa [#allocation11], 1 }
 0xa12   :  { %10455 = vsyncpa [#allocation14], 1 }
 0xa13   :  { %10456 = vsyncpa [#allocation17], 1 }
 0xa14   :  { %10457 = vsyncpa [#allocation6], 1 }
 0xa15   :  { %10459 = vsyncpa [#allocation6 + $0x1], 1 }

</bundles_post_ra>
